<compile_context>
chip_gen: v6e
topology: v6e:2x2x1
jax: 0.10.0
libtpu: 0.0.40
codegen_flags: <defaults>
</compile_context>

<pallas_src>
import jax
import jax.numpy as jnp
from jax import lax
from jax.experimental import pallas as pl
from jax.experimental.pallas import tpu as pltpu

# cfg['model_params'] equivalents (small, lane-friendly)
FEA_DIM = 128     # fea_dim
MEM_DIM = 32      # mem_dim
MAX_TILE_N = 2048  # rows of flattened (B*H*W) per grid step


def _choose_tile(n, max_tile=MAX_TILE_N):
    """Largest power-of-two tile <= max_tile dividing n; prefer an even grid
    (v7x megacore), otherwise any grid >= 2 (pipeline overlap)."""
    cands = [t for t in (2048, 1024, 512, 256, 128, 64, 32, 16, 8) if t <= max_tile]
    for t in cands:
        if n % t == 0 and (n // t) >= 2 and (n // t) % 2 == 0:
            return t
    for t in cands:
        if n % t == 0 and (n // t) >= 2:
            return t
    return n  # tiny problem: single tile


def mem_read_kernel(q_ref, memT_ref, wq_ref, dv_ref, b_ref, qn_ref, dec_ref):
    """One tile of flattened spatial positions.

    q_ref:    (T, C)       un-normalized NHWC features (channels last)
    memT_ref: (C, 2M)      [real_mem ; fake_mem]^T  (pre-transposed)
    wq_ref:   (1, C)       dec_w[:C] + dec_w[2C:3C]            (hits qn twice)
    dv_ref:   (1, 2M)      decoder folded through block-diag read:
                           [real_mem @ dec_w[C:2C] ; fake_mem @ dec_w[3C:]]
    b_ref:    (1,) SMEM    decoder bias
    qn_ref:   (T, C)       L2-normalized query (== featr/featf in eval mode)
    dec_ref:  (1, 1, T)    fused surrogate-decoder output (lane-dense row)
    """
    m = memT_ref.shape[1] // 2

    q = q_ref[...].astype(jnp.float32)
    # F.normalize(feat, dim=channel): x / clamp_min(||x||, 1e-12)
    sumsq = jnp.sum(q * q, axis=-1, keepdims=True)
    qn = q * lax.rsqrt(jnp.maximum(sumsq, 1e-24))
    qn_ref[...] = qn.astype(qn_ref.dtype)

    # get_score for BOTH banks in one MXU pass: (T, C) @ (C, 2M)
    s = jnp.dot(qn, memT_ref[...].astype(jnp.float32),
                preferred_element_type=jnp.float32)                 # (T, 2M)

    # per-bank softmax over memory slots, shared max across both banks
    # (shared max >= each bank's max; the common factor cancels per bank)
    lane = lax.broadcasted_iota(jnp.int32, s.shape, 1)
    is_r = lane < m
    mx = jnp.max(s, axis=-1, keepdims=True)
    e = jnp.exp(s - mx)
    sum_r = jnp.sum(jnp.where(is_r, e, 0.0), axis=-1, keepdims=True)
    sum_f = jnp.sum(jnp.where(is_r, 0.0, e), axis=-1, keepdims=True)
    p = e * jnp.where(is_r,
                      pl.reciprocal(sum_r, approx=True),
                      pl.reciprocal(sum_f, approx=True))             # (T, 2M)

    # fused surrogate decoder, folded through the block-diagonal read:
    #   dec = qn @ wq^T + p @ dv^T  + b     emitted as a lane-dense (1, T) row
    dec = (lax.dot_general(wq_ref[...], qn, (((1,), (1,)), ((), ())),
                           preferred_element_type=jnp.float32)
           + lax.dot_general(dv_ref[...], p, (((1,), (1,)), ((), ())),
                             preferred_element_type=jnp.float32))    # (1, T)
    dec_ref[0] = (dec + b_ref[0]).astype(dec_ref.dtype)


def mem_attention_decode(q_flat, memT, wq, dv, dec_b):
    N, C = q_flat.shape
    M2 = memT.shape[1]
    tile = _choose_tile(N)
    assert N % tile == 0
    grid = (N // tile,)
    return pl.pallas_call(
        mem_read_kernel,
        out_shape=(
            jax.ShapeDtypeStruct((N, C), jnp.float32),              # normalized query
            jax.ShapeDtypeStruct((N // tile, 1, tile), jnp.float32),  # decoder rows
        ),
        grid_spec=pltpu.PrefetchScalarGridSpec(
            num_scalar_prefetch=0,
            grid=grid,
            in_specs=[
                pl.BlockSpec((tile, C), lambda i: (i, 0)),
                pl.BlockSpec((C, M2), lambda i: (0, 0)),
                pl.BlockSpec((1, C), lambda i: (0, 0)),
                pl.BlockSpec((1, M2), lambda i: (0, 0)),
                pl.BlockSpec(memory_space=pltpu.MemorySpace.SMEM),
            ],
            out_specs=[
                pl.BlockSpec((tile, C), lambda i: (i, 0)),
                pl.BlockSpec((1, 1, tile), lambda i: (i, 0, 0)),
            ],
        ),
        compiler_params=pltpu.CompilerParams(dimension_semantics=("parallel",)),
    )(q_flat, memT, wq, dv, dec_b)


def init_params(key):
    k1, k2, k3, k4 = jax.random.split(key, 4)
    # xavier_uniform_ for real_mem / fake_mem: U(-a, a), a = sqrt(6/(M+C))
    a = (6.0 / (MEM_DIM + FEA_DIM)) ** 0.5
    params = {
        "real_mem": jax.random.uniform(k1, (MEM_DIM, FEA_DIM), jnp.float32, -a, a),
        "fake_mem": jax.random.uniform(k2, (MEM_DIM, FEA_DIM), jnp.float32, -a, a),
        # surrogate weights for external modules (see TODOs below)
        "stem_w": 0.05 * jax.random.normal(k3, (3, FEA_DIM), jnp.float32),
        "stem_b": jnp.zeros((FEA_DIM,), jnp.float32),
        "dec_w": 0.05 * jax.random.normal(k4, (4 * FEA_DIM, 1), jnp.float32),
        "dec_b": jnp.zeros((1,), jnp.float32),
    }
    return params


@jax.jit
def memnet_forward(params, inp):
    """Eval-mode MemNet.forward(inp, tar=None) -> (out, featr, memr, featf, memf)."""
    B, Cin, Hin, Win = inp.shape
    # TODO(synk): timm encoder, setup_srm_layer + SRM encoder branch, ASPP and
    # Deconv are external modules whose architectures are not defined in this
    # file; a deterministic 2x2 avg-pool + 1x1 conv surrogate produces
    # `feat` of shape (B, H, W, fea_dim) in their place (emitted directly in
    # NHWC so no transpose precedes the kernel).
    x = inp.reshape(B, Cin, Hin // 2, 2, Win // 2, 2).mean(axis=(3, 5))
    feat = jnp.einsum("bchw,cd->bhwd", x, params["stem_w"]) + params["stem_b"]
    feat = jax.nn.relu(feat)                                   # (B, H, W, C)

    Bf, H, W, C = feat.shape
    q_flat = feat.reshape(B * H * W, C)

    # stacked, pre-transposed memory bank + decoder weights folded through the
    # block-diagonal read (valid because the surrogate decoder is linear)
    dec_w = params["dec_w"]                                                  # (4C, 1)
    memT = jnp.concatenate([params["real_mem"], params["fake_mem"]], 0).T    # (C, 2M)
    wq = (dec_w[:C, 0] + dec_w[2 * C:3 * C, 0])[None, :]                     # (1, C)
    dv = jnp.concatenate([params["real_mem"] @ dec_w[C:2 * C, 0],
                          params["fake_mem"] @ dec_w[3 * C:, 0]])[None, :]   # (1, 2M)

    # --- Pallas kernel: memory-attention read (real + fake) + fused decoder ---
    qn, dec = mem_attention_decode(q_flat, memT, wq, dv, params["dec_b"])

    # mem_attention eval path returns (updated_query, normalized NHWC feat, mem)
    featr = qn.reshape(B, H, W, C)
    featf = featr                     # eval path feeds identical normalized feat
    memr = params["real_mem"]
    memf = params["fake_mem"]

    # TODO(synk): cosin_sim() references undefined self.theta1/self.theta2 (and
    # calls pdb.set_trace); its results (fake_sim/real_sim) are not returned by
    # forward, so it is skipped.

    # TODO(synk): Decoder() is an external module with unknown architecture; a
    # deterministic 1x1-conv surrogate stands in for it and is fused (folded)
    # into the Pallas kernel above.  dec already includes the bias.
    out = dec.reshape(B, H, W)[:, None, :, :]                  # (B, 1, H, W)

    return out, featr, memr, featf, memf


if __name__ == "__main__":
    key = jax.random.PRNGKey(0)
    pkey, ikey = jax.random.split(key)
    params = init_params(pkey)
    inp = jax.random.normal(ikey, (2, 3, 64, 64), jnp.float32)  # NCHW images

    out, featr, memr, featf, memf = memnet_forward(params, inp)
    jax.block_until_ready((out, featr, memr, featf, memf))

    assert out.shape == (2, 1, 32, 32)
    assert featr.shape == (2, 32, 32, FEA_DIM)
    assert memr.shape == (MEM_DIM, FEA_DIM)
    print("KERNEL_OK")
</pallas_src>

<mosaic_0001>
module attributes {stable_mosaic.version = 11 : i64} {
  func.func @mem_read_kernel(%arg0: i32, %arg1: memref<1024x128xf32, #tpu.memory_space<vmem>>, %arg2: memref<128x64xf32, #tpu.memory_space<vmem>>, %arg3: memref<1x128xf32, #tpu.memory_space<vmem>>, %arg4: memref<1x64xf32, #tpu.memory_space<vmem>>, %arg5: memref<1xf32, #tpu.memory_space<smem>>, %arg6: memref<1024x128xf32, #tpu.memory_space<vmem>>, %arg7: memref<1x1x1024xf32, #tpu.memory_space<vmem>>) attributes {dimension_semantics = [#tpu.dimension_semantics<parallel>], iteration_bounds = array<i64: 2>, scalar_prefetch = 0 : i64, scratch_operands = 0 : i64, tpu.core_type = #tpu.core_type<tc>, window_params = [{transform_indices = @transform_0, window_bounds = array<i64: 1024, 128>}, {pipeline_mode = #tpu.pipeline_mode<synchronous>, transform_indices = @transform_1, window_bounds = array<i64: 128, 64>}, {pipeline_mode = #tpu.pipeline_mode<synchronous>, transform_indices = @transform_2, window_bounds = array<i64: 1, 128>}, {pipeline_mode = #tpu.pipeline_mode<synchronous>, transform_indices = @transform_3, window_bounds = array<i64: 1, 64>}, {transform_indices = @transform_4, window_bounds = array<i64: 1>}, {transform_indices = @transform_5, window_bounds = array<i64: 1024, 128>}, {transform_indices = @transform_6, window_bounds = array<i64: 1, 1, 1024>}]} {
    %c0 = arith.constant 0 : index
    %c0_0 = arith.constant 0 : index
    %0 = vector.load %arg1[%c0, %c0_0] : memref<1024x128xf32, #tpu.memory_space<vmem>>, vector<1024x128xf32>
    %1 = arith.mulf %0, %0 : vector<1024x128xf32>
    %cst = arith.constant dense<0.000000e+00> : vector<1024xf32>
    %2 = vector.multi_reduction <add>, %1, %cst [1] : vector<1024x128xf32> to vector<1024xf32>
    %3 = vector.shape_cast %2 : vector<1024xf32> to vector<1024x1xf32>
    %cst_1 = arith.constant 1.000000e-24 : f32
    %4 = vector.broadcast %cst_1 : f32 to vector<1024x1xf32>
    %5 = arith.maximumf %3, %4 : vector<1024x1xf32>
    %6 = math.rsqrt %5 : vector<1024x1xf32>
    %7 = vector.broadcast %6 : vector<1024x1xf32> to vector<1024x128xf32>
    %8 = arith.mulf %0, %7 : vector<1024x128xf32>
    %c0_2 = arith.constant 0 : index
    %c0_3 = arith.constant 0 : index
    %9 = vector.load %arg6[%c0_2, %c0_3] : memref<1024x128xf32, #tpu.memory_space<vmem>>, vector<1024x128xf32>
    tpu.vector_store %arg6[%c0_2, %c0_3], %8 {strides = array<i32>} : memref<1024x128xf32, #tpu.memory_space<vmem>>, vector<1024x128xf32>,
    %c0_4 = arith.constant 0 : index
    %c0_5 = arith.constant 0 : index
    %10 = vector.load %arg2[%c0_4, %c0_5] : memref<128x64xf32, #tpu.memory_space<vmem>>, vector<128x64xf32>
    %cst_6 = arith.constant dense<0.000000e+00> : vector<1024x64xf32>
    %11 = tpu.matmul %8, %10, %cst_6 {dimension_numbers = #tpu.dot_dimension_numbers<[1], [0], [0], [1], [0, 0, 1, 1], [], []>} : vector<1024x128xf32>, vector<128x64xf32>, vector<1024x64xf32> -> vector<1024x64xf32>
    %12 = tpu.iota {dimensions = array<i32: 1>} : vector<1024x64xi32>
    %c32_i32 = arith.constant 32 : i32
    %13 = vector.broadcast %c32_i32 : i32 to vector<1024x64xi32>
    %14 = arith.cmpi slt, %12, %13 : vector<1024x64xi32>
    %cst_7 = arith.constant dense<0xFF800000> : vector<1024xf32>
    %15 = vector.multi_reduction <maximumf>, %11, %cst_7 [1] : vector<1024x64xf32> to vector<1024xf32>
    %16 = vector.shape_cast %15 : vector<1024xf32> to vector<1024x1xf32>
    %17 = vector.broadcast %16 : vector<1024x1xf32> to vector<1024x64xf32>
    %18 = arith.subf %11, %17 : vector<1024x64xf32>
    %19 = math.exp %18 : vector<1024x64xf32>
    %cst_8 = arith.constant 0.000000e+00 : f32
    %20 = vector.broadcast %cst_8 : f32 to vector<1024x64xf32>
    %21 = arith.select %14, %19, %20 : vector<1024x64xi1>, vector<1024x64xf32>
    %cst_9 = arith.constant dense<0.000000e+00> : vector<1024xf32>
    %22 = vector.multi_reduction <add>, %21, %cst_9 [1] : vector<1024x64xf32> to vector<1024xf32>
    %23 = vector.shape_cast %22 : vector<1024xf32> to vector<1024x1xf32>
    %cst_10 = arith.constant 0.000000e+00 : f32
    %24 = vector.broadcast %cst_10 : f32 to vector<1024x64xf32>
    %25 = arith.select %14, %24, %19 : vector<1024x64xi1>, vector<1024x64xf32>
    %cst_11 = arith.constant dense<0.000000e+00> : vector<1024xf32>
    %26 = vector.multi_reduction <add>, %25, %cst_11 [1] : vector<1024x64xf32> to vector<1024xf32>
    %27 = vector.shape_cast %26 : vector<1024xf32> to vector<1024x1xf32>
    %28 = tpu.reciprocal %23 {approx = true} : vector<1024x1xf32> -> vector<1024x1xf32>
    %29 = tpu.reciprocal %27 {approx = true} : vector<1024x1xf32> -> vector<1024x1xf32>
    %30 = vector.shape_cast %28 : vector<1024x1xf32> to vector<1024x1xf32>
    %31 = vector.broadcast %30 : vector<1024x1xf32> to vector<1024x64xf32>
    %32 = vector.shape_cast %29 : vector<1024x1xf32> to vector<1024x1xf32>
    %33 = vector.broadcast %32 : vector<1024x1xf32> to vector<1024x64xf32>
    %34 = arith.select %14, %31, %33 : vector<1024x64xi1>, vector<1024x64xf32>
    %35 = arith.mulf %19, %34 : vector<1024x64xf32>
    %c0_12 = arith.constant 0 : index
    %c0_13 = arith.constant 0 : index
    %36 = vector.load %arg3[%c0_12, %c0_13] : memref<1x128xf32, #tpu.memory_space<vmem>>, vector<1x128xf32>
    %cst_14 = arith.constant dense<0.000000e+00> : vector<1x1024xf32>
    %37 = tpu.matmul %36, %8, %cst_14 {dimension_numbers = #tpu.dot_dimension_numbers<[1], [1], [0], [0], [0, 0, 1, 0], [], []>} : vector<1x128xf32>, vector<1024x128xf32>, vector<1x1024xf32> -> vector<1x1024xf32>
    %c0_15 = arith.constant 0 : index
    %c0_16 = arith.constant 0 : index
    %38 = vector.load %arg4[%c0_15, %c0_16] : memref<1x64xf32, #tpu.memory_space<vmem>>, vector<1x64xf32>
    %cst_17 = arith.constant dense<0.000000e+00> : vector<1x1024xf32>
    %39 = tpu.matmul %38, %35, %cst_17 {dimension_numbers = #tpu.dot_dimension_numbers<[1], [1], [0], [0], [0, 0, 1, 0], [], []>} : vector<1x64xf32>, vector<1024x64xf32>, vector<1x1024xf32> -> vector<1x1024xf32>
    %40 = arith.addf %37, %39 : vector<1x1024xf32>
    %c0_18 = arith.constant 0 : index
    %41 = memref.load %arg5[%c0_18] : memref<1xf32, #tpu.memory_space<smem>>
    %42 = vector.broadcast %41 : f32 to vector<1x1024xf32>
    %43 = arith.addf %40, %42 : vector<1x1024xf32>
    %c0_19 = arith.constant 0 : index
    %c0_20 = arith.constant 0 : index
    %c0_21 = arith.constant 0 : index
    %44 = vector.load %arg7[%c0_19, %c0_20, %c0_21] : memref<1x1x1024xf32, #tpu.memory_space<vmem>>, vector<1x1x1024xf32>
    %45 = vector.shape_cast %44 : vector<1x1x1024xf32> to vector<1x1024xf32>
    %46 = vector.shape_cast %43 : vector<1x1024xf32> to vector<1x1x1024xf32>
    tpu.vector_store %arg7[%c0_19, %c0_20, %c0_21], %46 {strides = array<i32>} : memref<1x1x1024xf32, #tpu.memory_space<vmem>>, vector<1x1x1024xf32>,
    return
  }
  func.func @transform_0(%arg0: i32) -> (i32, i32) {
    %c0_i32 = arith.constant 0 : i32
    %c0_i32_0 = arith.constant 0 : i32
    return %arg0, %c0_i32 : i32, i32
  }
  func.func @transform_1(%arg0: i32) -> (i32, i32) {
    %c0_i32 = arith.constant 0 : i32
    %c0_i32_0 = arith.constant 0 : i32
    %c0_i32_1 = arith.constant 0 : i32
    return %c0_i32, %c0_i32_0 : i32, i32
  }
  func.func @transform_2(%arg0: i32) -> (i32, i32) {
    %c0_i32 = arith.constant 0 : i32
    %c0_i32_0 = arith.constant 0 : i32
    %c0_i32_1 = arith.constant 0 : i32
    return %c0_i32, %c0_i32_0 : i32, i32
  }
  func.func @transform_3(%arg0: i32) -> (i32, i32) {
    %c0_i32 = arith.constant 0 : i32
    %c0_i32_0 = arith.constant 0 : i32
    %c0_i32_1 = arith.constant 0 : i32
    return %c0_i32, %c0_i32_0 : i32, i32
  }
  func.func @transform_4(%arg0: i32) -> i32 {
    %c0_i32 = arith.constant 0 : i32
    %c0_i32_0 = arith.constant 0 : i32
    return %c0_i32 : i32
  }
  func.func @transform_5(%arg0: i32) -> (i32, i32) {
    %c0_i32 = arith.constant 0 : i32
    %c0_i32_0 = arith.constant 0 : i32
    return %arg0, %c0_i32 : i32, i32
  }
  func.func @transform_6(%arg0: i32) -> (i32, i32, i32) {
    %c0_i32 = arith.constant 0 : i32
    %c0_i32_0 = arith.constant 0 : i32
    %c0_i32_1 = arith.constant 0 : i32
    return %arg0, %c0_i32, %c0_i32_0 : i32, i32, i32
  }
}

</mosaic_0001>

<bundles_post_ra>
// kernel: memnet_forward.1
= control target key start
LH: loop header
LB: loop body
LE: loop exit
PB: predicated region body
PF: predicated region fallthrough
CT: control target
= control target key end

     0   :  { %s7470_s23 = smov 0   ;;  %s11666_s0 = inlined_call_operand.vmem [shape: f32[2048,128], index: 0, kind: input, shape index: {}]   ;;  %s11667_s1 = inlined_call_operand.vmem [shape: f32[128,64], index: 1, kind: input, shape index: {}]   ;;  %s11668_s2 = inlined_call_operand.vmem [shape: f32[1,128], index: 2, kind: input, shape index: {}]   ;;  %s11669_s3 = inlined_call_operand.vmem [shape: f32[1,64], index: 3, kind: input, shape index: {}]   ;;  %s11670_s4 = inlined_call_operand.<no memory space> [shape: f32[1], index: 4, kind: input, shape index: {}]   ;;  %s11671_s5 = inlined_call_operand.vmem [shape: f32[2048,128], index: 5, kind: output, shape index: {0}]   ;;  %s11672_s6 = inlined_call_operand.vmem [shape: f32[2,1,1024], index: 6, kind: output, shape index: {1}]  }
   0x1   :  { %12 = sst [smem:[#allocation2]] %s11670_s4 }
   0x2 LB: > { %s7476_s24 = sadd.s32 4294967295, %s7429_s23   ;;  %p5437_p0 = scmp.ge.s32.totalorder %s7429_s23, 1  ;;  %s7429_s23 = sphi %s7470_s23, %s18_s23  }
   0x3   : > { %p217_p1 = scmp.lt.s32.totalorder %s7429_s23, 3 }
   0x5   : > { %p218_p2 = pnand %p5437_p0, %p217_p1 }
   0x7   : > { %221 = sbr.rel (%p218_p2) target bundleno = 1671 (0x687), region = 40 }
   0xc   : > { %s5438_s25 = sshll.u32 %s7476_s24, 7  ;;  %v1306_v0 = vld [vmem:[%s11667_s1 + $0x78] sm:$0xff]  ;;  %v1305_v1 = vld [vmem:[%s11667_s1 + $0x70] sm:$0xff]  ;;  %v1304_v28 = vld [vmem:[%s11667_s1 + $0x68] sm:$0xff]  ;;  %vm2015_vm0 = vcmask 523264   ;;  %s5277_s7 = sld [smem:[#allocation2]] }
   0xd   : > { %p252_p3 = scmp.lt.s32.totalorder %s5438_s25, 255  ;;  %5993 = vmatprep.subr.mxu0 %v1306_v0  ;;  %v1303_v29 = vld [vmem:[%s11667_s1 + $0x60] sm:$0xff]  ;;  %v1302_v34 = vld [vmem:[%s11667_s1 + $0x58] sm:$0xff]  ;;  %v1301_v37 = vld [vmem:[%s11667_s1 + $0x50] sm:$0xff]  ;;  %p263_p4 = scmp.lt.s32.totalorder %s7476_s24, 1 }
   0xe   : > { %5994 = vmatpush3.msra.mxu0 %v1306_v0  ;;  %v1300_v40 = vld [vmem:[%s11667_s1 + $0x48] sm:$0xff]  ;;  %v1299_v45 = vld [vmem:[%s11667_s1 + $0x40] sm:$0xff]  ;;  %v1298_v48 = vld [vmem:[%s11667_s1 + $0x38] sm:$0xff] }
   0xf   : > { %s12245_s25 = smov (!%p252_p3, %s5438_s25), 255  ;;  %5995 = vmatprep.subr.mxu0 %v1305_v1  ;;  %v1297_v51 = vld [vmem:[%s11667_s1 + $0x30] sm:$0xff]  ;;  %v1296_v56 = vld [vmem:[%s11667_s1 + $0x28] sm:$0xff]  ;;  %v1295_v59 = vld [vmem:[%s11667_s1 + $0x20] sm:$0xff]  ;;  %s12247_s24 = smov (!%p263_p4, %s7476_s24), 1 }
  0x10   : > { %s5439_s4 = sshll.u32 %s12245_s25, 3  ;;  %5996 = vmatpush3.msra.mxu0 %v1305_v1  ;;  %v1294_v62 = vld [vmem:[%s11667_s1 + $0x18] sm:$0xff]  ;;  %s5442_s8 = sshll.u32 %s12247_s24, 3 }
  0x11   : > { %s7489_s28 = scalar_lea.vmem %s11666_s0, %s5439_s4  ;;  %5997 = vmatprep.subr.mxu0 %v1304_v28  ;;  %s7762_s19 = scalar_lea.vmem %s11671_s5, %s5439_s4 }
  0x12   : > { %v7498_v2 = vld [vmem:[%s7489_s28 + $0x10] sm:$0xff]  ;;  %v7501_v3 = vld [vmem:[%s7489_s28] sm:$0xff]  ;;  %v7504_v4 = vld [vmem:[%s7489_s28 + $0x18] sm:$0xff]  ;;  %5998 = vmatpush3.msra.mxu0 %v1304_v28  ;;  %s266_s11 = scalar_lea.vmem %s11672_s6, %s5442_s8 }
  0x13   : > { %v397_v5 = vmul.f32 %v7498_v2, %v7498_v2  ;;  %v395_v6 = vmul.f32 %v7501_v3, %v7501_v3  ;;  %v7511_v7 = vld [vmem:[%s7489_s28 + $0x8] sm:$0xff]  ;;  %v398_v8 = vmul.f32 %v7504_v4, %v7504_v4  ;;  %v7521_v11 = vld [vmem:[%s7489_s28 + $0x20] sm:$0xff]  ;;  %v7528_v14 = vld [vmem:[%s7489_s28 + $0x38] sm:$0xff]  ;;  %5999 = vmatprep.subr.mxu0 %v1303_v29 }
  0x14   : > { %v396_v9 = vmul.f32 %v7511_v7, %v7511_v7  ;;  %v7518_v10 = vld [vmem:[%s7489_s28 + $0x28] sm:$0xff]  ;;  %v399_v13 = vmul.f32 %v7521_v11, %v7521_v11  ;;  %v7531_v15 = vld [vmem:[%s7489_s28 + $0x30] sm:$0xff]  ;;  %v402_v16 = vmul.f32 %v7528_v14, %v7528_v14  ;;  %v7541_v19 = vld [vmem:[%s7489_s28 + $0x40] sm:$0xff]  ;;  %6000 = vmatpush3.msra.mxu0 %v1303_v29 }
  0x15   : > { %527 = vadd.xlane.f32.xlu1 %v397_v5  ;;  %523 = vadd.xlane.f32.xlu0 %v395_v6  ;;  %v400_v12 = vmul.f32 %v7518_v10, %v7518_v10  ;;  %v401_v17 = vmul.f32 %v7531_v15, %v7531_v15  ;;  %v7538_v18 = vld [vmem:[%s7489_s28 + $0x48] sm:$0xff]  ;;  %v403_v21 = vmul.f32 %v7541_v19, %v7541_v19  ;;  %v7548_v22 = vld [vmem:[%s7489_s28 + $0x58] sm:$0xff]  ;;  %v7551_v23 = vld [vmem:[%s7489_s28 + $0x50] sm:$0xff] }
  0x16   : > { %v404_v20 = vmul.f32 %v7538_v18, %v7538_v18  ;;  %v406_v24 = vmul.f32 %v7548_v22, %v7548_v22  ;;  %v405_v25 = vmul.f32 %v7551_v23, %v7551_v23  ;;  %v7558_v26 = vld [vmem:[%s7489_s28 + $0x68] sm:$0xff]  ;;  %v7561_v27 = vld [vmem:[%s7489_s28 + $0x60] sm:$0xff]  ;;  %v7574_v32 = vld [vmem:[%s7489_s28 + $0x78] sm:$0xff]  ;;  %6001 = vmatprep.subr.mxu0 %v1302_v34 }
  0x17   : > { %v408_v30 = vmul.f32 %v7558_v26, %v7558_v26  ;;  %v407_v31 = vmul.f32 %v7561_v27, %v7561_v27  ;;  %v7577_v33 = vld [vmem:[%s7489_s28 + $0x70] sm:$0xff]  ;;  %v410_v35 = vmul.f32 %v7574_v32, %v7574_v32  ;;  %v7590_v38 = vld [vmem:[%s7489_s28 + $0x88] sm:$0xff]  ;;  %v7593_v39 = vld [vmem:[%s7489_s28 + $0x80] sm:$0xff]  ;;  %6002 = vmatpush3.msra.mxu0 %v1302_v34 }
  0x18   : > { %v409_v36 = vmul.f32 %v7577_v33, %v7577_v33  ;;  %6003 = vmatprep.subr.mxu0 %v1301_v37  ;;  %v412_v41 = vmul.f32 %v7590_v38, %v7590_v38  ;;  %v411_v42 = vmul.f32 %v7593_v39, %v7593_v39  ;;  %v7603_v43 = vld [vmem:[%s7489_s28 + $0x98] sm:$0xff]  ;;  %v7606_v44 = vld [vmem:[%s7489_s28 + $0x90] sm:$0xff]  ;;  %v7619_v49 = vld [vmem:[%s7489_s28 + $0xa8] sm:$0xff] }
  0x19   : > { %529 = vadd.xlane.f32.xlu1 %v398_v8  ;;  %525 = vadd.xlane.f32.xlu0 %v396_v9  ;;  %v414_v46 = vmul.f32 %v7603_v43, %v7603_v43  ;;  %v413_v47 = vmul.f32 %v7606_v44, %v7606_v44  ;;  %v7622_v50 = vld [vmem:[%s7489_s28 + $0xa0] sm:$0xff]  ;;  %v416_v52 = vmul.f32 %v7619_v49, %v7619_v49  ;;  %v7632_v54 = vld [vmem:[%s7489_s28 + $0xb8] sm:$0xff]  ;;  %v7635_v55 = vld [vmem:[%s7489_s28 + $0xb0] sm:$0xff] }
  0x1a   : > { %6004 = vmatpush3.msra.mxu0 %v1301_v37  ;;  %v415_v53 = vmul.f32 %v7622_v50, %v7622_v50  ;;  %v418_v57 = vmul.f32 %v7632_v54, %v7632_v54  ;;  %v417_v58 = vmul.f32 %v7635_v55, %v7635_v55  ;;  %v7648_v60 = vld [vmem:[%s7489_s28 + $0xc8] sm:$0xff]  ;;  %v7651_v61 = vld [vmem:[%s7489_s28 + $0xc0] sm:$0xff]  ;;  %v7661_v1 = vld [vmem:[%s7489_s28 + $0xd8] sm:$0xff] }
  0x1b   : > { %6005 = vmatprep.subr.mxu0 %v1300_v40  ;;  %v420_v63 = vmul.f32 %v7648_v60, %v7648_v60  ;;  %v419_v0 = vmul.f32 %v7651_v61, %v7651_v61  ;;  %v7664_v5 = vld [vmem:[%s7489_s28 + $0xd0] sm:$0xff]  ;;  %v422_v8 = vmul.f32 %v7661_v1, %v7661_v1  ;;  %v302_v37 = vld [vmem:[%s7489_s28 + $0x118] sm:$0xff] }
  0x1c   : > { %6006 = vmatpush3.msra.mxu0 %v1300_v40  ;;  %v1293_v6 = vld [vmem:[%s11667_s1 + $0x10] sm:$0xff]  ;;  %v421_v9 = vmul.f32 %v7664_v5, %v7664_v5 }
  0x1d   : > { %533 = vadd.xlane.f32.xlu1 %v400_v12  ;;  %531 = vadd.xlane.f32.xlu0 %v399_v13  ;;  %v1292_v12 = vld [vmem:[%s11667_s1 + $0x8] sm:$0xff] }
  0x1e   : > { %6007 = vmatprep.subr.mxu0 %v1299_v45  ;;  %v7677_v13 = vld [vmem:[%s7489_s28 + $0xe8] sm:$0xff] }
  0x1f   : > { %6008 = vmatpush3.msra.mxu0 %v1299_v45  ;;  %v304_v45 = vld [vmem:[%s7489_s28 + $0x128] sm:$0xff] }
  0x20   : > { %6009 = vmatprep.subr.mxu0 %v1298_v48 }
  0x21   : > { %537 = vadd.xlane.f32.xlu1 %v402_v16  ;;  %535 = vadd.xlane.f32.xlu0 %v401_v17  ;;  %v7680_v16 = vld [vmem:[%s7489_s28 + $0xe0] sm:$0xff] }
  0x22   : > { %6010 = vmatpush3.msra.mxu0 %v1298_v48  ;;  %v1291_v17 = vld [vmem:[%s11667_s1] sm:$0xff]  ;;  %v305_v48 = vld [vmem:[%s7489_s28 + $0x130] sm:$0xff] }
  0x23   : > { %6011 = vmatprep.subr.mxu0 %v1297_v51 }
  0x24   : > { %6012 = vmatpush3.msra.mxu0 %v1297_v51  ;;  %v306_v51 = vld [vmem:[%s7489_s28 + $0x138] sm:$0xff] }
  0x25   : > { %541 = vadd.xlane.f32.xlu1 %v404_v20  ;;  %539 = vadd.xlane.f32.xlu0 %v403_v21  ;;  %v424_v20 = vmul.f32 %v7677_v13, %v7677_v13  ;;  %v423_v21 = vmul.f32 %v7680_v16, %v7680_v16 }
  0x26   : > { %6013 = vmatprep.subr.mxu0 %v1296_v56 }
  0x27   : > { %6014 = vmatpush3.msra.mxu0 %v1296_v56  ;;  %v307_v56 = vld [vmem:[%s7489_s28 + $0x140] sm:$0xff] }
  0x28   : > { %6015 = vmatprep.subr.mxu0 %v1295_v59 }
  0x29   : > { %545 = vadd.xlane.f32.xlu1 %v406_v24  ;;  %543 = vadd.xlane.f32.xlu0 %v405_v25  ;;  %v7690_v24 = vld [vmem:[%s7489_s28 + $0xf8] sm:$0xff]  ;;  %v7693_v25 = vld [vmem:[%s7489_s28 + $0xf0] sm:$0xff] }
  0x2a   : > { %6016 = vmatpush3.msra.mxu0 %v1295_v59  ;;  %v426_v28 = vmul.f32 %v7690_v24, %v7690_v24  ;;  %v425_v29 = vmul.f32 %v7693_v25, %v7693_v25 }
  0x2b   : > { %6017 = vmatprep.subr.mxu0 %v1294_v62 }
  0x2c   : > { %6018 = vmatpush3.msra.mxu0 %v1294_v62  ;;  %v309_v62 = vld [vmem:[%s7489_s28 + $0x150] sm:$0xff] }
  0x2d   : > { %549 = vadd.xlane.f32.xlu1 %v408_v30  ;;  %547 = vadd.xlane.f32.xlu0 %v407_v31  ;;  %v7700_v30 = vld [vmem:[%s7489_s28 + $0x100] sm:$0xff]  ;;  %v7703_v31 = vld [vmem:[%s7489_s28 + $0x108] sm:$0xff] }
  0x2e   : > { %6019 = vmatprep.subr.mxu0 %v1293_v6  ;;  %v427_v34 = vmul.f32 %v7700_v30, %v7700_v30 }
  0x2f   : > { %6020 = vmatpush3.msra.mxu0 %v1293_v6 }
  0x30   : > { %6021 = vmatprep.subr.mxu0 %v1292_v12 }
  0x31   : > { %553 = vadd.xlane.f32.xlu1 %v410_v35  ;;  %551 = vadd.xlane.f32.xlu0 %v409_v36  ;;  %v428_v35 = vmul.f32 %v7703_v31, %v7703_v31  ;;  %v301_v36 = vld [vmem:[%s7489_s28 + $0x110] sm:$0xff] }
  0x32   : > { %6022 = vmatpush3.msra.mxu0 %v1292_v12  ;;  %v429_v40 = vmul.f32 %v301_v36, %v301_v36 }
  0x33   : > { %6023 = vmatprep.subr.mxu0 %v1291_v17 }
  0x34   : > { %6024 = vmatpush3.msra.mxu0 %v1291_v17 }
  0x35   : > { %557 = vadd.xlane.f32.xlu1 %v412_v41  ;;  %555 = vadd.xlane.f32.xlu0 %v411_v42  ;;  %v430_v41 = vmul.f32 %v302_v37, %v302_v37  ;;  %v303_v42 = vld [vmem:[%s7489_s28 + $0x120] sm:$0xff] }
  0x39   : > { %561 = vadd.xlane.f32.xlu1 %v414_v46  ;;  %559 = vadd.xlane.f32.xlu0 %v413_v47  ;;  %v431_v46 = vmul.f32 %v303_v42, %v303_v42  ;;  %v432_v47 = vmul.f32 %v304_v45, %v304_v45 }
  0x3d   : > { %565 = vadd.xlane.f32.xlu1 %v416_v52  ;;  %563 = vadd.xlane.f32.xlu0 %v415_v53  ;;  %v433_v52 = vmul.f32 %v305_v48, %v305_v48  ;;  %v434_v53 = vmul.f32 %v306_v51, %v306_v51 }
  0x41   : > { %569 = vadd.xlane.f32.xlu1 %v418_v57  ;;  %567 = vadd.xlane.f32.xlu0 %v417_v58  ;;  %v308_v57 = vld [vmem:[%s7489_s28 + $0x148] sm:$0xff]  ;;  %v435_v58 = vmul.f32 %v307_v56, %v307_v56 }
  0x42   : > { %v436_v59 = vmul.f32 %v308_v57, %v308_v57 }
  0x45   : > { %573 = vadd.xlane.f32.xlu1 %v420_v63  ;;  %571 = vadd.xlane.f32.xlu0 %v419_v0  ;;  %v310_v63 = vld [vmem:[%s7489_s28 + $0x158] sm:$0xff]  ;;  %v437_v0 = vmul.f32 %v309_v62, %v309_v62 }
  0x46   : > { %v438_v6 = vmul.f32 %v310_v63, %v310_v63 }
  0x49   : > { %577 = vadd.xlane.f32.xlu1 %v422_v8  ;;  %575 = vadd.xlane.f32.xlu0 %v421_v9  ;;  %v311_v8 = vld [vmem:[%s7489_s28 + $0x160] sm:$0xff]  ;;  %v312_v9 = vld [vmem:[%s7489_s28 + $0x168] sm:$0xff] }
  0x4a   : > { %v439_v12 = vmul.f32 %v311_v8, %v311_v8  ;;  %v440_v17 = vmul.f32 %v312_v9, %v312_v9 }
  0x4d   : > { %581 = vadd.xlane.f32.xlu1 %v424_v20  ;;  %579 = vadd.xlane.f32.xlu0 %v423_v21  ;;  %v313_v20 = vld [vmem:[%s7489_s28 + $0x170] sm:$0xff]  ;;  %v314_v21 = vld [vmem:[%s7489_s28 + $0x178] sm:$0xff] }
  0x51   : > { %585 = vadd.xlane.f32.xlu1 %v426_v28  ;;  %583 = vadd.xlane.f32.xlu0 %v425_v29  ;;  %v441_v28 = vmul.f32 %v313_v20, %v313_v20  ;;  %v442_v29 = vmul.f32 %v314_v21, %v314_v21 }
  0x55   : > { %587 = vadd.xlane.f32.xlu0 %v427_v34  ;;  %589 = vadd.xlane.f32.xlu1 %v428_v35  ;;  %v315_v34 = vld [vmem:[%s7489_s28 + $0x180] sm:$0xff]  ;;  %v316_v35 = vld [vmem:[%s7489_s28 + $0x188] sm:$0xff] }
  0x56   : > { %v443_v36 = vmul.f32 %v315_v34, %v315_v34  ;;  %v444_v37 = vmul.f32 %v316_v35, %v316_v35 }
  0x59   : > { %591 = vadd.xlane.f32.xlu0 %v429_v40  ;;  %593 = vadd.xlane.f32.xlu1 %v430_v41  ;;  %v317_v40 = vld [vmem:[%s7489_s28 + $0x190] sm:$0xff]  ;;  %v318_v41 = vld [vmem:[%s7489_s28 + $0x198] sm:$0xff] }
  0x5a   : > { %v445_v42 = vmul.f32 %v317_v40, %v317_v40  ;;  %v446_v45 = vmul.f32 %v318_v41, %v318_v41 }
  0x5d   : > { %595 = vadd.xlane.f32.xlu0 %v431_v46  ;;  %597 = vadd.xlane.f32.xlu1 %v432_v47  ;;  %v319_v46 = vld [vmem:[%s7489_s28 + $0x1a0] sm:$0xff]  ;;  %v320_v47 = vld [vmem:[%s7489_s28 + $0x1a8] sm:$0xff] }
  0x5e   : > { %v447_v48 = vmul.f32 %v319_v46, %v319_v46  ;;  %v448_v51 = vmul.f32 %v320_v47, %v320_v47 }
  0x61   : > { %599 = vadd.xlane.f32.xlu0 %v433_v52  ;;  %601 = vadd.xlane.f32.xlu1 %v434_v53  ;;  %v321_v52 = vld [vmem:[%s7489_s28 + $0x1b0] sm:$0xff]  ;;  %v322_v53 = vld [vmem:[%s7489_s28 + $0x1b8] sm:$0xff] }
  0x62   : > { %v449_v56 = vmul.f32 %v321_v52, %v321_v52  ;;  %v450_v57 = vmul.f32 %v322_v53, %v322_v53 }
  0x65   : > { %603 = vadd.xlane.f32.xlu0 %v435_v58  ;;  %605 = vadd.xlane.f32.xlu1 %v436_v59  ;;  %v323_v58 = vld [vmem:[%s7489_s28 + $0x1c0] sm:$0xff]  ;;  %v324_v59 = vld [vmem:[%s7489_s28 + $0x1c8] sm:$0xff] }
  0x66   : > { %v451_v62 = vmul.f32 %v323_v58, %v323_v58  ;;  %v452_v63 = vmul.f32 %v324_v59, %v324_v59 }
  0x69   : > { %607 = vadd.xlane.f32.xlu0 %v437_v0  ;;  %609 = vadd.xlane.f32.xlu1 %v438_v6  ;;  %v325_v0 = vld [vmem:[%s7489_s28 + $0x1d0] sm:$0xff]  ;;  %v326_v6 = vld [vmem:[%s7489_s28 + $0x1d8] sm:$0xff] }
  0x6a   : > { %v453_v8 = vmul.f32 %v325_v0, %v325_v0  ;;  %v454_v9 = vmul.f32 %v326_v6, %v326_v6  ;;  %v339_v0 = vld [vmem:[%s7489_s28 + $0x240] sm:$0xff]  ;;  %v340_v6 = vld [vmem:[%s7489_s28 + $0x248] sm:$0xff] }
  0x6d   : > { %611 = vadd.xlane.f32.xlu0 %v439_v12  ;;  %613 = vadd.xlane.f32.xlu1 %v440_v17  ;;  %v327_v12 = vld [vmem:[%s7489_s28 + $0x1e0] sm:$0xff]  ;;  %v328_v17 = vld [vmem:[%s7489_s28 + $0x1e8] sm:$0xff] }
  0x6e   : > { %v455_v20 = vmul.f32 %v327_v12, %v327_v12  ;;  %v456_v21 = vmul.f32 %v328_v17, %v328_v17  ;;  %v467_v12 = vmul.f32 %v339_v0, %v339_v0  ;;  %v468_v17 = vmul.f32 %v340_v6, %v340_v6 }
  0x71   : > { %615 = vadd.xlane.f32.xlu0 %v441_v28  ;;  %617 = vadd.xlane.f32.xlu1 %v442_v29  ;;  %v329_v28 = vld [vmem:[%s7489_s28 + $0x1f0] sm:$0xff]  ;;  %v330_v29 = vld [vmem:[%s7489_s28 + $0x1f8] sm:$0xff] }
  0x72   : > { %v457_v34 = vmul.f32 %v329_v28, %v329_v28  ;;  %v458_v35 = vmul.f32 %v330_v29, %v330_v29  ;;  %v341_v28 = vld [vmem:[%s7489_s28 + $0x250] sm:$0xff]  ;;  %v342_v29 = vld [vmem:[%s7489_s28 + $0x258] sm:$0xff] }
  0x75   : > { %619 = vadd.xlane.f32.xlu0 %v443_v36  ;;  %621 = vadd.xlane.f32.xlu1 %v444_v37  ;;  %v331_v36 = vld [vmem:[%s7489_s28 + $0x200] sm:$0xff]  ;;  %v332_v37 = vld [vmem:[%s7489_s28 + $0x208] sm:$0xff] }
  0x76   : > { %v459_v40 = vmul.f32 %v331_v36, %v331_v36  ;;  %v460_v41 = vmul.f32 %v332_v37, %v332_v37  ;;  %v469_v36 = vmul.f32 %v341_v28, %v341_v28  ;;  %v470_v37 = vmul.f32 %v342_v29, %v342_v29 }
  0x79   : > { %623 = vadd.xlane.f32.xlu0 %v445_v42  ;;  %625 = vadd.xlane.f32.xlu1 %v446_v45  ;;  %v333_v42 = vld [vmem:[%s7489_s28 + $0x210] sm:$0xff]  ;;  %v334_v45 = vld [vmem:[%s7489_s28 + $0x218] sm:$0xff] }
  0x7a   : > { %v461_v46 = vmul.f32 %v333_v42, %v333_v42  ;;  %v462_v47 = vmul.f32 %v334_v45, %v334_v45  ;;  %v343_v42 = vld [vmem:[%s7489_s28 + $0x260] sm:$0xff]  ;;  %v344_v45 = vld [vmem:[%s7489_s28 + $0x268] sm:$0xff] }
  0x7d   : > { %627 = vadd.xlane.f32.xlu0 %v447_v48  ;;  %629 = vadd.xlane.f32.xlu1 %v448_v51  ;;  %v335_v48 = vld [vmem:[%s7489_s28 + $0x220] sm:$0xff]  ;;  %v336_v51 = vld [vmem:[%s7489_s28 + $0x228] sm:$0xff] }
  0x7e   : > { %v463_v52 = vmul.f32 %v335_v48, %v335_v48  ;;  %v464_v53 = vmul.f32 %v336_v51, %v336_v51  ;;  %v471_v48 = vmul.f32 %v343_v42, %v343_v42  ;;  %v472_v51 = vmul.f32 %v344_v45, %v344_v45  ;;  %v350_v42 = vld [vmem:[%s7489_s28 + $0x298] sm:$0xff] }
  0x81   : > { %631 = vadd.xlane.f32.xlu0 %v449_v56  ;;  %633 = vadd.xlane.f32.xlu1 %v450_v57  ;;  %v337_v56 = vld [vmem:[%s7489_s28 + $0x230] sm:$0xff]  ;;  %v338_v57 = vld [vmem:[%s7489_s28 + $0x238] sm:$0xff] }
  0x82   : > { %v465_v58 = vmul.f32 %v337_v56, %v337_v56  ;;  %v466_v59 = vmul.f32 %v338_v57, %v338_v57  ;;  %v345_v56 = vld [vmem:[%s7489_s28 + $0x270] sm:$0xff]  ;;  %v346_v57 = vld [vmem:[%s7489_s28 + $0x278] sm:$0xff] }
  0x85   : > { %635 = vadd.xlane.f32.xlu0 %v451_v62  ;;  %637 = vadd.xlane.f32.xlu1 %v452_v63 }
  0x89   : > { %639 = vadd.xlane.f32.xlu0 %v453_v8  ;;  %641 = vadd.xlane.f32.xlu1 %v454_v9 }
  0x8d   : > { %643 = vadd.xlane.f32.xlu0 %v455_v20  ;;  %645 = vadd.xlane.f32.xlu1 %v456_v21 }
  0x91   : > { %647 = vadd.xlane.f32.xlu0 %v457_v34  ;;  %649 = vadd.xlane.f32.xlu1 %v458_v35 }
  0x95   : > { %651 = vadd.xlane.f32.xlu0 %v459_v40  ;;  %653 = vadd.xlane.f32.xlu1 %v460_v41 }
  0x99   : > { %655 = vadd.xlane.f32.xlu0 %v461_v46  ;;  %657 = vadd.xlane.f32.xlu1 %v462_v47 }
  0x9d   : > { %659 = vadd.xlane.f32.xlu0 %v463_v52  ;;  %661 = vadd.xlane.f32.xlu1 %v464_v53 }
  0x9e   : > { %v528_v62 = vpop.xlane.xlu1 %527  ;;  %v524_v63 = vpop.xlane.xlu0 %523 }
  0x9f   : > { %v781_v8 = vmax.f32 %v528_v62, 1e-24  ;;  %v779_v9 = vmax.f32 %v524_v63, 1e-24  ;;  %v473_v62 = vmul.f32 %v345_v56, %v345_v56  ;;  %v474_v63 = vmul.f32 %v346_v57, %v346_v57  ;;  %v351_v57 = vld [vmem:[%s7489_s28 + $0x2a0] sm:$0xff] }
  0xa1   : > { %6226 = vrsqrt.f32 %v781_v8  ;;  %663 = vadd.xlane.f32.xlu0 %v465_v58  ;;  %665 = vadd.xlane.f32.xlu1 %v466_v59 }
  0xa2   : > { %6228 = vrsqrt.f32 %v779_v9  ;;  %v530_v20 = vpop.xlane.xlu1 %529  ;;  %v526_v21 = vpop.xlane.xlu0 %525  ;;  %v347_v9 = vld [vmem:[%s7489_s28 + $0x280] sm:$0xff] }
  0xa3   : > { %v782_v34 = vmax.f32 %v530_v20, 1e-24  ;;  %v780_v35 = vmax.f32 %v526_v21, 1e-24 }
  0xa5   : > { %6230 = vrsqrt.f32 %v782_v34  ;;  %667 = vadd.xlane.f32.xlu0 %v467_v12  ;;  %669 = vadd.xlane.f32.xlu1 %v468_v17  ;;  %v348_v12 = vld [vmem:[%s7489_s28 + $0x288] sm:$0xff]  ;;  %v475_v34 = vmul.f32 %v347_v9, %v347_v9 }
  0xa6   : > { %6232 = vrsqrt.f32 %v780_v35  ;;  %v534_v40 = vpop.xlane.xlu1 %533  ;;  %v532_v41 = vpop.xlane.xlu0 %531  ;;  %v476_v35 = vmul.f32 %v348_v12, %v348_v12 }
  0xa7   : > { %v784_v46 = vmax.f32 %v534_v40, 1e-24  ;;  %v783_v47 = vmax.f32 %v532_v41, 1e-24  ;;  %v349_v41 = vld [vmem:[%s7489_s28 + $0x290] sm:$0xff] }
  0xa9   : > { %6234 = vrsqrt.f32 %v784_v46  ;;  %671 = vadd.xlane.f32.xlu0 %v469_v36  ;;  %673 = vadd.xlane.f32.xlu1 %v470_v37 }
  0xaa   : > { %6236 = vrsqrt.f32 %v783_v47  ;;  %v538_v52 = vpop.xlane.xlu1 %537  ;;  %v536_v53 = vpop.xlane.xlu0 %535 }
  0xab   : > { %v786_v58 = vmax.f32 %v538_v52, 1e-24  ;;  %v785_v59 = vmax.f32 %v536_v53, 1e-24 }
  0xad   : > { %6238 = vrsqrt.f32 %v786_v58  ;;  %675 = vadd.xlane.f32.xlu0 %v471_v48  ;;  %677 = vadd.xlane.f32.xlu1 %v472_v51  ;;  %v477_v48 = vmul.f32 %v349_v41, %v349_v41  ;;  %v478_v51 = vmul.f32 %v350_v42, %v350_v42  ;;  %v352_v58 = vld [vmem:[%s7489_s28 + $0x2a8] sm:$0xff] }
  0xae   : > { %v6227_v0 = vpop.eup %6226  ;;  %6240 = vrsqrt.f32 %v785_v59  ;;  %v542_v6 = vpop.xlane.xlu1 %541  ;;  %v356_v41 = vld [vmem:[%s7489_s28 + $0x2c8] sm:$0xff] }
  0xaf   : > { %v540_v8 = vpop.xlane.xlu0 %539  ;;  %v6229_v17 = vpop.eup %6228  ;;  %v788_v20 = vmax.f32 %v542_v6, 1e-24  ;;  %v1037_v28 = vmul.f32 %v6227_v0, %v7498_v2  ;;  %v479_v0 = vmul.f32 %v351_v57, %v351_v57  ;;  %v480_v6 = vmul.f32 %v352_v58, %v352_v58 }
  0xb0   : > { %v787_v21 = vmax.f32 %v540_v8, 1e-24  ;;  %v1035_v29 = vmul.f32 %v6229_v17, %v7501_v3  ;;  %v354_v17 = vld [vmem:[%s7489_s28 + $0x2b8] sm:$0xff] }
  0xb1   : > { %6242 = vrsqrt.f32 %v788_v20  ;;  %679 = vadd.xlane.f32.xlu0 %v473_v62  ;;  %681 = vadd.xlane.f32.xlu1 %v474_v63  ;;  %1165 = vst [vmem:[%s7762_s19 + $0x10] sm:$0xff] %v1037_v28 }
  0xb2   : > { %v6231_v36 = vpop.eup %6230  ;;  %1163 = vst [vmem:[%s7762_s19] sm:$0xff] %v1035_v29  ;;  %6025 = vmatprep.mubr.f32.mxu0 %v1035_v29  ;;  %6244 = vrsqrt.f32 %v787_v21  ;;  %v546_v37 = vpop.xlane.xlu1 %545 }
  0xb3   : > { %v544_v40 = vpop.xlane.xlu0 %543  ;;  %v6233_v45 = vpop.eup %6232  ;;  %v790_v2 = vmax.f32 %v546_v37, 1e-24  ;;  %v1038_v46 = vmul.f32 %v6231_v36, %v7504_v4 }
  0xb4   : > { %v789_v3 = vmax.f32 %v544_v40, 1e-24  ;;  %v1036_v47 = vmul.f32 %v6233_v45, %v7511_v7  ;;  %v355_v40 = vld [vmem:[%s7489_s28 + $0x2c0] sm:$0xff] }
  0xb5   : > { %6246 = vrsqrt.f32 %v790_v2  ;;  %683 = vadd.xlane.f32.xlu0 %v475_v34  ;;  %685 = vadd.xlane.f32.xlu1 %v476_v35  ;;  %1166 = vst [vmem:[%s7762_s19 + $0x18] sm:$0xff] %v1038_v46  ;;  %v482_v35 = vmul.f32 %v354_v17, %v354_v17 }
  0xb6   : > { %v6235_v52 = vpop.eup %6234  ;;  %1164 = vst [vmem:[%s7762_s19 + $0x8] sm:$0xff] %v1036_v47  ;;  %6026 = vmatmul.mubr.f32.vlgmr.msra.gmra.mxu0 %v1036_v47  ;;  %6248 = vrsqrt.f32 %v789_v3  ;;  %v550_v53 = vpop.xlane.xlu1 %549  ;;  %v484_v47 = vmul.f32 %v356_v41, %v356_v41 }
  0xb7   : > { %v548_v56 = vpop.xlane.xlu0 %547  ;;  %v6237_v59 = vpop.eup %6236  ;;  %v792_v4 = vmax.f32 %v550_v53, 1e-24  ;;  %6028 = vmatprep.mubr.f32.mxu0 %v1037_v28  ;;  %v7777_v62 = vmul.f32 %v6235_v52, %v7518_v10  ;;  %v353_v10 = vld [vmem:[%s7489_s28 + $0x2b0] sm:$0xff]  ;;  %v358_v53 = vld [vmem:[%s7489_s28 + $0x2d8] sm:$0xff] }
  0xb8   : > { %v791_v7 = vmax.f32 %v548_v56, 1e-24  ;;  %v7780_v63 = vmul.f32 %v6237_v59, %v7521_v11  ;;  %v481_v34 = vmul.f32 %v353_v10, %v353_v10  ;;  %v357_v52 = vld [vmem:[%s7489_s28 + $0x2d0] sm:$0xff] }
  0xb9   : > { %6250 = vrsqrt.f32 %v792_v4  ;;  %687 = vadd.xlane.f32.xlu0 %v477_v48  ;;  %689 = vadd.xlane.f32.xlu1 %v478_v51  ;;  %1168 = vst [vmem:[%s7762_s19 + $0x28] sm:$0xff] %v7777_v62  ;;  %v485_v4 = vmul.f32 %v357_v52, %v357_v52 }
  0xba   : > { %v6239_v8 = vpop.eup %6238  ;;  %6029 = vmatmul.mubr.f32.gmra.mxu0 %v1038_v46  ;;  %6252 = vrsqrt.f32 %v791_v7  ;;  %v554_v9 = vpop.xlane.xlu1 %553  ;;  %1167 = vst [vmem:[%s7762_s19 + $0x20] sm:$0xff] %v7780_v63  ;;  %v483_v46 = vmul.f32 %v355_v40, %v355_v40  ;;  %v486_v7 = vmul.f32 %v358_v53, %v358_v53 }
  0xbb   : > { %v552_v12 = vpop.xlane.xlu0 %551  ;;  %v6241_v20 = vpop.eup %6240  ;;  %v794_v11 = vmax.f32 %v554_v9, 1e-24  ;;  %6031 = vmatprep.mubr.f32.mxu0 %v7780_v63  ;;  %v7790_v28 = vmul.f32 %v6239_v8, %v7528_v14  ;;  %v359_v8 = vld [vmem:[%s7489_s28 + $0x2e0] sm:$0xff]  ;;  %v360_v9 = vld [vmem:[%s7489_s28 + $0x2e8] sm:$0xff] }
  0xbc   : > { %v793_v21 = vmax.f32 %v552_v12, 1e-24  ;;  %v7793_v29 = vmul.f32 %v6241_v20, %v7531_v15 }
  0xbd   : > { %6254 = vrsqrt.f32 %v794_v11  ;;  %691 = vadd.xlane.f32.xlu0 %v479_v0  ;;  %693 = vadd.xlane.f32.xlu1 %v480_v6  ;;  %1170 = vst [vmem:[%s7762_s19 + $0x38] sm:$0xff] %v7790_v28  ;;  %v487_v11 = vmul.f32 %v359_v8, %v359_v8 }
  0xbe   : > { %v6243_v36 = vpop.eup %6242  ;;  %6032 = vmatmul.mubr.f32.gmra.mxu0 %v7777_v62  ;;  %6256 = vrsqrt.f32 %v793_v21  ;;  %v558_v37 = vpop.xlane.xlu1 %557  ;;  %1169 = vst [vmem:[%s7762_s19 + $0x30] sm:$0xff] %v7793_v29  ;;  %v488_v21 = vmul.f32 %v360_v9, %v360_v9 }
  0xbf   : > { %v556_v14 = vpop.xlane.xlu0 %555  ;;  %v6245_v15 = vpop.eup %6244  ;;  %v796_v42 = vmax.f32 %v558_v37, 1e-24  ;;  %6034 = vmatprep.mubr.f32.mxu0 %v7793_v29  ;;  %v7804_v2 = vmul.f32 %v6243_v36, %v7538_v18  ;;  %v361_v36 = vld [vmem:[%s7489_s28 + $0x2f0] sm:$0xff]  ;;  %v362_v37 = vld [vmem:[%s7489_s28 + $0x2f8] sm:$0xff] }
  0xc0   : > { %v795_v45 = vmax.f32 %v556_v14, 1e-24  ;;  %v7807_v3 = vmul.f32 %v6245_v15, %v7541_v19 }
  0xc1   : > { %6258 = vrsqrt.f32 %v796_v42  ;;  %695 = vadd.xlane.f32.xlu0 %v481_v34  ;;  %697 = vadd.xlane.f32.xlu1 %v482_v35  ;;  %1172 = vst [vmem:[%s7762_s19 + $0x48] sm:$0xff] %v7804_v2  ;;  %v489_v42 = vmul.f32 %v361_v36, %v361_v36 }
  0xc2   : > { %v6247_v48 = vpop.eup %6246  ;;  %6035 = vmatmul.mubr.f32.gmra.mxu0 %v7790_v28  ;;  %6260 = vrsqrt.f32 %v795_v45  ;;  %v562_v51 = vpop.xlane.xlu1 %561  ;;  %1171 = vst [vmem:[%s7762_s19 + $0x40] sm:$0xff] %v7807_v3  ;;  %v490_v45 = vmul.f32 %v362_v37, %v362_v37 }
  0xc3   : > { %v560_v18 = vpop.xlane.xlu0 %559  ;;  %v6249_v19 = vpop.eup %6248  ;;  %v798_v56 = vmax.f32 %v562_v51, 1e-24  ;;  %6037 = vmatprep.mubr.f32.mxu0 %v7807_v3  ;;  %v7818_v58 = vmul.f32 %v6247_v48, %v7548_v22  ;;  %v363_v48 = vld [vmem:[%s7489_s28 + $0x300] sm:$0xff]  ;;  %v364_v51 = vld [vmem:[%s7489_s28 + $0x308] sm:$0xff] }
  0xc4   : > { %v797_v57 = vmax.f32 %v560_v18, 1e-24  ;;  %v7821_v59 = vmul.f32 %v6249_v19, %v7551_v23 }
  0xc5   : > { %6262 = vrsqrt.f32 %v798_v56  ;;  %699 = vadd.xlane.f32.xlu0 %v483_v46  ;;  %701 = vadd.xlane.f32.xlu1 %v484_v47  ;;  %1174 = vst [vmem:[%s7762_s19 + $0x58] sm:$0xff] %v7818_v58  ;;  %v491_v56 = vmul.f32 %v363_v48, %v363_v48 }
  0xc6   : > { %v6251_v0 = vpop.eup %6250  ;;  %6038 = vmatmul.mubr.f32.gmra.mxu0 %v7804_v2  ;;  %6264 = vrsqrt.f32 %v797_v57  ;;  %v566_v6 = vpop.xlane.xlu1 %565  ;;  %1173 = vst [vmem:[%s7762_s19 + $0x50] sm:$0xff] %v7821_v59  ;;  %v492_v57 = vmul.f32 %v364_v51, %v364_v51 }
  0xc7   : > { %v564_v22 = vpop.xlane.xlu0 %563  ;;  %v6253_v23 = vpop.eup %6252  ;;  %v800_v12 = vmax.f32 %v566_v6, 1e-24  ;;  %6040 = vmatprep.mubr.f32.mxu0 %v7821_v59  ;;  %v7832_v17 = vmul.f32 %v6251_v0, %v7558_v26  ;;  %v365_v0 = vld [vmem:[%s7489_s28 + $0x310] sm:$0xff]  ;;  %v366_v6 = vld [vmem:[%s7489_s28 + $0x318] sm:$0xff] }
  0xc8   : > { %v799_v10 = vmax.f32 %v564_v22, 1e-24  ;;  %v7835_v20 = vmul.f32 %v6253_v23, %v7561_v27 }
  0xc9   : > { %6266 = vrsqrt.f32 %v800_v12  ;;  %703 = vadd.xlane.f32.xlu0 %v485_v4  ;;  %705 = vadd.xlane.f32.xlu1 %v486_v7  ;;  %1176 = vst [vmem:[%s7762_s19 + $0x68] sm:$0xff] %v7832_v17  ;;  %v493_v12 = vmul.f32 %v365_v0, %v365_v0 }
  0xca   : > { %v6255_v34 = vpop.eup %6254  ;;  %6041 = vmatmul.mubr.f32.gmra.mxu0 %v7818_v58  ;;  %6268 = vrsqrt.f32 %v799_v10  ;;  %v570_v35 = vpop.xlane.xlu1 %569  ;;  %1175 = vst [vmem:[%s7762_s19 + $0x60] sm:$0xff] %v7835_v20  ;;  %v494_v10 = vmul.f32 %v366_v6, %v366_v6 }
  0xcb   : > { %v568_v26 = vpop.xlane.xlu0 %567  ;;  %v6257_v27 = vpop.eup %6256  ;;  %v802_v14 = vmax.f32 %v570_v35, 1e-24  ;;  %6043 = vmatprep.mubr.f32.mxu0 %v7835_v20  ;;  %v7846_v41 = vmul.f32 %v6255_v34, %v7574_v32  ;;  %v367_v34 = vld [vmem:[%s7489_s28 + $0x320] sm:$0xff]  ;;  %v368_v35 = vld [vmem:[%s7489_s28 + $0x328] sm:$0xff] }
  0xcc   : > { %v801_v40 = vmax.f32 %v568_v26, 1e-24  ;;  %v7849_v15 = vmul.f32 %v6257_v27, %v7577_v33 }
  0xcd   : > { %6270 = vrsqrt.f32 %v802_v14  ;;  %707 = vadd.xlane.f32.xlu0 %v487_v11  ;;  %709 = vadd.xlane.f32.xlu1 %v488_v21  ;;  %1178 = vst [vmem:[%s7762_s19 + $0x78] sm:$0xff] %v7846_v41  ;;  %v495_v14 = vmul.f32 %v367_v34, %v367_v34 }
  0xce   : > { %v6259_v46 = vpop.eup %6258  ;;  %6044 = vmatmul.mubr.f32.gmra.mxu0 %v7832_v17  ;;  %6272 = vrsqrt.f32 %v801_v40  ;;  %v574_v47 = vpop.xlane.xlu1 %573  ;;  %1177 = vst [vmem:[%s7762_s19 + $0x70] sm:$0xff] %v7849_v15  ;;  %v496_v40 = vmul.f32 %v368_v35, %v368_v35 }
  0xcf   : > { %v572_v32 = vpop.xlane.xlu0 %571  ;;  %v6261_v33 = vpop.eup %6260  ;;  %v804_v18 = vmax.f32 %v574_v47, 1e-24  ;;  %6046 = vmatprep.mubr.f32.mxu0 %v7849_v15  ;;  %v7860_v53 = vmul.f32 %v6259_v46, %v7590_v38  ;;  %v369_v46 = vld [vmem:[%s7489_s28 + $0x330] sm:$0xff]  ;;  %v370_v47 = vld [vmem:[%s7489_s28 + $0x338] sm:$0xff] }
  0xd0   : > { %v803_v52 = vmax.f32 %v572_v32, 1e-24  ;;  %v7863_v19 = vmul.f32 %v6261_v33, %v7593_v39 }
  0xd1   : > { %6274 = vrsqrt.f32 %v804_v18  ;;  %711 = vadd.xlane.f32.xlu0 %v489_v42  ;;  %713 = vadd.xlane.f32.xlu1 %v490_v45  ;;  %1180 = vst [vmem:[%s7762_s19 + $0x88] sm:$0xff] %v7860_v53  ;;  %v497_v18 = vmul.f32 %v369_v46, %v369_v46 }
  0xd2   : > { %v6263_v4 = vpop.eup %6262  ;;  %6047 = vmatmul.mubr.f32.gmra.mxu0 %v7846_v41  ;;  %6276 = vrsqrt.f32 %v803_v52  ;;  %v578_v7 = vpop.xlane.xlu1 %577  ;;  %1179 = vst [vmem:[%s7762_s19 + $0x80] sm:$0xff] %v7863_v19  ;;  %v498_v52 = vmul.f32 %v370_v47, %v370_v47  ;;  %v376_v47 = vld [vmem:[%s7489_s28 + $0x368] sm:$0xff] }
  0xd3   : > { %v576_v38 = vpop.xlane.xlu0 %575  ;;  %v6265_v39 = vpop.eup %6264  ;;  %v806_v22 = vmax.f32 %v578_v7, 1e-24  ;;  %6049 = vmatprep.mubr.f32.mxu0 %v7863_v19  ;;  %v7874_v9 = vmul.f32 %v6263_v4, %v7603_v43  ;;  %v371_v4 = vld [vmem:[%s7489_s28 + $0x340] sm:$0xff]  ;;  %v372_v7 = vld [vmem:[%s7489_s28 + $0x348] sm:$0xff] }
  0xd4   : > { %v805_v8 = vmax.f32 %v576_v38, 1e-24  ;;  %v7877_v23 = vmul.f32 %v6265_v39, %v7606_v44 }
  0xd5   : > { %6278 = vrsqrt.f32 %v806_v22  ;;  %715 = vadd.xlane.f32.xlu0 %v491_v56  ;;  %717 = vadd.xlane.f32.xlu1 %v492_v57  ;;  %1182 = vst [vmem:[%s7762_s19 + $0x98] sm:$0xff] %v7874_v9  ;;  %v499_v22 = vmul.f32 %v371_v4, %v371_v4 }
  0xd6   : > { %v6267_v11 = vpop.eup %6266  ;;  %6050 = vmatmul.mubr.f32.gmra.mxu0 %v7860_v53  ;;  %6280 = vrsqrt.f32 %v805_v8  ;;  %v582_v21 = vpop.xlane.xlu1 %581  ;;  %1181 = vst [vmem:[%s7762_s19 + $0x90] sm:$0xff] %v7877_v23  ;;  %v500_v8 = vmul.f32 %v372_v7, %v372_v7  ;;  %v378_v7 = vld [vmem:[%s7489_s28 + $0x378] sm:$0xff] }
  0xd7   : > { %v580_v43 = vpop.xlane.xlu0 %579  ;;  %v6269_v44 = vpop.eup %6268  ;;  %v808_v26 = vmax.f32 %v582_v21, 1e-24  ;;  %6052 = vmatprep.mubr.f32.mxu0 %v7877_v23  ;;  %v7888_v37 = vmul.f32 %v6267_v11, %v7619_v49  ;;  %v373_v11 = vld [vmem:[%s7489_s28 + $0x350] sm:$0xff]  ;;  %v374_v21 = vld [vmem:[%s7489_s28 + $0x358] sm:$0xff] }
  0xd8   : > { %v807_v36 = vmax.f32 %v580_v43, 1e-24  ;;  %v7891_v27 = vmul.f32 %v6269_v44, %v7622_v50 }
  0xd9   : > { %6282 = vrsqrt.f32 %v808_v26  ;;  %719 = vadd.xlane.f32.xlu0 %v493_v12  ;;  %721 = vadd.xlane.f32.xlu1 %v494_v10  ;;  %1184 = vst [vmem:[%s7762_s19 + $0xa8] sm:$0xff] %v7888_v37  ;;  %v501_v26 = vmul.f32 %v373_v11, %v373_v11 }
  0xda   : > { %v6271_v42 = vpop.eup %6270  ;;  %6053 = vmatmul.mubr.f32.gmra.mxu0 %v7874_v9  ;;  %6284 = vrsqrt.f32 %v807_v36  ;;  %v586_v45 = vpop.xlane.xlu1 %585  ;;  %1183 = vst [vmem:[%s7762_s19 + $0xa0] sm:$0xff] %v7891_v27  ;;  %v502_v36 = vmul.f32 %v374_v21, %v374_v21  ;;  %v380_v21 = vld [vmem:[%s7489_s28 + $0x388] sm:$0xff] }
  0xdb   : > { %v584_v49 = vpop.xlane.xlu0 %583  ;;  %v6273_v50 = vpop.eup %6272  ;;  %v810_v32 = vmax.f32 %v586_v45, 1e-24  ;;  %6055 = vmatprep.mubr.f32.mxu0 %v7891_v27  ;;  %v7902_v51 = vmul.f32 %v6271_v42, %v7632_v54  ;;  %v375_v42 = vld [vmem:[%s7489_s28 + $0x360] sm:$0xff] }
  0xdc   : > { %v809_v48 = vmax.f32 %v584_v49, 1e-24  ;;  %v7905_v33 = vmul.f32 %v6273_v50, %v7635_v55 }
  0xdd   : > { %6286 = vrsqrt.f32 %v810_v32  ;;  %723 = vadd.xlane.f32.xlu0 %v495_v14  ;;  %725 = vadd.xlane.f32.xlu1 %v496_v40  ;;  %1186 = vst [vmem:[%s7762_s19 + $0xb8] sm:$0xff] %v7902_v51  ;;  %v503_v32 = vmul.f32 %v375_v42, %v375_v42 }
  0xde   : > { %v6275_v56 = vpop.eup %6274  ;;  %6056 = vmatmul.mubr.f32.gmra.mxu0 %v7888_v37  ;;  %6288 = vrsqrt.f32 %v809_v48  ;;  %1185 = vst [vmem:[%s7762_s19 + $0xb0] sm:$0xff] %v7905_v33  ;;  %v590_v54 = vpop.xlane.xlu1 %589 }
  0xdf   : > { %v588_v57 = vpop.xlane.xlu0 %587  ;;  %v6277_v55 = vpop.eup %6276  ;;  %6058 = vmatprep.mubr.f32.mxu0 %v7905_v33  ;;  %v812_v0 = vmax.f32 %v590_v54, 1e-24  ;;  %v7916_v6 = vmul.f32 %v6275_v56, %v7648_v60  ;;  %v377_v56 = vld [vmem:[%s7489_s28 + $0x370] sm:$0xff] }
  0xe0   : > { %v811_v38 = vmax.f32 %v588_v57, 1e-24  ;;  %v7919_v39 = vmul.f32 %v6277_v55, %v7651_v61 }
  0xe1   : > { %727 = vadd.xlane.f32.xlu0 %v497_v18  ;;  %729 = vadd.xlane.f32.xlu1 %v498_v52  ;;  %1188 = vst [vmem:[%s7762_s19 + $0xc8] sm:$0xff] %v7916_v6  ;;  %v504_v52 = vmul.f32 %v376_v47, %v376_v47 }
  0xe2   : > { %6290 = vrsqrt.f32 %v811_v38  ;;  %v6279_v12 = vpop.eup %6278  ;;  %6059 = vmatmul.mubr.f32.gmra.mxu0 %v7902_v51  ;;  %1187 = vst [vmem:[%s7762_s19 + $0xc0] sm:$0xff] %v7919_v39  ;;  %v594_v60 = vpop.xlane.xlu1 %593  ;;  %v505_v38 = vmul.f32 %v377_v56, %v377_v56 }
  0xe3   : > { %6292 = vrsqrt.f32 %v812_v0  ;;  %v592_v10 = vpop.xlane.xlu0 %591  ;;  %v6281_v61 = vpop.eup %6280  ;;  %6061 = vmatprep.mubr.f32.mxu0 %v7919_v39  ;;  %v814_v34 = vmax.f32 %v594_v60, 1e-24  ;;  %v7930_v35 = vmul.f32 %v6279_v12, %v7661_v1  ;;  %v379_v12 = vld [vmem:[%s7489_s28 + $0x380] sm:$0xff] }
  0xe4   : > { %v813_v43 = vmax.f32 %v592_v10, 1e-24  ;;  %v7933_v44 = vmul.f32 %v6281_v61, %v7664_v5 }
  0xe5   : > { %731 = vadd.xlane.f32.xlu0 %v499_v22  ;;  %733 = vadd.xlane.f32.xlu1 %v500_v8  ;;  %1190 = vst [vmem:[%s7762_s19 + $0xd8] sm:$0xff] %v7930_v35  ;;  %v506_v8 = vmul.f32 %v378_v7, %v378_v7 }
  0xe6   : > { %6294 = vrsqrt.f32 %v813_v43  ;;  %v6283_v14 = vpop.eup %6282  ;;  %6062 = vmatmul.mubr.f32.gmra.mxu0 %v7916_v6  ;;  %1189 = vst [vmem:[%s7762_s19 + $0xd0] sm:$0xff] %v7933_v44  ;;  %v598_v40 = vpop.xlane.xlu1 %597  ;;  %v507_v43 = vmul.f32 %v379_v12, %v379_v12 }
  0xe7   : > { %6296 = vrsqrt.f32 %v814_v34  ;;  %v596_v1 = vpop.xlane.xlu0 %595  ;;  %v6285_v5 = vpop.eup %6284  ;;  %6064 = vmatprep.mubr.f32.mxu0 %v7933_v44  ;;  %v816_v49 = vmax.f32 %v598_v40, 1e-24  ;;  %v7943_v46 = vmul.f32 %v6283_v14, %v7677_v13  ;;  %v7250_v40 = vld [vmem:[%s7489_s28 + $0x110] sm:$0xff] }
  0xe8   : > { %v815_v45 = vmax.f32 %v596_v1, 1e-24  ;;  %v7947_v50 = vmul.f32 %v6285_v5, %v7680_v16  ;;  %v382_v5 = vld [vmem:[%s7489_s28 + $0x398] sm:$0xff] }
  0xe9   : > { %735 = vadd.xlane.f32.xlu0 %v501_v26  ;;  %737 = vadd.xlane.f32.xlu1 %v502_v36  ;;  %1192 = vst [vmem:[%s7762_s19 + $0xe8] sm:$0xff] %v7943_v46  ;;  %v381_v36 = vld [vmem:[%s7489_s28 + $0x390] sm:$0xff] }
  0xea   : > { %6298 = vrsqrt.f32 %v815_v45  ;;  %v6287_v48 = vpop.eup %6286  ;;  %6065 = vmatmul.mubr.f32.gmra.mxu0 %v7930_v35  ;;  %1191 = vst [vmem:[%s7762_s19 + $0xe0] sm:$0xff] %v7947_v50  ;;  %v602_v18 = vpop.xlane.xlu1 %601  ;;  %v7251_v45 = vld [vmem:[%s7489_s28 + $0x118] sm:$0xff]  ;;  %v509_v47 = vmul.f32 %v381_v36, %v381_v36 }
  0xeb   : > { %6300 = vrsqrt.f32 %v816_v49  ;;  %v600_v13 = vpop.xlane.xlu0 %599  ;;  %v6289_v16 = vpop.eup %6288  ;;  %6067 = vmatprep.mubr.f32.mxu0 %v7947_v50  ;;  %v1066_v57 = vmul.f32 %v6287_v48, %v7690_v24  ;;  %v818_v4 = vmax.f32 %v602_v18, 1e-24  ;;  %v383_v18 = vld [vmem:[%s7489_s28 + $0x3a0] sm:$0xff] }
  0xec   : > { %v817_v54 = vmax.f32 %v600_v13, 1e-24  ;;  %v1065_v55 = vmul.f32 %v6289_v16, %v7693_v25  ;;  %v510_v13 = vmul.f32 %v382_v5, %v382_v5  ;;  %v7252_v16 = vld [vmem:[%s7489_s28 + $0x120] sm:$0xff] }
  0xed   : > { %1194 = vst [vmem:[%s7762_s19 + $0xf8] sm:$0xff] %v1066_v57  ;;  %5857 = vmatprep.subr.mxu0 %v1066_v57  ;;  %739 = vadd.xlane.f32.xlu0 %v503_v32 }
  0xee   : > { %6302 = vrsqrt.f32 %v817_v54  ;;  %6068 = vmatmul.mubr.f32.gmra.mxu0 %v7943_v46  ;;  %1193 = vst [vmem:[%s7762_s19 + $0xf0] sm:$0xff] %v1065_v55  ;;  %741 = vadd.xlane.f32.xlu1 %v504_v52  ;;  %v606_v22 = vpop.xlane.xlu1 %605  ;;  %v384_v54 = vld [vmem:[%s7489_s28 + $0x3a8] sm:$0xff] }
  0xef   : > { %v6291_v0 = vpop.eup %6290  ;;  %6304 = vrsqrt.f32 %v818_v4  ;;  %v604_v24 = vpop.xlane.xlu0 %603  ;;  %5858 = vmatpush3.xpose.msra.mxu0 %v7846_v41  ;;  %6070 = vmatprep.mubr.f32.mxu0 %v1065_v55  ;;  %v820_v60 = vmax.f32 %v606_v22, 1e-24  ;;  %v7253_v4 = vld [vmem:[%s7489_s28 + $0x128] sm:$0xff]  ;;  %v385_v22 = vld [vmem:[%s7489_s28 + $0x3b0] sm:$0xff] }
  0xf0   : > { %v6293_v10 = vpop.eup %6292  ;;  %v819_v25 = vmax.f32 %v604_v24, 1e-24  ;;  %v1067_v11 = vmul.f32 %v6291_v0, %v7700_v30  ;;  %5859 = vmatprep.subr.mxu0 %v1065_v55  ;;  %v508_v30 = vmul.f32 %v380_v21, %v380_v21  ;;  %v511_v55 = vmul.f32 %v383_v18, %v383_v18 }
  0xf1   : > { %v1068_v61 = vmul.f32 %v6293_v10, %v7703_v31  ;;  %743 = vadd.xlane.f32.xlu0 %v505_v38  ;;  %v512_v24 = vmul.f32 %v384_v54, %v384_v54  ;;  %v7254_v10 = vld [vmem:[%s7489_s28 + $0x130] sm:$0xff] }
  0xf2   : > { %6306 = vrsqrt.f32 %v819_v25  ;;  %1195 = vst [vmem:[%s7762_s19 + $0x100] sm:$0xff] %v1067_v11  ;;  %6071 = vmatmul.mubr.f32.gmra.mxu0 %v1066_v57  ;;  %745 = vadd.xlane.f32.xlu1 %v506_v8  ;;  %v610_v26 = vpop.xlane.xlu1 %609 }
  0xf3   : > { %v6295_v34 = vpop.eup %6294  ;;  %6308 = vrsqrt.f32 %v820_v60  ;;  %1196 = vst [vmem:[%s7762_s19 + $0x108] sm:$0xff] %v1068_v61  ;;  %v608_v41 = vpop.xlane.xlu0 %607  ;;  %5860 = vmatpush3.xpose.msra.mxu0 %v7849_v15  ;;  %6073 = vmatprep.mubr.f32.mxu0 %v1067_v11  ;;  %v822_v1 = vmax.f32 %v610_v26, 1e-24  ;;  %v386_v60 = vld [vmem:[%s7489_s28 + $0x3b8] sm:$0xff]  ;;  %v387_v26 = vld [vmem:[%s7489_s28 + $0x3c0] sm:$0xff] }
  0xf4   : > { %v6297_v14 = vpop.eup %6296  ;;  %v821_v31 = vmax.f32 %v608_v41, 1e-24  ;;  %v1069_v42 = vmul.f32 %v7250_v40, %v6295_v34  ;;  %5861 = vmatprep.subr.mxu0 %v7943_v46  ;;  %v7255_v11 = vld [vmem:[%s7489_s28 + $0x138] sm:$0xff]  ;;  %v514_v41 = vmul.f32 %v386_v60, %v386_v60  ;;  %v7257_v40 = vld [vmem:[%s7489_s28 + $0x148] sm:$0xff]  ;;  %v515_v5 = vmul.f32 %v387_v26, %v387_v26  ;;  %v393_v60 = vld [vmem:[%s7489_s28 + $0x3f0] sm:$0xff] }
  0xf5   : > { %v1070_v49 = vmul.f32 %v7251_v45, %v6297_v14  ;;  %747 = vadd.xlane.f32.xlu0 %v507_v43  ;;  %v7256_v14 = vld [vmem:[%s7489_s28 + $0x140] sm:$0xff]  ;;  %v521_v26 = vmul.f32 %v393_v60, %v393_v60 }
  0xf6   : > { %6310 = vrsqrt.f32 %v821_v31  ;;  %1197 = vst [vmem:[%s7762_s19 + $0x110] sm:$0xff] %v1069_v42  ;;  %6074 = vmatmul.mubr.f32.gmra.mxu0 %v1068_v61  ;;  %749 = vadd.xlane.f32.xlu1 %v508_v30  ;;  %v614_v48 = vpop.xlane.xlu1 %613  ;;  %v513_v61 = vmul.f32 %v385_v22, %v385_v22  ;;  %v7261_v22 = vld [vmem:[%s7489_s28 + $0x168] sm:$0xff] }
  0xf7   : > { %v6299_v32 = vpop.eup %6298  ;;  %6312 = vrsqrt.f32 %v822_v1  ;;  %1198 = vst [vmem:[%s7762_s19 + $0x118] sm:$0xff] %v1070_v49  ;;  %v612_v15 = vpop.xlane.xlu0 %611  ;;  %5862 = vmatpush3.xpose.msra.mxu0 %v7832_v17  ;;  %6076 = vmatprep.mubr.f32.mxu0 %v1069_v42  ;;  %v824_v56 = vmax.f32 %v614_v48, 1e-24  ;;  %v388_v1 = vld [vmem:[%s7489_s28 + $0x3c8] sm:$0xff] }
  0xf8   : > { %v6301_v46 = vpop.eup %6300  ;;  %v823_v52 = vmax.f32 %v612_v15, 1e-24  ;;  %v1071_v57 = vmul.f32 %v7252_v16, %v6299_v32  ;;  %5863 = vmatprep.subr.mxu0 %v7947_v50  ;;  %v389_v32 = vld [vmem:[%s7489_s28 + $0x3d0] sm:$0xff] }
  0xf9   : > { %v1072_v7 = vmul.f32 %v7253_v4, %v6301_v46  ;;  %751 = vadd.xlane.f32.xlu0 %v509_v47  ;;  %v516_v47 = vmul.f32 %v388_v1, %v388_v1  ;;  %v390_v46 = vld [vmem:[%s7489_s28 + $0x3d8] sm:$0xff]  ;;  %v517_v16 = vmul.f32 %v389_v32, %v389_v32  ;;  %v7264_v1 = vld [vmem:[%s7489_s28 + $0x180] sm:$0xff]  ;;  %v7266_v32 = vld [vmem:[%s7489_s28 + $0x190] sm:$0xff] }
  0xfa   : > { %6314 = vrsqrt.f32 %v823_v52  ;;  %1199 = vst [vmem:[%s7762_s19 + $0x120] sm:$0xff] %v1071_v57  ;;  %6077 = vmatmul.mubr.f32.gmra.mxu0 %v1070_v49  ;;  %753 = vadd.xlane.f32.xlu1 %v510_v13  ;;  %v618_v0 = vpop.xlane.xlu1 %617  ;;  %v7258_v13 = vld [vmem:[%s7489_s28 + $0x150] sm:$0xff]  ;;  %v7259_v52 = vld [vmem:[%s7489_s28 + $0x158] sm:$0xff]  ;;  %v518_v4 = vmul.f32 %v390_v46, %v390_v46 }
  0xfb   : > { %v6303_v38 = vpop.eup %6302  ;;  %6316 = vrsqrt.f32 %v824_v56  ;;  %1200 = vst [vmem:[%s7762_s19 + $0x128] sm:$0xff] %v1072_v7  ;;  %v616_v17 = vpop.xlane.xlu0 %615  ;;  %5864 = vmatpush3.xpose.msra.mxu0 %v7835_v20  ;;  %6079 = vmatprep.mubr.f32.mxu0 %v1071_v57  ;;  %v826_v12 = vmax.f32 %v618_v0, 1e-24 }
  0xfc   : > { %v6305_v50 = vpop.eup %6304  ;;  %v825_v8 = vmax.f32 %v616_v17, 1e-24  ;;  %v1073_v25 = vmul.f32 %v7254_v10, %v6303_v38  ;;  %5865 = vmatprep.subr.mxu0 %v7930_v35  ;;  %v7260_v17 = vld [vmem:[%s7489_s28 + $0x160] sm:$0xff] }
  0xfd   : > { %v1074_v21 = vmul.f32 %v7255_v11, %v6305_v50  ;;  %755 = vadd.xlane.f32.xlu0 %v511_v55 }
  0xfe   : > { %6318 = vrsqrt.f32 %v825_v8  ;;  %1201 = vst [vmem:[%s7762_s19 + $0x130] sm:$0xff] %v1073_v25  ;;  %6080 = vmatmul.mubr.f32.gmra.mxu0 %v1072_v7  ;;  %757 = vadd.xlane.f32.xlu1 %v512_v24  ;;  %v622_v34 = vpop.xlane.xlu1 %621  ;;  %v391_v7 = vld [vmem:[%s7489_s28 + $0x3e0] sm:$0xff]  ;;  %v392_v24 = vld [vmem:[%s7489_s28 + $0x3e8] sm:$0xff] }
  0xff   : > { %v6307_v43 = vpop.eup %6306  ;;  %6320 = vrsqrt.f32 %v826_v12  ;;  %1202 = vst [vmem:[%s7762_s19 + $0x138] sm:$0xff] %v1074_v21  ;;  %v620_v20 = vpop.xlane.xlu0 %619  ;;  %5866 = vmatpush3.xpose.msra.mxu0 %v7818_v58  ;;  %6082 = vmatprep.mubr.f32.mxu0 %v1073_v25  ;;  %v828_v36 = vmax.f32 %v622_v34, 1e-24  ;;  %v519_v8 = vmul.f32 %v391_v7, %v391_v7  ;;  %v520_v25 = vmul.f32 %v392_v24, %v392_v24  ;;  %v7263_v34 = vld [vmem:[%s7489_s28 + $0x178] sm:$0xff] }
 0x100   : > { %v6309_v35 = vpop.eup %6308  ;;  %v827_v30 = vmax.f32 %v620_v20, 1e-24  ;;  %v1075_v31 = vmul.f32 %v7256_v14, %v6307_v43  ;;  %5867 = vmatprep.subr.mxu0 %v7933_v44  ;;  %v394_v20 = vld [vmem:[%s7489_s28 + $0x3f8] sm:$0xff] }
 0x101   : > { %v1076_v42 = vmul.f32 %v7257_v40, %v6309_v35  ;;  %759 = vadd.xlane.f32.xlu0 %v513_v61  ;;  %v7262_v61 = vld [vmem:[%s7489_s28 + $0x170] sm:$0xff] }
 0x102   : > { %6322 = vrsqrt.f32 %v827_v30  ;;  %1203 = vst [vmem:[%s7762_s19 + $0x140] sm:$0xff] %v1075_v31  ;;  %6083 = vmatmul.mubr.f32.gmra.mxu0 %v1074_v21  ;;  %761 = vadd.xlane.f32.xlu1 %v514_v41  ;;  %v626_v49 = vpop.xlane.xlu1 %625 }
 0x103   : > { %v6311_v45 = vpop.eup %6310  ;;  %6324 = vrsqrt.f32 %v828_v36  ;;  %1204 = vst [vmem:[%s7762_s19 + $0x148] sm:$0xff] %v1076_v42  ;;  %v624_v58 = vpop.xlane.xlu0 %623  ;;  %5868 = vmatpush3.xpose.msra.mxu0 %v7821_v59  ;;  %6085 = vmatprep.mubr.f32.mxu0 %v1075_v31  ;;  %v830_v48 = vmax.f32 %v626_v49, 1e-24  ;;  %v522_v36 = vmul.f32 %v394_v20, %v394_v20 }
 0x104   : > { %v6313_v44 = vpop.eup %6312  ;;  %v829_v15 = vmax.f32 %v624_v58, 1e-24  ;;  %v1077_v18 = vmul.f32 %v7258_v13, %v6311_v45  ;;  %5869 = vmatprep.subr.mxu0 %v7916_v6 }
 0x105   : > { %v1078_v56 = vmul.f32 %v7259_v52, %v6313_v44  ;;  %763 = vadd.xlane.f32.xlu0 %v515_v5 }
 0x106   : > { %6326 = vrsqrt.f32 %v829_v15  ;;  %1205 = vst [vmem:[%s7762_s19 + $0x150] sm:$0xff] %v1077_v18  ;;  %6086 = vmatmul.mubr.f32.gmra.mxu0 %v1076_v42  ;;  %765 = vadd.xlane.f32.xlu1 %v516_v47  ;;  %v630_v54 = vpop.xlane.xlu1 %629  ;;  %v7265_v42 = vld [vmem:[%s7489_s28 + $0x188] sm:$0xff]  ;;  %v7267_v15 = vld [vmem:[%s7489_s28 + $0x198] sm:$0xff] }
 0x107   : > { %v6315_v57 = vpop.eup %6314  ;;  %6328 = vrsqrt.f32 %v830_v48  ;;  %1206 = vst [vmem:[%s7762_s19 + $0x158] sm:$0xff] %v1078_v56  ;;  %v628_v59 = vpop.xlane.xlu0 %627  ;;  %5870 = vmatpush3.xpose.msra.mxu0 %v7804_v2  ;;  %6088 = vmatprep.mubr.f32.mxu0 %v1077_v18  ;;  %v832_v38 = vmax.f32 %v630_v54, 1e-24 }
 0x108   : > { %v6317_v6 = vpop.eup %6316  ;;  %v831_v55 = vmax.f32 %v628_v59, 1e-24  ;;  %v1079_v0 = vmul.f32 %v7260_v17, %v6315_v57  ;;  %5871 = vmatprep.subr.mxu0 %v7919_v39  ;;  %v7269_v57 = vld [vmem:[%s7489_s28 + $0x1a8] sm:$0xff]  ;;  %v7271_v17 = vld [vmem:[%s7489_s28 + $0x1b8] sm:$0xff] }
 0x109   : > { %v1080_v50 = vmul.f32 %v7261_v22, %v6317_v6  ;;  %767 = vadd.xlane.f32.xlu0 %v517_v16 }
 0x10a   : > { %6330 = vrsqrt.f32 %v831_v55  ;;  %1207 = vst [vmem:[%s7762_s19 + $0x160] sm:$0xff] %v1079_v0  ;;  %6089 = vmatmul.mubr.f32.gmra.mxu0 %v1078_v56  ;;  %769 = vadd.xlane.f32.xlu1 %v518_v4  ;;  %v634_v10 = vpop.xlane.xlu1 %633  ;;  %v7268_v56 = vld [vmem:[%s7489_s28 + $0x1a0] sm:$0xff]  ;;  %v7270_v55 = vld [vmem:[%s7489_s28 + $0x1b0] sm:$0xff] }
 0x10b   : > { %v6319_v12 = vpop.eup %6318  ;;  %6332 = vrsqrt.f32 %v832_v38  ;;  %1208 = vst [vmem:[%s7762_s19 + $0x168] sm:$0xff] %v1080_v50  ;;  %v632_v2 = vpop.xlane.xlu0 %631  ;;  %5872 = vmatpush3.xpose.msra.mxu0 %v7807_v3  ;;  %6091 = vmatprep.mubr.f32.mxu0 %v1079_v0  ;;  %v834_v21 = vmax.f32 %v634_v10, 1e-24 }
 0x10c   : > { %v6321_v39 = vpop.eup %6320  ;;  %v833_v11 = vmax.f32 %v632_v2, 1e-24  ;;  %v1081_v43 = vmul.f32 %v7262_v61, %v6319_v12  ;;  %5873 = vmatprep.subr.mxu0 %v7902_v51  ;;  %v7273_v2 = vld [vmem:[%s7489_s28 + $0x1c0] sm:$0xff] }
 0x10d   : > { %v1082_v41 = vmul.f32 %v7263_v34, %v6321_v39  ;;  %771 = vadd.xlane.f32.xlu0 %v519_v8  ;;  %v7272_v8 = vld [vmem:[%s7762_s19 + $0x18] sm:$0xff]  ;;  %v7276_v34 = vld [vmem:[%s7489_s28 + $0x1d0] sm:$0xff] }
 0x10e   : > { %6334 = vrsqrt.f32 %v833_v11  ;;  %1209 = vst [vmem:[%s7762_s19 + $0x170] sm:$0xff] %v1081_v43  ;;  %6092 = vmatmul.mubr.f32.gmra.mxu0 %v1080_v50  ;;  %773 = vadd.xlane.f32.xlu1 %v520_v25  ;;  %v638_v30 = vpop.xlane.xlu1 %637  ;;  %v7274_v25 = vld [vmem:[%s7489_s28 + $0x1c8] sm:$0xff] }
 0x10f   : > { %v6323_v35 = vpop.eup %6322  ;;  %6336 = vrsqrt.f32 %v834_v21  ;;  %1210 = vst [vmem:[%s7762_s19 + $0x178] sm:$0xff] %v1082_v41  ;;  %v636_v3 = vpop.xlane.xlu0 %635  ;;  %5874 = vmatpush3.xpose.msra.mxu0 %v7790_v28  ;;  %6094 = vmatprep.mubr.f32.mxu0 %v1081_v43  ;;  %v836_v31 = vmax.f32 %v638_v30, 1e-24  ;;  %v7275_v43 = vld [vmem:[%s7762_s19 + $0x10] sm:$0xff] }
 0x110   : > { %v6325_v14 = vpop.eup %6324  ;;  %v835_v51 = vmax.f32 %v636_v3, 1e-24  ;;  %v1083_v40 = vmul.f32 %v7264_v1, %v6323_v35  ;;  %5875 = vmatprep.subr.mxu0 %v7905_v33  ;;  %v7279_v1 = vld [vmem:[%s7489_s28 + $0x1e0] sm:$0xff] }
 0x111   : > { %v1084_v5 = vmul.f32 %v7265_v42, %v6325_v14  ;;  %775 = vadd.xlane.f32.xlu0 %v521_v26  ;;  %v7277_v26 = vld [vmem:[%s7489_s28 + $0x1d8] sm:$0xff]  ;;  %v7280_v42 = vld [vmem:[%s7489_s28 + $0x1e8] sm:$0xff] }
 0x112   : > { %6338 = vrsqrt.f32 %v835_v51  ;;  %1211 = vst [vmem:[%s7762_s19 + $0x180] sm:$0xff] %v1083_v40  ;;  %6095 = vmatmul.mubr.f32.gmra.mxu0 %v1082_v41  ;;  %777 = vadd.xlane.f32.xlu1 %v522_v36  ;;  %v642_v58 = vpop.xlane.xlu1 %641  ;;  %v7278_v51 = vld [vmem:[%s7762_s19 + $0x8] sm:$0xff] }
 0x113   : > { %v6327_v45 = vpop.eup %6326  ;;  %6340 = vrsqrt.f32 %v836_v31  ;;  %1212 = vst [vmem:[%s7762_s19 + $0x188] sm:$0xff] %v1084_v5  ;;  %v640_v28 = vpop.xlane.xlu0 %639  ;;  %5876 = vmatpush3.xpose.msra.mxu0 %v7793_v29  ;;  %6097 = vmatprep.mubr.f32.mxu0 %v1083_v40  ;;  %v838_v47 = vmax.f32 %v642_v58, 1e-24 }
 0x114   : > { %v6329_v49 = vpop.eup %6328  ;;  %v837_v33 = vmax.f32 %v640_v28, 1e-24  ;;  %v1085_v44 = vmul.f32 %v7266_v32, %v6327_v45  ;;  %5877 = vmatprep.subr.mxu0 %v7888_v37  ;;  %v7282_v32 = vld [vmem:[%s7489_s28 + $0x1f0] sm:$0xff] }
 0x115   : > { %v1086_v48 = vmul.f32 %v7267_v15, %v6329_v49  ;;  %v7283_v15 = vld [vmem:[%s7489_s28 + $0x1f8] sm:$0xff] }
 0x116   : > { %6342 = vrsqrt.f32 %v837_v33  ;;  %1213 = vst [vmem:[%s7762_s19 + $0x190] sm:$0xff] %v1085_v44  ;;  %6098 = vmatmul.mubr.f32.gmra.mxu0 %v1084_v5  ;;  %v646_v29 = vpop.xlane.xlu1 %645  ;;  %v7281_v33 = vld [vmem:[%s7762_s19] sm:$0xff] }
 0x117   : > { %v6331_v13 = vpop.eup %6330  ;;  %6344 = vrsqrt.f32 %v838_v47  ;;  %1214 = vst [vmem:[%s7762_s19 + $0x198] sm:$0xff] %v1086_v48  ;;  %v644_v18 = vpop.xlane.xlu0 %643  ;;  %5878 = vmatpush3.xpose.msra.mxu0 %v7777_v62  ;;  %6100 = vmatprep.mubr.f32.mxu0 %v1085_v44  ;;  %v840_v37 = vmax.f32 %v646_v29, 1e-24 }
 0x118   : > { %v6333_v46 = vpop.eup %6332  ;;  %v839_v52 = vmax.f32 %v644_v18, 1e-24  ;;  %v1087_v16 = vmul.f32 %v7268_v56, %v6331_v13  ;;  %5879 = vmatprep.subr.mxu0 %v7891_v27  ;;  %v7284_v56 = vld [vmem:[%s7489_s28 + $0x200] sm:$0xff] }
 0x119   : > { %v1088_v59 = vmul.f32 %v7269_v57, %v6333_v46  ;;  %v7285_v57 = vld [vmem:[%s7489_s28 + $0x208] sm:$0xff] }
 0x11a   : > { %6346 = vrsqrt.f32 %v839_v52  ;;  %1215 = vst [vmem:[%s7762_s19 + $0x1a0] sm:$0xff] %v1087_v16  ;;  %6101 = vmatmul.mubr.f32.gmra.mxu0 %v1086_v48  ;;  %v650_v62 = vpop.xlane.xlu1 %649 }
 0x11b   : > { %v6335_v54 = vpop.eup %6334  ;;  %6348 = vrsqrt.f32 %v840_v37  ;;  %1216 = vst [vmem:[%s7762_s19 + $0x1a8] sm:$0xff] %v1088_v59  ;;  %v648_v4 = vpop.xlane.xlu0 %647  ;;  %5880 = vmatpush3.xpose.msra.mxu0 %v7780_v63  ;;  %6103 = vmatprep.mubr.f32.mxu0 %v1087_v16  ;;  %v842_v27 = vmax.f32 %v650_v62, 1e-24 }
 0x11c   : > { %v6337_v7 = vpop.eup %6336  ;;  %v841_v6 = vmax.f32 %v648_v4, 1e-24  ;;  %v1089_v38 = vmul.f32 %v7270_v55, %v6335_v54  ;;  %5881 = vmatprep.subr.mxu0 %v7874_v9  ;;  %v7286_v55 = vld [vmem:[%s7489_s28 + $0x210] sm:$0xff] }
 0x11d   : > { %v1090_v0 = vmul.f32 %v7271_v17, %v6337_v7  ;;  %v7287_v17 = vld [vmem:[%s7489_s28 + $0x218] sm:$0xff] }
 0x11e   : > { %6350 = vrsqrt.f32 %v841_v6  ;;  %1217 = vst [vmem:[%s7762_s19 + $0x1b0] sm:$0xff] %v1089_v38  ;;  %6104 = vmatmul.mubr.f32.gmra.mxu0 %v1088_v59  ;;  %v654_v22 = vpop.xlane.xlu1 %653 }
 0x11f   : > { %v6339_v24 = vpop.eup %6338  ;;  %6352 = vrsqrt.f32 %v842_v27  ;;  %1218 = vst [vmem:[%s7762_s19 + $0x1b8] sm:$0xff] %v1090_v0  ;;  %v652_v63 = vpop.xlane.xlu0 %651  ;;  %5882 = vmatpush3.xpose.msra.mxu0 %v7272_v8  ;;  %6106 = vmatprep.mubr.f32.mxu0 %v1089_v38  ;;  %v844_v9 = vmax.f32 %v654_v22, 1e-24 }
 0x120   : > { %v6341_v50 = vpop.eup %6340  ;;  %v843_v12 = vmax.f32 %v652_v63, 1e-24  ;;  %v1091_v10 = vmul.f32 %v7273_v2, %v6339_v24  ;;  %5883 = vmatprep.subr.mxu0 %v7877_v23 }
 0x121   : > { %v1092_v60 = vmul.f32 %v7274_v25, %v6341_v50 }
 0x122   : > { %6354 = vrsqrt.f32 %v843_v12  ;;  %1219 = vst [vmem:[%s7762_s19 + $0x1c0] sm:$0xff] %v1091_v10  ;;  %6107 = vmatmul.mubr.f32.gmra.mxu0 %v1090_v0  ;;  %v658_v21 = vpop.xlane.xlu1 %657 }
 0x123   : > { %v6343_v39 = vpop.eup %6342  ;;  %6356 = vrsqrt.f32 %v844_v9  ;;  %1220 = vst [vmem:[%s7762_s19 + $0x1c8] sm:$0xff] %v1092_v60  ;;  %v656_v11 = vpop.xlane.xlu0 %655  ;;  %5884 = vmatpush3.xpose.msra.mxu0 %v7275_v43  ;;  %6109 = vmatprep.mubr.f32.mxu0 %v1091_v10  ;;  %v846_v23 = vmax.f32 %v658_v21, 1e-24  ;;  %v7288_v9 = vld [vmem:[%s7489_s28 + $0x220] sm:$0xff]  ;;  %v7289_v10 = vld [vmem:[%s7489_s28 + $0x228] sm:$0xff] }
 0x124   : > { %v6345_v61 = vpop.eup %6344  ;;  %v845_v20 = vmax.f32 %v656_v11, 1e-24  ;;  %v1093_v41 = vmul.f32 %v7276_v34, %v6343_v39  ;;  %5885 = vmatprep.subr.mxu0 %v7860_v53  ;;  %v7291_v34 = vld [vmem:[%s7489_s28 + $0x238] sm:$0xff] }
 0x125   : > { %v1094_v35 = vmul.f32 %v7277_v26, %v6345_v61 }
 0x126   : > { %6358 = vrsqrt.f32 %v845_v20  ;;  %1221 = vst [vmem:[%s7762_s19 + $0x1d0] sm:$0xff] %v1093_v41  ;;  %6110 = vmatmul.mubr.f32.gmra.mxu0 %v1092_v60  ;;  %v662_v36 = vpop.xlane.xlu1 %661  ;;  %v7290_v20 = vld [vmem:[%s7489_s28 + $0x230] sm:$0xff] }
 0x127   : > { %v6347_v3 = vpop.eup %6346  ;;  %6360 = vrsqrt.f32 %v846_v23  ;;  %1222 = vst [vmem:[%s7762_s19 + $0x1d8] sm:$0xff] %v1094_v35  ;;  %v660_v30 = vpop.xlane.xlu0 %659  ;;  %5886 = vmatpush3.xpose.msra.mxu0 %v7278_v51  ;;  %6112 = vmatprep.mubr.f32.mxu0 %v1093_v41  ;;  %v848_v53 = vmax.f32 %v662_v36, 1e-24  ;;  %v7292_v51 = vld [vmem:[%s7489_s28 + $0x240] sm:$0xff] }
 0x128   : > { %v6349_v14 = vpop.eup %6348  ;;  %v847_v31 = vmax.f32 %v660_v30, 1e-24  ;;  %v1095_v40 = vmul.f32 %v7279_v1, %v6347_v3  ;;  %5887 = vmatprep.subr.mxu0 %v7863_v19 }
 0x129   : > { %v1096_v5 = vmul.f32 %v7280_v42, %v6349_v14 }
 0x12a   : > { %6362 = vrsqrt.f32 %v847_v31  ;;  %1223 = vst [vmem:[%s7762_s19 + $0x1e0] sm:$0xff] %v1095_v40  ;;  %6113 = vmatmul.mubr.f32.gmra.mxu0 %v1094_v35  ;;  %v666_v58 = vpop.xlane.xlu1 %665 }
 0x12b   : > { %v6351_v45 = vpop.eup %6350  ;;  %6364 = vrsqrt.f32 %v848_v53  ;;  %1224 = vst [vmem:[%s7762_s19 + $0x1e8] sm:$0xff] %v1096_v5  ;;  %v664_v28 = vpop.xlane.xlu0 %663  ;;  %5888 = vmatpush3.xpose.msra.mxu0 %v7281_v33  ;;  %6115 = vmatprep.mubr.f32.mxu0 %v1095_v40  ;;  %v850_v19 = vmax.f32 %v666_v58, 1e-24  ;;  %v7293_v53 = vld [vmem:[%s7489_s28 + $0x248] sm:$0xff] }
 0x12c   : > { %v6353_v49 = vpop.eup %6352  ;;  %v849_v47 = vmax.f32 %v664_v28, 1e-24  ;;  %v1097_v44 = vmul.f32 %v7282_v32, %v6351_v45 }
 0x12d   : > { %v1098_v48 = vmul.f32 %v7283_v15, %v6353_v49  ;;  %v7294_v49 = vld [vmem:[%s7489_s28 + $0x250] sm:$0xff] }
 0x12e   : > { %6366 = vrsqrt.f32 %v849_v47  ;;  %1225 = vst [vmem:[%s7762_s19 + $0x1f0] sm:$0xff] %v1097_v44  ;;  %6116 = vmatmul.mubr.f32.gmra.mxu0 %v1096_v5  ;;  %v670_v29 = vpop.xlane.xlu1 %669  ;;  %v7295_v47 = vld [vmem:[%s7489_s28 + $0x258] sm:$0xff] }
 0x12f   : > { %v6355_v13 = vpop.eup %6354  ;;  %6368 = vrsqrt.f32 %v850_v19  ;;  %1226 = vst [vmem:[%s7762_s19 + $0x1f8] sm:$0xff] %v1098_v48  ;;  %v668_v18 = vpop.xlane.xlu0 %667  ;;  %6118 = vmatprep.mubr.f32.mxu0 %v1097_v44  ;;  %v852_v37 = vmax.f32 %v670_v29, 1e-24  ;;  %v7296_v29 = vld [vmem:[%s7489_s28 + $0x260] sm:$0xff] }
 0x130   : > { %v6357_v46 = vpop.eup %6356  ;;  %v851_v52 = vmax.f32 %v668_v18, 1e-24  ;;  %v1099_v16 = vmul.f32 %v7284_v56, %v6355_v13 }
 0x131   : > { %v1100_v59 = vmul.f32 %v7285_v57, %v6357_v46 }
 0x132   : > { %6370 = vrsqrt.f32 %v851_v52  ;;  %1227 = vst [vmem:[%s7762_s19 + $0x200] sm:$0xff] %v1099_v16  ;;  %6119 = vmatmul.mubr.f32.gmra.mxu0 %v1098_v48  ;;  %v674_v62 = vpop.xlane.xlu1 %673  ;;  %v7297_v52 = vld [vmem:[%s7489_s28 + $0x268] sm:$0xff] }
 0x133   : > { %v6359_v54 = vpop.eup %6358  ;;  %6372 = vrsqrt.f32 %v852_v37  ;;  %1228 = vst [vmem:[%s7762_s19 + $0x208] sm:$0xff] %v1100_v59  ;;  %v672_v4 = vpop.xlane.xlu0 %671  ;;  %6121 = vmatprep.mubr.f32.mxu0 %v1099_v16  ;;  %v854_v27 = vmax.f32 %v674_v62, 1e-24  ;;  %v7298_v62 = vld [vmem:[%s7489_s28 + $0x270] sm:$0xff] }
 0x134   : > { %v6361_v7 = vpop.eup %6360  ;;  %v853_v6 = vmax.f32 %v672_v4, 1e-24  ;;  %v1101_v38 = vmul.f32 %v7286_v55, %v6359_v54 }
 0x135   : > { %v1102_v0 = vmul.f32 %v7287_v17, %v6361_v7 }
 0x136   : > { %6374 = vrsqrt.f32 %v853_v6  ;;  %1229 = vst [vmem:[%s7762_s19 + $0x210] sm:$0xff] %v1101_v38  ;;  %6122 = vmatmul.mubr.f32.gmra.mxu0 %v1100_v59  ;;  %v678_v22 = vpop.xlane.xlu1 %677  ;;  %v7299_v6 = vld [vmem:[%s7489_s28 + $0x278] sm:$0xff] }
 0x137   : > { %v6363_v24 = vpop.eup %6362  ;;  %6376 = vrsqrt.f32 %v854_v27  ;;  %1230 = vst [vmem:[%s7762_s19 + $0x218] sm:$0xff] %v1102_v0  ;;  %v676_v63 = vpop.xlane.xlu0 %675  ;;  %6124 = vmatprep.mubr.f32.mxu0 %v1101_v38  ;;  %v856_v12 = vmax.f32 %v678_v22, 1e-24  ;;  %v7300_v22 = vld [vmem:[%s7489_s28 + $0x280] sm:$0xff] }
 0x138   : > { %v6365_v50 = vpop.eup %6364  ;;  %v855_v8 = vmax.f32 %v676_v63, 1e-24  ;;  %v1103_v2 = vmul.f32 %v7288_v9, %v6363_v24 }
 0x139   : > { %v1104_v25 = vmul.f32 %v7289_v10, %v6365_v50 }
 0x13a   : > { %6378 = vrsqrt.f32 %v855_v8  ;;  %1231 = vst [vmem:[%s7762_s19 + $0x220] sm:$0xff] %v1103_v2  ;;  %6125 = vmatmul.mubr.f32.gmra.mxu0 %v1102_v0  ;;  %v682_v11 = vpop.xlane.xlu1 %681  ;;  %v7301_v8 = vld [vmem:[%s7489_s28 + $0x288] sm:$0xff] }
 0x13b   : > { %v6367_v60 = vpop.eup %6366  ;;  %6380 = vrsqrt.f32 %v856_v12  ;;  %1232 = vst [vmem:[%s7762_s19 + $0x228] sm:$0xff] %v1104_v25  ;;  %v680_v39 = vpop.xlane.xlu0 %679  ;;  %6127 = vmatprep.mubr.f32.mxu0 %v1103_v2  ;;  %v858_v43 = vmax.f32 %v682_v11, 1e-24  ;;  %v7302_v11 = vld [vmem:[%s7489_s28 + $0x290] sm:$0xff] }
 0x13c   : > { %v6369_v21 = vpop.eup %6368  ;;  %v857_v61 = vmax.f32 %v680_v39, 1e-24  ;;  %v1105_v23 = vmul.f32 %v7290_v20, %v6367_v60 }
 0x13d   : > { %v1106_v41 = vmul.f32 %v7291_v34, %v6369_v21 }
 0x13e   : > { %6382 = vrsqrt.f32 %v857_v61  ;;  %1233 = vst [vmem:[%s7762_s19 + $0x230] sm:$0xff] %v1105_v23  ;;  %6128 = vmatmul.mubr.f32.gmra.mxu0 %v1104_v25  ;;  %v686_v3 = vpop.xlane.xlu1 %685  ;;  %v7303_v61 = vld [vmem:[%s7489_s28 + $0x298] sm:$0xff] }
 0x13f   : > { %v6371_v26 = vpop.eup %6370  ;;  %6384 = vrsqrt.f32 %v858_v43  ;;  %1234 = vst [vmem:[%s7762_s19 + $0x238] sm:$0xff] %v1106_v41  ;;  %v684_v35 = vpop.xlane.xlu0 %683  ;;  %6130 = vmatprep.mubr.f32.mxu0 %v1105_v23  ;;  %v860_v14 = vmax.f32 %v686_v3, 1e-24  ;;  %v7304_v3 = vld [vmem:[%s7489_s28 + $0x2a0] sm:$0xff] }
 0x140   : > { %v6373_v30 = vpop.eup %6372  ;;  %v859_v36 = vmax.f32 %v684_v35, 1e-24  ;;  %v8089_v31 = vmul.f32 %v7292_v51, %v6371_v26 }
 0x141   : > { %v8092_v1 = vmul.f32 %v7293_v53, %v6373_v30 }
 0x142   : > { %6386 = vrsqrt.f32 %v859_v36  ;;  %1235 = vst [vmem:[%s7762_s19 + $0x240] sm:$0xff] %v8089_v31  ;;  %6131 = vmatmul.mubr.f32.gmra.mxu0 %v1106_v41  ;;  %v690_v5 = vpop.xlane.xlu1 %689  ;;  %v7305_v36 = vld [vmem:[%s7489_s28 + $0x2a8] sm:$0xff] }
 0x143   : > { %v6375_v40 = vpop.eup %6374  ;;  %6388 = vrsqrt.f32 %v860_v14  ;;  %1236 = vst [vmem:[%s7762_s19 + $0x248] sm:$0xff] %v8092_v1  ;;  %v688_v42 = vpop.xlane.xlu0 %687  ;;  %6133 = vmatprep.mubr.f32.mxu0 %v8089_v31  ;;  %v862_v58 = vmax.f32 %v690_v5, 1e-24 }
 0x144   : > { %v6377_v45 = vpop.eup %6376  ;;  %v861_v28 = vmax.f32 %v688_v42, 1e-24  ;;  %v8100_v33 = vmul.f32 %v7294_v49, %v6375_v40  ;;  %v7307_v49 = vld [vmem:[%s7489_s28 + $0x2b8] sm:$0xff] }
 0x145   : > { %v8103_v19 = vmul.f32 %v7295_v47, %v6377_v45 }
 0x146   : > { %6390 = vrsqrt.f32 %v861_v28  ;;  %1237 = vst [vmem:[%s7762_s19 + $0x250] sm:$0xff] %v8100_v33  ;;  %6134 = vmatmul.mubr.f32.gmra.mxu0 %v8092_v1  ;;  %v694_v15 = vpop.xlane.xlu1 %693  ;;  %v7306_v28 = vld [vmem:[%s7489_s28 + $0x2b0] sm:$0xff] }
 0x147   : > { %v6379_v32 = vpop.eup %6378  ;;  %6392 = vrsqrt.f32 %v862_v58  ;;  %1238 = vst [vmem:[%s7762_s19 + $0x258] sm:$0xff] %v8103_v19  ;;  %v692_v44 = vpop.xlane.xlu0 %691  ;;  %6136 = vmatprep.mubr.f32.mxu0 %v8100_v33  ;;  %v864_v18 = vmax.f32 %v694_v15, 1e-24 }
 0x148   : > { %v6381_v48 = vpop.eup %6380  ;;  %v863_v13 = vmax.f32 %v692_v44, 1e-24  ;;  %v8112_v46 = vmul.f32 %v7296_v29, %v6379_v32  ;;  %v7308_v29 = vld [vmem:[%s7489_s28 + $0x2c0] sm:$0xff] }
 0x149   : > { %v8115_v37 = vmul.f32 %v7297_v52, %v6381_v48 }
 0x14a   : > { %6394 = vrsqrt.f32 %v863_v13  ;;  %1239 = vst [vmem:[%s7762_s19 + $0x260] sm:$0xff] %v8112_v46  ;;  %6137 = vmatmul.mubr.f32.gmra.mxu0 %v8103_v19  ;;  %v698_v57 = vpop.xlane.xlu1 %697 }
 0x14b   : > { %v6383_v56 = vpop.eup %6382  ;;  %6396 = vrsqrt.f32 %v864_v18  ;;  %1240 = vst [vmem:[%s7762_s19 + $0x268] sm:$0xff] %v8115_v37  ;;  %v696_v16 = vpop.xlane.xlu0 %695  ;;  %6139 = vmatprep.mubr.f32.mxu0 %v8112_v46  ;;  %v866_v4 = vmax.f32 %v698_v57, 1e-24 }
 0x14c   : > { %v6385_v59 = vpop.eup %6384  ;;  %v865_v54 = vmax.f32 %v696_v16, 1e-24  ;;  %v8124_v7 = vmul.f32 %v7298_v62, %v6383_v56  ;;  %v7309_v56 = vld [vmem:[%s7489_s28 + $0x2c8] sm:$0xff] }
 0x14d   : > { %v8127_v27 = vmul.f32 %v7299_v6, %v6385_v59 }
 0x14e   : > { %6398 = vrsqrt.f32 %v865_v54  ;;  %1241 = vst [vmem:[%s7762_s19 + $0x270] sm:$0xff] %v8124_v7  ;;  %6140 = vmatmul.mubr.f32.gmra.mxu0 %v8115_v37  ;;  %v702_v17 = vpop.xlane.xlu1 %701 }
 0x14f   : > { %v6387_v55 = vpop.eup %6386  ;;  %6400 = vrsqrt.f32 %v866_v4  ;;  %1242 = vst [vmem:[%s7762_s19 + $0x278] sm:$0xff] %v8127_v27  ;;  %v700_v38 = vpop.xlane.xlu0 %699  ;;  %6142 = vmatprep.mubr.f32.mxu0 %v8124_v7  ;;  %v868_v63 = vmax.f32 %v702_v17, 1e-24  ;;  %v7311_v17 = vld [vmem:[%s7489_s28 + $0x2d8] sm:$0xff] }
 0x150   : > { %v6389_v0 = vpop.eup %6388  ;;  %v867_v24 = vmax.f32 %v700_v38, 1e-24  ;;  %v8136_v50 = vmul.f32 %v7300_v22, %v6387_v55  ;;  %v7310_v55 = vld [vmem:[%s7489_s28 + $0x2d0] sm:$0xff] }
 0x151   : > { %v8139_v12 = vmul.f32 %v7301_v8, %v6389_v0 }
 0x152   : > { %6402 = vrsqrt.f32 %v867_v24  ;;  %1243 = vst [vmem:[%s7762_s19 + $0x280] sm:$0xff] %v8136_v50  ;;  %6143 = vmatmul.mubr.f32.gmra.mxu0 %v8127_v27  ;;  %v706_v10 = vpop.xlane.xlu1 %705 }
 0x153   : > { %v6391_v9 = vpop.eup %6390  ;;  %6404 = vrsqrt.f32 %v868_v63  ;;  %1244 = vst [vmem:[%s7762_s19 + $0x288] sm:$0xff] %v8139_v12  ;;  %v704_v2 = vpop.xlane.xlu0 %703  ;;  %6145 = vmatprep.mubr.f32.mxu0 %v8136_v50  ;;  %v870_v39 = vmax.f32 %v706_v10, 1e-24  ;;  %v7312_v10 = vld [vmem:[%s7489_s28 + $0x2e0] sm:$0xff] }
 0x154   : > { %v6393_v25 = vpop.eup %6392  ;;  %v869_v60 = vmax.f32 %v704_v2, 1e-24  ;;  %v8148_v21 = vmul.f32 %v7302_v11, %v6391_v9 }
 0x155   : > { %v8151_v43 = vmul.f32 %v7303_v61, %v6393_v25 }
 0x156   : > { %6406 = vrsqrt.f32 %v869_v60  ;;  %1245 = vst [vmem:[%s7762_s19 + $0x290] sm:$0xff] %v8148_v21  ;;  %6146 = vmatmul.mubr.f32.gmra.mxu0 %v8139_v12  ;;  %v710_v34 = vpop.xlane.xlu1 %709  ;;  %v7313_v60 = vld [vmem:[%s7489_s28 + $0x2e8] sm:$0xff] }
 0x157   : > { %v6395_v20 = vpop.eup %6394  ;;  %6408 = vrsqrt.f32 %v870_v39  ;;  %1246 = vst [vmem:[%s7762_s19 + $0x298] sm:$0xff] %v8151_v43  ;;  %v708_v23 = vpop.xlane.xlu0 %707  ;;  %6148 = vmatprep.mubr.f32.mxu0 %v8148_v21  ;;  %v872_v35 = vmax.f32 %v710_v34, 1e-24 }
 0x158   : > { %v6397_v41 = vpop.eup %6396  ;;  %v871_v26 = vmax.f32 %v708_v23, 1e-24  ;;  %v8160_v30 = vmul.f32 %v7304_v3, %v6395_v20  ;;  %v7315_v3 = vld [vmem:[%s7489_s28 + $0x2f8] sm:$0xff] }
 0x159   : > { %v8163_v14 = vmul.f32 %v7305_v36, %v6397_v41 }
 0x15a   : > { %6410 = vrsqrt.f32 %v871_v26  ;;  %1247 = vst [vmem:[%s7762_s19 + $0x2a0] sm:$0xff] %v8160_v30  ;;  %6149 = vmatmul.mubr.f32.gmra.mxu0 %v8151_v43  ;;  %v714_v40 = vpop.xlane.xlu1 %713  ;;  %v7314_v26 = vld [vmem:[%s7489_s28 + $0x2f0] sm:$0xff] }
 0x15b   : > { %v6399_v51 = vpop.eup %6398  ;;  %6412 = vrsqrt.f32 %v872_v35  ;;  %1248 = vst [vmem:[%s7762_s19 + $0x2a8] sm:$0xff] %v8163_v14  ;;  %v712_v53 = vpop.xlane.xlu0 %711  ;;  %6151 = vmatprep.mubr.f32.mxu0 %v8160_v30  ;;  %v874_v45 = vmax.f32 %v714_v40, 1e-24 }
 0x15c   : > { %v6401_v42 = vpop.eup %6400  ;;  %v873_v5 = vmax.f32 %v712_v53, 1e-24  ;;  %v8172_v58 = vmul.f32 %v7306_v28, %v6399_v51  ;;  %v7316_v28 = vld [vmem:[%s7489_s28 + $0x300] sm:$0xff] }
 0x15d   : > { %v8175_v47 = vmul.f32 %v7307_v49, %v6401_v42 }
 0x15e   : > { %6414 = vrsqrt.f32 %v873_v5  ;;  %1249 = vst [vmem:[%s7762_s19 + $0x2b0] sm:$0xff] %v8172_v58  ;;  %6152 = vmatmul.mubr.f32.gmra.mxu0 %v8163_v14  ;;  %v718_v15 = vpop.xlane.xlu1 %717 }
 0x15f   : > { %v6403_v32 = vpop.eup %6402  ;;  %6416 = vrsqrt.f32 %v874_v45  ;;  %1250 = vst [vmem:[%s7762_s19 + $0x2b8] sm:$0xff] %v8175_v47  ;;  %v716_v44 = vpop.xlane.xlu0 %715  ;;  %6154 = vmatprep.mubr.f32.mxu0 %v8172_v58  ;;  %v876_v18 = vmax.f32 %v718_v15, 1e-24 }
 0x160   : > { %v6405_v48 = vpop.eup %6404  ;;  %v875_v13 = vmax.f32 %v716_v44, 1e-24  ;;  %v8184_v52 = vmul.f32 %v7308_v29, %v6403_v32  ;;  %v7317_v32 = vld [vmem:[%s7489_s28 + $0x308] sm:$0xff] }
 0x161   : > { %v8187_v16 = vmul.f32 %v7309_v56, %v6405_v48 }
 0x162   : > { %6418 = vrsqrt.f32 %v875_v13  ;;  %1251 = vst [vmem:[%s7762_s19 + $0x2c0] sm:$0xff] %v8184_v52  ;;  %6155 = vmatmul.mubr.f32.gmra.mxu0 %v8175_v47  ;;  %v722_v54 = vpop.xlane.xlu1 %721 }
 0x163   : > { %v6407_v57 = vpop.eup %6406  ;;  %6420 = vrsqrt.f32 %v876_v18  ;;  %1252 = vst [vmem:[%s7762_s19 + $0x2c8] sm:$0xff] %v8187_v16  ;;  %v720_v59 = vpop.xlane.xlu0 %719  ;;  %6157 = vmatprep.mubr.f32.mxu0 %v8184_v52  ;;  %v878_v6 = vmax.f32 %v722_v54, 1e-24  ;;  %v7319_v54 = vld [vmem:[%s7489_s28 + $0x318] sm:$0xff] }
 0x164   : > { %v6409_v4 = vpop.eup %6408  ;;  %v877_v62 = vmax.f32 %v720_v59, 1e-24  ;;  %v8196_v38 = vmul.f32 %v7310_v55, %v6407_v57  ;;  %v7318_v57 = vld [vmem:[%s7489_s28 + $0x310] sm:$0xff] }
 0x165   : > { %v8199_v0 = vmul.f32 %v7311_v17, %v6409_v4 }
 0x166   : > { %6422 = vrsqrt.f32 %v877_v62  ;;  %1253 = vst [vmem:[%s7762_s19 + $0x2d0] sm:$0xff] %v8196_v38  ;;  %6158 = vmatmul.mubr.f32.gmra.mxu0 %v8187_v16  ;;  %v726_v22 = vpop.xlane.xlu1 %725 }
 0x167   : > { %v6411_v24 = vpop.eup %6410  ;;  %6424 = vrsqrt.f32 %v878_v6  ;;  %1254 = vst [vmem:[%s7762_s19 + $0x2d8] sm:$0xff] %v8199_v0  ;;  %v724_v63 = vpop.xlane.xlu0 %723  ;;  %6160 = vmatprep.mubr.f32.mxu0 %v8196_v38  ;;  %v880_v2 = vmax.f32 %v726_v22, 1e-24 }
 0x168   : > { %v6413_v8 = vpop.eup %6412  ;;  %v879_v9 = vmax.f32 %v724_v63, 1e-24  ;;  %v8208_v25 = vmul.f32 %v7312_v10, %v6411_v24 }
 0x169   : > { %v8211_v39 = vmul.f32 %v7313_v60, %v6413_v8  ;;  %v7320_v8 = vld [vmem:[%s7489_s28 + $0x320] sm:$0xff]  ;;  %v7321_v60 = vld [vmem:[%s7489_s28 + $0x328] sm:$0xff] }
 0x16a   : > { %6426 = vrsqrt.f32 %v879_v9  ;;  %1255 = vst [vmem:[%s7762_s19 + $0x2e0] sm:$0xff] %v8208_v25  ;;  %6161 = vmatmul.mubr.f32.gmra.mxu0 %v8199_v0  ;;  %v730_v20 = vpop.xlane.xlu1 %729 }
 0x16b   : > { %v6415_v11 = vpop.eup %6414  ;;  %6428 = vrsqrt.f32 %v880_v2  ;;  %1256 = vst [vmem:[%s7762_s19 + $0x2e8] sm:$0xff] %v8211_v39  ;;  %v728_v61 = vpop.xlane.xlu0 %727  ;;  %6163 = vmatprep.mubr.f32.mxu0 %v8208_v25  ;;  %v882_v41 = vmax.f32 %v730_v20, 1e-24 }
 0x16c   : > { %v6417_v23 = vpop.eup %6416  ;;  %v881_v34 = vmax.f32 %v728_v61, 1e-24  ;;  %v8220_v35 = vmul.f32 %v7314_v26, %v6415_v11 }
 0x16d   : > { %v1130_v36 = vmul.f32 %v7315_v3, %v6417_v23 }
 0x16e   : > { %6430 = vrsqrt.f32 %v881_v34  ;;  %1257 = vst [vmem:[%s7762_s19 + $0x2f0] sm:$0xff] %v8220_v35  ;;  %6164 = vmatmul.mubr.f32.gmra.mxu0 %v8211_v39  ;;  %v734_v40 = vpop.xlane.xlu1 %733 }
 0x16f   : > { %v6419_v51 = vpop.eup %6418  ;;  %6432 = vrsqrt.f32 %v882_v41  ;;  %1258 = vst [vmem:[%s7762_s19 + $0x2f8] sm:$0xff] %v1130_v36  ;;  %v732_v53 = vpop.xlane.xlu0 %731  ;;  %5925 = vmatprep.subr.mxu0 %v1130_v36  ;;  %6166 = vmatprep.mubr.f32.mxu0 %v8220_v35  ;;  %v884_v45 = vmax.f32 %v734_v40, 1e-24 }
 0x170   : > { %v6421_v42 = vpop.eup %6420  ;;  %v883_v5 = vmax.f32 %v732_v53, 1e-24  ;;  %v1131_v49 = vmul.f32 %v7316_v28, %v6419_v51 }
 0x171   : > { %v1132_v44 = vmul.f32 %v7317_v32, %v6421_v42  ;;  %v7323_v42 = vld [vmem:[%s7489_s28 + $0x338] sm:$0xff] }
 0x172   : > { %6434 = vrsqrt.f32 %v883_v5  ;;  %1259 = vst [vmem:[%s7762_s19 + $0x300] sm:$0xff] %v1131_v49  ;;  %6167 = vmatmul.mubr.f32.gmra.mxu0 %v1130_v36  ;;  %v738_v13 = vpop.xlane.xlu1 %737  ;;  %v7322_v36 = vld [vmem:[%s7489_s28 + $0x330] sm:$0xff] }
 0x173   : > { %v6423_v15 = vpop.eup %6422  ;;  %6436 = vrsqrt.f32 %v884_v45  ;;  %1260 = vst [vmem:[%s7762_s19 + $0x308] sm:$0xff] %v1132_v44  ;;  %v736_v48 = vpop.xlane.xlu0 %735  ;;  %6169 = vmatprep.mubr.f32.mxu0 %v1131_v49  ;;  %v886_v56 = vmax.f32 %v738_v13, 1e-24  ;;  %v7324_v13 = vld [vmem:[%s7489_s28 + $0x340] sm:$0xff] }
 0x174   : > { %v6425_v18 = vpop.eup %6424  ;;  %v885_v29 = vmax.f32 %v736_v48, 1e-24  ;;  %v1133_v59 = vmul.f32 %v7318_v57, %v6423_v15  ;;  %v7325_v57 = vld [vmem:[%s7489_s28 + $0x348] sm:$0xff] }
 0x175   : > { %v1134_v4 = vmul.f32 %v7319_v54, %v6425_v18 }
 0x176   : > { %6438 = vrsqrt.f32 %v885_v29  ;;  %1261 = vst [vmem:[%s7762_s19 + $0x310] sm:$0xff] %v1133_v59  ;;  %v8235_v6 = vpop.f32.mrf.mxu0  ;;  %6170 = vmatmul.mubr.f32.gmra.mxu0 %v1132_v44 }
 0x177   : > { %v6427_v62 = vpop.eup %6426  ;;  %6440 = vrsqrt.f32 %v886_v56  ;;  %1262 = vst [vmem:[%s7762_s19 + $0x318] sm:$0xff] %v1134_v4  ;;  %v740_v55 = vpop.xlane.xlu0 %739  ;;  %v2019_v24 = vsel %vm2015_vm0, %v8235_v6, -inf  ;;  %6172 = vmatprep.mubr.f32.mxu0 %v1133_v59 }
 0x178   : > { %v6429_v17 = vpop.eup %6428  ;;  %v887_v63 = vmax.f32 %v740_v55, 1e-24  ;;  %v742_v22 = vpop.xlane.xlu1 %741  ;;  %v1135_v9 = vmul.f32 %v7320_v8, %v6427_v62  ;;  %2020 = vmax.xlane.f32.xlu1 %v2019_v24 }
 0x179   : > { %v8241_v2 = vpop.f32.mrf.mxu0  ;;  %v888_v10 = vmax.f32 %v742_v22, 1e-24  ;;  %v1136_v11 = vmul.f32 %v7321_v60, %v6429_v17  ;;  %v7326_v22 = vld [vmem:[%s7489_s28 + $0x350] sm:$0xff]  ;;  %v7327_v60 = vld [vmem:[%s7489_s28 + $0x358] sm:$0xff] }
 0x17a   : > { %6442 = vrsqrt.f32 %v887_v63  ;;  %1263 = vst [vmem:[%s7762_s19 + $0x320] sm:$0xff] %v1135_v9  ;;  %6173 = vmatmul.mubr.f32.gmra.mxu0 %v1134_v4  ;;  %v2016_v41 = vsel %vm2015_vm0, %v8241_v2, -inf }
 0x17b   : > { %v6431_v61 = vpop.eup %6430  ;;  %v8245_v20 = vpop.f32.mrf.mxu0  ;;  %6444 = vrsqrt.f32 %v888_v10  ;;  %1264 = vst [vmem:[%s7762_s19 + $0x328] sm:$0xff] %v1136_v11  ;;  %6175 = vmatprep.mubr.f32.mxu0 %v1135_v9 }
 0x17c   : > { %v744_v23 = vpop.xlane.xlu0 %743  ;;  %v6433_v34 = vpop.eup %6432  ;;  %v1137_v51 = vmul.f32 %v7322_v36, %v6431_v61  ;;  %2017 = vmax.xlane.f32.xlu1 %v2016_v41  ;;  %v2025_v44 = vsel %vm2015_vm0, %v8245_v20, -inf }
 0x17d   : > { %v889_v26 = vmax.f32 %v744_v23, 1e-24  ;;  %v746_v3 = vpop.xlane.xlu1 %745  ;;  %v8251_v53 = vpop.f32.mrf.mxu0  ;;  %v1138_v5 = vmul.f32 %v7323_v42, %v6433_v34 }
 0x17e   : > { %v890_v40 = vmax.f32 %v746_v3, 1e-24  ;;  %1265 = vst [vmem:[%s7762_s19 + $0x330] sm:$0xff] %v1137_v51  ;;  %6176 = vmatmul.mubr.f32.gmra.mxu0 %v1136_v11  ;;  %v2022_v17 = vsel %vm2015_vm0, %v8251_v53, -inf }
 0x17f   : > { %6446 = vrsqrt.f32 %v889_v26  ;;  %v6435_v45 = vpop.eup %6434  ;;  %v8255_v28 = vpop.f32.mrf.mxu0  ;;  %1266 = vst [vmem:[%s7762_s19 + $0x338] sm:$0xff] %v1138_v5  ;;  %6178 = vmatprep.mubr.f32.mxu0 %v1137_v51  ;;  %v7328_v51 = vld [vmem:[%s7489_s28 + $0x360] sm:$0xff] }
 0x180   : > { %6448 = vrsqrt.f32 %v890_v40  ;;  %v748_v49 = vpop.xlane.xlu0 %747  ;;  %v6437_v32 = vpop.eup %6436  ;;  %v1139_v18 = vmul.f32 %v7324_v13, %v6435_v45  ;;  %2026 = vmax.xlane.f32.xlu1 %v2025_v44  ;;  %v2031_v26 = vsel %vm2015_vm0, %v8255_v28, -inf  ;;  %v7329_v45 = vld [vmem:[%s7489_s28 + $0x368] sm:$0xff] }
 0x181   : > { %v891_v15 = vmax.f32 %v748_v49, 1e-24  ;;  %v750_v48 = vpop.xlane.xlu1 %749  ;;  %v8261_v29 = vpop.f32.mrf.mxu0  ;;  %v1140_v59 = vmul.f32 %v7325_v57, %v6437_v32  ;;  %v7330_v57 = vld [vmem:[%s7489_s28 + $0x370] sm:$0xff] }
 0x182   : > { %v892_v56 = vmax.f32 %v750_v48, 1e-24  ;;  %1267 = vst [vmem:[%s7762_s19 + $0x340] sm:$0xff] %v1139_v18  ;;  %6179 = vmatmul.mubr.f32.gmra.mxu0 %v1138_v5  ;;  %v2028_v13 = vsel %vm2015_vm0, %v8261_v29, -inf }
 0x183   : > { %6450 = vrsqrt.f32 %v891_v15  ;;  %v6439_v54 = vpop.eup %6438  ;;  %v8265_v4 = vpop.f32.mrf.mxu0  ;;  %1268 = vst [vmem:[%s7762_s19 + $0x348] sm:$0xff] %v1140_v59  ;;  %6181 = vmatprep.mubr.f32.mxu0 %v1139_v18 }
 0x184   : > { %6452 = vrsqrt.f32 %v892_v56  ;;  %v752_v62 = vpop.xlane.xlu0 %751  ;;  %v6441_v55 = vpop.eup %6440  ;;  %v1141_v8 = vmul.f32 %v7326_v22, %v6439_v54  ;;  %2023 = vmax.xlane.f32.xlu1 %v2022_v17 }
 0x185   : > { %v893_v24 = vmax.f32 %v752_v62, 1e-24  ;;  %v754_v63 = vpop.xlane.xlu1 %753  ;;  %v8271_v9 = vpop.f32.mrf.mxu0  ;;  %v1142_v11 = vmul.f32 %v7327_v60, %v6441_v55  ;;  %v7331_v55 = vld [vmem:[%s7489_s28 + $0x378] sm:$0xff] }
 0x186   : > { %v894_v10 = vmax.f32 %v754_v63, 1e-24  ;;  %1269 = vst [vmem:[%s7762_s19 + $0x350] sm:$0xff] %v1141_v8  ;;  %6182 = vmatmul.mubr.f32.gmra.mxu0 %v1140_v59 }
 0x187   : > { %6454 = vrsqrt.f32 %v893_v24  ;;  %v6443_v61 = vpop.eup %6442  ;;  %v8275_v23 = vpop.f32.mrf.mxu0  ;;  %1270 = vst [vmem:[%s7762_s19 + $0x358] sm:$0xff] %v1142_v11  ;;  %6184 = vmatprep.mubr.f32.mxu0 %v1141_v8 }
 0x188   : > { %6456 = vrsqrt.f32 %v894_v10  ;;  %v756_v34 = vpop.xlane.xlu0 %755  ;;  %v6445_v41 = vpop.eup %6444  ;;  %v1143_v40 = vmul.f32 %v7328_v51, %v6443_v61  ;;  %2032 = vmax.xlane.f32.xlu1 %v2031_v26  ;;  %v2037_v10 = vsel %vm2015_vm0, %v8265_v4, -inf  ;;  %v7332_v61 = vld [vmem:[%s7489_s28 + $0x380] sm:$0xff] }
 0x189   : > { %v895_v3 = vmax.f32 %v756_v34, 1e-24  ;;  %v758_v36 = vpop.xlane.xlu1 %757  ;;  %v8281_v42 = vpop.f32.mrf.mxu0  ;;  %v1144_v49 = vmul.f32 %v7329_v45, %v6445_v41 }
 0x18a   : > { %v896_v5 = vmax.f32 %v758_v36, 1e-24  ;;  %1271 = vst [vmem:[%s7762_s19 + $0x360] sm:$0xff] %v1143_v40  ;;  %6185 = vmatmul.mubr.f32.gmra.mxu0 %v1142_v11 }
 0x18b   : > { %6458 = vrsqrt.f32 %v895_v3  ;;  %v8285_v44 = vpop.f32.mrf.mxu0  ;;  %1272 = vst [vmem:[%s7762_s19 + $0x368] sm:$0xff] %v1144_v49  ;;  %6187 = vmatprep.mubr.f32.mxu0 %v1143_v40  ;;  %v7333_v3 = vld [vmem:[%s7489_s28 + $0x388] sm:$0xff] }
 0x18c   : > { %v6447_v32 = vpop.eup %6446  ;;  %6460 = vrsqrt.f32 %v896_v5  ;;  %v760_v15 = vpop.xlane.xlu0 %759  ;;  %2029 = vmax.xlane.f32.xlu1 %v2028_v13 }
 0x18d   : > { %v6449_v48 = vpop.eup %6448  ;;  %v897_v18 = vmax.f32 %v760_v15, 1e-24  ;;  %v762_v56 = vpop.xlane.xlu1 %761  ;;  %v1145_v59 = vmul.f32 %v7330_v57, %v6447_v32  ;;  %v7335_v57 = vld [vmem:[%s7489_s28 + $0x398] sm:$0xff] }
 0x18e   : > { %v8291_v54 = vpop.f32.mrf.mxu0  ;;  %v898_v62 = vmax.f32 %v762_v56, 1e-24  ;;  %v1146_v17 = vmul.f32 %v7331_v55, %v6449_v48  ;;  %6188 = vmatmul.mubr.f32.gmra.mxu0 %v1144_v49  ;;  %v2034_v49 = vsel %vm2015_vm0, %v8271_v9, -inf  ;;  %v7334_v48 = vld [vmem:[%s7489_s28 + $0x390] sm:$0xff] }
 0x18f   : > { %6462 = vrsqrt.f32 %v897_v18  ;;  %1273 = vst [vmem:[%s7762_s19 + $0x370] sm:$0xff] %v1145_v59  ;;  %6190 = vmatprep.mubr.f32.mxu0 %v1145_v59 }
 0x190   : > { %v6451_v24 = vpop.eup %6450  ;;  %v8295_v63 = vpop.f32.mrf.mxu0  ;;  %6464 = vrsqrt.f32 %v898_v62  ;;  %1274 = vst [vmem:[%s7762_s19 + $0x378] sm:$0xff] %v1146_v17  ;;  %2038 = vmax.xlane.f32.xlu1 %v2037_v10 }
 0x191   : > { %v764_v22 = vpop.xlane.xlu0 %763  ;;  %v6453_v8 = vpop.eup %6452  ;;  %v1147_v34 = vmul.f32 %v7332_v61, %v6451_v24 }
 0x192   : > { %v899_v60 = vmax.f32 %v764_v22, 1e-24  ;;  %v766_v11 = vpop.xlane.xlu1 %765  ;;  %v8301_v41 = vpop.f32.mrf.mxu0  ;;  %v1148_v36 = vmul.f32 %v7333_v3, %v6453_v8  ;;  %6191 = vmatmul.mubr.f32.gmra.mxu0 %v1146_v17  ;;  %v2043_v22 = vsel %vm2015_vm0, %v8275_v23, -inf  ;;  %v7337_v3 = vld [vmem:[%s7489_s28 + $0x3a8] sm:$0xff] }
 0x193   : > { %v900_v26 = vmax.f32 %v766_v11, 1e-24  ;;  %1275 = vst [vmem:[%s7762_s19 + $0x380] sm:$0xff] %v1147_v34  ;;  %6193 = vmatprep.mubr.f32.mxu0 %v1147_v34  ;;  %v7336_v11 = vld [vmem:[%s7489_s28 + $0x3a0] sm:$0xff] }
 0x194   : > { %6466 = vrsqrt.f32 %v899_v60  ;;  %v6455_v51 = vpop.eup %6454  ;;  %v8305_v40 = vpop.f32.mrf.mxu0  ;;  %1276 = vst [vmem:[%s7762_s19 + $0x388] sm:$0xff] %v1148_v36  ;;  %2035 = vmax.xlane.f32.xlu1 %v2034_v49 }
 0x195   : > { %6468 = vrsqrt.f32 %v900_v26  ;;  %v768_v5 = vpop.xlane.xlu0 %767  ;;  %v6457_v45 = vpop.eup %6456  ;;  %v1149_v13 = vmul.f32 %v7334_v48, %v6455_v51 }
 0x196   : > { %v901_v32 = vmax.f32 %v768_v5, 1e-24  ;;  %v770_v15 = vpop.xlane.xlu1 %769  ;;  %v8311_v18 = vpop.f32.mrf.mxu0  ;;  %v1150_v59 = vmul.f32 %v7335_v57, %v6457_v45  ;;  %6194 = vmatmul.mubr.f32.gmra.mxu0 %v1148_v36 }
 0x197   : > { %v902_v56 = vmax.f32 %v770_v15, 1e-24  ;;  %1277 = vst [vmem:[%s7762_s19 + $0x390] sm:$0xff] %v1149_v13  ;;  %6196 = vmatprep.mubr.f32.mxu0 %v1149_v13 }
 0x198   : > { %6470 = vrsqrt.f32 %v901_v32  ;;  %v6459_v62 = vpop.eup %6458  ;;  %v8315_v55 = vpop.f32.mrf.mxu0  ;;  %1278 = vst [vmem:[%s7762_s19 + $0x398] sm:$0xff] %v1150_v59  ;;  %2044 = vmax.xlane.f32.xlu1 %v2043_v22  ;;  %v2040_v32 = vsel %vm2015_vm0, %v8281_v42, -inf }
 0x199   : > { %6472 = vrsqrt.f32 %v902_v56  ;;  %v772_v17 = vpop.xlane.xlu0 %771  ;;  %v6461_v24 = vpop.eup %6460  ;;  %v2067_v8 = vsel %vm2015_vm0, %v8315_v55, -inf  ;;  %v1151_v61 = vmul.f32 %v7336_v11, %v6459_v62  ;;  %v7338_v56 = vld [vmem:[%s7489_s28 + $0x3b0] sm:$0xff] }
 0x19a   : > { %v903_v10 = vmax.f32 %v772_v17, 1e-24  ;;  %v774_v60 = vpop.xlane.xlu1 %773  ;;  %v8323_v34 = vpop.f32.mrf.mxu0  ;;  %2068 = vmax.xlane.f32.xlu0 %v2067_v8  ;;  %v1152_v36 = vmul.f32 %v7337_v3, %v6461_v24  ;;  %6197 = vmatmul.mubr.f32.gmra.mxu0 %v1150_v59  ;;  %v7339_v17 = vld [vmem:[%s7489_s28 + $0x3b8] sm:$0xff] }
 0x19b   : > { %v904_v26 = vmax.f32 %v774_v60, 1e-24  ;;  %1279 = vst [vmem:[%s7762_s19 + $0x3a0] sm:$0xff] %v1151_v61  ;;  %v2064_v15 = vsel %vm2015_vm0, %v8323_v34, -inf  ;;  %6199 = vmatprep.mubr.f32.mxu0 %v1151_v61  ;;  %v2049_v60 = vsel %vm2015_vm0, %v8285_v44, -inf  ;;  %v7340_v61 = vld [vmem:[%s7489_s28 + $0x3c0] sm:$0xff] }
 0x19c   : > { %6474 = vrsqrt.f32 %v903_v10  ;;  %v6463_v51 = vpop.eup %6462  ;;  %v8327_v5 = vpop.f32.mrf.mxu0  ;;  %1280 = vst [vmem:[%s7762_s19 + $0x3a8] sm:$0xff] %v1152_v36  ;;  %2041 = vmax.xlane.f32.xlu1 %v2040_v32 }
 0x19d   : > { %6476 = vrsqrt.f32 %v904_v26  ;;  %v776_v45 = vpop.xlane.xlu0 %775  ;;  %v6465_v49 = vpop.eup %6464  ;;  %v1153_v57 = vmul.f32 %v7338_v56, %v6463_v51  ;;  %v2073_v11 = vsel %vm2015_vm0, %v8327_v5, -inf  ;;  %v7341_v51 = vld [vmem:[%s7489_s28 + $0x3c8] sm:$0xff] }
 0x19e   : > { %v905_v48 = vmax.f32 %v776_v45, 1e-24  ;;  %v778_v13 = vpop.xlane.xlu1 %777  ;;  %v8335_v59 = vpop.f32.mrf.mxu0  ;;  %2065 = vmax.xlane.f32.xlu0 %v2064_v15  ;;  %v1154_v24 = vmul.f32 %v7339_v17, %v6465_v49  ;;  %6200 = vmatmul.mubr.f32.gmra.mxu0 %v1152_v36  ;;  %v2046_v15 = vsel %vm2015_vm0, %v8291_v54, -inf }
 0x19f   : > { %v906_v62 = vmax.f32 %v778_v13, 1e-24  ;;  %1281 = vst [vmem:[%s7762_s19 + $0x3b0] sm:$0xff] %v1153_v57  ;;  %6202 = vmatprep.mubr.f32.mxu0 %v1153_v57  ;;  %v7342_v13 = vld [vmem:[%s7489_s28 + $0x3d0] sm:$0xff] }
 0x1a0   : > { %6478 = vrsqrt.f32 %v905_v48  ;;  %v8339_v8 = vpop.f32.mrf.mxu0  ;;  %1282 = vst [vmem:[%s7762_s19 + $0x3b8] sm:$0xff] %v1154_v24  ;;  %2050 = vmax.xlane.f32.xlu1 %v2049_v60  ;;  %v2070_v48 = vsel %vm2015_vm0, %v8335_v59, -inf  ;;  %v2055_v60 = vsel %vm2015_vm0, %v8295_v63, -inf }
 0x1a1   : > { %v6467_v22 = vpop.eup %6466  ;;  %6480 = vrsqrt.f32 %v906_v62  ;;  %v7343_v62 = vld [vmem:[%s7489_s28 + $0x3d8] sm:$0xff] }
 0x1a2   : > { %v6469_v10 = vpop.eup %6468  ;;  %v1155_v26 = vmul.f32 %v7340_v61, %v6467_v22  ;;  %v8347_v3 = vpop.f32.mrf.mxu0  ;;  %2074 = vmax.xlane.f32.xlu0 %v2073_v11  ;;  %6203 = vmatmul.mubr.f32.gmra.mxu0 %v1154_v24  ;;  %v2079_v11 = vsel %vm2015_vm0, %v8339_v8, -inf  ;;  %v7344_v61 = vld [vmem:[%s7489_s28 + $0x3e0] sm:$0xff] }
 0x1a3   : > { %v1156_v36 = vmul.f32 %v7341_v51, %v6469_v10 }
 0x1a4   : > { %1283 = vst [vmem:[%s7762_s19 + $0x3c0] sm:$0xff] %v1155_v26  ;;  %v8351_v49 = vpop.f32.mrf.mxu0  ;;  %6205 = vmatprep.mubr.f32.mxu0 %v1155_v26  ;;  %2047 = vmax.xlane.f32.xlu1 %v2046_v15 }
 0x1a5   : > { %v6471_v45 = vpop.eup %6470  ;;  %1284 = vst [vmem:[%s7762_s19 + $0x3c8] sm:$0xff] %v1156_v36 }
 0x1a6   : > { %v6473_v32 = vpop.eup %6472  ;;  %v1157_v56 = vmul.f32 %v7342_v13, %v6471_v45  ;;  %v8359_v57 = vpop.f32.mrf.mxu0  ;;  %2071 = vmax.xlane.f32.xlu0 %v2070_v48  ;;  %6206 = vmatmul.mubr.f32.gmra.mxu0 %v1156_v36  ;;  %v7345_v45 = vld [vmem:[%s7489_s28 + $0x3e8] sm:$0xff]  ;;  %v2052_v13 = vsel %vm2015_vm0, %v8301_v41, -inf }
 0x1a7   : > { %v1158_v17 = vmul.f32 %v7343_v62, %v6473_v32  ;;  %v7346_v62 = vld [vmem:[%s7489_s28 + $0x3f0] sm:$0xff] }
 0x1a8   : > { %1285 = vst [vmem:[%s7762_s19 + $0x3d0] sm:$0xff] %v1157_v56  ;;  %v8363_v22 = vpop.f32.mrf.mxu0  ;;  %6208 = vmatprep.mubr.f32.mxu0 %v1157_v56  ;;  %2056 = vmax.xlane.f32.xlu1 %v2055_v60  ;;  %v2076_v56 = vsel %vm2015_vm0, %v8347_v3, -inf  ;;  %v7347_v60 = vld [vmem:[%s7489_s28 + $0x3f8] sm:$0xff] }
 0x1a9   : > { %v6475_v24 = vpop.eup %6474  ;;  %1286 = vst [vmem:[%s7762_s19 + $0x3d8] sm:$0xff] %v1158_v17 }
 0x1aa   : > { %v6477_v10 = vpop.eup %6476  ;;  %v1159_v26 = vmul.f32 %v7344_v61, %v6475_v24  ;;  %v8371_v51 = vpop.f32.mrf.mxu0  ;;  %2080 = vmax.xlane.f32.xlu0 %v2079_v11  ;;  %6209 = vmatmul.mubr.f32.gmra.mxu0 %v1158_v17  ;;  %v2061_v61 = vsel %vm2015_vm0, %v8305_v40, -inf }
 0x1ab   : > { %v1160_v36 = vmul.f32 %v7345_v45, %v6477_v10  ;;  %v2085_v45 = vsel %vm2015_vm0, %v8351_v49, -inf }
 0x1ac   : > { %1287 = vst [vmem:[%s7762_s19 + $0x3e0] sm:$0xff] %v1159_v26  ;;  %v8375_v15 = vpop.f32.mrf.mxu0  ;;  %6211 = vmatprep.mubr.f32.mxu0 %v1159_v26  ;;  %2053 = vmax.xlane.f32.xlu1 %v2052_v13  ;;  %v2082_v13 = vsel %vm2015_vm0, %v8359_v57, -inf }
 0x1ad   : > { %v6479_v32 = vpop.eup %6478  ;;  %1288 = vst [vmem:[%s7762_s19 + $0x3e8] sm:$0xff] %v1160_v36 }
 0x1ae   : > { %v6481_v48 = vpop.eup %6480  ;;  %v1161_v24 = vmul.f32 %v7346_v62, %v6479_v32  ;;  %v8383_v10 = vpop.f32.mrf.mxu0  ;;  %2077 = vmax.xlane.f32.xlu0 %v2076_v56  ;;  %6212 = vmatmul.mubr.f32.gmra.mxu0 %v1160_v36  ;;  %v8399_v32 = vld [vmem:[%s11668_s2] sm:$0x1]  ;;  %v2058_v36 = vsel %vm2015_vm0, %v8311_v18, -inf }
 0x1af   : > { %v1162_v11 = vmul.f32 %v7347_v60, %v6481_v48  ;;  %v2091_v60 = vsel %vm2015_vm0, %v8363_v22, -inf }
 0x1b0   : > { %1289 = vst [vmem:[%s7762_s19 + $0x3f0] sm:$0xff] %v1161_v24  ;;  %v8387_v17 = vpop.f32.mrf.mxu0  ;;  %6214 = vmatprep.mubr.f32.mxu0 %v1161_v24  ;;  %2062 = vmax.xlane.f32.xlu1 %v2061_v61 }
 0x1b1   : > { %1290 = vst [vmem:[%s7762_s19 + $0x3f8] sm:$0xff] %v1162_v11 }
 0x1b2   : > { %v8394_v26 = vpop.f32.mrf.mxu0  ;;  %2086 = vmax.xlane.f32.xlu0 %v2085_v45  ;;  %6215 = vmatmul.mubr.f32.gmra.mxu0 %v1162_v11  ;;  %v2088_v45 = vsel %vm2015_vm0, %v8371_v51, -inf }
 0x1b3   : > { %5889 = vmatprep.mubr.f32.mxu0 %v8399_v32 }
 0x1b4   : > { %v8401_v48 = vpop.f32.mrf.mxu0  ;;  %2059 = vmax.xlane.f32.xlu1 %v2058_v36 }
 0x1b6   : > { %v8408_v56 = vpop.f32.mrf.mxu0  ;;  %2083 = vmax.xlane.f32.xlu0 %v2082_v13  ;;  %5890 = vmatmul.mubr.f32.vlgmr.msra.gmra.mxu0 %v8399_v32 }
 0x1b7   : > { %5926 = vmatpush3.xpose.msra.mxu0 %v8127_v27  ;;  %5957 = vmatprep.mubr.f32.mxu0 %v8399_v32 }
 0x1b8   : > { %v8410_v62 = vpop.f32.mrf.mxu0  ;;  %5927 = vmatprep.subr.mxu0 %v8220_v35 }
 0x1b9   : > { %11833 = vst [vmem:[#allocation3_spill] sm:$0xff] %v8410_v62  ;;  %v2115_v24 = vsel %vm2015_vm0, %v8410_v62, -inf  ;;  %v7352_v62 = vld [vmem:[%s7762_s19 + $0x218] sm:$0xff] }
 0x1ba   : > { %2116 = vmax.xlane.f32.xlu1 %v2115_v24  ;;  %v8419_v11 = vpop.f32.mrf.mxu0  ;;  %2092 = vmax.xlane.f32.xlu0 %v2091_v60  ;;  %v2097_v24 = vsel %vm2015_vm0, %v8375_v15, -inf }
 0x1bb   : > { %11834 = vst [vmem:[#allocation4_spill] sm:$0xff] %v8419_v11  ;;  %5928 = vmatpush3.xpose.msra.mxu0 %v8124_v7  ;;  %v2112_v27 = vsel %vm2015_vm0, %v8419_v11, -inf  ;;  %v7350_v11 = vld [vmem:[%s7762_s19 + $0x228] sm:$0xff] }
 0x1bc   : > { %v8422_v61 = vpop.f32.mrf.mxu0  ;;  %5929 = vmatprep.subr.mxu0 %v8211_v39 }
 0x1bd   : > { %11835 = vst [vmem:[#allocation5_spill] sm:$0xff] %v8422_v61  ;;  %v2121_v35 = vsel %vm2015_vm0, %v8422_v61, -inf }
 0x1be   : > { %2113 = vmax.xlane.f32.xlu1 %v2112_v27  ;;  %v8429_v36 = vpop.f32.mrf.mxu0  ;;  %2089 = vmax.xlane.f32.xlu0 %v2088_v45 }
 0x1bf   : > { %11836 = vst [vmem:[#allocation6_spill] sm:$0xff] %v8429_v36  ;;  %5930 = vmatpush3.xpose.msra.mxu0 %v8115_v37  ;;  %v2118_v39 = vsel %vm2015_vm0, %v8429_v36, -inf }
 0x1c0   : > { %v8432_v13 = vpop.f32.mrf.mxu0  ;;  %5931 = vmatprep.subr.mxu0 %v8208_v25  ;;  %v2094_v25 = vsel %vm2015_vm0, %v8383_v10, -inf }
 0x1c1   : > { %11837 = vst [vmem:[#allocation7_spill] sm:$0xff] %v8432_v13  ;;  %v2127_v45 = vsel %vm2015_vm0, %v8432_v13, -inf }
 0x1c2   : > { %2122 = vmax.xlane.f32.xlu1 %v2121_v35  ;;  %v8438_v7 = vpop.f32.mrf.mxu0  ;;  %2098 = vmax.xlane.f32.xlu0 %v2097_v24 }
 0x1c3   : > { %11838 = vst [vmem:[#allocation8_spill] sm:$0xff] %v8438_v7  ;;  %5932 = vmatpush3.xpose.msra.mxu0 %v8112_v46  ;;  %v2124_v24 = vsel %vm2015_vm0, %v8438_v7, -inf }
 0x1c4   : > { %v8442_v60 = vpop.f32.mrf.mxu0  ;;  %5933 = vmatprep.subr.mxu0 %v8199_v0  ;;  %v2103_v0 = vsel %vm2015_vm0, %v8387_v17, -inf }
 0x1c6   : > { %2119 = vmax.xlane.f32.xlu1 %v2118_v39  ;;  %v8448_v37 = vpop.f32.mrf.mxu0  ;;  %2095 = vmax.xlane.f32.xlu0 %v2094_v25 }
 0x1c7   : > { %11839 = vst [vmem:[#allocation9_spill] sm:$0xff] %v8448_v37  ;;  %5934 = vmatpush3.xpose.msra.mxu0 %v8103_v19 }
 0x1c8   : > { %v8452_v27 = vpop.f32.mrf.mxu0  ;;  %5935 = vmatprep.subr.mxu0 %v8196_v38  ;;  %v2100_v38 = vsel %vm2015_vm0, %v8394_v26, -inf }
 0x1ca   : > { %2128 = vmax.xlane.f32.xlu1 %v2127_v45  ;;  %v8458_v46 = vpop.f32.mrf.mxu0  ;;  %2104 = vmax.xlane.f32.xlu0 %v2103_v0 }
 0x1cb   : > { %5936 = vmatpush3.xpose.msra.mxu0 %v8100_v33  ;;  %v2133_v33 = vsel %vm2015_vm0, %v8442_v60, -inf }
 0x1cc   : > { %v8462_v35 = vpop.f32.mrf.mxu0  ;;  %5937 = vmatprep.subr.mxu0 %v8187_v16  ;;  %v2109_v16 = vsel %vm2015_vm0, %v8401_v48, -inf }
 0x1ce   : > { %2125 = vmax.xlane.f32.xlu1 %v2124_v24  ;;  %v8468_v19 = vpop.f32.mrf.mxu0  ;;  %2101 = vmax.xlane.f32.xlu0 %v2100_v38  ;;  %v7348_v38 = vld [vmem:[%s7762_s19 + $0x238] sm:$0xff] }
 0x1cf   : > { %5938 = vmatpush3.xpose.msra.mxu0 %v8092_v1  ;;  %v2130_v1 = vsel %vm2015_vm0, %v8448_v37, -inf }
 0x1d0   : > { %v8472_v39 = vpop.f32.mrf.mxu0  ;;  %5939 = vmatprep.subr.mxu0 %v8184_v52  ;;  %v2106_v52 = vsel %vm2015_vm0, %v8408_v56, -inf }
 0x1d2   : > { %2134 = vmax.xlane.f32.xlu1 %v2133_v33  ;;  %v8478_v25 = vpop.f32.mrf.mxu0  ;;  %2110 = vmax.xlane.f32.xlu0 %v2109_v16 }
 0x1d3   : > { %5940 = vmatpush3.xpose.msra.mxu0 %v8089_v31  ;;  %v2139_v31 = vsel %vm2015_vm0, %v8452_v27, -inf }
 0x1d4   : > { %v8482_v45 = vpop.f32.mrf.mxu0  ;;  %5941 = vmatprep.subr.mxu0 %v8175_v47 }
 0x1d6   : > { %2131 = vmax.xlane.f32.xlu1 %v2130_v1  ;;  %v8488_v0 = vpop.f32.mrf.mxu0  ;;  %2107 = vmax.xlane.f32.xlu0 %v2106_v52  ;;  %v7349_v1 = vld [vmem:[%s7762_s19 + $0x230] sm:$0xff]  ;;  %v2136_v52 = vsel %vm2015_vm0, %v8458_v46, -inf }
 0x1d7   : > { %5942 = vmatpush3.xpose.msra.mxu0 %v7348_v38 }
 0x1d8   : > { %v8492_v24 = vpop.f32.mrf.mxu0  ;;  %5943 = vmatprep.subr.mxu0 %v8172_v58 }
 0x1d9   : > { %11840 = vst [vmem:[#allocation10_spill] sm:$0xff] %v8492_v24  ;;  %v2163_v33 = vsel %vm2015_vm0, %v8492_v24, -inf  ;;  %v2148_v24 = vsel %vm2015_vm0, %v8478_v25, -inf }
 0x1da   : > { %2140 = vmax.xlane.f32.xlu1 %v2139_v31  ;;  %v8500_v47 = vpop.f32.mrf.mxu0  ;;  %2164 = vmax.xlane.f32.xlu0 %v2163_v33 }
 0x1db   : > { %11841 = vst [vmem:[#allocation11_spill] sm:$0xff] %v8500_v47  ;;  %5944 = vmatpush3.xpose.msra.mxu0 %v7349_v1  ;;  %v2160_v58 = vsel %vm2015_vm0, %v8500_v47, -inf  ;;  %v2145_v1 = vsel %vm2015_vm0, %v8462_v35, -inf  ;;  %v2142_v47 = vsel %vm2015_vm0, %v8468_v19, -inf }
 0x1dc   : > { %v8502_v16 = vpop.f32.mrf.mxu0  ;;  %5945 = vmatprep.subr.mxu0 %v8163_v14 }
 0x1dd   : > { %11842 = vst [vmem:[#allocation12_spill] sm:$0xff] %v8502_v16  ;;  %v2169_v33 = vsel %vm2015_vm0, %v8502_v16, -inf }
 0x1de   : > { %2137 = vmax.xlane.f32.xlu1 %v2136_v52  ;;  %v8508_v38 = vpop.f32.mrf.mxu0  ;;  %2161 = vmax.xlane.f32.xlu0 %v2160_v58  ;;  %v7351_v58 = vld [vmem:[%s7762_s19 + $0x220] sm:$0xff] }
 0x1df   : > { %11843 = vst [vmem:[#allocation13_spill] sm:$0xff] %v8508_v38  ;;  %5946 = vmatpush3.xpose.msra.mxu0 %v7350_v11 }
 0x1e0   : > { %v8512_v31 = vpop.f32.mrf.mxu0  ;;  %5947 = vmatprep.subr.mxu0 %v8160_v30  ;;  %v2166_v30 = vsel %vm2015_vm0, %v8508_v38, -inf  ;;  %v7355_v38 = vld [vmem:[%s7762_s19 + $0x200] sm:$0xff] }
 0x1e1   : > { %11844 = vst [vmem:[#allocation14_spill] sm:$0xff] %v8512_v31 }
 0x1e2   : > { %2146 = vmax.xlane.f32.xlu1 %v2145_v1  ;;  %v8520_v14 = vpop.f32.mrf.mxu0  ;;  %2170 = vmax.xlane.f32.xlu0 %v2169_v33  ;;  %v2175_v33 = vsel %vm2015_vm0, %v8512_v31, -inf }
 0x1e3   : > { %11845 = vst [vmem:[#allocation15_spill] sm:$0xff] %v8520_v14  ;;  %5948 = vmatpush3.xpose.msra.mxu0 %v7351_v58  ;;  %v2151_v58 = vsel %vm2015_vm0, %v8472_v39, -inf }
 0x1e4   : > { %v8522_v52 = vpop.f32.mrf.mxu0  ;;  %5949 = vmatprep.subr.mxu0 %v8151_v43 }
 0x1e6   : > { %2143 = vmax.xlane.f32.xlu1 %v2142_v47  ;;  %v8528_v11 = vpop.f32.mrf.mxu0  ;;  %2167 = vmax.xlane.f32.xlu0 %v2166_v30  ;;  %v7353_v30 = vld [vmem:[%s7762_s19 + $0x210] sm:$0xff] }
 0x1e7   : > { %11846 = vst [vmem:[#allocation16_spill] sm:$0xff] %v8528_v11  ;;  %5950 = vmatpush3.xpose.msra.mxu0 %v7352_v62 }
 0x1e8   : > { %v8532_v1 = vpop.f32.mrf.mxu0  ;;  %5951 = vmatprep.subr.mxu0 %v8148_v21  ;;  %v2172_v21 = vsel %vm2015_vm0, %v8520_v14, -inf }
 0x1ea   : > { %2152 = vmax.xlane.f32.xlu1 %v2151_v58  ;;  %v8540_v43 = vpop.f32.mrf.mxu0  ;;  %2176 = vmax.xlane.f32.xlu0 %v2175_v33  ;;  %v7354_v33 = vld [vmem:[%s7762_s19 + $0x208] sm:$0xff] }
 0x1eb   : > { %11847 = vst [vmem:[#allocation17_spill] sm:$0xff] %v8540_v43  ;;  %5952 = vmatpush3.xpose.msra.mxu0 %v7353_v30  ;;  %v2157_v30 = vsel %vm2015_vm0, %v8482_v45, -inf }
 0x1ec   : > { %v8542_v47 = vpop.f32.mrf.mxu0  ;;  %5953 = vmatprep.subr.mxu0 %v8139_v12  ;;  %v2181_v12 = vsel %vm2015_vm0, %v8522_v52, -inf }
 0x1ed   : > { %11848 = vst [vmem:[#allocation18_spill] sm:$0xff] %v8542_v47 }
 0x1ee   : > { %2149 = vmax.xlane.f32.xlu1 %v2148_v24  ;;  %v8548_v62 = vpop.f32.mrf.mxu0  ;;  %2173 = vmax.xlane.f32.xlu0 %v2172_v21  ;;  %v2154_v21 = vsel %vm2015_vm0, %v8488_v0, -inf }
 0x1ef   : > { %11849 = vst [vmem:[#allocation19_spill] sm:$0xff] %v8548_v62  ;;  %5954 = vmatpush3.xpose.msra.mxu0 %v7354_v33 }
 0x1f0   : > { %v8552_v58 = vpop.f32.mrf.mxu0  ;;  %5955 = vmatprep.subr.mxu0 %v8136_v50  ;;  %v2178_v50 = vsel %vm2015_vm0, %v8528_v11, -inf }
 0x1f1   : > { %11850 = vst [vmem:[#allocation20_spill] sm:$0xff] %v8552_v58 }
 0x1f2   : > { %2158 = vmax.xlane.f32.xlu1 %v2157_v30  ;;  %v8558_v36 = vpop.f32.mrf.mxu0  ;;  %2182 = vmax.xlane.f32.xlu0 %v2181_v12 }
 0x1f3   : > { %11851 = vst [vmem:[#allocation21_spill] sm:$0xff] %v8558_v36  ;;  %5956 = vmatpush3.xpose.msra.mxu0 %v7355_v38  ;;  %v2187_v38 = vsel %vm2015_vm0, %v8532_v1, -inf }
 0x1f4   : > { %v8562_v24 = vpop.f32.mrf.mxu0 }
 0x1f5   : > { %11852 = vst [vmem:[#allocation22_spill] sm:$0xff] %v8562_v24 }
 0x1f6   : > { %2155 = vmax.xlane.f32.xlu1 %v2154_v21  ;;  %v8567_v33 = vpop.f32.mrf.mxu0  ;;  %2179 = vmax.xlane.f32.xlu0 %v2178_v50  ;;  %v2184_v50 = vsel %vm2015_vm0, %v8540_v43, -inf }
 0x1f7   : > { %11853 = vst [vmem:[#allocation23_spill] sm:$0xff] %v8567_v33  ;;  %5958 = vmatmul.mubr.f32.vlgmr.msra.gmra.mxu0 %v8399_v32 }
 0x1f8   : > { %v8571_v30 = vpop.f32.mrf.mxu0 }
 0x1f9   : > { %11854 = vst [vmem:[#allocation24_spill] sm:$0xff] %v8571_v30  ;;  %v2211_v12 = vsel %vm2015_vm0, %v8571_v30, -inf }
 0x1fa   : > { %2212 = vmax.xlane.f32.xlu1 %v2211_v12  ;;  %v8578_v61 = vpop.f32.mrf.mxu0  ;;  %2188 = vmax.xlane.f32.xlu0 %v2187_v38  ;;  %v2193_v38 = vsel %vm2015_vm0, %v8542_v47, -inf }
 0x1fb   : > { %11855 = vst [vmem:[#allocation25_spill] sm:$0xff] %v8578_v61  ;;  %v2208_v21 = vsel %vm2015_vm0, %v8578_v61, -inf }
 0x1fc   : > { %v8582_v16 = vpop.f32.mrf.mxu0 }
 0x1fd   : > { %11856 = vst [vmem:[#allocation26_spill] sm:$0xff] %v8582_v16  ;;  %v2217_v12 = vsel %vm2015_vm0, %v8582_v16, -inf  ;;  %v2190_v16 = vsel %vm2015_vm0, %v8548_v62, -inf }
 0x1fe   : > { %2209 = vmax.xlane.f32.xlu1 %v2208_v21  ;;  %v8586_v32 = vpop.f32.mrf.mxu0  ;;  %2185 = vmax.xlane.f32.xlu0 %v2184_v50 }
 0x1ff   : > { %11857 = vst [vmem:[#allocation27_spill] sm:$0xff] %v8586_v32  ;;  %v2214_v21 = vsel %vm2015_vm0, %v8586_v32, -inf }
 0x200   : > { %v8590_v30 = vpop.f32.mrf.mxu0 }
 0x201   : > { %11858 = vst [vmem:[#allocation28_spill] sm:$0xff] %v8590_v30  ;;  %v2021_v61 = vpop.xlane.xlu1 %2020 }
 0x202   : > { %2218 = vmax.xlane.f32.xlu1 %v2217_v12  ;;  %v8594_v7 = vpop.f32.mrf.mxu0  ;;  %2194 = vmax.xlane.f32.xlu0 %v2193_v38  ;;  %v2401_v14 = vsub.f32 %v8235_v6, %v2021_v61  ;;  %v2223_v38 = vsel %vm2015_vm0, %v8590_v30, -inf  ;;  %v2199_v61 = vsel %vm2015_vm0, %v8552_v58, -inf  ;;  %v11693_v30 = vlaneseq }
 0x203   : > { %11859 = vst [vmem:[#allocation29_spill] sm:$0xff] %v8594_v7 }
 0x204   : > { %v8599_v13 = vpop.f32.mrf.mxu0  ;;  %v2530_v50 = vmul.f32 1.442695, %v2401_v14 }
 0x205   : > { %11860 = vst [vmem:[#allocation30_spill] sm:$0xff] %v8599_v13  ;;  %v2018_v31 = vpop.xlane.xlu1 %2017 }
 0x206   : > { %2215 = vmax.xlane.f32.xlu1 %v2214_v21  ;;  %v8603_v12 = vpop.f32.mrf.mxu0  ;;  %2191 = vmax.xlane.f32.xlu0 %v2190_v16  ;;  %6482 = vpow2.f32 %v2530_v50  ;;  %v2400_v37 = vsub.f32 %v8241_v2, %v2018_v31  ;;  %v2220_v2 = vsel %vm2015_vm0, %v8594_v7, -inf }
 0x207   : > { %11861 = vst [vmem:[#allocation31_spill] sm:$0xff] %v8603_v12 }
 0x208   : > { %v8608_v32 = vpop.f32.mrf.mxu0  ;;  %v2528_v6 = vmul.f32 1.442695, %v2400_v37  ;;  %v2196_v37 = vsel %vm2015_vm0, %v8558_v36, -inf }
 0x209   : > { %11862 = vst [vmem:[#allocation32_spill] sm:$0xff] %v8608_v32  ;;  %v2027_v21 = vpop.xlane.xlu1 %2026 }
 0x20a   : > { %2224 = vmax.xlane.f32.xlu1 %v2223_v38  ;;  %v8612_v14 = vpop.f32.mrf.mxu0  ;;  %2200 = vmax.xlane.f32.xlu0 %v2199_v61  ;;  %6484 = vpow2.f32 %v2528_v6  ;;  %v2403_v16 = vsub.f32 %v8245_v20, %v2027_v21  ;;  %v8626_v6 = vand.u32 127, %v11693_v30  ;;  %v2229_v20 = vsel %vm2015_vm0, %v8599_v13, -inf }
 0x20b   : > { %11863 = vst [vmem:[#allocation33_spill] sm:$0xff] %v8612_v14  ;;  %v2205_v21 = vsel %vm2015_vm0, %v8562_v24, -inf  ;;  %v2226_v30 = vsel %vm2015_vm0, %v8603_v12, -inf  ;;  %v2232_v36 = vsel %vm2015_vm0, %v8612_v14, -inf }
 0x20c   : > { %v8615_v11 = vpop.f32.mrf.mxu0  ;;  %v2534_v50 = vmul.f32 1.442695, %v2403_v16  ;;  %vm2014_vm1 = vcmp.lt.s32.totalorder %v8626_v6, 32  ;;  %v11589_v6 = vld [vmem:[%s11668_s2] sm:$0x1] }
 0x20d   : > { %11864 = vst [vmem:[#allocation34_spill] sm:$0xff] %v8615_v11  ;;  %v2024_v38 = vpop.xlane.xlu1 %2023 }
 0x20e   : > { %2221 = vmax.xlane.f32.xlu1 %v2220_v2  ;;  %v8621_v31 = vpop.f32.mrf.mxu0  ;;  %2197 = vmax.xlane.f32.xlu0 %v2196_v37  ;;  %6486 = vpow2.f32 %v2534_v50  ;;  %v2402_v2 = vsub.f32 %v8251_v53, %v2024_v38 }
 0x20f   : > { %11865 = vst [vmem:[#allocation35_spill] sm:$0xff] %v8621_v31 }
 0x210   : > { %v8623_v61 = vpop.f32.mrf.mxu0  ;;  %v2532_v13 = vmul.f32 1.442695, %v2402_v2 }
 0x211   : > { %11866 = vst [vmem:[#allocation36_spill] sm:$0xff] %v8623_v61  ;;  %v2033_v7 = vpop.xlane.xlu1 %2032  ;;  %v2247_v14 = vsel %vm2015_vm0, %v8623_v61, -inf }
 0x212   : > { %2230 = vmax.xlane.f32.xlu1 %v2229_v20  ;;  %2206 = vmax.xlane.f32.xlu0 %v2205_v21  ;;  %v8633_v16 = vpop.f32.mrf.mxu0  ;;  %v2202_v20 = vsel %vm2015_vm0, %v8567_v33, -inf  ;;  %v2235_v21 = vsel %vm2015_vm0, %v8608_v32, -inf  ;;  %6488 = vpow2.f32 %v2532_v13  ;;  %v2405_v12 = vsub.f32 %v8255_v28, %v2033_v7 }
 0x213   : > { %11867 = vst [vmem:[#allocation37_spill] sm:$0xff] %v8633_v16  ;;  %v8636_v37 = vpop.eup %6482 }
 0x214   : > { %11868 = vst [vmem:[#allocation38_spill] sm:$0xff] %v8636_v37  ;;  %v8642_v24 = vpop.f32.mrf.mxu0  ;;  %v2785_v53 = vsel %vm2014_vm1, %v8636_v37, 0.0 }
 0x215   : > { %v2030_v50 = vpop.xlane.xlu1 %2029  ;;  %11869 = vst [vmem:[#allocation39_spill] sm:$0xff] %v8642_v24  ;;  %v2253_v62 = vsel %vm2015_vm0, %v8642_v24, -inf }
 0x216   : > { %2227 = vmax.xlane.f32.xlu1 %v2226_v30  ;;  %2203 = vmax.xlane.f32.xlu0 %v2202_v20  ;;  %v2915_v30 = vsel %vm2015_vm0, %v2785_v53, 0.0  ;;  %v8653_v20 = vpop.f32.mrf.mxu0  ;;  %v2241_v53 = vsel %vm2015_vm0, %v8615_v11, -inf  ;;  %v2244_v11 = vsel %vm2015_vm0, %v8633_v16, -inf }
 0x217   : > { %v8647_v38 = vpop.eup %6484  ;;  %11871 = vst [vmem:[#allocation41_spill] sm:$0xff] %v8653_v20  ;;  %v2250_v16 = vsel %vm2015_vm0, %v8653_v20, -inf }
 0x218   : > { %11870 = vst [vmem:[#allocation40_spill] sm:$0xff] %v8647_v38  ;;  %v2784_v33 = vsel %vm2014_vm1, %v8647_v38, 0.0  ;;  %v8661_v58 = vpop.f32.mrf.mxu0 }
 0x219   : > { %v2039_v2 = vpop.xlane.xlu1 %2038  ;;  %v2912_v32 = vsel %vm2015_vm0, %v2784_v33, 0.0  ;;  %11872 = vst [vmem:[#allocation42_spill] sm:$0xff] %v8661_v58  ;;  %v2259_v7 = vsel %vm2015_vm0, %v8661_v58, -inf }
 0x21a   : > { %2236 = vmax.xlane.f32.xlu1 %v2235_v21  ;;  %2916 = vadd.xlane.f32.xlu0 %v2915_v30  ;;  %v2538_v21 = vmul.f32 1.442695, %v2405_v12  ;;  %v2404_v30 = vsub.f32 %v8261_v29, %v2030_v50  ;;  %v2238_v12 = vsel %vm2015_vm0, %v8621_v31, -inf  ;;  %v8679_v58 = vpop.f32.mrf.mxu0 }
 0x21b   : > { %v8663_v28 = vpop.eup %6486  ;;  %11874 = vst [vmem:[#allocation44_spill] sm:$0xff] %v8679_v58  ;;  %v2256_v31 = vsel %vm2015_vm0, %v8679_v58, -inf }
 0x21c   : > { %11873 = vst [vmem:[#allocation43_spill] sm:$0xff] %v8663_v28  ;;  %6490 = vpow2.f32 %v2538_v21  ;;  %v2536_v21 = vmul.f32 1.442695, %v2404_v30 }
 0x21d   : > { %v2036_v13 = vpop.xlane.xlu1 %2035 }
 0x21e   : > { %2233 = vmax.xlane.f32.xlu1 %v2232_v36  ;;  %2913 = vadd.xlane.f32.xlu0 %v2912_v32  ;;  %v2787_v32 = vsel %vm2014_vm1, %v8663_v28, 0.0  ;;  %6492 = vpow2.f32 %v2536_v21 }
 0x221   : > { %v8670_v36 = vpop.xlane.xlu1 %2044 }
 0x222   : > { %2242 = vmax.xlane.f32.xlu1 %v2241_v53  ;;  %2260 = vmax.xlane.f32.xlu0 %v2259_v7  ;;  %v2921_v53 = vsel %vm2015_vm0, %v2787_v32, 0.0  ;;  %v8686_v7 = vpop.eup %6488 }
 0x223   : > { %v8672_v33 = vpop.xlane.xlu0 %2068  ;;  %11875 = vst [vmem:[#allocation45_spill] sm:$0xff] %v8686_v7 }
 0x225   : > { %v8682_v29 = vpop.xlane.xlu1 %2041 }
 0x226   : > { %2239 = vmax.xlane.f32.xlu1 %v2238_v12  ;;  %2922 = vadd.xlane.f32.xlu0 %v2921_v53  ;;  %v2407_v12 = vsub.f32 %v8265_v4, %v2039_v2  ;;  %v2786_v53 = vsel %vm2014_vm1, %v8686_v7, 0.0 }
 0x227   : > { %v8684_v50 = vpop.xlane.xlu0 %2065  ;;  %v2918_v58 = vsel %vm2015_vm0, %v2786_v53, 0.0 }
 0x228   : > { %v2542_v21 = vmul.f32 1.442695, %v2407_v12 }
 0x229   : > { %v8693_v32 = vpop.xlane.xlu1 %2050  ;;  %v8709_v2 = vpop.eup %6490 }
 0x22a   : > { %2248 = vmax.xlane.f32.xlu1 %v2247_v14  ;;  %2257 = vmax.xlane.f32.xlu0 %v2256_v31  ;;  %v8702_v14 = vpop.f32.mrf.mxu0  ;;  %11877 = vst [vmem:[#allocation47_spill] sm:$0xff] %v8709_v2  ;;  %6494 = vpow2.f32 %v2542_v21  ;;  %v2789_v12 = vsel %vm2014_vm1, %v8709_v2, 0.0 }
 0x22b   : > { %v8695_v30 = vpop.xlane.xlu0 %2074  ;;  %11876 = vst [vmem:[#allocation46_spill] sm:$0xff] %v8702_v14  ;;  %v2265_v61 = vsel %vm2015_vm0, %v8702_v14, -inf  ;;  %v8735_v24 = vpop.eup %6492 }
 0x22c   : > { %v8725_v14 = vpop.f32.mrf.mxu0  ;;  %11879 = vst [vmem:[#allocation49_spill] sm:$0xff] %v8735_v24 }
 0x22d   : > { %v8705_v4 = vpop.xlane.xlu1 %2047  ;;  %11878 = vst [vmem:[#allocation48_spill] sm:$0xff] %v8725_v14 }
 0x22e   : > { %2245 = vmax.xlane.f32.xlu1 %v2244_v11  ;;  %2919 = vadd.xlane.f32.xlu0 %v2918_v58  ;;  %v2406_v11 = vsub.f32 %v8271_v9, %v2036_v13  ;;  %v3297_v9 = vsel %vm2014_vm1, 0.0, %v8636_v37 }
 0x22f   : > { %v8707_v31 = vpop.xlane.xlu0 %2071  ;;  %v3427_v47 = vsel %vm2015_vm0, %v3297_v9, 0.0 }
 0x231   : > { %v8716_v53 = vpop.xlane.xlu1 %2056 }
 0x232   : > { %2254 = vmax.xlane.f32.xlu1 %v2253_v62  ;;  %2266 = vmax.xlane.f32.xlu0 %v2265_v61  ;;  %v2927_v62 = vsel %vm2015_vm0, %v2789_v12, 0.0  ;;  %v2540_v61 = vmul.f32 1.442695, %v2406_v11  ;;  %v3296_v12 = vsel %vm2014_vm1, 0.0, %v8647_v38  ;;  %v2409_v11 = vsub.f32 %v8275_v23, %v8670_v36 }
 0x233   : > { %v8718_v58 = vpop.xlane.xlu0 %2080  ;;  %v3424_v9 = vsel %vm2015_vm0, %v3296_v12, 0.0  ;;  %v3299_v23 = vsel %vm2014_vm1, 0.0, %v8663_v28 }
 0x234   : > { %6496 = vpow2.f32 %v2540_v61  ;;  %v2546_v36 = vmul.f32 1.442695, %v2409_v11  ;;  %v3298_v11 = vsel %vm2014_vm1, 0.0, %v8686_v7 }
 0x235   : > { %v8731_v13 = vpop.xlane.xlu1 %2053 }
 0x236   : > { %2251 = vmax.xlane.f32.xlu1 %v2250_v16  ;;  %2928 = vadd.xlane.f32.xlu0 %v2927_v62  ;;  %v2262_v16 = vsel %vm2015_vm0, %v8725_v14, -inf  ;;  %v8753_v14 = vpop.f32.mrf.mxu0  ;;  %6498 = vpow2.f32 %v2546_v36 }
 0x237   : > { %v8733_v21 = vpop.xlane.xlu0 %2077  ;;  %11880 = vst [vmem:[#allocation50_spill] sm:$0xff] %v8753_v14  ;;  %v8763_v20 = vpop.eup %6494  ;;  %v2271_v12 = vsel %vm2015_vm0, %v8753_v14, -inf }
 0x238   : > { %11881 = vst [vmem:[#allocation51_spill] sm:$0xff] %v8763_v20  ;;  %v2791_v14 = vsel %vm2014_vm1, %v8763_v20, 0.0 }
 0x239   : > { %v8745_v62 = vpop.xlane.xlu1 %2062  ;;  %v2933_v36 = vsel %vm2015_vm0, %v2791_v14, 0.0  ;;  %v2410_v14 = vsub.f32 %v8291_v54, %v8705_v4  ;;  %v3303_v54 = vsel %vm2014_vm1, 0.0, %v8763_v20 }
 0x23a   : > { %3428 = vadd.xlane.f32.xlu1 %v3427_v47  ;;  %2263 = vmax.xlane.f32.xlu0 %v2262_v16  ;;  %v2788_v47 = vsel %vm2014_vm1, %v8735_v24, 0.0 }
 0x23b   : > { %v8747_v37 = vpop.xlane.xlu0 %2086  ;;  %v2924_v38 = vsel %vm2015_vm0, %v2788_v47, 0.0  ;;  %v2408_v47 = vsub.f32 %v8281_v42, %v8682_v29  ;;  %v2411_v42 = vsub.f32 %v8285_v44, %v8693_v32  ;;  %v8783_v29 = vpop.f32.mrf.mxu0  ;;  %v2548_v4 = vmul.f32 1.442695, %v2410_v14 }
 0x23c   : > { %11883 = vst [vmem:[#allocation53_spill] sm:$0xff] %v8783_v29  ;;  %v2268_v44 = vsel %vm2015_vm0, %v8783_v29, -inf }
 0x23d   : > { %v8759_v61 = vpop.xlane.xlu1 %2059  ;;  %v2544_v43 = vmul.f32 1.442695, %v2408_v47  ;;  %v2550_v32 = vmul.f32 1.442695, %v2411_v42  ;;  %v2413_v42 = vsub.f32 %v8295_v63, %v8716_v53  ;;  %v2412_v63 = vsub.f32 %v8301_v41, %v8731_v13 }
 0x23e   : > { %3425 = vadd.xlane.f32.xlu1 %v3424_v9  ;;  %2925 = vadd.xlane.f32.xlu0 %v2924_v38  ;;  %v3433_v9 = vsel %vm2015_vm0, %v3299_v23, 0.0  ;;  %v3430_v23 = vsel %vm2015_vm0, %v3298_v11, 0.0  ;;  %v3300_v11 = vsel %vm2014_vm1, 0.0, %v8735_v24 }
 0x23f   : > { %v8761_v16 = vpop.xlane.xlu0 %2083  ;;  %6500 = vpow2.f32 %v2544_v43  ;;  %v3436_v43 = vsel %vm2015_vm0, %v3300_v11, 0.0  ;;  %v2554_v14 = vmul.f32 1.442695, %v2413_v42  ;;  %v2552_v13 = vmul.f32 1.442695, %v2412_v63 }
 0x240   : > { %6502 = vpow2.f32 %v2550_v32  ;;  %v3445_v32 = vsel %vm2015_vm0, %v3303_v54, 0.0 }
 0x241   : > { %6504 = vpow2.f32 %v2548_v4  ;;  %v2415_v4 = vsub.f32 %v8305_v40, %v8745_v62  ;;  %v2414_v40 = vsub.f32 %v8311_v18, %v8759_v61 }
 0x242   : > { %3434 = vadd.xlane.f32.xlu1 %v3433_v9  ;;  %2272 = vmax.xlane.f32.xlu0 %v2271_v12  ;;  %v3301_v12 = vsel %vm2014_vm1, 0.0, %v8709_v2  ;;  %6506 = vpow2.f32 %v2554_v14 }
 0x243   : > { %v8773_v38 = vpop.xlane.xlu1 %2116  ;;  %v8775_v28 = vpop.xlane.xlu0 %2092  ;;  %v3439_v47 = vsel %vm2015_vm0, %v3301_v12, 0.0  ;;  %6508 = vpow2.f32 %v2552_v13  ;;  %v2558_v63 = vmul.f32 1.442695, %v2415_v4  ;;  %v2417_v13 = vsub.f32 %v8315_v55, %v8672_v33 }
 0x244   : > { %11882 = vst [vmem:[#allocation52_spill] sm:$0xff] %v8773_v38  ;;  %v8793_v38 = vpop.eup %6496  ;;  %v2556_v61 = vmul.f32 1.442695, %v2414_v40  ;;  %v2416_v40 = vsub.f32 %v8323_v34, %v8684_v50 }
 0x245   : > { %11885 = vst [vmem:[#allocation55_spill] sm:$0xff] %v8793_v38  ;;  %v8821_v24 = vpop.eup %6498  ;;  %v3302_v53 = vsel %vm2014_vm1, 0.0, %v8793_v38  ;;  %6510 = vpow2.f32 %v2558_v63  ;;  %v2562_v33 = vmul.f32 1.442695, %v2417_v13 }
 0x246   : > { %3431 = vadd.xlane.f32.xlu1 %v3430_v23  ;;  %2934 = vadd.xlane.f32.xlu0 %v2933_v36  ;;  %v2790_v36 = vsel %vm2014_vm1, %v8793_v38, 0.0  ;;  %11887 = vst [vmem:[#allocation57_spill] sm:$0xff] %v8821_v24  ;;  %v3442_v54 = vsel %vm2015_vm0, %v3302_v53, 0.0  ;;  %v3305_v41 = vsel %vm2014_vm1, 0.0, %v8821_v24  ;;  %6512 = vpow2.f32 %v2556_v61 }
 0x247   : > { %v8789_v9 = vpop.xlane.xlu1 %2113  ;;  %v8791_v7 = vpop.xlane.xlu0 %2089  ;;  %v3451_v38 = vsel %vm2015_vm0, %v3305_v41, 0.0  ;;  %6514 = vpow2.f32 %v2562_v33  ;;  %v2560_v50 = vmul.f32 1.442695, %v2416_v40  ;;  %v2419_v61 = vsub.f32 %v8327_v5, %v8695_v30 }
 0x248   : > { %11884 = vst [vmem:[#allocation54_spill] sm:$0xff] %v8789_v9 }
 0x249   : > { %6516 = vpow2.f32 %v2560_v50  ;;  %v2566_v30 = vmul.f32 1.442695, %v2419_v61  ;;  %v2421_v50 = vsub.f32 %v8339_v8, %v8718_v58 }
 0x24a   : > { %3440 = vadd.xlane.f32.xlu1 %v3439_v47  ;;  %2269 = vmax.xlane.f32.xlu0 %v2268_v44  ;;  %v2930_v47 = vsel %vm2015_vm0, %v2790_v36, 0.0  ;;  %v8817_v44 = vpop.f32.mrf.mxu0 }
 0x24b   : > { %v8803_v23 = vpop.xlane.xlu1 %2122  ;;  %v8808_v12 = vpop.xlane.xlu0 %2098  ;;  %11886 = vst [vmem:[#allocation56_spill] sm:$0xff] %v8817_v44  ;;  %v2277_v2 = vsel %vm2015_vm0, %v8817_v44, -inf  ;;  %6518 = vpow2.f32 %v2566_v30  ;;  %v2570_v58 = vmul.f32 1.442695, %v2421_v50 }
 0x24e   : > { %3437 = vadd.xlane.f32.xlu1 %v3436_v43  ;;  %2931 = vadd.xlane.f32.xlu0 %v2930_v47  ;;  %v2793_v43 = vsel %vm2014_vm1, %v8821_v24, 0.0 }
 0x24f   : > { %v8819_v29 = vpop.xlane.xlu1 %2119  ;;  %v8823_v11 = vpop.xlane.xlu0 %2095  ;;  %v2939_v42 = vsel %vm2015_vm0, %v2793_v43, 0.0 }
 0x252   : > { %3446 = vadd.xlane.f32.xlu1 %v3445_v32  ;;  %2278 = vmax.xlane.f32.xlu0 %v2277_v2  ;;  %v8846_v2 = vpop.f32.mrf.mxu0  ;;  %v8849_v32 = vpop.eup %6500 }
 0x253   : > { %v8833_v36 = vpop.xlane.xlu1 %2128  ;;  %v8838_v47 = vpop.xlane.xlu0 %2104  ;;  %11888 = vst [vmem:[#allocation58_spill] sm:$0xff] %v8846_v2  ;;  %11889 = vst [vmem:[#allocation59_spill] sm:$0xff] %v8849_v32  ;;  %v2274_v14 = vsel %vm2015_vm0, %v8846_v2, -inf  ;;  %v3304_v62 = vsel %vm2014_vm1, 0.0, %v8849_v32  ;;  %v2792_v41 = vsel %vm2014_vm1, %v8849_v32, 0.0 }
 0x254   : > { %v8863_v43 = vpop.eup %6502  ;;  %v3448_v18 = vsel %vm2015_vm0, %v3304_v62, 0.0  ;;  %v8881_v2 = vpop.f32.mrf.mxu0 }
 0x255   : > { %11890 = vst [vmem:[#allocation60_spill] sm:$0xff] %v8863_v43  ;;  %v3307_v4 = vsel %vm2014_vm1, 0.0, %v8863_v43  ;;  %11892 = vst [vmem:[#allocation62_spill] sm:$0xff] %v8881_v2  ;;  %v2283_v55 = vsel %vm2015_vm0, %v8881_v2, -inf  ;;  %v2795_v13 = vsel %vm2014_vm1, %v8863_v43, 0.0 }
 0x256   : > { %3443 = vadd.xlane.f32.xlu1 %v3442_v54  ;;  %2940 = vadd.xlane.f32.xlu0 %v2939_v42  ;;  %v3457_v63 = vsel %vm2015_vm0, %v3307_v4, 0.0  ;;  %v8907_v4 = vpop.f32.mrf.mxu0 }
 0x257   : > { %v8851_v44 = vpop.xlane.xlu1 %2125  ;;  %v8853_v53 = vpop.xlane.xlu0 %2101  ;;  %11895 = vst [vmem:[#allocation65_spill] sm:$0xff] %v8907_v4  ;;  %v2280_v5 = vsel %vm2015_vm0, %v8907_v4, -inf }
 0x258   : > { %v8945_v43 = vpop.f32.mrf.mxu0 }
 0x259   : > { %11900 = vst [vmem:[#allocation70_spill] sm:$0xff] %v8945_v43  ;;  %v2289_v8 = vsel %vm2015_vm0, %v8945_v43, -inf }
 0x25a   : > { %3452 = vadd.xlane.f32.xlu1 %v3451_v38  ;;  %2275 = vmax.xlane.f32.xlu0 %v2274_v14  ;;  %v2936_v38 = vsel %vm2015_vm0, %v2792_v41, 0.0  ;;  %v8879_v14 = vpop.eup %6504  ;;  %v8977_v43 = vpop.f32.mrf.mxu0 }
 0x25b   : > { %v8865_v54 = vpop.xlane.xlu1 %2134  ;;  %v8870_v42 = vpop.xlane.xlu0 %2110  ;;  %11891 = vst [vmem:[#allocation61_spill] sm:$0xff] %v8879_v14  ;;  %v3306_v62 = vsel %vm2014_vm1, 0.0, %v8879_v14  ;;  %11903 = vst [vmem:[#allocation73_spill] sm:$0xff] %v8977_v43 }
 0x25c   : > { %v8895_v41 = vpop.eup %6506  ;;  %v3454_v34 = vsel %vm2015_vm0, %v3306_v62, 0.0  ;;  %v2418_v62 = vsub.f32 %v8335_v59, %v8707_v31 }
 0x25d   : > { %11893 = vst [vmem:[#allocation63_spill] sm:$0xff] %v8895_v41  ;;  %v8913_v24 = vpop.eup %6508  ;;  %v2797_v50 = vsel %vm2014_vm1, %v8895_v41, 0.0 }
 0x25e   : > { %3449 = vadd.xlane.f32.xlu1 %v3448_v18  ;;  %2937 = vadd.xlane.f32.xlu0 %v2936_v38  ;;  %11896 = vst [vmem:[#allocation66_spill] sm:$0xff] %v8913_v24  ;;  %v2564_v31 = vmul.f32 1.442695, %v2418_v62 }
 0x25f   : > { %v8883_v20 = vpop.xlane.xlu1 %2131  ;;  %v8885_v32 = vpop.xlane.xlu0 %2107 }
 0x260   : > { %6520 = vpow2.f32 %v2564_v31  ;;  %v2423_v31 = vsub.f32 %v8351_v49, %v8747_v37 }
 0x261   : > { %6522 = vpow2.f32 %v2570_v58 }
 0x262   : > { %3458 = vadd.xlane.f32.xlu1 %v3457_v63  ;;  %2284 = vmax.xlane.f32.xlu0 %v2283_v55  ;;  %v2945_v55 = vsel %vm2015_vm0, %v2795_v13, 0.0  ;;  %v3309_v63 = vsel %vm2014_vm1, 0.0, %v8895_v41  ;;  %v3308_v13 = vsel %vm2014_vm1, 0.0, %v8913_v24  ;;  %v2574_v49 = vmul.f32 1.442695, %v2423_v31 }
 0x263   : > { %v8897_v18 = vpop.xlane.xlu1 %2140  ;;  %v8902_v38 = vpop.xlane.xlu0 %2164  ;;  %v3463_v40 = vsel %vm2015_vm0, %v3309_v63, 0.0  ;;  %v2794_v63 = vsel %vm2014_vm1, %v8879_v14, 0.0  ;;  %v3460_v59 = vsel %vm2015_vm0, %v3308_v13, 0.0  ;;  %v2420_v13 = vsub.f32 %v8347_v3, %v8733_v21 }
 0x264   : > { %11894 = vst [vmem:[#allocation64_spill] sm:$0xff] %v8902_v38  ;;  %v2942_v61 = vsel %vm2015_vm0, %v2794_v63, 0.0  ;;  %v2796_v31 = vsel %vm2014_vm1, %v8913_v24, 0.0 }
 0x265   : > { %v2568_v21 = vmul.f32 1.442695, %v2420_v13  ;;  %v2422_v13 = vsub.f32 %v8359_v57, %v8761_v16 }
 0x266   : > { %3455 = vadd.xlane.f32.xlu1 %v3454_v34  ;;  %2946 = vadd.xlane.f32.xlu0 %v2945_v55  ;;  %v8927_v34 = vpop.eup %6510 }
 0x267   : > { %v8915_v2 = vpop.xlane.xlu1 %2137  ;;  %v8917_v33 = vpop.xlane.xlu0 %2161  ;;  %11898 = vst [vmem:[#allocation68_spill] sm:$0xff] %v8927_v34  ;;  %6524 = vpow2.f32 %v2568_v21  ;;  %v2572_v16 = vmul.f32 1.442695, %v2422_v13 }
 0x268   : > { %11897 = vst [vmem:[#allocation67_spill] sm:$0xff] %v8917_v33  ;;  %6526 = vpow2.f32 %v2574_v49  ;;  %v9009_v33 = vpop.f32.mrf.mxu0 }
 0x269   : > { %11906 = vst [vmem:[#allocation76_spill] sm:$0xff] %v9009_v33  ;;  %v2295_v13 = vsel %vm2015_vm0, %v9009_v33, -inf  ;;  %6528 = vpow2.f32 %v2572_v16  ;;  %v2799_v33 = vsel %vm2014_vm1, %v8927_v34, 0.0 }
 0x26a   : > { %3464 = vadd.xlane.f32.xlu1 %v3463_v40  ;;  %2281 = vmax.xlane.f32.xlu0 %v2280_v5  ;;  %v3311_v40 = vsel %vm2014_vm1, 0.0, %v8927_v34  ;;  %v8943_v5 = vpop.eup %6512 }
 0x26b   : > { %v8929_v55 = vpop.xlane.xlu1 %2146  ;;  %v8934_v4 = vpop.xlane.xlu0 %2170  ;;  %11899 = vst [vmem:[#allocation69_spill] sm:$0xff] %v8943_v5  ;;  %v3469_v30 = vsel %vm2015_vm0, %v3311_v40, 0.0  ;;  %v3310_v63 = vsel %vm2014_vm1, 0.0, %v8943_v5  ;;  %v2951_v40 = vsel %vm2015_vm0, %v2797_v50, 0.0 }
 0x26c   : > { %v8954_v62 = vpop.eup %6514  ;;  %v3466_v3 = vsel %vm2015_vm0, %v3310_v63, 0.0  ;;  %v2286_v63 = vsel %vm2015_vm0, %v8977_v43, -inf }
 0x26d   : > { %11901 = vst [vmem:[#allocation71_spill] sm:$0xff] %v8954_v62 }
 0x26e   : > { %3461 = vadd.xlane.f32.xlu1 %v3460_v59  ;;  %2943 = vadd.xlane.f32.xlu0 %v2942_v61 }
 0x26f   : > { %v8947_v14 = vpop.xlane.xlu1 %2143  ;;  %v8949_v9 = vpop.xlane.xlu0 %2167 }
 0x272   : > { %3470 = vadd.xlane.f32.xlu1 %v3469_v30  ;;  %2290 = vmax.xlane.f32.xlu0 %v2289_v8  ;;  %v3313_v8 = vsel %vm2014_vm1, 0.0, %v8954_v62  ;;  %v8975_v30 = vpop.eup %6516 }
 0x273   : > { %v8961_v59 = vpop.xlane.xlu1 %2152  ;;  %v8966_v61 = vpop.xlane.xlu0 %2176  ;;  %11902 = vst [vmem:[#allocation72_spill] sm:$0xff] %v8975_v30  ;;  %v3475_v37 = vsel %vm2015_vm0, %v3313_v8, 0.0  ;;  %v3312_v50 = vsel %vm2014_vm1, 0.0, %v8975_v30  ;;  %v2425_v8 = vsub.f32 %v8363_v22, %v8775_v28 }
 0x274   : > { %v3472_v57 = vsel %vm2015_vm0, %v3312_v50, 0.0 }
 0x275   : > { %v2578_v50 = vmul.f32 1.442695, %v2425_v8  ;;  %v2427_v8 = vsub.f32 %v8375_v15, %v8808_v12  ;;  %v2426_v12 = vsub.f32 %v8383_v10, %v8823_v11 }
 0x276   : > { %3467 = vadd.xlane.f32.xlu1 %v3466_v3  ;;  %2952 = vadd.xlane.f32.xlu0 %v2951_v40  ;;  %v8991_v3 = vpop.eup %6518 }
 0x277   : > { %v8979_v41 = vpop.xlane.xlu1 %2149  ;;  %v8981_v58 = vpop.xlane.xlu0 %2173  ;;  %11904 = vst [vmem:[#allocation74_spill] sm:$0xff] %v8991_v3  ;;  %6530 = vpow2.f32 %v2578_v50  ;;  %v2582_v15 = vmul.f32 1.442695, %v2427_v8  ;;  %v2580_v11 = vmul.f32 1.442695, %v2426_v12 }
 0x278   : > { %v9007_v43 = vpop.eup %6520 }
 0x279   : > { %11905 = vst [vmem:[#allocation75_spill] sm:$0xff] %v9007_v43  ;;  %v9018_v28 = vpop.eup %6522 }
 0x27a   : > { %3476 = vadd.xlane.f32.xlu1 %v3475_v37  ;;  %2287 = vmax.xlane.f32.xlu0 %v2286_v63  ;;  %v2948_v37 = vsel %vm2015_vm0, %v2796_v31, 0.0  ;;  %v3315_v63 = vsel %vm2014_vm1, 0.0, %v8991_v3  ;;  %11907 = vst [vmem:[#allocation77_spill] sm:$0xff] %v9018_v28  ;;  %v2424_v31 = vsub.f32 %v8371_v51, %v8791_v7  ;;  %v3317_v51 = vsel %vm2014_vm1, 0.0, %v9018_v28 }
 0x27b   : > { %v8993_v40 = vpop.xlane.xlu1 %2158  ;;  %v8998_v21 = vpop.xlane.xlu0 %2182  ;;  %v3481_v22 = vsel %vm2015_vm0, %v3315_v63, 0.0  ;;  %v3487_v38 = vsel %vm2015_vm0, %v3317_v51, 0.0  ;;  %v2798_v51 = vsel %vm2014_vm1, %v8943_v5, 0.0 }
 0x27c   : > { %v2576_v7 = vmul.f32 1.442695, %v2424_v31 }
 0x27e   : > { %3473 = vadd.xlane.f32.xlu1 %v3472_v57  ;;  %2949 = vadd.xlane.f32.xlu0 %v2948_v37  ;;  %v3314_v57 = vsel %vm2014_vm1, 0.0, %v9007_v43  ;;  %6532 = vpow2.f32 %v2576_v7 }
 0x27f   : > { %v9011_v24 = vpop.xlane.xlu1 %2155  ;;  %v9013_v49 = vpop.xlane.xlu0 %2179  ;;  %v3478_v16 = vsel %vm2015_vm0, %v3314_v57, 0.0  ;;  %6534 = vpow2.f32 %v2582_v15 }
 0x280   : > { %6536 = vpow2.f32 %v2580_v11 }
 0x282   : > { %3482 = vadd.xlane.f32.xlu1 %v3481_v22  ;;  %2296 = vmax.xlane.f32.xlu0 %v2295_v13  ;;  %v9038_v13 = vpop.f32.mrf.mxu0  ;;  %v2957_v22 = vsel %vm2015_vm0, %v2799_v33, 0.0 }
 0x283   : > { %v9025_v37 = vpop.xlane.xlu1 %2212  ;;  %v9030_v63 = vpop.xlane.xlu0 %2188  ;;  %11909 = vst [vmem:[#allocation79_spill] sm:$0xff] %v9038_v13  ;;  %v2292_v50 = vsel %vm2015_vm0, %v9038_v13, -inf }
 0x284   : > { %11908 = vst [vmem:[#allocation78_spill] sm:$0xff] %v9025_v37  ;;  %v9041_v37 = vpop.eup %6524  ;;  %v9070_v8 = vpop.f32.mrf.mxu0 }
 0x285   : > { %11910 = vst [vmem:[#allocation80_spill] sm:$0xff] %v9041_v37  ;;  %v9050_v31 = vpop.eup %6526  ;;  %v3316_v33 = vsel %vm2014_vm1, 0.0, %v9041_v37  ;;  %v2301_v5 = vsel %vm2015_vm0, %v9070_v8, -inf }
 0x286   : > { %3479 = vadd.xlane.f32.xlu1 %v3478_v16  ;;  %2958 = vadd.xlane.f32.xlu0 %v2957_v22  ;;  %11912 = vst [vmem:[#allocation82_spill] sm:$0xff] %v9050_v31  ;;  %v3484_v7 = vsel %vm2015_vm0, %v3316_v33, 0.0  ;;  %v3319_v10 = vsel %vm2014_vm1, 0.0, %v9050_v31 }
 0x287   : > { %v9043_v34 = vpop.xlane.xlu1 %2209  ;;  %v9045_v57 = vpop.xlane.xlu0 %2185  ;;  %v3493_v15 = vsel %vm2015_vm0, %v3319_v10, 0.0 }
 0x288   : > { %11911 = vst [vmem:[#allocation81_spill] sm:$0xff] %v9043_v34  ;;  %v9073_v34 = vpop.eup %6528 }
 0x289   : > { %11914 = vst [vmem:[#allocation84_spill] sm:$0xff] %v9073_v34 }
 0x28a   : > { %3488 = vadd.xlane.f32.xlu1 %v3487_v38  ;;  %2293 = vmax.xlane.f32.xlu0 %v2292_v50  ;;  %v2429_v38 = vsub.f32 %v8387_v17, %v8838_v47  ;;  %v2954_v50 = vsel %vm2015_vm0, %v2798_v51, 0.0  ;;  %v2428_v17 = vsub.f32 %v8394_v26, %v8853_v53  ;;  %v9084_v47 = vpop.f32.mrf.mxu0  ;;  %v3318_v51 = vsel %vm2014_vm1, 0.0, %v9073_v34 }
 0x28b   : > { %v9057_v16 = vpop.xlane.xlu1 %2218  ;;  %v9062_v22 = vpop.xlane.xlu0 %2194  ;;  %v3490_v10 = vsel %vm2015_vm0, %v3318_v51, 0.0  ;;  %v2298_v11 = vsel %vm2015_vm0, %v9084_v47, -inf  ;;  %v2801_v26 = vsel %vm2014_vm1, %v8954_v62, 0.0 }
 0x28c   : > { %11913 = vst [vmem:[#allocation83_spill] sm:$0xff] %v9057_v16  ;;  %v2586_v12 = vmul.f32 1.442695, %v2429_v38  ;;  %v2584_v53 = vmul.f32 1.442695, %v2428_v17  ;;  %v2431_v38 = vsub.f32 %v8401_v48, %v8870_v42  ;;  %v2800_v48 = vsel %vm2014_vm1, %v8975_v30, 0.0 }
 0x28d   : > { %v2430_v17 = vsub.f32 %v8408_v56, %v8885_v32  ;;  %v2803_v56 = vsel %vm2014_vm1, %v8991_v3, 0.0  ;;  %v2439_v32 = vsub.f32 %v8442_v60, %v8865_v54  ;;  %v2802_v60 = vsel %vm2014_vm1, %v9007_v43, 0.0 }
 0x28e   : > { %3485 = vadd.xlane.f32.xlu1 %v3484_v7  ;;  %2955 = vadd.xlane.f32.xlu0 %v2954_v50  ;;  %v9089_v7 = vpop.eup %6530  ;;  %6538 = vpow2.f32 %v2586_v12  ;;  %v2963_v12 = vsel %vm2015_vm0, %v2801_v26, 0.0  ;;  %v2590_v42 = vmul.f32 1.442695, %v2431_v38  ;;  %v2969_v62 = vsel %vm2015_vm0, %v2803_v56, 0.0 }
 0x28f   : > { %v9075_v16 = vpop.xlane.xlu1 %2215  ;;  %v9077_v33 = vpop.xlane.xlu0 %2191  ;;  %11916 = vst [vmem:[#allocation86_spill] sm:$0xff] %v9089_v7  ;;  %6540 = vpow2.f32 %v2584_v53  ;;  %v2960_v53 = vsel %vm2015_vm0, %v2800_v48, 0.0  ;;  %v2606_v54 = vmul.f32 1.442695, %v2439_v32  ;;  %v2966_v32 = vsel %vm2015_vm0, %v2802_v60, 0.0 }
 0x290   : > { %11915 = vst [vmem:[#allocation85_spill] sm:$0xff] %v9075_v16  ;;  %6542 = vpow2.f32 %v2590_v42 }
 0x292   : > { %3494 = vadd.xlane.f32.xlu1 %v3493_v15  ;;  %2302 = vmax.xlane.f32.xlu0 %v2301_v5  ;;  %v3321_v5 = vsel %vm2014_vm1, 0.0, %v9089_v7  ;;  %v9106_v15 = vpop.eup %6532 }
 0x293   : > { %v9091_v50 = vpop.xlane.xlu1 %2224  ;;  %v9093_v16 = vpop.xlane.xlu0 %2200  ;;  %11918 = vst [vmem:[#allocation88_spill] sm:$0xff] %v9106_v15  ;;  %v3499_v13 = vsel %vm2015_vm0, %v3321_v5, 0.0 }
 0x294   : > { %11917 = vst [vmem:[#allocation87_spill] sm:$0xff] %v9091_v50 }
 0x296   : > { %3491 = vadd.xlane.f32.xlu1 %v3490_v10  ;;  %2299 = vmax.xlane.f32.xlu0 %v2298_v11  ;;  %v3320_v10 = vsel %vm2014_vm1, 0.0, %v9106_v15  ;;  %v9122_v11 = vpop.eup %6534 }
 0x297   : > { %v9108_v51 = vpop.xlane.xlu1 %2221  ;;  %v9110_v50 = vpop.xlane.xlu0 %2197  ;;  %v3323_v38 = vsel %vm2014_vm1, 0.0, %v9122_v11 }
 0x298   : > { %11919 = vst [vmem:[#allocation89_spill] sm:$0xff] %v9108_v51  ;;  %v3496_v51 = vsel %vm2015_vm0, %v3320_v10, 0.0  ;;  %v3505_v30 = vsel %vm2015_vm0, %v3323_v38, 0.0 }
 0x29a   : > { %3500 = vadd.xlane.f32.xlu1 %v3499_v13  ;;  %2964 = vadd.xlane.f32.xlu0 %v2963_v12  ;;  %v2588_v13 = vmul.f32 1.442695, %v2430_v17  ;;  %v9138_v12 = vpop.eup %6536 }
 0x29b   : > { %v9124_v5 = vpop.xlane.xlu1 %2230  ;;  %v9126_v26 = vpop.xlane.xlu0 %2206  ;;  %11921 = vst [vmem:[#allocation91_spill] sm:$0xff] %v9138_v12  ;;  %v3322_v42 = vsel %vm2014_vm1, 0.0, %v9138_v12 }
 0x29c   : > { %11920 = vst [vmem:[#allocation90_spill] sm:$0xff] %v9124_v5  ;;  %6544 = vpow2.f32 %v2588_v13  ;;  %v9154_v17 = vpop.eup %6538  ;;  %v3502_v38 = vsel %vm2015_vm0, %v3322_v42, 0.0 }
 0x29d   : > { %6546 = vpow2.f32 %v2606_v54  ;;  %v9170_v13 = vpop.eup %6540 }
 0x29e   : > { %3497 = vadd.xlane.f32.xlu1 %v3496_v51  ;;  %2961 = vadd.xlane.f32.xlu0 %v2960_v53  ;;  %v2441_v51 = vsub.f32 %v8452_v27, %v8897_v18  ;;  %v2805_v27 = vsel %vm2014_vm1, %v9018_v28, 0.0 }
 0x29f   : > { %v9140_v10 = vpop.xlane.xlu1 %2227  ;;  %v9142_v48 = vpop.xlane.xlu0 %2203  ;;  %v2975_v54 = vsel %vm2015_vm0, %v2805_v27, 0.0 }
 0x2a0   : > { %11922 = vst [vmem:[#allocation92_spill] sm:$0xff] %v9140_v10  ;;  %v2610_v18 = vmul.f32 1.442695, %v2441_v51  ;;  %v2443_v51 = vsub.f32 %v8462_v35, %v8929_v55  ;;  %v2807_v35 = vsel %vm2014_vm1, %v9050_v31, 0.0  ;;  %v2442_v55 = vsub.f32 %v8468_v19, %v8947_v14 }
 0x2a1   : > { %v2806_v19 = vsel %vm2014_vm1, %v9073_v34, 0.0 }
 0x2a2   : > { %3506 = vadd.xlane.f32.xlu1 %v3505_v30  ;;  %2970 = vadd.xlane.f32.xlu0 %v2969_v62  ;;  %v2440_v30 = vsub.f32 %v8458_v46, %v8915_v2  ;;  %v3325_v62 = vsel %vm2014_vm1, 0.0, %v9154_v17  ;;  %v2804_v46 = vsel %vm2014_vm1, %v9041_v37, 0.0  ;;  %6548 = vpow2.f32 %v2610_v18 }
 0x2a3   : > { %v9156_v53 = vpop.xlane.xlu1 %2236  ;;  %v9158_v56 = vpop.xlane.xlu0 %2916  ;;  %v3511_v43 = vsel %vm2015_vm0, %v3325_v62, 0.0  ;;  %v2972_v18 = vsel %vm2015_vm0, %v2804_v46, 0.0  ;;  %v2612_v14 = vmul.f32 1.442695, %v2442_v55  ;;  %v2978_v55 = vsel %vm2015_vm0, %v2806_v19, 0.0 }
 0x2a4   : > { %11923 = vst [vmem:[#allocation93_spill] sm:$0xff] %v9156_v53  ;;  %v2608_v2 = vmul.f32 1.442695, %v2440_v30 }
 0x2a6   : > { %3503 = vadd.xlane.f32.xlu1 %v3502_v38  ;;  %2967 = vadd.xlane.f32.xlu0 %v2966_v32  ;;  %v3324_v38 = vsel %vm2014_vm1, 0.0, %v9170_v13  ;;  %v9186_v32 = vpop.eup %6542  ;;  %6550 = vpow2.f32 %v2608_v2 }
 0x2a7   : > { %v9172_v42 = vpop.xlane.xlu1 %2233  ;;  %v9174_v60 = vpop.xlane.xlu0 %2913  ;;  %v3508_v3 = vsel %vm2015_vm0, %v3324_v38, 0.0  ;;  %v3327_v30 = vsel %vm2014_vm1, 0.0, %v9186_v32 }
 0x2a8   : > { %11924 = vst [vmem:[#allocation94_spill] sm:$0xff] %v9172_v42  ;;  %v3517_v2 = vsel %vm2015_vm0, %v3327_v30, 0.0  ;;  %v11949_v42 = vld [vmem:[#allocation19_spill] sm:$0xff] }
 0x2a9   : > { %v2458_v34 = vsub.f32 %v11949_v42, %v9077_v33 }
 0x2aa   : > { %3512 = vadd.xlane.f32.xlu1 %v3511_v43  ;;  %2976 = vadd.xlane.f32.xlu0 %v2975_v54  ;;  %v2614_v43 = vmul.f32 1.442695, %v2443_v51  ;;  %v9202_v54 = vpop.eup %6544  ;;  %v2981_v51 = vsel %vm2015_vm0, %v2807_v35, 0.0 }
 0x2ab   : > { %v9188_v62 = vpop.xlane.xlu1 %2242  ;;  %v9190_v27 = vpop.xlane.xlu0 %2260 }
 0x2ac   : > { %11925 = vst [vmem:[#allocation95_spill] sm:$0xff] %v9190_v27  ;;  %v9208_v27 = vpop.f32.mrf.mxu0  ;;  %6552 = vpow2.f32 %v2614_v43  ;;  %v9220_v37 = vpop.eup %6546 }
 0x2ad   : > { %11926 = vst [vmem:[#allocation96_spill] sm:$0xff] %v9208_v27  ;;  %11927 = vst [vmem:[#allocation97_spill] sm:$0xff] %v9220_v37  ;;  %6554 = vpow2.f32 %v2612_v14 }
 0x2ae   : > { %3509 = vadd.xlane.f32.xlu1 %v3508_v3  ;;  %2973 = vadd.xlane.f32.xlu0 %v2972_v18  ;;  %v2445_v3 = vsub.f32 %v8472_v39, %v8961_v59  ;;  %v3326_v18 = vsel %vm2014_vm1, 0.0, %v9202_v54  ;;  %v9226_v27 = vpop.f32.mrf.mxu0  ;;  %v2809_v39 = vsel %vm2014_vm1, %v9089_v7, 0.0 }
 0x2af   : > { %v9204_v38 = vpop.xlane.xlu1 %2239  ;;  %v9206_v46 = vpop.xlane.xlu0 %2922  ;;  %11929 = vst [vmem:[#allocation99_spill] sm:$0xff] %v9226_v27  ;;  %v3514_v43 = vsel %vm2015_vm0, %v3326_v18, 0.0 }
 0x2b0   : > { %v2618_v59 = vmul.f32 1.442695, %v2445_v3  ;;  %v9244_v27 = vpop.f32.mrf.mxu0  ;;  %v2987_v3 = vsel %vm2015_vm0, %v2809_v39, 0.0 }
 0x2b1   : > { %11931 = vst [vmem:[#allocation101_spill] sm:$0xff] %v9244_v27 }
 0x2b2   : > { %3518 = vadd.xlane.f32.xlu1 %v3517_v2  ;;  %2982 = vadd.xlane.f32.xlu0 %v2981_v51  ;;  %v2444_v2 = vsub.f32 %v8478_v25, %v8979_v41  ;;  %v3335_v51 = vsel %vm2014_vm1, 0.0, %v9220_v37  ;;  %v2808_v25 = vsel %vm2014_vm1, %v9106_v15, 0.0  ;;  %6556 = vpow2.f32 %v2618_v59  ;;  %v9262_v27 = vpop.f32.mrf.mxu0 }
 0x2b3   : > { %v9222_v30 = vpop.xlane.xlu1 %2248  ;;  %v9224_v35 = vpop.xlane.xlu0 %2257  ;;  %v3541_v14 = vsel %vm2015_vm0, %v3335_v51, 0.0  ;;  %11934 = vst [vmem:[#allocation104_spill] sm:$0xff] %v9262_v27 }
 0x2b4   : > { %11928 = vst [vmem:[#allocation98_spill] sm:$0xff] %v9224_v35  ;;  %v9238_v35 = vpop.eup %6548  ;;  %v2616_v41 = vmul.f32 1.442695, %v2444_v2  ;;  %v2984_v2 = vsel %vm2015_vm0, %v2808_v25, 0.0 }
 0x2b5   : > { %11930 = vst [vmem:[#allocation100_spill] sm:$0xff] %v9238_v35  ;;  %v9256_v10 = vpop.eup %6550 }
 0x2b6   : > { %3515 = vadd.xlane.f32.xlu1 %v3514_v43  ;;  %2979 = vadd.xlane.f32.xlu0 %v2978_v55  ;;  %v2447_v43 = vsub.f32 %v8482_v45, %v8993_v40  ;;  %v3337_v55 = vsel %vm2014_vm1, 0.0, %v9238_v35  ;;  %11932 = vst [vmem:[#allocation102_spill] sm:$0xff] %v9256_v10  ;;  %6558 = vpow2.f32 %v2616_v41  ;;  %v2446_v40 = vsub.f32 %v8488_v0, %v9011_v24  ;;  %v9282_v0 = vpop.f32.mrf.mxu0 }
 0x2b7   : > { %v9240_v18 = vpop.xlane.xlu1 %2245  ;;  %v9242_v19 = vpop.xlane.xlu0 %2919  ;;  %v3547_v59 = vsel %vm2015_vm0, %v3337_v55, 0.0  ;;  %v2811_v55 = vsel %vm2014_vm1, %v9122_v11, 0.0  ;;  %v2455_v41 = vsub.f32 %v8522_v52, %v8998_v21  ;;  %11936 = vst [vmem:[#allocation106_spill] sm:$0xff] %v9282_v0  ;;  %v2810_v52 = vsel %vm2014_vm1, %v9138_v12, 0.0  ;;  %v12021_v0 = vld [vmem:[#allocation3_spill] sm:$0xff] }
 0x2b8   : > { %v2622_v45 = vmul.f32 1.442695, %v2447_v43  ;;  %v2620_v43 = vmul.f32 1.442695, %v2446_v40  ;;  %v2457_v40 = vsub.f32 %v8532_v1, %v9030_v63  ;;  %v2813_v1 = vsel %vm2014_vm1, %v9154_v17, 0.0 }
 0x2ba   : > { %3542 = vadd.xlane.f32.xlu1 %v3541_v14  ;;  %2988 = vadd.xlane.f32.xlu0 %v2987_v3  ;;  %v3336_v14 = vsel %vm2014_vm1, 0.0, %v9256_v10  ;;  %v9271_v3 = vpop.eup %6552  ;;  %6560 = vpow2.f32 %v2622_v45  ;;  %v2638_v45 = vmul.f32 1.442695, %v2455_v41 }
 0x2bb   : > { %v9258_v51 = vpop.xlane.xlu1 %2254  ;;  %v9260_v39 = vpop.xlane.xlu0 %2266  ;;  %11935 = vst [vmem:[#allocation105_spill] sm:$0xff] %v9271_v3  ;;  %v3544_v24 = vsel %vm2015_vm0, %v3336_v14, 0.0  ;;  %6562 = vrcp.f32 %v9158_v56 }
 0x2bc   : > { %11933 = vst [vmem:[#allocation103_spill] sm:$0xff] %v9260_v39  ;;  %v9289_v27 = vpop.eup %6554  ;;  %v9299_v14 = vpop.f32.mrf.mxu0 }
 0x2bd   : > { %11937 = vst [vmem:[#allocation107_spill] sm:$0xff] %v9289_v27  ;;  %11939 = vst [vmem:[#allocation109_spill] sm:$0xff] %v9299_v14 }
 0x2be   : > { %3548 = vadd.xlane.f32.xlu1 %v3547_v59  ;;  %2985 = vadd.xlane.f32.xlu0 %v2984_v2  ;;  %v2993_v59 = vsel %vm2015_vm0, %v2811_v55, 0.0  ;;  %v3339_v2 = vsel %vm2014_vm1, 0.0, %v9271_v3 }
 0x2bf   : > { %v9273_v39 = vpop.xlane.xlu1 %2251  ;;  %v9278_v25 = vpop.xlane.xlu0 %2928  ;;  %v3553_v55 = vsel %vm2015_vm0, %v3339_v2, 0.0 }
 0x2c0   : > { %v9306_v56 = vpop.eup %6556 }
 0x2c1   : > { %11940 = vst [vmem:[#allocation110_spill] sm:$0xff] %v9306_v56 }
 0x2c2   : > { %3545 = vadd.xlane.f32.xlu1 %v3544_v24  ;;  %2994 = vadd.xlane.f32.xlu0 %v2993_v59  ;;  %v2990_v24 = vsel %vm2015_vm0, %v2810_v52, 0.0  ;;  %v3338_v59 = vsel %vm2014_vm1, 0.0, %v9289_v27  ;;  %v11942_v52 = vld [vmem:[#allocation17_spill] sm:$0xff] }
 0x2c3   : > { %v3429_v5 = vpop.xlane.xlu1 %3428  ;;  %v9295_v21 = vpop.xlane.xlu0 %2263  ;;  %v3550_v2 = vsel %vm2015_vm0, %v3338_v59, 0.0 }
 0x2c4   : > { %11938 = vst [vmem:[#allocation108_spill] sm:$0xff] %v9295_v21  ;;  %6564 = vrcp.f32 %v3429_v5  ;;  %v2642_v5 = vmul.f32 1.442695, %v2457_v40  ;;  %v9323_v21 = vpop.eup %6558  ;;  %v2812_v40 = vsel %vm2014_vm1, %v9170_v13, 0.0 }
 0x2c5   : > { %6566 = vpow2.f32 %v2620_v43  ;;  %v9314_v43 = vpop.f32.mrf.mxu0  ;;  %11943 = vst [vmem:[#allocation17_spill] sm:$0xff] %v9323_v21 }
 0x2c6   : > { %3554 = vadd.xlane.f32.xlu1 %v3553_v55  ;;  %6568 = vrcp.f32 %v9174_v60  ;;  %2991 = vadd.xlane.f32.xlu0 %v2990_v24  ;;  %11941 = vst [vmem:[#allocation111_spill] sm:$0xff] %v9314_v43  ;;  %v2456_v55 = vsub.f32 %v11942_v52, %v9045_v57  ;;  %v2999_v60 = vsel %vm2015_vm0, %v2813_v1, 0.0  ;;  %v3341_v24 = vsel %vm2014_vm1, 0.0, %v9306_v56  ;;  %v11945_v57 = vld [vmem:[#allocation18_spill] sm:$0xff] }
 0x2c7   : > { %v3426_v41 = vpop.xlane.xlu1 %3425  ;;  %v9312_v63 = vpop.xlane.xlu0 %2925 }
 0x2c8   : > { %6570 = vrcp.f32 %v3426_v41  ;;  %v2459_v41 = vsub.f32 %v11945_v57, %v9062_v22  ;;  %v9333_v1 = vpop.f32.mrf.mxu0  ;;  %v2640_v52 = vmul.f32 1.442695, %v2456_v55 }
 0x2c9   : > { %6572 = vpow2.f32 %v2638_v45  ;;  %11946 = vst [vmem:[#allocation18_spill] sm:$0xff] %v9333_v1 }
 0x2ca   : > { %3551 = vadd.xlane.f32.xlu1 %v3550_v2  ;;  %6574 = vrcp.f32 %v9206_v46  ;;  %3000 = vadd.xlane.f32.xlu0 %v2999_v60  ;;  %v3559_v2 = vsel %vm2015_vm0, %v3341_v24, 0.0  ;;  %v2996_v46 = vsel %vm2015_vm0, %v2812_v40, 0.0  ;;  %v3340_v60 = vsel %vm2014_vm1, 0.0, %v9323_v21 }
 0x2cb   : > { %v3435_v45 = vpop.xlane.xlu1 %3434  ;;  %v9329_v59 = vpop.xlane.xlu0 %2272  ;;  %v2646_v57 = vmul.f32 1.442695, %v2459_v41  ;;  %v3556_v40 = vsel %vm2015_vm0, %v3340_v60, 0.0  ;;  %v2814_v41 = vsel %vm2014_vm1, %v9202_v54, 0.0 }
 0x2cc   : > { %6576 = vrcp.f32 %v3435_v45  ;;  %11944 = vst [vmem:[#allocation112_spill] sm:$0xff] %v9329_v59  ;;  %v2815_v45 = vsel %vm2014_vm1, %v9186_v32, 0.0  ;;  %v3002_v14 = vsel %vm2015_vm0, %v2814_v41, 0.0 }
 0x2cd   : > { %6578 = vpow2.f32 %v2642_v5  ;;  %v9343_v5 = vpop.eup %6560  ;;  %v3005_v59 = vsel %vm2015_vm0, %v2815_v45, 0.0 }
 0x2ce   : > { %3560 = vadd.xlane.f32.xlu1 %v3559_v2  ;;  %11947 = vst [vmem:[#allocation113_spill] sm:$0xff] %v9343_v5  ;;  %6580 = vrcp.f32 %v9242_v19  ;;  %2997 = vadd.xlane.f32.xlu0 %v2996_v46  ;;  %v6563_v55 = vpop.eup %6562  ;;  %v9346_v2 = vpop.f32.mrf.mxu0  ;;  %v3343_v19 = vsel %vm2014_vm1, 0.0, %v9343_v5 }
 0x2cf   : > { %v3432_v22 = vpop.xlane.xlu1 %3431  ;;  %v2935_v24 = vpop.xlane.xlu0 %2934  ;;  %11948 = vst [vmem:[#allocation114_spill] sm:$0xff] %v9346_v2 }
 0x2d0   : > { %6582 = vrcp.f32 %v3432_v22  ;;  %v9367_v22 = vpop.f32.mrf.mxu0 }
 0x2d1   : > { %v6565_v28 = vpop.eup %6564  ;;  %6584 = vpow2.f32 %v2640_v52  ;;  %11953 = vst [vmem:[#allocation117_spill] sm:$0xff] %v9367_v22 }
 0x2d2   : > { %3557 = vadd.xlane.f32.xlu1 %v3556_v40  ;;  %v9358_v46 = vpop.eup %6566  ;;  %6586 = vrcp.f32 %v9278_v25  ;;  %3006 = vadd.xlane.f32.xlu0 %v3005_v59  ;;  %v9363_v52 = vsel %vm2014_vm1, %v6563_v55, %v6565_v28  ;;  %v3565_v40 = vsel %vm2015_vm0, %v3343_v19, 0.0  ;;  %v2823_v25 = vsel %vm2014_vm1, %v9220_v37, 0.0  ;;  %v11955_v55 = vld [vmem:[#allocation20_spill] sm:$0xff] }
 0x2d3   : > { %11950 = vst [vmem:[#allocation19_spill] sm:$0xff] %v9358_v46  ;;  %v3441_v60 = vpop.xlane.xlu1 %3440  ;;  %11951 = vst [vmem:[#allocation115_spill] sm:$0xff] %v9363_v52  ;;  %v6569_v33 = vpop.eup %6568  ;;  %v2644_v28 = vmul.f32 1.442695, %v2458_v34 }
 0x2d4   : > { %6588 = vrcp.f32 %v3441_v60  ;;  %v9365_v42 = vpop.xlane.xlu0 %2269  ;;  %v2461_v60 = vsub.f32 %v11955_v55, %v9093_v16  ;;  %v9386_v52 = vpop.f32.mrf.mxu0 }
 0x2d5   : > { %11952 = vst [vmem:[#allocation116_spill] sm:$0xff] %v9365_v42  ;;  %v6571_v45 = vpop.eup %6570  ;;  %6590 = vpow2.f32 %v2646_v57  ;;  %v3342_v57 = vsel %vm2014_vm1, 0.0, %v9358_v46  ;;  %11957 = vst [vmem:[#allocation119_spill] sm:$0xff] %v9386_v52 }
 0x2d6   : > { %v9374_v59 = vpop.eup %6572  ;;  %3566 = vadd.xlane.f32.xlu1 %v3565_v40  ;;  %v9383_v19 = vsel %vm2014_vm1, %v6569_v33, %v6571_v45  ;;  %6592 = vrcp.f32 %v9312_v63  ;;  %3003 = vadd.xlane.f32.xlu0 %v3002_v14  ;;  %v3562_v16 = vsel %vm2015_vm0, %v3342_v57, 0.0  ;;  %v3029_v40 = vsel %vm2015_vm0, %v2823_v25, 0.0  ;;  %v11959_v45 = vld [vmem:[#allocation21_spill] sm:$0xff]  ;;  %v9406_v15 = vpop.f32.mrf.mxu0 }
 0x2d7   : > { %11954 = vst [vmem:[#allocation118_spill] sm:$0xff] %v9374_v59  ;;  %11956 = vst [vmem:[#allocation20_spill] sm:$0xff] %v9383_v19  ;;  %v3438_v41 = vpop.xlane.xlu1 %3437  ;;  %v6575_v37 = vpop.eup %6574  ;;  %v3351_v55 = vsel %vm2014_vm1, 0.0, %v9374_v59  ;;  %v2825_v63 = vsel %vm2014_vm1, %v9238_v35, 0.0  ;;  %v2650_v33 = vmul.f32 1.442695, %v2461_v60 }
 0x2d8   : > { %6594 = vrcp.f32 %v3438_v41  ;;  %v2932_v42 = vpop.xlane.xlu0 %2931  ;;  %v2460_v41 = vsub.f32 %v11959_v45, %v9110_v50  ;;  %11962 = vst [vmem:[#allocation122_spill] sm:$0xff] %v9406_v15  ;;  %v3035_v60 = vsel %vm2015_vm0, %v2825_v63, 0.0 }
 0x2d9   : > { %v6577_v34 = vpop.eup %6576  ;;  %6596 = vpow2.f32 %v2644_v28  ;;  %v3589_v28 = vsel %vm2015_vm0, %v3351_v55, 0.0 }
 0x2da   : > { %v9396_v14 = vpop.eup %6578  ;;  %3563 = vadd.xlane.f32.xlu1 %v3562_v16  ;;  %v9402_v57 = vsel %vm2014_vm1, %v6575_v37, %v6577_v34  ;;  %6598 = vrcp.f32 %v2935_v24  ;;  %3030 = vadd.xlane.f32.xlu0 %v3029_v40  ;;  %v2824_v37 = vsel %vm2014_vm1, %v9256_v10, 0.0  ;;  %v2648_v24 = vmul.f32 1.442695, %v2460_v41  ;;  %v11963_v34 = vld [vmem:[#allocation22_spill] sm:$0xff]  ;;  %v9426_v10 = vpop.f32.mrf.mxu0 }
 0x2db   : > { %11958 = vst [vmem:[#allocation120_spill] sm:$0xff] %v9396_v14  ;;  %11960 = vst [vmem:[#allocation21_spill] sm:$0xff] %v9402_v57  ;;  %v3447_v25 = vpop.xlane.xlu1 %3446  ;;  %v6581_v19 = vpop.eup %6580  ;;  %v3353_v50 = vsel %vm2014_vm1, 0.0, %v9396_v14  ;;  %v2463_v16 = vsub.f32 %v11963_v34, %v9126_v26 }
 0x2dc   : > { %6600 = vrcp.f32 %v3447_v25  ;;  %v9404_v31 = vpop.xlane.xlu0 %2278  ;;  %v3595_v26 = vsel %vm2015_vm0, %v3353_v50, 0.0  ;;  %v2827_v50 = vsel %vm2014_vm1, %v9271_v3, 0.0 }
 0x2dd   : > { %11961 = vst [vmem:[#allocation121_spill] sm:$0xff] %v9404_v31  ;;  %v6583_v35 = vpop.eup %6582  ;;  %6602 = vpow2.f32 %v2650_v33  ;;  %v11966_v33 = vld [vmem:[#allocation23_spill] sm:$0xff] }
 0x2de   : > { %3590 = vadd.xlane.f32.xlu1 %v3589_v28  ;;  %v9420_v40 = vsel %vm2014_vm1, %v6581_v19, %v6583_v35  ;;  %v9422_v55 = vpop.eup %6584  ;;  %6604 = vrcp.f32 %v2932_v42  ;;  %3036 = vadd.xlane.f32.xlu0 %v3035_v60  ;;  %v2462_v41 = vsub.f32 %v11966_v33, %v9142_v48  ;;  %11967 = vst [vmem:[#allocation23_spill] sm:$0xff] %v9426_v10  ;;  %v3032_v28 = vsel %vm2015_vm0, %v2824_v37, 0.0 }
 0x2df   : > { %11964 = vst [vmem:[#allocation22_spill] sm:$0xff] %v9420_v40  ;;  %11965 = vst [vmem:[#allocation123_spill] sm:$0xff] %v9422_v55  ;;  %v3444_v63 = vpop.xlane.xlu1 %3443  ;;  %v6587_v45 = vpop.eup %6586  ;;  %v2654_v19 = vmul.f32 1.442695, %v2463_v16  ;;  %v3352_v42 = vsel %vm2014_vm1, 0.0, %v9422_v55  ;;  %v11971_v16 = vld [vmem:[#allocation16_spill] sm:$0xff] }
 0x2e0   : > { %6606 = vrcp.f32 %v3444_v63  ;;  %v2941_v25 = vpop.xlane.xlu0 %2940  ;;  %v2454_v63 = vsub.f32 %v11971_v16, %v9013_v49  ;;  %v2652_v33 = vmul.f32 1.442695, %v2462_v41  ;;  %v2826_v41 = vsel %vm2014_vm1, %v9289_v27, 0.0 }
 0x2e1   : > { %v6589_v57 = vpop.eup %6588  ;;  %6608 = vpow2.f32 %v2648_v24 }
 0x2e2   : > { %v9430_v35 = vpop.eup %6590  ;;  %3596 = vadd.xlane.f32.xlu1 %v3595_v26  ;;  %v9437_v60 = vsel %vm2014_vm1, %v6587_v45, %v6589_v57  ;;  %6610 = vrcp.f32 %v2941_v25  ;;  %3033 = vadd.xlane.f32.xlu0 %v3032_v28  ;;  %v9446_v26 = vpop.f32.mrf.mxu0  ;;  %v3592_v57 = vsel %vm2015_vm0, %v3352_v42, 0.0  ;;  %v3041_v45 = vsel %vm2015_vm0, %v2827_v50, 0.0  ;;  %v11975_v42 = vld [vmem:[#allocation9_spill] sm:$0xff] }
 0x2e3   : > { %11968 = vst [vmem:[#allocation124_spill] sm:$0xff] %v9430_v35  ;;  %11969 = vst [vmem:[#allocation125_spill] sm:$0xff] %v9437_v60  ;;  %v3453_v48 = vpop.xlane.xlu1 %3452  ;;  %v6593_v37 = vpop.eup %6592  ;;  %v3355_v25 = vsel %vm2014_vm1, 0.0, %v9430_v35  ;;  %v2438_v50 = vsub.f32 %v11975_v42, %v8883_v20  ;;  %v2636_v3 = vmul.f32 1.442695, %v2454_v63 }
 0x2e4   : > { %6612 = vrcp.f32 %v3453_v48  ;;  %v9442_v24 = vpop.xlane.xlu0 %2275  ;;  %11972 = vst [vmem:[#allocation16_spill] sm:$0xff] %v9446_v26  ;;  %v9464_v40 = vpop.f32.mrf.mxu0 }
 0x2e5   : > { %11970 = vst [vmem:[#allocation126_spill] sm:$0xff] %v9442_v24  ;;  %v6595_v34 = vpop.eup %6594  ;;  %6614 = vpow2.f32 %v2654_v19  ;;  %11976 = vst [vmem:[#allocation9_spill] sm:$0xff] %v9464_v40  ;;  %v2604_v42 = vmul.f32 1.442695, %v2438_v50 }
 0x2e6   : > { %3593 = vadd.xlane.f32.xlu1 %v3592_v57  ;;  %v9455_v28 = vsel %vm2014_vm1, %v6593_v37, %v6595_v34  ;;  %v9457_v48 = vpop.eup %6596  ;;  %3042 = vadd.xlane.f32.xlu0 %v3041_v45  ;;  %v3601_v37 = vsel %vm2015_vm0, %v3355_v25, 0.0  ;;  %v3038_v34 = vsel %vm2015_vm0, %v2826_v41, 0.0 }
 0x2e7   : > { %11973 = vst [vmem:[#allocation127_spill] sm:$0xff] %v9455_v28  ;;  %11974 = vst [vmem:[#allocation128_spill] sm:$0xff] %v9457_v48  ;;  %v3450_v49 = vpop.xlane.xlu1 %3449  ;;  %v6599_v19 = vpop.eup %6598  ;;  %v3354_v45 = vsel %vm2014_vm1, 0.0, %v9457_v48 }
 0x2e8   : > { %6616 = vrcp.f32 %v3450_v49  ;;  %v2938_v16 = vpop.xlane.xlu0 %2937  ;;  %v3598_v27 = vsel %vm2015_vm0, %v3354_v45, 0.0  ;;  %v2828_v45 = vsel %vm2014_vm1, %v9323_v21, 0.0 }
 0x2e9   : > { %v6601_v57 = vpop.eup %6600  ;;  %6618 = vpow2.f32 %v2652_v33  ;;  %v2829_v33 = vsel %vm2014_vm1, %v9306_v56, 0.0 }
 0x2ea   : > { %6620 = vrcp.f32 %v2938_v16  ;;  %3602 = vadd.xlane.f32.xlu1 %v3601_v37  ;;  %v9473_v20 = vsel %vm2014_vm1, %v6599_v19, %v6601_v57  ;;  %v9475_v49 = vpop.eup %6602  ;;  %3039 = vadd.xlane.f32.xlu0 %v3038_v34  ;;  %v9482_v37 = vpop.f32.mrf.mxu0  ;;  %v3047_v19 = vsel %vm2015_vm0, %v2829_v33, 0.0 }
 0x2eb   : > { %11977 = vst [vmem:[#allocation129_spill] sm:$0xff] %v9473_v20  ;;  %11978 = vst [vmem:[#allocation130_spill] sm:$0xff] %v9475_v49  ;;  %v3459_v63 = vpop.xlane.xlu1 %3458  ;;  %v6605_v25 = vpop.eup %6604  ;;  %6622 = vpow2.f32 %v2636_v3  ;;  %v3357_v57 = vsel %vm2014_vm1, 0.0, %v9475_v49 }
 0x2ec   : > { %v9480_v16 = vpop.xlane.xlu0 %2284  ;;  %11980 = vst [vmem:[#allocation132_spill] sm:$0xff] %v9482_v37  ;;  %6624 = vpow2.f32 %v2604_v42  ;;  %v9500_v31 = vpop.f32.mrf.mxu0 }
 0x2ed   : > { %11979 = vst [vmem:[#allocation131_spill] sm:$0xff] %v9480_v16  ;;  %v6607_v41 = vpop.eup %6606  ;;  %6626 = vrcp.f32 %v3459_v63  ;;  %v2831_v63 = vsel %vm2014_vm1, %v9343_v5, 0.0 }
 0x2ee   : > { %3599 = vadd.xlane.f32.xlu1 %v3598_v27  ;;  %v9491_v34 = vsel %vm2014_vm1, %v6605_v25, %v6607_v41  ;;  %v9493_v50 = vpop.eup %6608  ;;  %3048 = vadd.xlane.f32.xlu0 %v3047_v19  ;;  %v11983_v27 = vld [vmem:[#allocation14_spill] sm:$0xff]  ;;  %v3607_v25 = vsel %vm2015_vm0, %v3357_v57, 0.0  ;;  %v3044_v41 = vsel %vm2015_vm0, %v2828_v45, 0.0 }
 0x2ef   : > { %11981 = vst [vmem:[#allocation133_spill] sm:$0xff] %v9491_v34  ;;  %11982 = vst [vmem:[#allocation134_spill] sm:$0xff] %v9493_v50  ;;  %v3456_v56 = vpop.xlane.xlu1 %3455  ;;  %v6611_v3 = vpop.eup %6610  ;;  %v2453_v33 = vsub.f32 %v11983_v27, %v8966_v61  ;;  %v3356_v19 = vsel %vm2014_vm1, 0.0, %v9493_v50 }
 0x2f0   : > { %v2947_v28 = vpop.xlane.xlu0 %2946  ;;  %11984 = vst [vmem:[#allocation14_spill] sm:$0xff] %v9500_v31  ;;  %v3604_v31 = vsel %vm2015_vm0, %v3356_v19, 0.0  ;;  %v2830_v19 = vsel %vm2014_vm1, %v9358_v46, 0.0 }
 0x2f1   : > { %v6613_v24 = vpop.eup %6612  ;;  %6628 = vrcp.f32 %v2947_v28  ;;  %v2634_v28 = vmul.f32 1.442695, %v2453_v33 }
 0x2f2   : > { %3608 = vadd.xlane.f32.xlu1 %v3607_v25  ;;  %v9509_v42 = vsel %vm2014_vm1, %v6611_v3, %v6613_v24  ;;  %v9511_v61 = vpop.eup %6614  ;;  %3045 = vadd.xlane.f32.xlu0 %v3044_v41  ;;  %v9518_v25 = vpop.f32.mrf.mxu0  ;;  %v11990_v24 = vld [vmem:[#allocation7_spill] sm:$0xff]  ;;  %v3053_v41 = vsel %vm2015_vm0, %v2831_v63, 0.0 }
 0x2f3   : > { %11985 = vst [vmem:[#allocation135_spill] sm:$0xff] %v9509_v42  ;;  %11986 = vst [vmem:[#allocation136_spill] sm:$0xff] %v9511_v61  ;;  %v3465_v27 = vpop.xlane.xlu1 %3464  ;;  %v2437_v3 = vsub.f32 %v11990_v24, %v8833_v36  ;;  %v3359_v5 = vsel %vm2014_vm1, 0.0, %v9511_v61  ;;  %6630 = vpow2.f32 %v2634_v28 }
 0x2f4   : > { %v9516_v57 = vpop.xlane.xlu0 %2281  ;;  %11988 = vst [vmem:[#allocation138_spill] sm:$0xff] %v9518_v25  ;;  %6632 = vrcp.f32 %v3456_v56  ;;  %v3613_v63 = vsel %vm2015_vm0, %v3359_v5, 0.0  ;;  %v2839_v56 = vsel %vm2014_vm1, %v9374_v59, 0.0 }
 0x2f5   : > { %11987 = vst [vmem:[#allocation137_spill] sm:$0xff] %v9516_v57  ;;  %v6617_v45 = vpop.eup %6616  ;;  %v2602_v24 = vmul.f32 1.442695, %v2437_v3 }
 0x2f6   : > { %v9521_v21 = vpop.eup %6618  ;;  %3605 = vadd.xlane.f32.xlu1 %v3604_v31  ;;  %3054 = vadd.xlane.f32.xlu0 %v3053_v41  ;;  %v9538_v31 = vpop.f32.mrf.mxu0  ;;  %v3050_v41 = vsel %vm2015_vm0, %v2830_v19, 0.0  ;;  %v11996_v19 = vld [vmem:[#allocation15_spill] sm:$0xff] }
 0x2f7   : > { %11989 = vst [vmem:[#allocation139_spill] sm:$0xff] %v9521_v21  ;;  %v6621_v33 = vpop.eup %6620  ;;  %v9529_v60 = vpop.xlane.xlu1 %3461  ;;  %11992 = vst [vmem:[#allocation140_spill] sm:$0xff] %v9538_v31  ;;  %v3358_v46 = vsel %vm2014_vm1, 0.0, %v9521_v21 }
 0x2f8   : > { %v2944_v25 = vpop.xlane.xlu0 %2943  ;;  %v9536_v36 = vsel %vm2014_vm1, %v6621_v33, %v6617_v45  ;;  %v9545_v28 = vpop.eup %6622  ;;  %v3610_v3 = vsel %vm2015_vm0, %v3358_v46, 0.0  ;;  %v2841_v46 = vsel %vm2014_vm1, %v9396_v14, 0.0 }
 0x2f9   : > { %11991 = vst [vmem:[#allocation7_spill] sm:$0xff] %v9536_v36  ;;  %6634 = vrcp.f32 %v2944_v25  ;;  %11993 = vst [vmem:[#allocation141_spill] sm:$0xff] %v9545_v28  ;;  %v9554_v5 = vpop.eup %6624  ;;  %v9556_v25 = vpop.f32.mrf.mxu0  ;;  %v3350_v59 = vsel %vm2014_vm1, 0.0, %v9545_v28 }
 0x2fa   : > { %3614 = vadd.xlane.f32.xlu1 %v3613_v63  ;;  %3051 = vadd.xlane.f32.xlu0 %v3050_v41  ;;  %11994 = vst [vmem:[#allocation142_spill] sm:$0xff] %v9554_v5  ;;  %11995 = vst [vmem:[#allocation143_spill] sm:$0xff] %v9556_v25  ;;  %v6627_v33 = vpop.eup %6626  ;;  %6636 = vpow2.f32 %v2602_v24  ;;  %v2452_v63 = vsub.f32 %v11996_v19, %v8981_v58  ;;  %v3077_v41 = vsel %vm2015_vm0, %v2839_v56, 0.0  ;;  %v11997_v24 = vld [vmem:[#allocation8_spill] sm:$0xff]  ;;  %v3334_v14 = vsel %vm2014_vm1, 0.0, %v9554_v5 }
 0x2fb   : > { %v9547_v34 = vpop.xlane.xlu1 %3470  ;;  %v2436_v25 = vsub.f32 %v11997_v24, %v8851_v44  ;;  %v9576_v56 = vpop.f32.mrf.mxu0  ;;  %6638 = vrcp.f32 %v3465_v27 }
 0x2fc   : > { %v9552_v45 = vpop.xlane.xlu0 %2290  ;;  %11999 = vst [vmem:[#allocation8_spill] sm:$0xff] %v9576_v56  ;;  %v2632_v19 = vmul.f32 1.442695, %v2452_v63  ;;  %v3538_v63 = vsel %vm2015_vm0, %v3334_v14, 0.0 }
 0x2fe   : > { %3611 = vadd.xlane.f32.xlu1 %v3610_v3  ;;  %v6629_v31 = vpop.eup %6628  ;;  %3078 = vadd.xlane.f32.xlu0 %v3077_v41  ;;  %v3586_v3 = vsel %vm2015_vm0, %v3350_v59, 0.0  ;;  %v3083_v41 = vsel %vm2015_vm0, %v2841_v46, 0.0 }
 0x2ff   : > { %v9565_v57 = vpop.xlane.xlu1 %3467  ;;  %v9574_v58 = vsel %vm2014_vm1, %v6629_v31, %v6627_v33  ;;  %v2840_v31 = vsel %vm2014_vm1, %v9422_v55, 0.0  ;;  %v2600_v33 = vmul.f32 1.442695, %v2436_v25  ;;  %v2843_v25 = vsel %vm2014_vm1, %v9430_v35, 0.0  ;;  %v12002_v55 = vld [vmem:[#allocation12_spill] sm:$0xff] }
 0x300   : > { %v2953_v20 = vpop.xlane.xlu0 %2952  ;;  %11998 = vst [vmem:[#allocation15_spill] sm:$0xff] %v9574_v58  ;;  %v9590_v59 = vpop.eup %6630  ;;  %v3080_v24 = vsel %vm2015_vm0, %v2840_v31, 0.0  ;;  %v2451_v56 = vsub.f32 %v12002_v55, %v8934_v4  ;;  %v2349_v31 = vsel %vm2015_vm0, %v9464_v40, -inf }
 0x301   : > { %6640 = vrcp.f32 %v2953_v20  ;;  %12000 = vst [vmem:[#allocation144_spill] sm:$0xff] %v9590_v59  ;;  %v9592_v20 = vpop.f32.mrf.mxu0  ;;  %v6633_v46 = vpop.eup %6632  ;;  %v3349_v4 = vsel %vm2014_vm1, 0.0, %v9590_v59 }
 0x302   : > { %3587 = vadd.xlane.f32.xlu1 %v3586_v3  ;;  %3084 = vadd.xlane.f32.xlu0 %v3083_v41  ;;  %12001 = vst [vmem:[#allocation145_spill] sm:$0xff] %v9592_v20  ;;  %6642 = vpow2.f32 %v2632_v19 }
 0x303   : > { %v9583_v44 = vpop.xlane.xlu1 %3476  ;;  %6644 = vpow2.f32 %v2600_v33  ;;  %v9607_v19 = vpop.f32.mrf.mxu0 }
 0x304   : > { %v9588_v27 = vpop.xlane.xlu0 %2287  ;;  %12004 = vst [vmem:[#allocation146_spill] sm:$0xff] %v9607_v19  ;;  %6646 = vrcp.f32 %v9529_v60  ;;  %v2842_v60 = vsel %vm2014_vm1, %v9457_v48, 0.0  ;;  %v2845_v48 = vsel %vm2014_vm1, %v9475_v49, 0.0 }
 0x306   : > { %3539 = vadd.xlane.f32.xlu1 %v3538_v63  ;;  %v6635_v3 = vpop.eup %6634  ;;  %3081 = vadd.xlane.f32.xlu0 %v3080_v24  ;;  %v3089_v63 = vsel %vm2015_vm0, %v2843_v25, 0.0 }
 0x307   : > { %v9596_v41 = vpop.xlane.xlu1 %3473  ;;  %v9605_v14 = vsel %vm2014_vm1, %v6635_v3, %v6633_v46  ;;  %v9616_v55 = vpop.eup %6636  ;;  %v2630_v46 = vmul.f32 1.442695, %v2451_v56  ;;  %v3583_v3 = vsel %vm2015_vm0, %v3349_v4, 0.0 }
 0x308   : > { %v2950_v20 = vpop.xlane.xlu0 %2949  ;;  %12003 = vst [vmem:[#allocation12_spill] sm:$0xff] %v9605_v14  ;;  %12005 = vst [vmem:[#allocation147_spill] sm:$0xff] %v9616_v55  ;;  %v6639_v25 = vpop.eup %6638  ;;  %v3333_v35 = vsel %vm2014_vm1, 0.0, %v9616_v55 }
 0x309   : > { %6648 = vrcp.f32 %v2950_v20  ;;  %v9625_v20 = vpop.f32.mrf.mxu0 }
 0x30a   : > { %2350 = vmax.xlane.f32.xlu1 %v2349_v31  ;;  %3090 = vadd.xlane.f32.xlu0 %v3089_v63  ;;  %12006 = vst [vmem:[#allocation148_spill] sm:$0xff] %v9625_v20  ;;  %v12007_v31 = vld [vmem:[#allocation5_spill] sm:$0xff]  ;;  %v3086_v63 = vsel %vm2015_vm0, %v2842_v60, 0.0  ;;  %6650 = vpow2.f32 %v2630_v46  ;;  %v3535_v60 = vsel %vm2015_vm0, %v3333_v35, 0.0 }
 0x30b   : > { %v9618_v33 = vpop.xlane.xlu1 %3482  ;;  %v2435_v40 = vsub.f32 %v12007_v31, %v8803_v23  ;;  %6652 = vrcp.f32 %v9547_v34 }
 0x30c   : > { %v9623_v24 = vpop.xlane.xlu0 %2296 }
 0x30d   : > { %v2598_v31 = vmul.f32 1.442695, %v2435_v40  ;;  %v2346_v40 = vsel %vm2015_vm0, %v9482_v37, -inf  ;;  %v2847_v37 = vsel %vm2014_vm1, %v9511_v61, 0.0 }
 0x30e   : > { %3584 = vadd.xlane.f32.xlu1 %v3583_v3  ;;  %v6641_v19 = vpop.eup %6640  ;;  %3087 = vadd.xlane.f32.xlu0 %v3086_v63  ;;  %v9643_v3 = vpop.f32.mrf.mxu0  ;;  %v3095_v63 = vsel %vm2015_vm0, %v2845_v48, 0.0  ;;  %v12012_v48 = vld [vmem:[#allocation13_spill] sm:$0xff]  ;;  %v3101_v53 = vsel %vm2015_vm0, %v2847_v37, 0.0 }
 0x30f   : > { %v9634_v56 = vpop.xlane.xlu1 %3479  ;;  %v9641_v23 = vsel %vm2014_vm1, %v6641_v19, %v6639_v25  ;;  %12008 = vst [vmem:[#allocation5_spill] sm:$0xff] %v9643_v3  ;;  %v9648_v20 = vpop.eup %6642  ;;  %v2844_v19 = vsel %vm2014_vm1, %v9493_v50, 0.0 }
 0x310   : > { %v2959_v4 = vpop.xlane.xlu0 %2958  ;;  %12009 = vst [vmem:[#allocation149_spill] sm:$0xff] %v9648_v20  ;;  %v9657_v49 = vpop.eup %6644 }
 0x311   : > { %6654 = vrcp.f32 %v2959_v4  ;;  %12010 = vst [vmem:[#allocation150_spill] sm:$0xff] %v9657_v49  ;;  %v9659_v34 = vpop.f32.mrf.mxu0  ;;  %v6647_v35 = vpop.eup %6646  ;;  %v2450_v4 = vsub.f32 %v12012_v48, %v8949_v9  ;;  %v12013_v9 = vld [vmem:[#allocation6_spill] sm:$0xff]  ;;  %v3332_v61 = vsel %vm2014_vm1, 0.0, %v9657_v49 }
 0x312   : > { %3536 = vadd.xlane.f32.xlu1 %v3535_v60  ;;  %3096 = vadd.xlane.f32.xlu0 %v3095_v63  ;;  %12011 = vst [vmem:[#allocation151_spill] sm:$0xff] %v9659_v34  ;;  %6656 = vpow2.f32 %v2598_v31  ;;  %v3092_v60 = vsel %vm2015_vm0, %v2844_v19, 0.0  ;;  %v3348_v63 = vsel %vm2014_vm1, 0.0, %v9648_v20  ;;  %v2434_v19 = vsub.f32 %v12013_v9, %v8819_v29 }
 0x313   : > { %v9650_v46 = vpop.xlane.xlu1 %3488  ;;  %6658 = vrcp.f32 %v9565_v57  ;;  %v3580_v48 = vsel %vm2015_vm0, %v3348_v63, 0.0  ;;  %v2846_v29 = vsel %vm2014_vm1, %v9521_v21, 0.0  ;;  %v2838_v21 = vsel %vm2014_vm1, %v9545_v28, 0.0 }
 0x314   : > { %v9655_v25 = vpop.xlane.xlu0 %2293  ;;  %v2596_v63 = vmul.f32 1.442695, %v2434_v19  ;;  %v2343_v19 = vsel %vm2015_vm0, %v9426_v10, -inf  ;;  %v12020_v10 = vld [vmem:[#allocation52_spill] sm:$0xff] }
 0x316   : > { %2347 = vmax.xlane.f32.xlu1 %v2346_v40  ;;  %v6649_v50 = vpop.eup %6648  ;;  %3093 = vadd.xlane.f32.xlu0 %v3092_v60  ;;  %v9680_v40 = vpop.f32.mrf.mxu0  ;;  %v2628_v60 = vmul.f32 1.442695, %v2450_v4 }
 0x317   : > { %v9669_v36 = vpop.xlane.xlu1 %3485  ;;  %v9676_v31 = vsel %vm2014_vm1, %v6649_v50, %v6647_v35  ;;  %v9695_v57 = vpop.eup %6650 }
 0x318   : > { %v2956_v42 = vpop.xlane.xlu0 %2955  ;;  %12014 = vst [vmem:[#allocation13_spill] sm:$0xff] %v9695_v57  ;;  %v9697_v4 = vpop.f32.mrf.mxu0  ;;  %v3347_v28 = vsel %vm2014_vm1, 0.0, %v9695_v57 }
 0x319   : > { %6660 = vrcp.f32 %v2956_v42  ;;  %12015 = vst [vmem:[#allocation6_spill] sm:$0xff] %v9697_v4  ;;  %v3532_v42 = vsel %vm2015_vm0, %v3332_v61, 0.0  ;;  %v6653_v37 = vpop.eup %6652 }
 0x31a   : > { %3581 = vadd.xlane.f32.xlu1 %v3580_v48  ;;  %3102 = vadd.xlane.f32.xlu0 %v3101_v53  ;;  %6662 = vpow2.f32 %v2628_v60  ;;  %v3098_v53 = vsel %vm2015_vm0, %v2846_v29, 0.0  ;;  %v9712_v61 = vpop.f32.mrf.mxu0  ;;  %v12017_v60 = vld [vmem:[#allocation64_spill] sm:$0xff]  ;;  %v12018_v29 = vld [vmem:[#allocation10_spill] sm:$0xff] }
 0x31b   : > { %v9688_v50 = vpop.xlane.xlu1 %3494  ;;  %12016 = vst [vmem:[#allocation152_spill] sm:$0xff] %v9712_v61  ;;  %6664 = vpow2.f32 %v2596_v63 }
 0x31c   : > { %v9693_v35 = vpop.xlane.xlu0 %2302  ;;  %6666 = vrcp.f32 %v9583_v44 }
 0x31e   : > { %3533 = vadd.xlane.f32.xlu1 %v3532_v42  ;;  %v6655_v9 = vpop.eup %6654  ;;  %3099 = vadd.xlane.f32.xlu0 %v3098_v53  ;;  %v2449_v42 = vsub.f32 %v12018_v29, %v12017_v60  ;;  %v3074_v53 = vsel %vm2015_vm0, %v2838_v21, 0.0  ;;  %v2433_v60 = vsub.f32 %v12021_v0, %v12020_v10  ;;  %v3577_v21 = vsel %vm2015_vm0, %v3347_v28, 0.0 }
 0x31f   : > { %v9701_v48 = vpop.xlane.xlu1 %3491  ;;  %v9710_v16 = vsel %vm2014_vm1, %v6655_v9, %v6653_v37  ;;  %v9722_v14 = vpop.eup %6656  ;;  %v2822_v9 = vsel %vm2014_vm1, %v9554_v5, 0.0 }
 0x320   : > { %v9706_v7 = vpop.xlane.xlu0 %2299  ;;  %12019 = vst [vmem:[#allocation64_spill] sm:$0xff] %v9722_v14  ;;  %v6659_v29 = vpop.eup %6658  ;;  %v2626_v12 = vmul.f32 1.442695, %v2449_v42  ;;  %v3331_v5 = vsel %vm2014_vm1, 0.0, %v9722_v14  ;;  %v2594_v42 = vmul.f32 1.442695, %v2433_v60 }
 0x321   : > { %v3529_v44 = vsel %vm2015_vm0, %v3331_v5, 0.0  ;;  %v12024_v5 = vld [vmem:[#allocation67_spill] sm:$0xff] }
 0x322   : > { %2344 = vmax.xlane.f32.xlu1 %v2343_v19  ;;  %3075 = vadd.xlane.f32.xlu0 %v3074_v53  ;;  %v9731_v19 = vpop.f32.mrf.mxu0  ;;  %v3026_v53 = vsel %vm2015_vm0, %v2822_v9, 0.0  ;;  %v12025_v60 = vld [vmem:[#allocation11_spill] sm:$0xff] }
 0x323   : > { %v9724_v37 = vpop.xlane.xlu1 %3500  ;;  %12022 = vst [vmem:[#allocation10_spill] sm:$0xff] %v9731_v19 }
 0x324   : > { %v2965_v63 = vpop.xlane.xlu0 %2964  ;;  %v9746_v28 = vpop.f32.mrf.mxu0 }
 0x325   : > { %6668 = vrcp.f32 %v2965_v63  ;;  %12023 = vst [vmem:[#allocation52_spill] sm:$0xff] %v9746_v28  ;;  %v2397_v9 = vsel %vm2015_vm0, %v9746_v28, -inf }
 0x326   : > { %3578 = vadd.xlane.f32.xlu1 %v3577_v21  ;;  %v6661_v34 = vpop.eup %6660  ;;  %3027 = vadd.xlane.f32.xlu0 %v3026_v53  ;;  %6670 = vrcp.f32 %v9596_v41 }
 0x327   : > { %v9739_v58 = vpop.xlane.xlu1 %3497  ;;  %v9744_v0 = vsel %vm2014_vm1, %v6661_v34, %v6659_v29  ;;  %v9751_v63 = vpop.eup %6662  ;;  %v2837_v34 = vsel %vm2014_vm1, %v9590_v59, 0.0  ;;  %v2448_v29 = vsub.f32 %v12025_v60, %v12024_v5  ;;  %v12027_v5 = vld [vmem:[#allocation4_spill] sm:$0xff] }
 0x328   : > { %v2962_v10 = vpop.xlane.xlu0 %2961  ;;  %v3071_v53 = vsel %vm2015_vm0, %v2837_v34, 0.0 }
 0x329   : > { %6672 = vrcp.f32 %v2962_v10  ;;  %v3346_v10 = vsel %vm2014_vm1, 0.0, %v9751_v63 }
 0x32a   : > { %6674 = vpow2.f32 %v2626_v12  ;;  %3530 = vadd.xlane.f32.xlu1 %v3529_v44  ;;  %2398 = vmax.xlane.f32.xlu0 %v2397_v9  ;;  %v2340_v12 = vsel %vm2015_vm0, %v9446_v26, -inf  ;;  %v9767_v44 = vpop.eup %6664  ;;  %v2821_v9 = vsel %vm2014_vm1, %v9616_v55, 0.0  ;;  %v2624_v26 = vmul.f32 1.442695, %v2448_v29  ;;  %v9782_v55 = vpop.f32.mrf.mxu0 }
 0x32b   : > { %v9753_v41 = vpop.xlane.xlu1 %3506  ;;  %6676 = vrcp.f32 %v9618_v33  ;;  %v6667_v34 = vpop.eup %6666  ;;  %v3330_v28 = vsel %vm2014_vm1, 0.0, %v9767_v44  ;;  %12028 = vst [vmem:[#allocation3_spill] sm:$0xff] %v9782_v55 }
 0x32c   : > { %v2971_v21 = vpop.xlane.xlu0 %2970 }
 0x32d   : > { %6678 = vrcp.f32 %v2971_v21  ;;  %v3574_v21 = vsel %vm2015_vm0, %v3346_v10, 0.0 }
 0x32e   : > { %6680 = vpow2.f32 %v2594_v42  ;;  %2341 = vmax.xlane.f32.xlu1 %v2340_v12  ;;  %3072 = vadd.xlane.f32.xlu0 %v3071_v53  ;;  %v12026_v12 = vld [vmem:[#allocation54_spill] sm:$0xff]  ;;  %v3023_v53 = vsel %vm2015_vm0, %v2821_v9, 0.0  ;;  %v3526_v9 = vsel %vm2015_vm0, %v3330_v28, 0.0  ;;  %v9809_v28 = vld [vmem:[%s11669_s3] sm:$0x1] }
 0x32f   : > { %v9769_v33 = vpop.xlane.xlu1 %3503  ;;  %6682 = vrcp.f32 %v9634_v56  ;;  %v2432_v60 = vsub.f32 %v12027_v5, %v12026_v12  ;;  %v2394_v5 = vsel %vm2015_vm0, %v9782_v55, -inf  ;;  %12031 = vst [vmem:[#allocation54_spill] sm:$0xff] %v9809_v28  ;;  %5753 = vmatprep.mubr.msk.f32.mxu1 %vm2015_vm0, %v9809_v28  ;;  %v12033_v55 = vld [vmem:[#allocation39_spill] sm:$0xff] }
 0x330   : > { %v2968_v42 = vpop.xlane.xlu0 %2967 }
 0x331   : > { %6684 = vrcp.f32 %v2968_v42  ;;  %v2592_v12 = vmul.f32 1.442695, %v2432_v60 }
 0x332   : > { %3575 = vadd.xlane.f32.xlu1 %v3574_v21  ;;  %v6669_v59 = vpop.eup %6668  ;;  %3024 = vadd.xlane.f32.xlu0 %v3023_v53  ;;  %6686 = vrcp.f32 %v9650_v46 }
 0x333   : > { %v9784_v56 = vpop.xlane.xlu1 %3512  ;;  %v9789_v42 = vsel %vm2014_vm1, %v6669_v59, %v6667_v34  ;;  %v6671_v29 = vpop.eup %6670  ;;  %v2836_v59 = vsel %vm2014_vm1, %v9648_v20, 0.0  ;;  %v2479_v20 = vsub.f32 %v12033_v55, %v9258_v51 }
 0x334   : > { %v2977_v10 = vpop.xlane.xlu0 %2976  ;;  %12029 = vst [vmem:[#allocation67_spill] sm:$0xff] %v9789_v42 }
 0x335   : > { %6688 = vrcp.f32 %v2977_v10  ;;  %v2337_v10 = vsel %vm2015_vm0, %v9386_v52, -inf  ;;  %v2820_v52 = vsel %vm2014_vm1, %v9657_v49, 0.0 }
 0x336   : > { %v6673_v21 = vpop.eup %6672  ;;  %6690 = vpow2.f32 %v2624_v26  ;;  %3527 = vadd.xlane.f32.xlu1 %v3526_v9  ;;  %2395 = vmax.xlane.f32.xlu0 %v2394_v5  ;;  %v3020_v28 = vsel %vm2015_vm0, %v2820_v52, 0.0  ;;  %v2391_v52 = vsel %vm2015_vm0, %v9712_v61, -inf }
 0x337   : > { %v9794_v53 = vpop.eup %6674  ;;  %v9796_v46 = vpop.xlane.xlu1 %3509  ;;  %v9803_v34 = vsel %vm2014_vm1, %v6673_v21, %v6671_v29  ;;  %6692 = vrcp.f32 %v9669_v36  ;;  %v2495_v29 = vsub.f32 %v9070_v8, %v9693_v35  ;;  %v3068_v36 = vsel %vm2015_vm0, %v2836_v59, 0.0 }
 0x338   : > { %12030 = vst [vmem:[#allocation11_spill] sm:$0xff] %v9803_v34  ;;  %v2974_v26 = vpop.xlane.xlu0 %2973  ;;  %v6677_v60 = vpop.eup %6676  ;;  %v3345_v21 = vsel %vm2014_vm1, 0.0, %v9794_v53 }
 0x339   : > { %6694 = vrcp.f32 %v2974_v26  ;;  %v3571_v59 = vsel %vm2015_vm0, %v3345_v21, 0.0 }
 0x33a   : > { %v6679_v9 = vpop.eup %6678  ;;  %6696 = vpow2.f32 %v2592_v12  ;;  %2338 = vmax.xlane.f32.xlu1 %v2337_v10  ;;  %3069 = vadd.xlane.f32.xlu0 %v3068_v36  ;;  %v2718_v36 = vmul.f32 1.442695, %v2495_v29  ;;  %v2686_v29 = vmul.f32 1.442695, %v2479_v20 }
 0x33b   : > { %v9821_v5 = vpop.eup %6680  ;;  %v9823_v26 = vpop.xlane.xlu1 %3518  ;;  %v9830_v12 = vsel %vm2014_vm1, %v6679_v9, %v6677_v60 }
 0x33c   : > { %12032 = vst [vmem:[#allocation4_spill] sm:$0xff] %v9830_v12  ;;  %v9832_v8 = vpop.xlane.xlu0 %2982  ;;  %v6683_v35 = vpop.eup %6682  ;;  %v3329_v49 = vsel %vm2014_vm1, 0.0, %v9821_v5  ;;  %6698 = vpow2.f32 %v2718_v36  ;;  %v2334_v36 = vsel %vm2015_vm0, %v9406_v15, -inf  ;;  %v2819_v15 = vsel %vm2014_vm1, %v9722_v14, 0.0 }
 0x33d   : > { %v3523_v51 = vsel %vm2015_vm0, %v3329_v49, 0.0  ;;  %6700 = vpow2.f32 %v2686_v29 }
 0x33e   : > { %v6685_v10 = vpop.eup %6684  ;;  %3572 = vadd.xlane.f32.xlu1 %v3571_v59  ;;  %3021 = vadd.xlane.f32.xlu0 %v3020_v28 }
 0x33f   : > { %v9841_v60 = vpop.xlane.xlu1 %3515  ;;  %v9845_v9 = vsel %vm2014_vm1, %v6685_v10, %v6683_v35  ;;  %v6687_v34 = vpop.eup %6686  ;;  %v2835_v35 = vsel %vm2014_vm1, %v9695_v57, 0.0 }
 0x340   : > { %12034 = vst [vmem:[#allocation39_spill] sm:$0xff] %v9845_v9  ;;  %v9847_v21 = vpop.xlane.xlu0 %2979  ;;  %v3065_v61 = vsel %vm2015_vm0, %v2835_v35, 0.0  ;;  %v12039_v35 = vld [vmem:[#allocation41_spill] sm:$0xff] }
 0x342   : > { %v6689_v55 = vpop.eup %6688  ;;  %3524 = vadd.xlane.f32.xlu1 %v3523_v51  ;;  %2392 = vmax.xlane.f32.xlu0 %v2391_v52  ;;  %v2494_v52 = vsub.f32 %v9084_v47, %v9706_v7 }
 0x343   : > { %v9852_v59 = vpop.eup %6690  ;;  %v9854_v28 = vpop.xlane.xlu1 %3542  ;;  %v9861_v10 = vsel %vm2014_vm1, %v6689_v55, %v6687_v34 }
 0x344   : > { %12035 = vst [vmem:[#allocation153_spill] sm:$0xff] %v9852_v59  ;;  %12036 = vst [vmem:[#allocation154_spill] sm:$0xff] %v9861_v10  ;;  %v9863_v49 = vpop.xlane.xlu0 %2988  ;;  %v6693_v20 = vpop.eup %6692  ;;  %v3344_v57 = vsel %vm2014_vm1, 0.0, %v9852_v59  ;;  %v2716_v42 = vmul.f32 1.442695, %v2494_v52 }
 0x345   : > { %v3568_v7 = vsel %vm2015_vm0, %v3344_v57, 0.0  ;;  %v2388_v57 = vsel %vm2015_vm0, %v9731_v19, -inf  ;;  %v12043_v19 = vld [vmem:[#allocation37_spill] sm:$0xff] }
 0x346   : > { %v6695_v51 = vpop.eup %6694  ;;  %2335 = vmax.xlane.f32.xlu1 %v2334_v36  ;;  %3066 = vadd.xlane.f32.xlu0 %v3065_v61  ;;  %v2478_v36 = vsub.f32 %v12039_v35, %v9273_v39  ;;  %v3017_v61 = vsel %vm2015_vm0, %v2819_v15, 0.0  ;;  %v12040_v39 = vld [vmem:[#allocation34_spill] sm:$0xff]  ;;  %6702 = vpow2.f32 %v2716_v42  ;;  %v2834_v15 = vsel %vm2014_vm1, %v9751_v63, 0.0 }
 0x347   : > { %v9873_v34 = vpop.eup %6696  ;;  %v9875_v55 = vpop.xlane.xlu1 %3548  ;;  %v9882_v29 = vsel %vm2014_vm1, %v6695_v51, %v6693_v20  ;;  %v2475_v52 = vsub.f32 %v12040_v39, %v9188_v62  ;;  %v12044_v62 = vld [vmem:[#allocation70_spill] sm:$0xff] }
 0x348   : > { %12037 = vst [vmem:[#allocation155_spill] sm:$0xff] %v9873_v34  ;;  %12038 = vst [vmem:[#allocation156_spill] sm:$0xff] %v9882_v29  ;;  %v9884_v47 = vpop.xlane.xlu0 %2985  ;;  %v3328_v9 = vsel %vm2014_vm1, 0.0, %v9873_v34  ;;  %v2476_v29 = vsub.f32 %v12043_v19, %v9240_v18  ;;  %v2491_v42 = vsub.f32 %v12044_v62, %v9552_v45  ;;  %v12047_v45 = vld [vmem:[#allocation79_spill] sm:$0xff] }
 0x349   : > { %v3520_v51 = vsel %vm2015_vm0, %v3328_v9, 0.0  ;;  %v9905_v35 = vpop.eup %6698  ;;  %v2678_v39 = vmul.f32 1.442695, %v2475_v52  ;;  %v2492_v62 = vsub.f32 %v12047_v45, %v9655_v25  ;;  %v2818_v52 = vsel %vm2014_vm1, %v9767_v44, 0.0 }
 0x34a   : > { %3569 = vadd.xlane.f32.xlu1 %v3568_v7  ;;  %3018 = vadd.xlane.f32.xlu0 %v3017_v61  ;;  %v2684_v7 = vmul.f32 1.442695, %v2478_v36  ;;  %12041 = vst [vmem:[#allocation41_spill] sm:$0xff] %v9905_v35  ;;  %v12042_v61 = vld [vmem:[#allocation36_spill] sm:$0xff]  ;;  %v2331_v36 = vsel %vm2015_vm0, %v9346_v2, -inf  ;;  %v3391_v18 = vsel %vm2014_vm1, 0.0, %v9905_v35  ;;  %v9925_v19 = vpop.eup %6700 }
 0x34b   : > { %v9893_v14 = vpop.xlane.xlu1 %3545  ;;  %v2477_v12 = vsub.f32 %v12042_v61, %v9222_v30  ;;  %v12045_v30 = vld [vmem:[#allocation76_spill] sm:$0xff]  ;;  %12046 = vst [vmem:[#allocation34_spill] sm:$0xff] %v9925_v19  ;;  %v3375_v25 = vsel %vm2014_vm1, 0.0, %v9925_v19 }
 0x34c   : > { %v9895_v20 = vpop.xlane.xlu0 %2994  ;;  %6704 = vpow2.f32 %v2684_v7  ;;  %v2680_v7 = vmul.f32 1.442695, %v2476_v29 }
 0x34d   : > { %v2682_v61 = vmul.f32 1.442695, %v2477_v12  ;;  %6706 = vpow2.f32 %v2678_v39  ;;  %v3014_v12 = vsel %vm2015_vm0, %v2818_v52, 0.0  ;;  %v2385_v39 = vsel %vm2015_vm0, %v9680_v40, -inf }
 0x34e   : > { %3521 = vadd.xlane.f32.xlu1 %v3520_v51  ;;  %2389 = vmax.xlane.f32.xlu0 %v2388_v57  ;;  %v3062_v51 = vsel %vm2015_vm0, %v2834_v15, 0.0  ;;  %v2493_v57 = vsub.f32 %v12045_v30, %v9623_v24  ;;  %v2710_v15 = vmul.f32 1.442695, %v2491_v42  ;;  %v3661_v42 = vsel %vm2015_vm0, %v3375_v25, 0.0 }
 0x34f   : > { %v9909_v9 = vpop.xlane.xlu1 %3554  ;;  %6708 = vpow2.f32 %v2682_v61  ;;  %v2833_v61 = vsel %vm2014_vm1, %v9794_v53, 0.0  ;;  %v2328_v52 = vsel %vm2015_vm0, %v9367_v22, -inf }
 0x350   : > { %v9913_v10 = vpop.xlane.xlu0 %2991  ;;  %v2714_v30 = vmul.f32 1.442695, %v2493_v57  ;;  %6710 = vpow2.f32 %v2680_v7  ;;  %v3059_v7 = vsel %vm2015_vm0, %v2833_v61, 0.0 }
 0x351   : > { %6712 = vpow2.f32 %v2710_v15 }
 0x352   : > { %2332 = vmax.xlane.f32.xlu1 %v2331_v36  ;;  %3063 = vadd.xlane.f32.xlu0 %v3062_v51  ;;  %v3709_v36 = vsel %vm2015_vm0, %v3391_v18, 0.0  ;;  %v2712_v51 = vmul.f32 1.442695, %v2492_v62  ;;  %6714 = vpow2.f32 %v2714_v30 }
 0x353   : > { %v9929_v2 = vpop.xlane.xlu1 %3551  ;;  %v9944_v57 = vpop.eup %6702 }
 0x354   : > { %v3001_v24 = vpop.xlane.xlu0 %3000  ;;  %12048 = vst [vmem:[#allocation36_spill] sm:$0xff] %v9944_v57  ;;  %6716 = vpow2.f32 %v2712_v51  ;;  %v3390_v15 = vsel %vm2014_vm1, 0.0, %v9944_v57 }
 0x355   : > { %6718 = vrcp.f32 %v9823_v26  ;;  %v2817_v26 = vsel %vm2014_vm1, %v9821_v5, 0.0 }
 0x356   : > { %3710 = vadd.xlane.f32.xlu1 %v3709_v36  ;;  %3015 = vadd.xlane.f32.xlu0 %v3014_v12  ;;  %v3706_v12 = vsel %vm2015_vm0, %v3390_v15, 0.0  ;;  %v3011_v25 = vsel %vm2015_vm0, %v2817_v26, 0.0 }
 0x357   : > { %v9939_v45 = vpop.xlane.xlu1 %3560 }
 0x358   : > { %v2998_v29 = vpop.xlane.xlu0 %2997 }
 0x359   : > { %v9959_v36 = vpop.eup %6704 }
 0x35a   : > { %3662 = vadd.xlane.f32.xlu1 %v3661_v42  ;;  %2386 = vmax.xlane.f32.xlu0 %v2385_v39  ;;  %12049 = vst [vmem:[#allocation37_spill] sm:$0xff] %v9959_v36  ;;  %v9973_v51 = vpop.eup %6706 }
 0x35b   : > { %v9946_v18 = vpop.xlane.xlu1 %3557  ;;  %12050 = vst [vmem:[#allocation70_spill] sm:$0xff] %v9973_v51 }
 0x35c   : > { %v3007_v62 = vpop.xlane.xlu0 %3006 }
 0x35d   : > { %6720 = vrcp.f32 %v3007_v62 }
 0x35e   : > { %6722 = vrcp.f32 %v9784_v56  ;;  %2329 = vmax.xlane.f32.xlu1 %v2328_v52  ;;  %3060 = vadd.xlane.f32.xlu0 %v3059_v7  ;;  %v2832_v7 = vsel %vm2014_vm1, %v9852_v59, 0.0 }
 0x35f   : > { %6724 = vrcp.f32 %v3001_v24  ;;  %v9961_v30 = vpop.xlane.xlu1 %3566  ;;  %v3374_v24 = vsel %vm2014_vm1, 0.0, %v9959_v36 }
 0x360   : > { %6726 = vrcp.f32 %v9841_v60  ;;  %v3004_v56 = vpop.xlane.xlu0 %3003  ;;  %v9977_v60 = vpop.eup %6708 }
 0x361   : > { %6728 = vrcp.f32 %v3004_v56  ;;  %12051 = vst [vmem:[#allocation76_spill] sm:$0xff] %v9977_v60  ;;  %v9980_v61 = vpop.eup %6710  ;;  %v2325_v56 = vsel %vm2015_vm0, %v9314_v43, -inf }
 0x362   : > { %6730 = vrcp.f32 %v9796_v46  ;;  %3707 = vadd.xlane.f32.xlu1 %v3706_v12  ;;  %3012 = vadd.xlane.f32.xlu0 %v3011_v25  ;;  %12052 = vst [vmem:[#allocation79_spill] sm:$0xff] %v9980_v61  ;;  %v3658_v46 = vsel %vm2015_vm0, %v3374_v24, 0.0  ;;  %v9983_v62 = vpop.eup %6712 }
 0x363   : > { %6732 = vrcp.f32 %v2998_v29  ;;  %v9975_v42 = vpop.xlane.xlu1 %3563  ;;  %12053 = vst [vmem:[#allocation157_spill] sm:$0xff] %v9983_v62  ;;  %v2382_v29 = vsel %vm2015_vm0, %v9697_v4, -inf  ;;  %v9988_v52 = vpop.eup %6714 }
 0x364   : > { %6734 = vrcp.f32 %v9854_v28  ;;  %v3031_v39 = vpop.xlane.xlu0 %3030  ;;  %12054 = vst [vmem:[#allocation158_spill] sm:$0xff] %v9988_v52  ;;  %v9996_v15 = vpop.eup %6716  ;;  %v3389_v25 = vsel %vm2014_vm1, 0.0, %v9988_v52 }
 0x365   : > { %6736 = vrcp.f32 %v3031_v39  ;;  %12055 = vst [vmem:[#allocation159_spill] sm:$0xff] %v9996_v15  ;;  %v6719_v26 = vpop.eup %6718 }
 0x366   : > { %6738 = vrcp.f32 %v9753_v41  ;;  %3659 = vadd.xlane.f32.xlu1 %v3658_v46  ;;  %2383 = vmax.xlane.f32.xlu0 %v2382_v29 }
 0x367   : > { %6740 = vrcp.f32 %v9895_v20  ;;  %v9991_v28 = vpop.xlane.xlu1 %3590  ;;  %v3056_v20 = vsel %vm2015_vm0, %v2832_v7, 0.0 }
 0x368   : > { %6742 = vrcp.f32 %v9875_v55  ;;  %v3037_v41 = vpop.xlane.xlu0 %3036 }
 0x369   : > { %6744 = vrcp.f32 %v3037_v41 }
 0x36a   : > { %v6721_v12 = vpop.eup %6720  ;;  %6746 = vrcp.f32 %v9769_v33  ;;  %2326 = vmax.xlane.f32.xlu1 %v2325_v56  ;;  %3057 = vadd.xlane.f32.xlu0 %v3056_v20  ;;  %v2816_v33 = vsel %vm2014_vm1, %v9873_v34, 0.0  ;;  %v12056_v56 = vld [vmem:[#allocation68_spill] sm:$0xff] }
 0x36b   : > { %v6723_v24 = vpop.eup %6722  ;;  %6748 = vrcp.f32 %v9913_v10  ;;  %v10007_v55 = vpop.xlane.xlu1 %3596  ;;  %v4095_v39 = vsel %vm2014_vm1, %v6721_v12, %v6719_v26  ;;  %v3703_v10 = vsel %vm2015_vm0, %v3389_v25, 0.0  ;;  %v4207_v20 = vmul.f32 %v12056_v56, %v9710_v16 }
 0x36c   : > { %v6725_v46 = vpop.eup %6724  ;;  %6750 = vrcp.f32 %v9893_v14  ;;  %v3034_v29 = vpop.xlane.xlu0 %3033  ;;  %v4223_v7 = vmul.f32 %v9186_v32, %v4095_v39  ;;  %v3008_v26 = vsel %vm2015_vm0, %v2816_v33, 0.0  ;;  %v3373_v14 = vsel %vm2014_vm1, 0.0, %v9977_v60 }
 0x36d   : > { %v6727_v41 = vpop.eup %6726  ;;  %6752 = vrcp.f32 %v3034_v29 }
 0x36e   : > { %v6729_v43 = vpop.eup %6728  ;;  %6754 = vrcp.f32 %v9724_v37  ;;  %5721 = vmatprep.subr.msk.mxu1 %vm2015_vm0, %v4223_v7  ;;  %3704 = vadd.xlane.f32.xlu1 %v3703_v10  ;;  %v4093_v37 = vsel %vm2014_vm1, %v6725_v46, %v6723_v24  ;;  %v12057_v7 = vld [vmem:[#allocation69_spill] sm:$0xff] }
 0x36f   : > { %v6731_v32 = vpop.eup %6730  ;;  %6756 = vrcp.f32 %v9863_v49  ;;  %3009 = vadd.xlane.f32.xlu0 %v3008_v26  ;;  %5722 = vmatpush3.xpose.msk.msra.mxu1 %vm2015_vm0, %v4207_v20  ;;  %v10027_v12 = vpop.xlane.xlu1 %3593  ;;  %v4094_v16 = vsel %vm2014_vm1, %v6729_v43, %v6727_v41  ;;  %v3655_v49 = vsel %vm2015_vm0, %v3373_v14, 0.0  ;;  %v4206_v10 = vmul.f32 %v12057_v7, %v9744_v0  ;;  %v12058_v26 = vld [vmem:[#allocation63_spill] sm:$0xff] }
 0x370   : > { %v6733_v25 = vpop.eup %6732  ;;  %6758 = vrcp.f32 %v9909_v9  ;;  %v3043_v39 = vpop.xlane.xlu0 %3042  ;;  %v4222_v33 = vmul.f32 %v9202_v54, %v4094_v16  ;;  %v2379_v43 = vsel %vm2015_vm0, %v9643_v3, -inf  ;;  %v4221_v9 = vmul.f32 %v9154_v17, %v4093_v37 }
 0x371   : > { %v6735_v29 = vpop.eup %6734  ;;  %6760 = vrcp.f32 %v3043_v39  ;;  %v4092_v0 = vsel %vm2014_vm1, %v6733_v25, %v6731_v32  ;;  %v2322_v20 = vsel %vm2015_vm0, %v9333_v1, -inf  ;;  %v4205_v14 = vmul.f32 %v12058_v26, %v9641_v23  ;;  %v12059_v32 = vld [vmem:[#allocation73_spill] sm:$0xff] }
 0x372   : > { %v6737_v56 = vpop.eup %6736  ;;  %6762 = vrcp.f32 %v9739_v58  ;;  %5723 = vmatprep.subr.msk.mxu1 %vm2015_vm0, %v4222_v33  ;;  %3656 = vadd.xlane.f32.xlu1 %v3655_v49  ;;  %v2879_v58 = vsel %vm2014_vm1, %v9905_v35, 0.0  ;;  %v2490_v37 = vsub.f32 %v12059_v32, %v9588_v27  ;;  %v3388_v39 = vsel %vm2014_vm1, 0.0, %v9996_v15  ;;  %v12062_v32 = vld [vmem:[#allocation15_spill] sm:$0xff] }
 0x373   : > { %v6739_v24 = vpop.eup %6738  ;;  %6764 = vrcp.f32 %v9884_v47  ;;  %2380 = vmax.xlane.f32.xlu0 %v2379_v43  ;;  %5724 = vmatpush3.xpose.msk.msra.mxu1 %vm2015_vm0, %v4206_v10  ;;  %v10045_v54 = vpop.xlane.xlu1 %3602  ;;  %v10054_v46 = vsel %vm2014_vm1, %v6737_v56, %v6735_v29  ;;  %v3197_v25 = vsel %vm2015_vm0, %v2879_v58, 0.0  ;;  %v2863_v27 = vsel %vm2014_vm1, %v9925_v19, 0.0  ;;  %v12060_v10 = vld [vmem:[#allocation35_spill] sm:$0xff] }
 0x374   : > { %v6741_v17 = vpop.eup %6740  ;;  %6766 = vrcp.f32 %v9929_v2  ;;  %5725 = vmatprep.subr.msk.mxu1 %vm2015_vm0, %v4221_v9  ;;  %v3040_v47 = vpop.xlane.xlu0 %3039  ;;  %v4220_v2 = vmul.f32 %v9170_v13, %v4092_v0  ;;  %v2474_v56 = vsub.f32 %v12060_v10, %v9204_v38  ;;  %v3700_v43 = vsel %vm2015_vm0, %v3388_v39, 0.0  ;;  %v12061_v9 = vld [vmem:[#allocation66_spill] sm:$0xff]  ;;  %v12064_v39 = vld [vmem:[#allocation151_spill] sm:$0xff] }
 0x375   : > { %v6743_v41 = vpop.eup %6742  ;;  %6768 = vrcp.f32 %v3040_v47  ;;  %v4091_v29 = vsel %vm2014_vm1, %v6741_v17, %v6739_v24  ;;  %v4204_v24 = vmul.f32 %v12061_v9, %v9676_v31  ;;  %v2708_v0 = vmul.f32 1.442695, %v2490_v37  ;;  %v12063_v37 = vld [vmem:[#allocation60_spill] sm:$0xff] }
 0x376   : > { %v6745_v16 = vpop.eup %6744  ;;  %2323 = vmax.xlane.f32.xlu1 %v2322_v20  ;;  %6770 = vrcp.f32 %v9832_v8  ;;  %v3149_v17 = vsel %vm2015_vm0, %v2863_v27, 0.0  ;;  %v4219_v47 = vmul.f32 %v9122_v11, %v4091_v29  ;;  %v12065_v27 = vld [vmem:[#allocation91_spill] sm:$0xff] }
 0x377   : > { %v6747_v33 = vpop.eup %6746  ;;  %3198 = vadd.xlane.f32.xlu0 %v3197_v25  ;;  %5726 = vmatpush3.xpose.msk.msra.mxu1 %vm2015_vm0, %v4205_v14  ;;  %v10071_v23 = vpop.xlane.xlu1 %3599  ;;  %v10080_v13 = vsel %vm2014_vm1, %v6745_v16, %v6743_v41  ;;  %6772 = vrcp.f32 %v9688_v50  ;;  %v3372_v41 = vsel %vm2014_vm1, 0.0, %v9980_v61  ;;  %v2676_v16 = vmul.f32 1.442695, %v2474_v56 }
 0x378   : > { %v6749_v49 = vpop.eup %6748  ;;  %5727 = vmatprep.subr.msk.mxu1 %vm2015_vm0, %v4220_v2  ;;  %v10083_v8 = vpop.xlane.xlu0 %3048  ;;  %6774 = vrcp.f32 %v9847_v21  ;;  %v3652_v21 = vsel %vm2015_vm0, %v3372_v41, 0.0  ;;  %v4203_v25 = vmul.f32 %v12063_v37, %v12062_v32  ;;  %v12071_v32 = vld [vmem:[#allocation86_spill] sm:$0xff] }
 0x379   : > { %v6751_v7 = vpop.eup %6750  ;;  %v4090_v31 = vsel %vm2014_vm1, %v6749_v49, %v6747_v33  ;;  %6776 = vrcp.f32 %v9701_v48  ;;  %v2376_v33 = vsel %vm2015_vm0, %v12064_v39, -inf  ;;  %v2878_v48 = vsel %vm2014_vm1, %v9944_v57, 0.0  ;;  %v12094_v57 = vld [vmem:[#allocation77_spill] sm:$0xff]  ;;  %v12103_v39 = vld [vmem:[#allocation80_spill] sm:$0xff] }
 0x37a   : > { %v6753_v58 = vpop.eup %6752  ;;  %3701 = vadd.xlane.f32.xlu1 %v3700_v43  ;;  %6778 = vpow2.f32 %v2708_v0  ;;  %v4218_v29 = vmul.f32 %v12065_v27, %v4090_v31 }
 0x37b   : > { %v6755_v20 = vpop.eup %6754  ;;  %3150 = vadd.xlane.f32.xlu0 %v3149_v17  ;;  %5728 = vmatpush3.xpose.msk.msra.mxu1 %vm2015_vm0, %v4204_v24  ;;  %v10098_v38 = vpop.xlane.xlu1 %3608  ;;  %v10104_v50 = vsel %vm2014_vm1, %v6753_v58, %v6751_v7  ;;  %6780 = vpow2.f32 %v2676_v16  ;;  %v12066_v58 = vld [vmem:[#allocation106_spill] sm:$0xff]  ;;  %v12067_v17 = vld [vmem:[#allocation12_spill] sm:$0xff] }
 0x37c   : > { %v6757_v11 = vpop.eup %6756  ;;  %5729 = vmatprep.subr.msk.mxu1 %vm2015_vm0, %v4219_v47  ;;  %v10107_v26 = vpop.xlane.xlu0 %3045  ;;  %v2319_v0 = vsel %vm2015_vm0, %v12066_v58, -inf  ;;  %v12068_v47 = vld [vmem:[#allocation61_spill] sm:$0xff] }
 0x37d   : > { %v6759_v14 = vpop.eup %6758  ;;  %v4089_v10 = vsel %vm2014_vm1, %v6757_v11, %v6755_v20  ;;  %v4202_v41 = vmul.f32 %v12068_v47, %v12067_v17  ;;  %v12070_v20 = vld [vmem:[#allocation62_spill] sm:$0xff] }
 0x37e   : > { %v6761_v2 = vpop.eup %6760  ;;  %3653 = vadd.xlane.f32.xlu1 %v3652_v21  ;;  %v12069_v21 = vld [vmem:[#allocation131_spill] sm:$0xff]  ;;  %v4217_v37 = vmul.f32 %v12071_v32, %v4089_v10  ;;  %v12072_v10 = vld [vmem:[#allocation93_spill] sm:$0xff] }
 0x37f   : > { %v6763_v49 = vpop.eup %6762  ;;  %2377 = vmax.xlane.f32.xlu0 %v2376_v33  ;;  %5730 = vmatpush3.xpose.msk.msra.mxu1 %vm2015_vm0, %v4203_v25  ;;  %v10117_v7 = vpop.xlane.xlu1 %3605  ;;  %v10126_v56 = vsel %vm2014_vm1, %v6761_v2, %v6759_v14  ;;  %v2489_v11 = vsub.f32 %v12070_v20, %v12069_v21  ;;  %v3194_v14 = vsel %vm2015_vm0, %v2878_v48, 0.0  ;;  %v3387_v25 = vsel %vm2014_vm1, 0.0, %v9983_v62  ;;  %v12075_v21 = vld [vmem:[#allocation57_spill] sm:$0xff] }
 0x380   : > { %v6765_v43 = vpop.eup %6764  ;;  %5731 = vmatprep.subr.msk.mxu1 %vm2015_vm0, %v4218_v29  ;;  %v10129_v9 = vpop.xlane.xlu0 %3054  ;;  %v2862_v2 = vsel %vm2014_vm1, %v9959_v36, 0.0  ;;  %v3697_v47 = vsel %vm2015_vm0, %v3387_v25, 0.0  ;;  %v12093_v36 = vld [vmem:[#allocation154_spill] sm:$0xff] }
 0x381   : > { %v6767_v24 = vpop.eup %6766  ;;  %v4088_v33 = vsel %vm2014_vm1, %v6765_v43, %v6763_v49  ;;  %v2706_v32 = vmul.f32 1.442695, %v2489_v11  ;;  %v3146_v49 = vsel %vm2015_vm0, %v2862_v2, 0.0  ;;  %v12076_v43 = vld [vmem:[#allocation88_spill] sm:$0xff] }
 0x382   : > { %v6769_v31 = vpop.eup %6768  ;;  %2320 = vmax.xlane.f32.xlu1 %v2319_v0  ;;  %v12073_v0 = vld [vmem:[#allocation32_spill] sm:$0xff] }
 0x383   : > { %3195 = vadd.xlane.f32.xlu0 %v3194_v14  ;;  %5732 = vmatpush3.xpose.msk.msra.mxu1 %vm2015_vm0, %v4202_v41  ;;  %v10143_v16 = vpop.xlane.xlu1 %3614  ;;  %v10152_v27 = vsel %vm2014_vm1, %v6769_v31, %v6767_v24  ;;  %v6771_v29 = vpop.eup %6770  ;;  %v2473_v17 = vsub.f32 %v12073_v0, %v12072_v10  ;;  %v12074_v41 = vld [vmem:[#allocation135_spill] sm:$0xff]  ;;  %v4216_v24 = vmul.f32 %v12076_v43, %v4088_v33  ;;  %v3371_v31 = vsel %vm2014_vm1, 0.0, %v9973_v51  ;;  %v12080_v43 = vld [vmem:[#allocation82_spill] sm:$0xff] }
 0x384   : > { %5733 = vmatprep.subr.msk.mxu1 %vm2015_vm0, %v4217_v37  ;;  %v10155_v48 = vpop.xlane.xlu0 %3051  ;;  %v4201_v20 = vmul.f32 %v12075_v21, %v12074_v41  ;;  %v6773_v14 = vpop.eup %6772  ;;  %v3649_v33 = vsel %vm2015_vm0, %v3371_v31, 0.0  ;;  %v12077_v0 = vld [vmem:[#allocation7_spill] sm:$0xff]  ;;  %6782 = vpow2.f32 %v2706_v32  ;;  %v12082_v31 = vld [vmem:[#allocation109_spill] sm:$0xff] }
 0x385   : > { %v4087_v25 = vsel %vm2014_vm1, %v6771_v29, %v6773_v14  ;;  %v6775_v10 = vpop.eup %6774  ;;  %v2674_v2 = vmul.f32 1.442695, %v2473_v17  ;;  %v2877_v17 = vsel %vm2014_vm1, %v9988_v52, 0.0 }
 0x386   : > { %3698 = vadd.xlane.f32.xlu1 %v3697_v47  ;;  %v12078_v47 = vld [vmem:[#allocation59_spill] sm:$0xff]  ;;  %v6777_v21 = vpop.eup %6776  ;;  %v4215_v58 = vmul.f32 %v12080_v43, %v4087_v25  ;;  %v2316_v25 = vsel %vm2015_vm0, %v12082_v31, -inf  ;;  %v12087_v43 = vld [vmem:[#allocation65_spill] sm:$0xff]  ;;  %v3191_v52 = vsel %vm2015_vm0, %v2877_v17, 0.0  ;;  %v12089_v17 = vld [vmem:[#allocation94_spill] sm:$0xff] }
 0x387   : > { %3147 = vadd.xlane.f32.xlu0 %v3146_v49  ;;  %5734 = vmatpush3.xpose.msk.msra.mxu1 %vm2015_vm0, %v4201_v20  ;;  %v10168_v37 = vpop.xlane.xlu1 %3611  ;;  %v4200_v41 = vmul.f32 %v12078_v47, %v12077_v0  ;;  %v12079_v20 = vld [vmem:[#allocation146_spill] sm:$0xff]  ;;  %v10181_v29 = vpop.eup %6778  ;;  %v4086_v32 = vsel %vm2014_vm1, %v6775_v10, %v6777_v21  ;;  %6784 = vpow2.f32 %v2674_v2  ;;  %v12084_v0 = vld [vmem:[#allocation51_spill] sm:$0xff]  ;;  %v12088_v10 = vld [vmem:[#allocation84_spill] sm:$0xff] }
 0x388   : > { %5735 = vmatprep.subr.msk.mxu1 %vm2015_vm0, %v4216_v24  ;;  %v10173_v11 = vpop.xlane.xlu0 %3078  ;;  %v2373_v49 = vsel %vm2015_vm0, %v12079_v20, -inf  ;;  %12081 = vst [vmem:[#allocation68_spill] sm:$0xff] %v10181_v29  ;;  %v4214_v21 = vmul.f32 %v12088_v10, %v4086_v32  ;;  %v12092_v10 = vld [vmem:[#allocation55_spill] sm:$0xff]  ;;  %v4213_v20 = vmul.f32 %v12094_v57, %v12093_v36  ;;  %v12099_v36 = vld [vmem:[#allocation125_spill] sm:$0xff] }
 0x38a   : > { %3650 = vadd.xlane.f32.xlu1 %v3649_v33  ;;  %v12083_v33 = vld [vmem:[#allocation129_spill] sm:$0xff] }
 0x38b   : > { %2374 = vmax.xlane.f32.xlu0 %v2373_v49  ;;  %5736 = vmatpush3.xpose.msk.msra.mxu1 %vm2015_vm0, %v4200_v41  ;;  %v10184_v14 = vpop.xlane.xlu1 %3587  ;;  %v4199_v47 = vmul.f32 %v12084_v0, %v12083_v33  ;;  %v10198_v41 = vpop.eup %6780  ;;  %v12086_v49 = vld [vmem:[#allocation137_spill] sm:$0xff]  ;;  %v2861_v33 = vsel %vm2014_vm1, %v9977_v60, 0.0  ;;  %v12100_v60 = vld [vmem:[#allocation47_spill] sm:$0xff] }
 0x38c   : > { %5737 = vmatprep.subr.msk.mxu1 %vm2015_vm0, %v4215_v58  ;;  %v10192_v24 = vpop.xlane.xlu0 %3084  ;;  %12085 = vst [vmem:[#allocation69_spill] sm:$0xff] %v10198_v41  ;;  %v2488_v1 = vsub.f32 %v12087_v43, %v12086_v49  ;;  %v3386_v58 = vsel %vm2014_vm1, 0.0, %v10181_v29  ;;  %v12090_v0 = vld [vmem:[#allocation33_spill] sm:$0xff]  ;;  %v4197_v22 = vmul.f32 %v12100_v60, %v12099_v36  ;;  %v2876_v60 = vsel %vm2014_vm1, %v9996_v15, 0.0 }
 0x38d   : > { %v2472_v32 = vsub.f32 %v12090_v0, %v12089_v17  ;;  %v3694_v49 = vsel %vm2015_vm0, %v3386_v58, 0.0  ;;  %v12091_v43 = vld [vmem:[#allocation133_spill] sm:$0xff]  ;;  %v12096_v0 = vld [vmem:[#allocation30_spill] sm:$0xff]  ;;  %v3188_v15 = vsel %vm2015_vm0, %v2876_v60, 0.0 }
 0x38e   : > { %2317 = vmax.xlane.f32.xlu1 %v2316_v25  ;;  %v2704_v31 = vmul.f32 1.442695, %v2488_v1  ;;  %v12095_v1 = vld [vmem:[#allocation90_spill] sm:$0xff]  ;;  %v12108_v36 = vld [vmem:[#allocation101_spill] sm:$0xff] }
 0x38f   : > { %3192 = vadd.xlane.f32.xlu0 %v3191_v52  ;;  %5738 = vmatpush3.xpose.msk.msra.mxu1 %vm2015_vm0, %v4199_v47  ;;  %v10208_v2 = vpop.xlane.xlu1 %3539  ;;  %v4198_v52 = vmul.f32 %v12092_v10, %v12091_v43  ;;  %v3143_v47 = vsel %vm2015_vm0, %v2861_v33, 0.0  ;;  %v12097_v33 = vld [vmem:[#allocation92_spill] sm:$0xff]  ;;  %v12098_v43 = vld [vmem:[#allocation31_spill] sm:$0xff] }
 0x390   : > { %5739 = vmatprep.subr.msk.mxu1 %vm2015_vm0, %v4214_v21  ;;  %v10214_v25 = vpop.xlane.xlu0 %3081  ;;  %v3370_v21 = vsel %vm2014_vm1, 0.0, %v10198_v41  ;;  %v2470_v10 = vsub.f32 %v12098_v43, %v12097_v33  ;;  %6786 = vpow2.f32 %v2704_v31  ;;  %v12106_v31 = vld [vmem:[#allocation126_spill] sm:$0xff] }
 0x391   : > { %v3646_v57 = vsel %vm2015_vm0, %v3370_v21, 0.0  ;;  %v10244_v3 = vpop.eup %6782 }
 0x392   : > { %3695 = vadd.xlane.f32.xlu1 %v3694_v49  ;;  %v2471_v49 = vsub.f32 %v12096_v0, %v12095_v1  ;;  %v12104_v1 = vld [vmem:[#allocation121_spill] sm:$0xff]  ;;  %v12105_v0 = vld [vmem:[#allocation56_spill] sm:$0xff] }
 0x393   : > { %3144 = vadd.xlane.f32.xlu0 %v3143_v47  ;;  %5740 = vmatpush3.xpose.msk.msra.mxu1 %vm2015_vm0, %v4198_v52  ;;  %v10228_v17 = vpop.xlane.xlu1 %2350  ;;  %v2672_v47 = vmul.f32 1.442695, %v2472_v32  ;;  %v12101_v52 = vld [vmem:[#allocation148_spill] sm:$0xff]  ;;  %v2487_v34 = vsub.f32 %v12105_v0, %v12104_v1  ;;  %v12107_v32 = vld [vmem:[#allocation58_spill] sm:$0xff] }
 0x394   : > { %5741 = vmatprep.subr.msk.mxu1 %vm2015_vm0, %v4213_v20  ;;  %v10231_v58 = vpop.xlane.xlu0 %3090  ;;  %v2370_v19 = vsel %vm2015_vm0, %v12101_v52, -inf  ;;  %v12102_v20 = vld [vmem:[#allocation156_spill] sm:$0xff]  ;;  %v2486_v33 = vsub.f32 %v12107_v32, %v12106_v31  ;;  %v2670_v43 = vmul.f32 1.442695, %v2471_v49  ;;  %v10263_v0 = vpop.eup %6784  ;;  %v12112_v31 = vld [vmem:[#allocation74_spill] sm:$0xff] }
 0x395   : > { %v4212_v35 = vmul.f32 %v12103_v39, %v12102_v20  ;;  %v12109_v20 = vld [vmem:[#allocation127_spill] sm:$0xff]  ;;  %6788 = vpow2.f32 %v2672_v47  ;;  %v12111_v52 = vld [vmem:[#allocation4_spill] sm:$0xff]  ;;  %v2702_v49 = vmul.f32 1.442695, %v2487_v34  ;;  %v2860_v47 = vsel %vm2014_vm1, %v9980_v61, 0.0 }
 0x396   : > { %3647 = vadd.xlane.f32.xlu1 %v3646_v57  ;;  %v2668_v57 = vmul.f32 1.442695, %v2470_v10  ;;  %v4211_v32 = vmul.f32 %v12112_v31, %v12111_v52  ;;  %6790 = vpow2.f32 %v2670_v43  ;;  %v3140_v34 = vsel %vm2015_vm0, %v2860_v47, 0.0  ;;  %v12118_v47 = vld [vmem:[#allocation45_spill] sm:$0xff] }
 0x397   : > { %2371 = vmax.xlane.f32.xlu0 %v2370_v19  ;;  %5742 = vmatpush3.xpose.msk.msra.mxu1 %vm2015_vm0, %v4197_v22  ;;  %v10249_v21 = vpop.xlane.xlu1 %3584  ;;  %v2313_v19 = vsel %vm2015_vm0, %v12108_v36, -inf  ;;  %v12110_v22 = vld [vmem:[#allocation49_spill] sm:$0xff] }
 0x398   : > { %5743 = vmatprep.subr.msk.mxu1 %vm2015_vm0, %v4212_v35  ;;  %v10257_v39 = vpop.xlane.xlu0 %3087  ;;  %v4196_v1 = vmul.f32 %v12110_v22, %v12109_v20  ;;  %v3385_v35 = vsel %vm2014_vm1, 0.0, %v10244_v3  ;;  %v12113_v20 = vld [vmem:[#allocation21_spill] sm:$0xff]  ;;  %v12114_v22 = vld [vmem:[#allocation43_spill] sm:$0xff]  ;;  %6792 = vpow2.f32 %v2668_v57 }
 0x399   : > { %v3691_v52 = vsel %vm2015_vm0, %v3385_v35, 0.0  ;;  %v4195_v31 = vmul.f32 %v12114_v22, %v12113_v20  ;;  %6794 = vpow2.f32 %v2702_v49  ;;  %v12117_v35 = vld [vmem:[#allocation22_spill] sm:$0xff]  ;;  %v12119_v49 = vld [vmem:[#allocation8_spill] sm:$0xff]  ;;  %v12120_v22 = vld [vmem:[#allocation67_spill] sm:$0xff] }
 0x39a   : > { %2314 = vmax.xlane.f32.xlu1 %v2313_v19  ;;  %v2700_v19 = vmul.f32 1.442695, %v2486_v33  ;;  %v3369_v33 = vsel %vm2014_vm1, 0.0, %v10263_v0  ;;  %v2367_v20 = vsel %vm2015_vm0, %v12119_v49, -inf  ;;  %v12142_v49 = vld [vmem:[#allocation136_spill] sm:$0xff] }
 0x39b   : > { %5744 = vmatpush3.xpose.msk.msra.mxu1 %vm2015_vm0, %v4196_v1  ;;  %3189 = vadd.xlane.f32.xlu0 %v3188_v15  ;;  %v10272_v10 = vpop.xlane.xlu1 %3536  ;;  %v12115_v15 = vld [vmem:[#allocation39_spill] sm:$0xff] }
 0x39c   : > { %5745 = vmatprep.subr.msk.mxu1 %vm2015_vm0, %v4211_v32  ;;  %v3097_v60 = vpop.xlane.xlu0 %3096  ;;  %v12116_v1 = vld [vmem:[#allocation75_spill] sm:$0xff]  ;;  %6796 = vpow2.f32 %v2700_v19  ;;  %v3643_v32 = vsel %vm2015_vm0, %v3369_v33, 0.0  ;;  %v12124_v33 = vld [vmem:[#allocation38_spill] sm:$0xff] }
 0x39d   : > { %v4210_v36 = vmul.f32 %v12116_v1, %v12115_v15  ;;  %6798 = vrcp.f32 %v9961_v30  ;;  %v10300_v19 = vpop.eup %6786  ;;  %v12122_v15 = vld [vmem:[#allocation104_spill] sm:$0xff] }
 0x39e   : > { %3692 = vadd.xlane.f32.xlu1 %v3691_v52  ;;  %v4194_v52 = vmul.f32 %v12118_v47, %v12117_v35  ;;  %6800 = vrcp.f32 %v9975_v42  ;;  %v2875_v42 = vsel %vm2014_vm1, %v9983_v62, 0.0  ;;  %v2310_v1 = vsel %vm2015_vm0, %v12122_v15, -inf  ;;  %v12125_v47 = vld [vmem:[#allocation11_spill] sm:$0xff]  ;;  %v12135_v15 = vld [vmem:[#allocation85_spill] sm:$0xff] }
 0x39f   : > { %5746 = vmatpush3.xpose.msk.msra.mxu1 %vm2015_vm0, %v4195_v31  ;;  %3141 = vadd.xlane.f32.xlu0 %v3140_v34  ;;  %v10288_v43 = vpop.xlane.xlu1 %2347  ;;  %v12121_v31 = vld [vmem:[#allocation71_spill] sm:$0xff]  ;;  %6802 = vrcp.f32 %v10129_v9  ;;  %v3185_v35 = vsel %vm2015_vm0, %v2875_v42, 0.0 }
 0x3a0   : > { %5747 = vmatprep.subr.msk.mxu1 %vm2015_vm0, %v4210_v36  ;;  %v3094_v57 = vpop.xlane.xlu0 %3093  ;;  %v4209_v34 = vmul.f32 %v12121_v31, %v12120_v22  ;;  %6804 = vrcp.f32 %v10143_v16  ;;  %v12123_v9 = vld [vmem:[#allocation115_spill] sm:$0xff]  ;;  %v3384_v16 = vsel %vm2014_vm1, 0.0, %v10300_v19  ;;  %v2859_v31 = vsel %vm2014_vm1, %v9973_v51, 0.0 }
 0x3a1   : > { %6806 = vrcp.f32 %v10155_v48  ;;  %v3688_v42 = vsel %vm2015_vm0, %v3384_v16, 0.0  ;;  %v12136_v51 = vld [vmem:[#allocation27_spill] sm:$0xff] }
 0x3a2   : > { %3644 = vadd.xlane.f32.xlu1 %v3643_v32  ;;  %v4193_v32 = vmul.f32 %v12124_v33, %v12123_v9  ;;  %v10322_v22 = vpop.eup %6788  ;;  %v3137_v33 = vsel %vm2015_vm0, %v2859_v31, 0.0  ;;  %v2466_v62 = vsub.f32 %v12136_v51, %v12135_v15  ;;  %v12139_v15 = vld [vmem:[#allocation96_spill] sm:$0xff] }
 0x3a3   : > { %5748 = vmatpush3.xpose.msk.msra.mxu1 %vm2015_vm0, %v4194_v52  ;;  %2368 = vmax.xlane.f32.xlu0 %v2367_v20  ;;  %v10304_v30 = vpop.xlane.xlu1 %3581  ;;  %v12126_v52 = vld [vmem:[#allocation72_spill] sm:$0xff] }
 0x3a4   : > { %5749 = vmatprep.subr.msk.mxu1 %vm2015_vm0, %v4209_v34  ;;  %v3103_v36 = vpop.xlane.xlu0 %3102  ;;  %v4208_v20 = vmul.f32 %v12126_v52, %v12125_v47  ;;  %v12130_v47 = vld [vmem:[#allocation26_spill] sm:$0xff] }
 0x3a5   : > { %6808 = vrcp.f32 %v3103_v36  ;;  %v12127_v36 = vld [vmem:[#allocation20_spill] sm:$0xff] }
 0x3a6   : > { %2311 = vmax.xlane.f32.xlu1 %v2310_v1  ;;  %6810 = vrcp.f32 %v10168_v37  ;;  %v12128_v1 = vld [vmem:[#allocation40_spill] sm:$0xff]  ;;  %v10335_v37 = vpop.eup %6790 }
 0x3a7   : > { %5750 = vmatpush3.xpose.msk.msra.mxu1 %vm2015_vm0, %v4193_v32  ;;  %3186 = vadd.xlane.f32.xlu0 %v3185_v35  ;;  %v10326_v48 = vpop.xlane.xlu1 %3533  ;;  %6812 = vrcp.f32 %v3097_v60  ;;  %v4192_v9 = vmul.f32 %v12128_v1, %v12127_v36  ;;  %v3368_v60 = vsel %vm2014_vm1, 0.0, %v10322_v22  ;;  %v10342_v32 = vpop.eup %6792  ;;  %v12129_v35 = vld [vmem:[#allocation83_spill] sm:$0xff] }
 0x3a8   : > { %5751 = vmatprep.subr.msk.mxu1 %vm2015_vm0, %v4208_v20  ;;  %v3100_v34 = vpop.xlane.xlu0 %3099  ;;  %v2467_v52 = vsub.f32 %v12130_v47, %v12129_v35  ;;  %v3640_v1 = vsel %vm2015_vm0, %v3368_v60, 0.0  ;;  %v12134_v35 = vld [vmem:[#allocation54_spill] sm:$0xff] }
 0x3a9   : > { %6814 = vrcp.f32 %v3100_v34  ;;  %v12131_v34 = vld [vmem:[#allocation112_spill] sm:$0xff] }
 0x3aa   : > { %6816 = vrcp.f32 %v10098_v38  ;;  %3689 = vadd.xlane.f32.xlu1 %v3688_v42  ;;  %v10350_v38 = vpop.eup %6794  ;;  %v12132_v42 = vld [vmem:[#allocation50_spill] sm:$0xff]  ;;  %v2662_v47 = vmul.f32 1.442695, %v2467_v52 }
 0x3ab   : > { %6818 = vrcp.f32 %v10083_v8  ;;  %5752 = vmatpush3.xpose.msk.msra.mxu1 %vm2015_vm0, %v4192_v9  ;;  %3138 = vadd.xlane.f32.xlu0 %v3137_v33  ;;  %v10348_v20 = vpop.xlane.xlu1 %2344  ;;  %v10354_v31 = vpop.eup %6796  ;;  %v2485_v36 = vsub.f32 %v12132_v42, %v12131_v34  ;;  %v12133_v9 = vld [vmem:[#allocation145_spill] sm:$0xff]  ;;  %v12137_v34 = vld [vmem:[#allocation87_spill] sm:$0xff]  ;;  %v12138_v42 = vld [vmem:[#allocation28_spill] sm:$0xff] }
 0x3ac   : > { %6820 = vrcp.f32 %v3094_v57  ;;  %v10352_v16 = vpop.xlane.xlu0 %3075  ;;  %v6799_v8 = vpop.eup %6798  ;;  %v2364_v33 = vsel %vm2015_vm0, %v12133_v9, -inf }
 0x3ad   : > { %6822 = vrcp.f32 %v9939_v45  ;;  %v6801_v57 = vpop.eup %6800 }
 0x3ae   : > { %6824 = vrcp.f32 %v10117_v7  ;;  %3641 = vadd.xlane.f32.xlu1 %v3640_v1  ;;  %5754 = vmatmul.mubr.msk.f32.vlgmr.msra.gmra.mxu1 %vm2015_vm0, %v12134_v35  ;;  %v2874_v7 = vsel %vm2014_vm1, %v10181_v29, 0.0  ;;  %v6803_v60 = vpop.eup %6802  ;;  %v2469_v1 = vsub.f32 %v12138_v42, %v12137_v34  ;;  %v3383_v34 = vsel %vm2014_vm1, 0.0, %v10350_v38  ;;  %v12141_v29 = vld [vmem:[#allocation53_spill] sm:$0xff] }
 0x3af   : > { %6826 = vrcp.f32 %v10107_v26  ;;  %2365 = vmax.xlane.f32.xlu0 %v2364_v33  ;;  %v10368_v45 = vpop.xlane.xlu1 %3578  ;;  %5787 = vmatprep.mubr.msk.f32.mxu1 %vm2015_vm0, %v12134_v35  ;;  %v6805_v51 = vpop.eup %6804  ;;  %v2698_v26 = vmul.f32 1.442695, %v2485_v36  ;;  %v2307_v33 = vsel %vm2015_vm0, %v12139_v15, -inf  ;;  %v3182_v35 = vsel %vm2015_vm0, %v2874_v7, 0.0 }
 0x3b0   : > { %6828 = vrcp.f32 %v10231_v58  ;;  %v10378_v52 = vpop.xlane.xlu0 %3027  ;;  %v6807_v61 = vpop.eup %6806  ;;  %v2660_v42 = vmul.f32 1.442695, %v2466_v62  ;;  %v2666_v15 = vmul.f32 1.442695, %v2469_v1  ;;  %v3367_v1 = vsel %vm2014_vm1, 0.0, %v10335_v37 }
 0x3b1   : > { %6830 = vrcp.f32 %v9946_v18  ;;  %v2858_v18 = vsel %vm2014_vm1, %v10198_v41, 0.0  ;;  %v3685_v41 = vsel %vm2015_vm0, %v3383_v34, 0.0  ;;  %v12144_v34 = vld [vmem:[#allocation139_spill] sm:$0xff] }
 0x3b2   : > { %6832 = vrcp.f32 %v10045_v54  ;;  %2308 = vmax.xlane.f32.xlu1 %v2307_v33  ;;  %v6809_v58 = vpop.eup %6808  ;;  %v4111_v54 = vsel %vm2014_vm1, %v6803_v60, %v6799_v8  ;;  %v12143_v8 = vld [vmem:[#allocation113_spill] sm:$0xff] }
 0x3b3   : > { %6834 = vpow2.f32 %v2662_v47  ;;  %3183 = vadd.xlane.f32.xlu0 %v3182_v35  ;;  %v10388_v36 = vpop.xlane.xlu1 %3530  ;;  %v6811_v33 = vpop.eup %6810  ;;  %v4127_v47 = vsel %vm2014_vm1, %v6809_v58, %v6805_v51  ;;  %v12140_v35 = vld [vmem:[#allocation116_spill] sm:$0xff]  ;;  %v4239_v60 = vmul.f32 %v12143_v8, %v4111_v54  ;;  %v12146_v54 = vld [vmem:[#allocation29_spill] sm:$0xff]  ;;  %v12149_v8 = vld [vmem:[#allocation103_spill] sm:$0xff] }
 0x3b4   : > { %6836 = vrcp.f32 %v10257_v39  ;;  %v10396_v7 = vpop.xlane.xlu0 %2398  ;;  %v6813_v62 = vpop.eup %6812  ;;  %v2484_v9 = vsub.f32 %v12141_v29, %v12140_v35  ;;  %v4255_v59 = vmul.f32 %v12142_v49, %v4127_v47  ;;  %v3134_v39 = vsel %vm2015_vm0, %v2858_v18, 0.0  ;;  %v12145_v18 = vld [vmem:[#allocation89_spill] sm:$0xff]  ;;  %v12148_v35 = vld [vmem:[#allocation19_spill] sm:$0xff] }
 0x3b5   : > { %6838 = vpow2.f32 %v2698_v26 }
 0x3b6   : > { %v6815_v4 = vpop.eup %6814  ;;  %6840 = vrcp.f32 %v10071_v23  ;;  %3686 = vadd.xlane.f32.xlu1 %v3685_v41  ;;  %5755 = vmatprep.subr.msk.mxu1 %vm2015_vm0, %v4255_v59  ;;  %v4110_v23 = vsel %vm2014_vm1, %v6807_v61, %v6801_v57  ;;  %v3637_v61 = vsel %vm2015_vm0, %v3367_v1, 0.0 }
 0x3b7   : > { %v6817_v51 = vpop.eup %6816  ;;  %6842 = vpow2.f32 %v2660_v42  ;;  %3135 = vadd.xlane.f32.xlu0 %v3134_v39  ;;  %v10411_v29 = vpop.xlane.xlu1 %2341  ;;  %v4126_v49 = vsel %vm2014_vm1, %v6815_v4, %v6811_v33  ;;  %5756 = vmatpush3.xpose.msk.msra.mxu1 %vm2015_vm0, %v4239_v60  ;;  %v2468_v4 = vsub.f32 %v12146_v54, %v12145_v18  ;;  %v2696_v33 = vmul.f32 1.442695, %v2484_v9  ;;  %v12151_v9 = vld [vmem:[#allocation130_spill] sm:$0xff] }
 0x3b8   : > { %v6819_v41 = vpop.eup %6818  ;;  %6844 = vrcp.f32 %v10192_v24  ;;  %v10419_v26 = vpop.xlane.xlu0 %3072  ;;  %v4254_v58 = vmul.f32 %v12144_v34, %v4126_v49  ;;  %v4125_v59 = vsel %vm2014_vm1, %v6813_v62, %v6817_v51  ;;  %v12147_v24 = vld [vmem:[#allocation140_spill] sm:$0xff]  ;;  %v4238_v39 = vmul.f32 %v12148_v35, %v4110_v23  ;;  %v12154_v35 = vld [vmem:[#allocation99_spill] sm:$0xff] }
 0x3b9   : > { %v6821_v42 = vpop.eup %6820  ;;  %6846 = vpow2.f32 %v2666_v15  ;;  %v2361_v47 = vsel %vm2015_vm0, %v12147_v24, -inf  ;;  %v12150_v15 = vld [vmem:[#allocation46_spill] sm:$0xff]  ;;  %v4253_v1 = vmul.f32 %v12151_v9, %v4125_v59  ;;  %v2664_v54 = vmul.f32 1.442695, %v2468_v4  ;;  %v12152_v59 = vld [vmem:[#allocation108_spill] sm:$0xff] }
 0x3ba   : > { %v6823_v57 = vpop.eup %6822  ;;  %6848 = vrcp.f32 %v10007_v55  ;;  %5757 = vmatprep.subr.msk.mxu1 %vm2015_vm0, %v4254_v58  ;;  %3638 = vadd.xlane.f32.xlu1 %v3637_v61  ;;  %v2483_v60 = vsub.f32 %v12150_v15, %v12149_v8  ;;  %v2873_v55 = vsel %vm2014_vm1, %v10244_v3, 0.0  ;;  %v12153_v61 = vld [vmem:[#allocation48_spill] sm:$0xff]  ;;  %v12156_v15 = vld [vmem:[#allocation134_spill] sm:$0xff] }
 0x3bb   : > { %v6825_v62 = vpop.eup %6824  ;;  %2362 = vmax.xlane.f32.xlu0 %v2361_v47  ;;  %v10434_v51 = vpop.xlane.xlu1 %3575  ;;  %v4109_v49 = vsel %vm2014_vm1, %v6819_v41, %v6823_v57  ;;  %6850 = vrcp.f32 %v10214_v25  ;;  %5758 = vmatpush3.xpose.msk.msra.mxu1 %vm2015_vm0, %v4238_v39  ;;  %v2482_v47 = vsub.f32 %v12153_v61, %v12152_v59  ;;  %v2304_v41 = vsel %vm2015_vm0, %v12154_v35, -inf  ;;  %v12155_v39 = vld [vmem:[#allocation110_spill] sm:$0xff] }
 0x3bc   : > { %v6827_v34 = vpop.eup %6826  ;;  %v10444_v23 = vpop.xlane.xlu0 %3024  ;;  %v4124_v58 = vsel %vm2014_vm1, %v6821_v42, %v6825_v62  ;;  %6852 = vpow2.f32 %v2696_v33  ;;  %5759 = vmatprep.subr.msk.mxu1 %vm2015_vm0, %v4253_v1  ;;  %v3179_v25 = vsel %vm2015_vm0, %v2873_v55, 0.0  ;;  %v4237_v8 = vmul.f32 %v12155_v39, %v4109_v49 }
 0x3bd   : > { %v6829_v18 = vpop.eup %6828  ;;  %6854 = vrcp.f32 %v10027_v12  ;;  %v3382_v42 = vsel %vm2014_vm1, 0.0, %v10354_v31  ;;  %v2694_v62 = vmul.f32 1.442695, %v2483_v60  ;;  %v4252_v9 = vmul.f32 %v12156_v15, %v4124_v58 }
 0x3be   : > { %v6831_v57 = vpop.eup %6830  ;;  %2305 = vmax.xlane.f32.xlu1 %v2304_v41  ;;  %v2857_v12 = vsel %vm2014_vm1, %v10263_v0, 0.0  ;;  %6856 = vrcp.f32 %v10173_v11  ;;  %v2692_v58 = vmul.f32 1.442695, %v2482_v47  ;;  %v3682_v61 = vsel %vm2015_vm0, %v3382_v42, 0.0  ;;  %v12158_v47 = vld [vmem:[#allocation124_spill] sm:$0xff] }
 0x3bf   : > { %v6833_v4 = vpop.eup %6832  ;;  %3180 = vadd.xlane.f32.xlu0 %v3179_v25  ;;  %v10459_v33 = vpop.xlane.xlu1 %3527  ;;  %v4108_v1 = vsel %vm2014_vm1, %v6827_v34, %v6831_v57  ;;  %5760 = vmatpush3.xpose.msk.msra.mxu1 %vm2015_vm0, %v4237_v8  ;;  %6858 = vpow2.f32 %v2664_v54  ;;  %v3131_v11 = vsel %vm2015_vm0, %v2857_v12, 0.0  ;;  %v12157_v34 = vld [vmem:[#allocation17_spill] sm:$0xff] }
 0x3c0   : > { %v10467_v55 = vpop.eup %6834  ;;  %v10471_v49 = vpop.xlane.xlu0 %2395  ;;  %v4123_v60 = vsel %vm2014_vm1, %v6829_v18, %v6833_v4  ;;  %5761 = vmatprep.subr.msk.mxu1 %vm2015_vm0, %v4252_v9  ;;  %6860 = vrcp.f32 %v9991_v28  ;;  %v4236_v57 = vmul.f32 %v12157_v34, %v4108_v1  ;;  %v3366_v18 = vsel %vm2014_vm1, 0.0, %v10342_v32  ;;  %v12159_v9 = vld [vmem:[#allocation143_spill] sm:$0xff]  ;;  %v12160_v12 = vld [vmem:[#allocation105_spill] sm:$0xff] }
 0x3c1   : > { %v6837_v59 = vpop.eup %6836  ;;  %6862 = vpow2.f32 %v2694_v62  ;;  %v4251_v39 = vmul.f32 %v12158_v47, %v4123_v60  ;;  %v3634_v62 = vsel %vm2015_vm0, %v3366_v18, 0.0  ;;  %v4235_v1 = vmul.f32 %v12160_v12, %v10126_v56  ;;  %v12165_v12 = vld [vmem:[#allocation42_spill] sm:$0xff] }
 0x3c2   : > { %v10477_v41 = vpop.eup %6838  ;;  %3683 = vadd.xlane.f32.xlu1 %v3682_v61  ;;  %6864 = vrcp.f32 %v10352_v16  ;;  %v2358_v16 = vsel %vm2015_vm0, %v12159_v9, -inf  ;;  %v12161_v61 = vld [vmem:[#allocation128_spill] sm:$0xff] }
 0x3c3   : > { %v6841_v25 = vpop.eup %6840  ;;  %3132 = vadd.xlane.f32.xlu0 %v3131_v11  ;;  %v10485_v54 = vpop.xlane.xlu1 %2338  ;;  %5762 = vmatpush3.xpose.msk.msra.mxu1 %vm2015_vm0, %v4236_v57  ;;  %6866 = vpow2.f32 %v2692_v58  ;;  %v3381_v60 = vsel %vm2014_vm1, 0.0, %v10477_v41 }
 0x3c4   : > { %v10488_v8 = vpop.eup %6842  ;;  %v3070_v28 = vpop.xlane.xlu0 %3069  ;;  %v4122_v42 = vsel %vm2014_vm1, %v6837_v59, %v6841_v25  ;;  %5763 = vmatprep.subr.msk.mxu1 %vm2015_vm0, %v4251_v39  ;;  %6868 = vrcp.f32 %v10184_v14  ;;  %v2872_v14 = vsel %vm2014_vm1, %v10300_v19, 0.0  ;;  %v12162_v25 = vld [vmem:[#allocation107_spill] sm:$0xff] }
 0x3c5   : > { %v6845_v4 = vpop.eup %6844  ;;  %6870 = vrcp.f32 %v10378_v52  ;;  %v4250_v11 = vmul.f32 %v12161_v61, %v4122_v42  ;;  %v3679_v52 = vsel %vm2015_vm0, %v3381_v60, 0.0  ;;  %v4234_v47 = vmul.f32 %v12162_v25, %v10152_v27 }
 0x3c6   : > { %v10496_v15 = vpop.eup %6846  ;;  %3635 = vadd.xlane.f32.xlu1 %v3634_v62  ;;  %6872 = vrcp.f32 %v10419_v26  ;;  %v3176_v26 = vsel %vm2015_vm0, %v2872_v14, 0.0 }
 0x3c7   : > { %v6849_v59 = vpop.eup %6848  ;;  %2359 = vmax.xlane.f32.xlu0 %v2358_v16  ;;  %v10507_v58 = vpop.xlane.xlu1 %3572  ;;  %5764 = vmatpush3.xpose.msk.msra.mxu1 %vm2015_vm0, %v4235_v1  ;;  %6874 = vrcp.f32 %v10208_v2  ;;  %v3365_v39 = vsel %vm2014_vm1, 0.0, %v10496_v15  ;;  %v12164_v16 = vld [vmem:[#allocation95_spill] sm:$0xff] }
 0x3c8   : > { %v3022_v56 = vpop.xlane.xlu0 %3021  ;;  %v4121_v34 = vsel %vm2014_vm1, %v6845_v4, %v6849_v59  ;;  %v6851_v57 = vpop.eup %6850  ;;  %5765 = vmatprep.subr.msk.mxu1 %vm2015_vm0, %v4250_v11  ;;  %6876 = vrcp.f32 %v10249_v21  ;;  %v12163_v4 = vld [vmem:[#allocation120_spill] sm:$0xff]  ;;  %v2856_v21 = vsel %vm2014_vm1, %v10322_v22, 0.0  ;;  %v2481_v1 = vsub.f32 %v12165_v12, %v12164_v16  ;;  %v12171_v12 = vld [vmem:[#allocation102_spill] sm:$0xff] }
 0x3c9   : > { %v10520_v18 = vpop.eup %6852  ;;  %6878 = vrcp.f32 %v10444_v23  ;;  %v4249_v62 = vmul.f32 %v12163_v4, %v4121_v34  ;;  %v3631_v59 = vsel %vm2015_vm0, %v3365_v39, 0.0  ;;  %v12166_v11 = vld [vmem:[#allocation100_spill] sm:$0xff] }
 0x3ca   : > { %3680 = vadd.xlane.f32.xlu1 %v3679_v52  ;;  %v6855_v42 = vpop.eup %6854  ;;  %6880 = vrcp.f32 %v3070_v28  ;;  %v3128_v28 = vsel %vm2015_vm0, %v2856_v21, 0.0  ;;  %v4233_v14 = vmul.f32 %v12166_v11, %v10080_v13  ;;  %v3380_v34 = vsel %vm2014_vm1, 0.0, %v10520_v18  ;;  %v12167_v52 = vld [vmem:[#allocation123_spill] sm:$0xff]  ;;  %v12169_v4 = vld [vmem:[#allocation24_spill] sm:$0xff] }
 0x3cb   : > { %3177 = vadd.xlane.f32.xlu0 %v3176_v26  ;;  %v10530_v2 = vpop.xlane.xlu1 %3524  ;;  %5766 = vmatpush3.xpose.msk.msra.mxu1 %vm2015_vm0, %v4234_v47  ;;  %v4120_v23 = vsel %vm2014_vm1, %v6851_v57, %v6855_v42  ;;  %v6857_v60 = vpop.eup %6856  ;;  %6882 = vrcp.f32 %v10272_v10  ;;  %v12168_v42 = vld [vmem:[#allocation78_spill] sm:$0xff]  ;;  %v2871_v11 = vsel %vm2014_vm1, %v10350_v38, 0.0 }
 0x3cc   : > { %v10539_v27 = vpop.xlane.xlu0 %2392  ;;  %5767 = vmatprep.subr.msk.mxu1 %vm2015_vm0, %v4249_v62  ;;  %v10546_v61 = vpop.eup %6858  ;;  %6884 = vrcp.f32 %v10304_v30  ;;  %v4248_v26 = vmul.f32 %v12167_v52, %v4120_v23  ;;  %v2690_v30 = vmul.f32 1.442695, %v2481_v1  ;;  %v3676_v62 = vsel %vm2015_vm0, %v3380_v34, 0.0  ;;  %v12173_v34 = vld [vmem:[#allocation98_spill] sm:$0xff] }
 0x3cd   : > { %v6861_v57 = vpop.eup %6860  ;;  %6886 = vrcp.f32 %v3022_v56  ;;  %v2465_v56 = vsub.f32 %v12169_v4, %v12168_v42  ;;  %v4232_v1 = vmul.f32 %v12171_v12, %v10104_v50  ;;  %v3364_v23 = vsel %vm2014_vm1, 0.0, %v10546_v61 }
 0x3ce   : > { %3632 = vadd.xlane.f32.xlu1 %v3631_v59  ;;  %v10558_v25 = vpop.eup %6862  ;;  %6888 = vrcp.f32 %v10326_v48  ;;  %v4119_v13 = vsel %vm2014_vm1, %v6857_v60, %v6861_v57  ;;  %v12170_v48 = vld [vmem:[#allocation14_spill] sm:$0xff]  ;;  %v12174_v57 = vld [vmem:[#allocation44_spill] sm:$0xff] }
 0x3cf   : > { %3129 = vadd.xlane.f32.xlu0 %v3128_v28  ;;  %v10555_v10 = vpop.xlane.xlu1 %2335  ;;  %5768 = vmatpush3.xpose.msk.msra.mxu1 %vm2015_vm0, %v4233_v14  ;;  %v6865_v39 = vpop.eup %6864  ;;  %6890 = vrcp.f32 %v10368_v45  ;;  %v2355_v16 = vsel %vm2015_vm0, %v12170_v48, -inf  ;;  %v12172_v59 = vld [vmem:[#allocation118_spill] sm:$0xff]  ;;  %v2480_v52 = vsub.f32 %v12174_v57, %v12173_v34  ;;  %v2658_v42 = vmul.f32 1.442695, %v2465_v56 }
 0x3d0   : > { %v3067_v47 = vpop.xlane.xlu0 %3066  ;;  %5769 = vmatprep.subr.msk.mxu1 %vm2015_vm0, %v4248_v26  ;;  %v10569_v21 = vpop.eup %6866  ;;  %v4247_v28 = vmul.f32 %v12172_v59, %v4119_v13  ;;  %v3628_v13 = vsel %vm2015_vm0, %v3364_v23, 0.0  ;;  %v2855_v23 = vsel %vm2014_vm1, %v10335_v37, 0.0 }
 0x3d1   : > { %6892 = vrcp.f32 %v3067_v47  ;;  %v6869_v60 = vpop.eup %6868  ;;  %v2688_v34 = vmul.f32 1.442695, %v2480_v52  ;;  %v3363_v52 = vsel %vm2014_vm1, 0.0, %v10467_v55 }
 0x3d2   : > { %3677 = vadd.xlane.f32.xlu1 %v3676_v62  ;;  %v6871_v14 = vpop.eup %6870  ;;  %6894 = vpow2.f32 %v2690_v30  ;;  %v4118_v26 = vsel %vm2014_vm1, %v6865_v39, %v6869_v60  ;;  %v3173_v30 = vsel %vm2015_vm0, %v2871_v11, 0.0  ;;  %v12175_v62 = vld [vmem:[#allocation97_spill] sm:$0xff]  ;;  %v3379_v39 = vsel %vm2014_vm1, 0.0, %v10558_v25 }
 0x3d3   : > { %2356 = vmax.xlane.f32.xlu0 %v2355_v16  ;;  %v10578_v45 = vpop.xlane.xlu1 %3569  ;;  %5770 = vmatpush3.xpose.msk.msra.mxu1 %vm2015_vm0, %v4232_v1  ;;  %v6873_v47 = vpop.eup %6872  ;;  %6896 = vrcp.f32 %v10388_v36  ;;  %v4231_v16 = vmul.f32 %v12175_v62, %v10054_v46  ;;  %v12176_v36 = vld [vmem:[#allocation141_spill] sm:$0xff] }
 0x3d4   : > { %v3019_v50 = vpop.xlane.xlu0 %3018  ;;  %5771 = vmatprep.subr.msk.mxu1 %vm2015_vm0, %v4247_v28  ;;  %v6875_v4 = vpop.eup %6874  ;;  %v4246_v1 = vmul.f32 %v12176_v36, %v4118_v26  ;;  %v12177_v28 = vld [vmem:[#allocation81_spill] sm:$0xff] }
 0x3d5   : > { %6898 = vrcp.f32 %v3019_v50  ;;  %v6877_v12 = vpop.eup %6876  ;;  %v4102_v60 = vsel %vm2014_vm1, %v6871_v14, %v6875_v4  ;;  %v12178_v46 = vld [vmem:[#allocation25_spill] sm:$0xff]  ;;  %v3125_v14 = vsel %vm2015_vm0, %v2855_v23, 0.0  ;;  %v12179_v4 = vld [vmem:[#allocation142_spill] sm:$0xff] }
 0x3d6   : > { %3629 = vadd.xlane.f32.xlu1 %v3628_v13  ;;  %v6879_v59 = vpop.eup %6878  ;;  %v2464_v11 = vsub.f32 %v12178_v46, %v12177_v28  ;;  %v4117_v50 = vsel %vm2014_vm1, %v6873_v47, %v6877_v12  ;;  %v3673_v13 = vsel %vm2015_vm0, %v3379_v39, 0.0  ;;  %6900 = vpow2.f32 %v2658_v42  ;;  %v12180_v47 = vld [vmem:[#allocation144_spill] sm:$0xff] }
 0x3d7   : > { %3174 = vadd.xlane.f32.xlu0 %v3173_v30  ;;  %v10598_v56 = vpop.xlane.xlu1 %3521  ;;  %5772 = vmatpush3.xpose.msk.msra.mxu1 %vm2015_vm0, %v4231_v16  ;;  %v6881_v26 = vpop.eup %6880  ;;  %v4230_v62 = vmul.f32 %v12179_v4, %v4102_v60  ;;  %v4245_v12 = vmul.f32 %v12180_v47, %v4117_v50  ;;  %6902 = vpow2.f32 %v2688_v34  ;;  %v3625_v46 = vsel %vm2015_vm0, %v3363_v52, 0.0  ;;  %v12181_v50 = vld [vmem:[#allocation138_spill] sm:$0xff]  ;;  %v12185_v47 = vld [vmem:[#allocation9_spill] sm:$0xff] }
 0x3d8   : > { %v10609_v57 = vpop.xlane.xlu0 %2389  ;;  %5773 = vmatprep.subr.msk.mxu1 %vm2015_vm0, %v4246_v1  ;;  %v6883_v30 = vpop.eup %6882  ;;  %v2656_v42 = vmul.f32 1.442695, %v2464_v11  ;;  %6904 = vrcp.f32 %v10434_v51  ;;  %v12182_v11 = vld [vmem:[#allocation52_spill] sm:$0xff] }
 0x3d9   : > { %v6885_v16 = vpop.eup %6884  ;;  %v4101_v39 = vsel %vm2014_vm1, %v6879_v59, %v6883_v30  ;;  %v2527_v34 = vsub.f32 %v12182_v11, %v10396_v7  ;;  %v12183_v30 = vld [vmem:[#allocation147_spill] sm:$0xff] }
 0x3da   : > { %3674 = vadd.xlane.f32.xlu1 %v3673_v13  ;;  %v6887_v1 = vpop.eup %6886  ;;  %v4116_v60 = vsel %vm2014_vm1, %v6881_v26, %v6885_v16  ;;  %v2352_v13 = vsel %vm2015_vm0, %v12181_v50, -inf  ;;  %v3378_v26 = vsel %vm2014_vm1, 0.0, %v10569_v21  ;;  %v2870_v16 = vsel %vm2014_vm1, %v10354_v31, 0.0 }
 0x3db   : > { %3126 = vadd.xlane.f32.xlu0 %v3125_v14  ;;  %v10620_v36 = vpop.xlane.xlu1 %2332  ;;  %5774 = vmatpush3.xpose.msk.msra.mxu1 %vm2015_vm0, %v4230_v62  ;;  %v6889_v28 = vpop.eup %6888  ;;  %v4229_v14 = vmul.f32 %v12183_v30, %v4101_v39  ;;  %v12184_v62 = vld [vmem:[#allocation149_spill] sm:$0xff] }
 0x3dc   : > { %v3064_v23 = vpop.xlane.xlu0 %3063  ;;  %5775 = vmatprep.subr.msk.mxu1 %vm2015_vm0, %v4245_v12  ;;  %v6891_v59 = vpop.eup %6890  ;;  %v4244_v52 = vmul.f32 %v12184_v62, %v4116_v60  ;;  %v4100_v7 = vsel %vm2014_vm1, %v6887_v1, %v6889_v28  ;;  %v2511_v12 = vsub.f32 %v12185_v47, %v10228_v17  ;;  %v3670_v60 = vsel %vm2015_vm0, %v3378_v26, 0.0  ;;  %v12188_v62 = vld [vmem:[#allocation3_spill] sm:$0xff]  ;;  %v12189_v47 = vld [vmem:[#allocation64_spill] sm:$0xff] }
 0x3dd   : > { %6906 = vrcp.f32 %v3064_v23  ;;  %v3362_v1 = vsel %vm2014_vm1, 0.0, %v10488_v8  ;;  %v2782_v17 = vmul.f32 1.442695, %v2527_v34  ;;  %v3170_v28 = vsel %vm2015_vm0, %v2870_v16, 0.0 }
 0x3de   : > { %3626 = vadd.xlane.f32.xlu1 %v3625_v46  ;;  %v6893_v51 = vpop.eup %6892  ;;  %6908 = vpow2.f32 %v2656_v42  ;;  %v2854_v26 = vsel %vm2014_vm1, %v10342_v32, 0.0  ;;  %v2526_v34 = vsub.f32 %v12188_v62, %v10471_v49 }
 0x3df   : > { %2353 = vmax.xlane.f32.xlu0 %v2352_v13  ;;  %v10639_v4 = vpop.xlane.xlu1 %3710  ;;  %5776 = vmatpush3.xpose.msk.msra.mxu1 %vm2015_vm0, %v4229_v14  ;;  %v4115_v23 = vsel %vm2014_vm1, %v6893_v51, %v6891_v59  ;;  %v10652_v46 = vpop.eup %6894  ;;  %6910 = vrcp.f32 %v10459_v33  ;;  %v12186_v13 = vld [vmem:[#allocation150_spill] sm:$0xff]  ;;  %v12187_v33 = vld [vmem:[#allocation13_spill] sm:$0xff]  ;;  %v2750_v51 = vmul.f32 1.442695, %v2511_v12  ;;  %v3122_v12 = vsel %vm2015_vm0, %v2854_v26, 0.0 }
 0x3e0   : > { %v3016_v39 = vpop.xlane.xlu0 %3015  ;;  %5777 = vmatprep.subr.msk.mxu1 %vm2015_vm0, %v4244_v52  ;;  %v6897_v42 = vpop.eup %6896  ;;  %v4228_v59 = vmul.f32 %v12186_v13, %v4100_v7  ;;  %v4243_v14 = vmul.f32 %v12187_v33, %v4115_v23  ;;  %v3622_v7 = vsel %vm2015_vm0, %v3362_v1, 0.0  ;;  %v3377_v49 = vsel %vm2014_vm1, 0.0, %v10652_v46 }
 0x3e1   : > { %6912 = vrcp.f32 %v3016_v39  ;;  %v2780_v1 = vmul.f32 1.442695, %v2526_v34  ;;  %v3667_v13 = vsel %vm2015_vm0, %v3377_v49, 0.0  ;;  %v12191_v34 = vld [vmem:[#allocation152_spill] sm:$0xff] }
 0x3e2   : > { %3671 = vadd.xlane.f32.xlu1 %v3670_v60  ;;  %v6899_v11 = vpop.eup %6898  ;;  %6914 = vpow2.f32 %v2782_v17 }
 0x3e3   : > { %3171 = vadd.xlane.f32.xlu0 %v3170_v28  ;;  %v10662_v30 = vpop.xlane.xlu1 %3662  ;;  %5778 = vmatpush3.xpose.msk.msra.mxu1 %vm2015_vm0, %v4228_v59  ;;  %v4099_v16 = vsel %vm2014_vm1, %v6899_v11, %v6897_v42  ;;  %v10682_v23 = vpop.eup %6900  ;;  %v2869_v42 = vsel %vm2014_vm1, %v10477_v41, 0.0  ;;  %6916 = vpow2.f32 %v2750_v51  ;;  %v12190_v11 = vld [vmem:[#allocation132_spill] sm:$0xff] }
 0x3e4   : > { %v10671_v52 = vpop.xlane.xlu0 %2386  ;;  %5779 = vmatprep.subr.msk.mxu1 %vm2015_vm0, %v4243_v14  ;;  %v4227_v39 = vmul.f32 %v12189_v47, %v4099_v16  ;;  %v10690_v28 = vpop.eup %6902  ;;  %6918 = vrcp.f32 %v10507_v58  ;;  %v2510_v33 = vsub.f32 %v12190_v11, %v10288_v43  ;;  %v3167_v14 = vsel %vm2015_vm0, %v2869_v42, 0.0 }
 0x3e5   : > { %v6905_v59 = vpop.eup %6904  ;;  %v3361_v26 = vsel %vm2014_vm1, 0.0, %v10682_v23  ;;  %v2853_v58 = vsel %vm2014_vm1, %v10496_v15, 0.0  ;;  %v2525_v43 = vsub.f32 %v12191_v34, %v10539_v27  ;;  %v3376_v27 = vsel %vm2014_vm1, 0.0, %v10690_v28 }
 0x3e6   : > { %3623 = vadd.xlane.f32.xlu1 %v3622_v7  ;;  %v2748_v42 = vmul.f32 1.442695, %v2510_v33 }
 0x3e7   : > { %3123 = vadd.xlane.f32.xlu0 %v3122_v12  ;;  %v10684_v60 = vpop.xlane.xlu1 %2329  ;;  %5780 = vmatpush3.xpose.msk.msra.mxu1 %vm2015_vm0, %v4227_v39  ;;  %v3619_v12 = vsel %vm2015_vm0, %v3361_v26, 0.0  ;;  %v2778_v11 = vmul.f32 1.442695, %v2525_v43 }
 0x3e8   : > { %v3061_v17 = vpop.xlane.xlu0 %3060 }
 0x3e9   : > { %6920 = vrcp.f32 %v3061_v17 }
 0x3ea   : > { %3668 = vadd.xlane.f32.xlu1 %v3667_v13  ;;  %v6907_v51 = vpop.eup %6906  ;;  %6922 = vpow2.f32 %v2780_v1  ;;  %v3119_v1 = vsel %vm2015_vm0, %v2853_v58, 0.0 }
 0x3eb   : > { %3168 = vadd.xlane.f32.xlu0 %v3167_v14  ;;  %v10700_v62 = vpop.xlane.xlu1 %3707  ;;  %v4114_v7 = vsel %vm2014_vm1, %v6907_v51, %v6905_v59  ;;  %v10709_v47 = vpop.eup %6908  ;;  %6924 = vrcp.f32 %v10530_v2  ;;  %v12192_v2 = vld [vmem:[#allocation23_spill] sm:$0xff]  ;;  %v3664_v51 = vsel %vm2015_vm0, %v3376_v27, 0.0 }
 0x3ec   : > { %v3013_v16 = vpop.xlane.xlu0 %3012  ;;  %v4242_v39 = vmul.f32 %v9751_v63, %v4114_v7  ;;  %v6911_v49 = vpop.eup %6910  ;;  %v2868_v63 = vsel %vm2014_vm1, %v10520_v18, 0.0  ;;  %v2509_v59 = vsub.f32 %v12192_v2, %v10348_v20  ;;  %v3360_v34 = vsel %vm2014_vm1, 0.0, %v10709_v47 }
 0x3ed   : > { %6926 = vrcp.f32 %v3013_v16  ;;  %v3164_v58 = vsel %vm2015_vm0, %v2868_v63, 0.0 }
 0x3ee   : > { %3620 = vadd.xlane.f32.xlu1 %v3619_v12  ;;  %v6913_v17 = vpop.eup %6912  ;;  %5781 = vmatprep.subr.msk.mxu1 %vm2015_vm0, %v4242_v39  ;;  %6928 = vpow2.f32 %v2748_v42  ;;  %v2746_v43 = vmul.f32 1.442695, %v2509_v59  ;;  %v3616_v12 = vsel %vm2015_vm0, %v3360_v34, 0.0  ;;  %v12194_v42 = vld [vmem:[#allocation10_spill] sm:$0xff]  ;;  %v12195_v59 = vld [vmem:[#allocation16_spill] sm:$0xff] }
 0x3ef   : > { %3120 = vadd.xlane.f32.xlu0 %v3119_v1  ;;  %v10719_v13 = vpop.xlane.xlu1 %3659  ;;  %v4098_v14 = vsel %vm2014_vm1, %v6913_v17, %v6911_v49  ;;  %v10736_v16 = vpop.eup %6914  ;;  %6930 = vpow2.f32 %v2778_v11  ;;  %v2524_v1 = vsub.f32 %v12194_v42, %v10609_v57  ;;  %v2508_v57 = vsub.f32 %v12195_v59, %v10411_v29 }
 0x3f0   : > { %v10726_v33 = vpop.xlane.xlu0 %2383  ;;  %v4226_v26 = vmul.f32 %v9767_v44, %v4098_v14  ;;  %v2852_v44 = vsel %vm2014_vm1, %v10546_v61, 0.0  ;;  %v10744_v39 = vpop.eup %6916  ;;  %6932 = vrcp.f32 %v10578_v45  ;;  %v3423_v17 = vsel %vm2014_vm1, 0.0, %v10736_v16 }
 0x3f1   : > { %12193 = vst [vmem:[#allocation63_spill] sm:$0xff] %v10744_v39  ;;  %v6919_v49 = vpop.eup %6918  ;;  %v3116_v27 = vsel %vm2015_vm0, %v2852_v44, 0.0  ;;  %v2867_v45 = vsel %vm2014_vm1, %v10558_v25, 0.0  ;;  %v2776_v44 = vmul.f32 1.442695, %v2524_v1  ;;  %v3407_v29 = vsel %vm2014_vm1, 0.0, %v10744_v39 }
 0x3f2   : > { %3665 = vadd.xlane.f32.xlu1 %v3664_v51  ;;  %5782 = vmatpush3.xpose.msk.msra.mxu1 %vm2015_vm0, %v4226_v26  ;;  %v2523_v1 = vsub.f32 %v9680_v40, %v10671_v52  ;;  %v2866_v40 = vsel %vm2014_vm1, %v10569_v21, 0.0 }
 0x3f3   : > { %3165 = vadd.xlane.f32.xlu0 %v3164_v58  ;;  %v10739_v20 = vpop.xlane.xlu1 %2326  ;;  %v3805_v58 = vsel %vm2015_vm0, %v3423_v17, 0.0  ;;  %v3757_v17 = vsel %vm2015_vm0, %v3407_v29, 0.0 }
 0x3f4   : > { %v3058_v7 = vpop.xlane.xlu0 %3057 }
 0x3f5   : > { %6934 = vrcp.f32 %v3058_v7 }
 0x3f6   : > { %3617 = vadd.xlane.f32.xlu1 %v3616_v12  ;;  %v6921_v63 = vpop.eup %6920  ;;  %6936 = vpow2.f32 %v2746_v43  ;;  %v3161_v43 = vsel %vm2015_vm0, %v2867_v45, 0.0 }
 0x3f7   : > { %3117 = vadd.xlane.f32.xlu0 %v3116_v27  ;;  %v10754_v2 = vpop.xlane.xlu1 %3704  ;;  %v4113_v14 = vsel %vm2014_vm1, %v6921_v63, %v6919_v49  ;;  %v10763_v26 = vpop.eup %6922  ;;  %6938 = vrcp.f32 %v10598_v56  ;;  %v2744_v56 = vmul.f32 1.442695, %v2508_v57 }
 0x3f8   : > { %v3010_v11 = vpop.xlane.xlu0 %3009  ;;  %v4241_v51 = vmul.f32 %v9794_v53, %v4113_v14  ;;  %v6925_v34 = vpop.eup %6924  ;;  %v2851_v53 = vsel %vm2014_vm1, %v10467_v55, 0.0  ;;  %v3422_v45 = vsel %vm2014_vm1, 0.0, %v10763_v26 }
 0x3f9   : > { %6940 = vrcp.f32 %v3010_v11  ;;  %v3113_v63 = vsel %vm2015_vm0, %v2851_v53, 0.0  ;;  %v2774_v11 = vmul.f32 1.442695, %v2523_v1  ;;  %v3802_v14 = vsel %vm2015_vm0, %v3422_v45, 0.0 }
 0x3fa   : > { %3806 = vadd.xlane.f32.xlu1 %v3805_v58  ;;  %v6927_v7 = vpop.eup %6926  ;;  %5783 = vmatprep.subr.msk.mxu1 %vm2015_vm0, %v4241_v51  ;;  %6942 = vpow2.f32 %v2776_v44  ;;  %v12197_v58 = vld [vmem:[#allocation119_spill] sm:$0xff]  ;;  %v3158_v44 = vsel %vm2015_vm0, %v2866_v40, 0.0 }
 0x3fb   : > { %3162 = vadd.xlane.f32.xlu0 %v3161_v43  ;;  %v10773_v12 = vpop.xlane.xlu1 %3656  ;;  %v4097_v42 = vsel %vm2014_vm1, %v6927_v7, %v6925_v34  ;;  %v10790_v59 = vpop.eup %6928  ;;  %6944 = vpow2.f32 %v2744_v56  ;;  %v2507_v34 = vsub.f32 %v12197_v58, %v10485_v54 }
 0x3fc   : > { %v10778_v49 = vpop.xlane.xlu0 %2380  ;;  %v4225_v27 = vmul.f32 %v9821_v5, %v4097_v42  ;;  %12196 = vst [vmem:[#allocation73_spill] sm:$0xff] %v10790_v59  ;;  %v10798_v52 = vpop.eup %6930  ;;  %6946 = vrcp.f32 %v10639_v4  ;;  %v3406_v43 = vsel %vm2014_vm1, 0.0, %v10790_v59  ;;  %v2850_v4 = vsel %vm2014_vm1, %v10488_v8, 0.0  ;;  %v12199_v42 = vld [vmem:[#allocation6_spill] sm:$0xff] }
 0x3fd   : > { %v6933_v51 = vpop.eup %6932  ;;  %v2522_v1 = vsub.f32 %v12199_v42, %v10726_v33  ;;  %v2742_v40 = vmul.f32 1.442695, %v2507_v34  ;;  %v2865_v33 = vsel %vm2014_vm1, %v10652_v46, 0.0 }
 0x3fe   : > { %3758 = vadd.xlane.f32.xlu1 %v3757_v17  ;;  %5784 = vmatpush3.xpose.msk.msra.mxu1 %vm2015_vm0, %v4225_v27  ;;  %v12200_v27 = vld [vmem:[#allocation153_spill] sm:$0xff] }
 0x3ff   : > { %3114 = vadd.xlane.f32.xlu0 %v3113_v63  ;;  %v10793_v57 = vpop.xlane.xlu1 %2323  ;;  %v3754_v63 = vsel %vm2015_vm0, %v3406_v43, 0.0  ;;  %v2772_v43 = vmul.f32 1.442695, %v2522_v1  ;;  %v2849_v1 = vsel %vm2014_vm1, %v10682_v23, 0.0 }
 0x400   : > { %v3199_v5 = vpop.xlane.xlu0 %3198 }
 0x401   : > { %6948 = vrcp.f32 %v3199_v5  ;;  %v3421_v5 = vsel %vm2014_vm1, 0.0, %v10798_v52 }
 0x402   : > { %3803 = vadd.xlane.f32.xlu1 %v3802_v14  ;;  %v6935_v29 = vpop.eup %6934  ;;  %6950 = vrcp.f32 %v10662_v30  ;;  %v3110_v30 = vsel %vm2015_vm0, %v2850_v4, 0.0 }
 0x403   : > { %3159 = vadd.xlane.f32.xlu0 %v3158_v44  ;;  %v10808_v7 = vpop.xlane.xlu1 %3701  ;;  %v4112_v54 = vsel %vm2014_vm1, %v6935_v29, %v6933_v51  ;;  %v10816_v56 = vpop.eup %6936  ;;  %6952 = vpow2.f32 %v2774_v11  ;;  %v12201_v51 = vld [vmem:[#allocation122_spill] sm:$0xff]  ;;  %v12202_v29 = vld [vmem:[#allocation155_spill] sm:$0xff] }
 0x404   : > { %v3151_v53 = vpop.xlane.xlu0 %3150  ;;  %12198 = vst [vmem:[#allocation35_spill] sm:$0xff] %v10816_v56  ;;  %v4240_v17 = vmul.f32 %v12200_v27, %v4112_v54  ;;  %v6939_v45 = vpop.eup %6938  ;;  %v2506_v58 = vsub.f32 %v12201_v51, %v10555_v10  ;;  %v3155_v54 = vsel %vm2015_vm0, %v2865_v33, 0.0  ;;  %v3405_v42 = vsel %vm2014_vm1, 0.0, %v10816_v56 }
 0x405   : > { %6954 = vrcp.f32 %v3151_v53  ;;  %v3799_v53 = vsel %vm2015_vm0, %v3421_v5, 0.0  ;;  %v12205_v5 = vld [vmem:[#allocation5_spill] sm:$0xff]  ;;  %v3107_v33 = vsel %vm2015_vm0, %v2849_v1, 0.0 }
 0x406   : > { %3755 = vadd.xlane.f32.xlu1 %v3754_v63  ;;  %v6941_v14 = vpop.eup %6940  ;;  %5785 = vmatprep.subr.msk.mxu1 %vm2015_vm0, %v4240_v17  ;;  %6956 = vpow2.f32 %v2742_v40  ;;  %v2740_v17 = vmul.f32 1.442695, %v2506_v58  ;;  %v3751_v40 = vsel %vm2015_vm0, %v3405_v42, 0.0  ;;  %v12207_v42 = vld [vmem:[#allocation41_spill] sm:$0xff] }
 0x407   : > { %3111 = vadd.xlane.f32.xlu0 %v3110_v30  ;;  %v10827_v11 = vpop.xlane.xlu1 %3653  ;;  %v4096_v44 = vsel %vm2014_vm1, %v6941_v14, %v6939_v45  ;;  %v10844_v27 = vpop.eup %6942  ;;  %6958 = vrcp.f32 %v10700_v62  ;;  %v2521_v14 = vsub.f32 %v12205_v5, %v10778_v49  ;;  %v7356_v62 = vld [vmem:[%s11669_s3] sm:$0x1]  ;;  %v2864_v49 = vsel %vm2014_vm1, %v10690_v28, 0.0 }
 0x408   : > { %v10834_v34 = vpop.xlane.xlu0 %2377  ;;  %v4224_v4 = vmul.f32 %v12202_v29, %v4096_v44  ;;  %12203 = vst [vmem:[#allocation66_spill] sm:$0xff] %v10844_v27  ;;  %v10853_v45 = vpop.eup %6944  ;;  %6960 = vpow2.f32 %v2772_v43  ;;  %v3420_v51 = vsel %vm2014_vm1, 0.0, %v10844_v27  ;;  %v12206_v43 = vld [vmem:[#allocation114_spill] sm:$0xff] }
 0x409   : > { %12204 = vst [vmem:[#allocation15_spill] sm:$0xff] %v10853_v45  ;;  %v6947_v30 = vpop.eup %6946  ;;  %v2505_v29 = vsub.f32 %v12206_v43, %v10620_v36  ;;  %v2770_v5 = vmul.f32 1.442695, %v2521_v14  ;;  %v3404_v36 = vsel %vm2014_vm1, 0.0, %v10853_v45  ;;  %v12210_v43 = vld [vmem:[#allocation34_spill] sm:$0xff] }
 0x40a   : > { %3800 = vadd.xlane.f32.xlu1 %v3799_v53  ;;  %5786 = vmatpush3.xpose.msk.msra.mxu1 %vm2015_vm0, %v4224_v4 }
 0x40b   : > { %3156 = vadd.xlane.f32.xlu0 %v3155_v54  ;;  %v10847_v10 = vpop.xlane.xlu1 %2320 }
 0x40c   : > { %v3196_v63 = vpop.xlane.xlu0 %3195 }
 0x40d   : > { %6962 = vrcp.f32 %v3196_v63  ;;  %5788 = vmatmul.mubr.msk.f32.vlgmr.msra.gmra.mxu1 %vm2015_vm0, %v7356_v62  ;;  %v3796_v63 = vsel %vm2015_vm0, %v3420_v51, 0.0  ;;  %v2738_v51 = vmul.f32 1.442695, %v2505_v29 }
 0x40e   : > { %3752 = vadd.xlane.f32.xlu1 %v3751_v40  ;;  %v6949_v58 = vpop.eup %6948  ;;  %5821 = vmatprep.mubr.msk.f32.mxu1 %vm2015_vm0, %v7356_v62  ;;  %6964 = vpow2.f32 %v2740_v17  ;;  %v3152_v17 = vsel %vm2015_vm0, %v2864_v49, 0.0 }
 0x40f   : > { %3108 = vadd.xlane.f32.xlu0 %v3107_v33  ;;  %v10866_v44 = vpop.xlane.xlu1 %3698  ;;  %v4159_v53 = vsel %vm2014_vm1, %v6949_v58, %v6947_v30  ;;  %v6951_v54 = vpop.eup %6950  ;;  %6966 = vrcp.f32 %v10719_v13  ;;  %v2848_v30 = vsel %vm2014_vm1, %v10709_v47, 0.0  ;;  %v12209_v58 = vld [vmem:[#allocation151_spill] sm:$0xff] }
 0x410   : > { %v3148_v4 = vpop.xlane.xlu0 %3147  ;;  %v4287_v1 = vmul.f32 %v12207_v42, %v4159_v53  ;;  %v10879_v40 = vpop.eup %6952  ;;  %v2520_v49 = vsub.f32 %v12209_v58, %v10834_v34  ;;  %v3748_v53 = vsel %vm2015_vm0, %v3404_v36, 0.0  ;;  %v3104_v42 = vsel %vm2015_vm0, %v2848_v30, 0.0  ;;  %v12211_v30 = vld [vmem:[#allocation117_spill] sm:$0xff] }
 0x411   : > { %12208 = vst [vmem:[#allocation60_spill] sm:$0xff] %v10879_v40  ;;  %6968 = vrcp.f32 %v3148_v4  ;;  %v2911_v34 = vsel %vm2014_vm1, %v10736_v16, 0.0 }
 0x412   : > { %3797 = vadd.xlane.f32.xlu1 %v3796_v63  ;;  %v6955_v33 = vpop.eup %6954  ;;  %5789 = vmatprep.subr.msk.mxu1 %vm2015_vm0, %v4287_v1  ;;  %6970 = vpow2.f32 %v2770_v5  ;;  %v3419_v1 = vsel %vm2014_vm1, 0.0, %v10879_v40  ;;  %v3293_v58 = vsel %vm2015_vm0, %v2911_v34, 0.0  ;;  %v12213_v34 = vld [vmem:[#allocation36_spill] sm:$0xff] }
 0x413   : > { %3153 = vadd.xlane.f32.xlu0 %v3152_v17  ;;  %v10886_v13 = vpop.xlane.xlu1 %3650  ;;  %v4143_v62 = vsel %vm2014_vm1, %v6955_v33, %v6951_v54  ;;  %v10901_v29 = vpop.eup %6956  ;;  %6972 = vpow2.f32 %v2738_v51  ;;  %v2768_v17 = vmul.f32 1.442695, %v2520_v49  ;;  %v3793_v36 = vsel %vm2015_vm0, %v3419_v1, 0.0 }
 0x414   : > { %v2375_v14 = vpop.xlane.xlu0 %2374  ;;  %v4271_v4 = vmul.f32 %v12210_v43, %v4143_v62  ;;  %v6959_v5 = vpop.eup %6958  ;;  %6974 = vrcp.f32 %v10754_v2  ;;  %v2504_v62 = vsub.f32 %v12211_v30, %v10684_v60  ;;  %v3403_v51 = vsel %vm2014_vm1, 0.0, %v10901_v29 }
 0x415   : > { %v10911_v33 = vpop.eup %6960  ;;  %v2895_v2 = vsel %vm2014_vm1, %v10744_v39, 0.0 }
 0x416   : > { %3749 = vadd.xlane.f32.xlu1 %v3748_v53  ;;  %5790 = vmatpush3.xpose.msk.msra.mxu1 %vm2015_vm0, %v4271_v4  ;;  %v3245_v39 = vsel %vm2015_vm0, %v2895_v2, 0.0 }
 0x417   : > { %3105 = vadd.xlane.f32.xlu0 %v3104_v42  ;;  %v10904_v54 = vpop.xlane.xlu1 %2317  ;;  %v12212_v42 = vld [vmem:[#allocation146_spill] sm:$0xff] }
 0x418   : > { %v3193_v63 = vpop.xlane.xlu0 %3192  ;;  %v2519_v1 = vsub.f32 %v12212_v42, %v2375_v14  ;;  %v2910_v14 = vsel %vm2014_vm1, %v10763_v26, 0.0 }
 0x419   : > { %6976 = vrcp.f32 %v3193_v63 }
 0x41a   : > { %3794 = vadd.xlane.f32.xlu1 %v3793_v36  ;;  %v6963_v43 = vpop.eup %6962  ;;  %6978 = vrcp.f32 %v10773_v12  ;;  %v3745_v36 = vsel %vm2015_vm0, %v3403_v51, 0.0  ;;  %v3418_v12 = vsel %vm2014_vm1, 0.0, %v10911_v33 }
 0x41b   : > { %3294 = vadd.xlane.f32.xlu0 %v3293_v58  ;;  %v10919_v4 = vpop.xlane.xlu1 %3695  ;;  %v4158_v60 = vsel %vm2014_vm1, %v6963_v43, %v6959_v5  ;;  %v10927_v53 = vpop.eup %6964  ;;  %6980 = vpow2.f32 %v2768_v17  ;;  %v2736_v58 = vmul.f32 1.442695, %v2504_v62  ;;  %v12214_v62 = vld [vmem:[#allocation111_spill] sm:$0xff] }
 0x41c   : > { %v3145_v49 = vpop.xlane.xlu0 %3144  ;;  %v4286_v63 = vmul.f32 %v12213_v34, %v4158_v60  ;;  %v6967_v30 = vpop.eup %6966  ;;  %v2503_v51 = vsub.f32 %v12214_v62, %v10739_v20  ;;  %v12215_v60 = vld [vmem:[#allocation37_spill] sm:$0xff]  ;;  %v3790_v34 = vsel %vm2015_vm0, %v3418_v12, 0.0  ;;  %v12218_v62 = vld [vmem:[#allocation148_spill] sm:$0xff] }
 0x41d   : > { %6982 = vrcp.f32 %v3145_v49  ;;  %v2766_v49 = vmul.f32 1.442695, %v2519_v1  ;;  %v2894_v1 = vsel %vm2014_vm1, %v10790_v59, 0.0 }
 0x41e   : > { %3746 = vadd.xlane.f32.xlu1 %v3745_v36  ;;  %v6969_v5 = vpop.eup %6968  ;;  %5791 = vmatprep.subr.msk.mxu1 %vm2015_vm0, %v4286_v63  ;;  %6984 = vpow2.f32 %v2736_v58  ;;  %v3402_v63 = vsel %vm2014_vm1, 0.0, %v10927_v53 }
 0x41f   : > { %3246 = vadd.xlane.f32.xlu0 %v3245_v39  ;;  %v10937_v17 = vpop.xlane.xlu1 %3647  ;;  %v4142_v2 = vsel %vm2014_vm1, %v6969_v5, %v6967_v30  ;;  %v3290_v39 = vsel %vm2015_vm0, %v2910_v14, 0.0  ;;  %v10952_v36 = vpop.eup %6970  ;;  %v2734_v30 = vmul.f32 1.442695, %v2503_v51  ;;  %6986 = vrcp.f32 %v10808_v7 }
 0x420   : > { %v2372_v43 = vpop.xlane.xlu0 %2371  ;;  %v4270_v42 = vmul.f32 %v12215_v60, %v4142_v2  ;;  %12216 = vst [vmem:[#allocation91_spill] sm:$0xff] %v10952_v36  ;;  %v10961_v12 = vpop.eup %6972  ;;  %6988 = vpow2.f32 %v2766_v49  ;;  %v3742_v5 = vsel %vm2015_vm0, %v3402_v63, 0.0  ;;  %v3242_v60 = vsel %vm2015_vm0, %v2894_v1, 0.0 }
 0x421   : > { %12217 = vst [vmem:[#allocation12_spill] sm:$0xff] %v10961_v12  ;;  %v6975_v14 = vpop.eup %6974  ;;  %v2518_v2 = vsub.f32 %v12218_v62, %v2372_v43  ;;  %v2909_v49 = vsel %vm2014_vm1, %v10798_v52, 0.0 }
 0x422   : > { %3791 = vadd.xlane.f32.xlu1 %v3790_v34  ;;  %5792 = vmatpush3.xpose.msk.msra.mxu1 %vm2015_vm0, %v4270_v42  ;;  %v3417_v42 = vsel %vm2014_vm1, 0.0, %v10952_v36  ;;  %v12219_v34 = vld [vmem:[#allocation18_spill] sm:$0xff] }
 0x423   : > { %3291 = vadd.xlane.f32.xlu0 %v3290_v39  ;;  %v10955_v20 = vpop.xlane.xlu1 %2314  ;;  %v2502_v43 = vsub.f32 %v12219_v34, %v10793_v57  ;;  %v3787_v62 = vsel %vm2015_vm0, %v3417_v42, 0.0  ;;  %v2764_v59 = vmul.f32 1.442695, %v2518_v2  ;;  %v3401_v57 = vsel %vm2014_vm1, 0.0, %v10961_v12 }
 0x424   : > { %v3190_v58 = vpop.xlane.xlu0 %3189 }
 0x425   : > { %6990 = vrcp.f32 %v3190_v58  ;;  %v12220_v58 = vld [vmem:[#allocation158_spill] sm:$0xff]  ;;  %v2732_v42 = vmul.f32 1.442695, %v2502_v43 }
 0x426   : > { %3743 = vadd.xlane.f32.xlu1 %v3742_v5  ;;  %v6977_v51 = vpop.eup %6976  ;;  %6992 = vpow2.f32 %v2734_v30  ;;  %v3287_v30 = vsel %vm2015_vm0, %v2909_v49, 0.0  ;;  %v12221_v49 = vld [vmem:[#allocation8_spill] sm:$0xff] }
 0x427   : > { %3243 = vadd.xlane.f32.xlu0 %v3242_v60  ;;  %v10969_v7 = vpop.xlane.xlu1 %3692  ;;  %v4157_v63 = vsel %vm2014_vm1, %v6977_v51, %v6975_v14  ;;  %v6979_v1 = vpop.eup %6978  ;;  %6994 = vrcp.f32 %v10827_v11  ;;  %v2893_v14 = vsel %vm2014_vm1, %v10816_v56, 0.0 }
 0x428   : > { %v3142_v39 = vpop.xlane.xlu0 %3141  ;;  %v4285_v5 = vmul.f32 %v12220_v58, %v4157_v63  ;;  %v10981_v60 = vpop.eup %6980  ;;  %v12222_v63 = vld [vmem:[#allocation76_spill] sm:$0xff] }
 0x429   : > { %6996 = vrcp.f32 %v3142_v39 }
 0x42a   : > { %3788 = vadd.xlane.f32.xlu1 %v3787_v62  ;;  %v6983_v34 = vpop.eup %6982  ;;  %5793 = vmatprep.subr.msk.mxu1 %vm2015_vm0, %v4285_v5  ;;  %v3739_v62 = vsel %vm2015_vm0, %v3401_v57, 0.0  ;;  %6998 = vpow2.f32 %v2764_v59  ;;  %v3239_v5 = vsel %vm2015_vm0, %v2893_v14, 0.0 }
 0x42b   : > { %3288 = vadd.xlane.f32.xlu0 %v3287_v30  ;;  %v10988_v11 = vpop.xlane.xlu1 %3644  ;;  %v4141_v51 = vsel %vm2014_vm1, %v6983_v34, %v6979_v1  ;;  %v3416_v30 = vsel %vm2014_vm1, 0.0, %v10981_v60  ;;  %v11002_v56 = vpop.eup %6984  ;;  %v2908_v1 = vsel %vm2014_vm1, %v10844_v27, 0.0  ;;  %7000 = vpow2.f32 %v2732_v42 }
 0x42c   : > { %v2369_v2 = vpop.xlane.xlu0 %2368  ;;  %v4269_v58 = vmul.f32 %v12222_v63, %v4141_v51  ;;  %v6987_v57 = vpop.eup %6986  ;;  %7002 = vrcp.f32 %v10866_v44  ;;  %v3784_v14 = vsel %vm2015_vm0, %v3416_v30, 0.0  ;;  %v12223_v51 = vld [vmem:[#allocation106_spill] sm:$0xff]  ;;  %v3284_v63 = vsel %vm2015_vm0, %v2908_v1, 0.0  ;;  %v12224_v30 = vld [vmem:[#allocation159_spill] sm:$0xff] }
 0x42d   : > { %v2517_v39 = vsub.f32 %v12221_v49, %v2369_v2  ;;  %v11012_v2 = vpop.eup %6988  ;;  %v2501_v49 = vsub.f32 %v12223_v51, %v10847_v10  ;;  %v3400_v42 = vsel %vm2014_vm1, 0.0, %v11002_v56  ;;  %v2892_v44 = vsel %vm2014_vm1, %v10853_v45, 0.0 }
 0x42e   : > { %3740 = vadd.xlane.f32.xlu1 %v3739_v62  ;;  %5794 = vmatpush3.xpose.msk.msra.mxu1 %vm2015_vm0, %v4269_v58 }
 0x42f   : > { %3240 = vadd.xlane.f32.xlu0 %v3239_v5  ;;  %v11005_v43 = vpop.xlane.xlu1 %2311  ;;  %v2762_v34 = vmul.f32 1.442695, %v2517_v39  ;;  %v2730_v51 = vmul.f32 1.442695, %v2501_v49  ;;  %v12225_v49 = vld [vmem:[#allocation109_spill] sm:$0xff] }
 0x430   : > { %v3187_v59 = vpop.xlane.xlu0 %3186 }
 0x431   : > { %7004 = vrcp.f32 %v3187_v59  ;;  %v3736_v59 = vsel %vm2015_vm0, %v3400_v42, 0.0  ;;  %v2500_v42 = vsub.f32 %v12225_v49, %v10904_v54 }
 0x432   : > { %3785 = vadd.xlane.f32.xlu1 %v3784_v14  ;;  %v6991_v58 = vpop.eup %6990  ;;  %7006 = vrcp.f32 %v10886_v13  ;;  %v3415_v13 = vsel %vm2014_vm1, 0.0, %v11012_v2 }
 0x433   : > { %3285 = vadd.xlane.f32.xlu0 %v3284_v63  ;;  %v11020_v62 = vpop.xlane.xlu1 %3689  ;;  %v4156_v10 = vsel %vm2014_vm1, %v6991_v58, %v6987_v57  ;;  %v11028_v5 = vpop.eup %6992  ;;  %7008 = vpow2.f32 %v2762_v34  ;;  %v3236_v63 = vsel %vm2015_vm0, %v2892_v44, 0.0  ;;  %v2907_v34 = vsel %vm2014_vm1, %v10879_v40, 0.0 }
 0x434   : > { %v3139_v39 = vpop.xlane.xlu0 %3138  ;;  %v4284_v1 = vmul.f32 %v12224_v30, %v4156_v10  ;;  %v6995_v14 = vpop.eup %6994  ;;  %v12227_v30 = vld [vmem:[#allocation79_spill] sm:$0xff]  ;;  %v3399_v40 = vsel %vm2014_vm1, 0.0, %v11028_v5 }
 0x435   : > { %7010 = vrcp.f32 %v3139_v39  ;;  %v12226_v39 = vld [vmem:[#allocation145_spill] sm:$0xff]  ;;  %v3733_v49 = vsel %vm2015_vm0, %v3399_v40, 0.0  ;;  %v2906_v40 = vsel %vm2014_vm1, %v10911_v33, 0.0 }
 0x436   : > { %3737 = vadd.xlane.f32.xlu1 %v3736_v59  ;;  %v6997_v45 = vpop.eup %6996  ;;  %5795 = vmatprep.subr.msk.mxu1 %vm2015_vm0, %v4284_v1  ;;  %v3781_v1 = vsel %vm2015_vm0, %v3415_v13, 0.0  ;;  %7012 = vpow2.f32 %v2730_v51  ;;  %v2728_v51 = vmul.f32 1.442695, %v2500_v42  ;;  %v12228_v42 = vld [vmem:[#allocation101_spill] sm:$0xff] }
 0x437   : > { %3237 = vadd.xlane.f32.xlu0 %v3236_v63  ;;  %v11037_v57 = vpop.xlane.xlu1 %3641  ;;  %v4140_v44 = vsel %vm2014_vm1, %v6997_v45, %v6995_v14  ;;  %v3281_v63 = vsel %vm2015_vm0, %v2907_v34, 0.0  ;;  %v11053_v27 = vpop.eup %6998  ;;  %v2891_v14 = vsel %vm2014_vm1, %v10901_v29, 0.0  ;;  %7014 = vrcp.f32 %v10919_v4 }
 0x438   : > { %v2366_v58 = vpop.xlane.xlu0 %2365  ;;  %v4268_v59 = vmul.f32 %v12227_v30, %v4140_v44  ;;  %v11062_v34 = vpop.eup %7000  ;;  %v3233_v44 = vsel %vm2015_vm0, %v2891_v14, 0.0  ;;  %v2499_v30 = vsub.f32 %v12228_v42, %v10955_v20 }
 0x439   : > { %v2516_v10 = vsub.f32 %v12226_v39, %v2366_v58  ;;  %v7003_v58 = vpop.eup %7002  ;;  %v3414_v39 = vsel %vm2014_vm1, 0.0, %v11053_v27 }
 0x43a   : > { %3782 = vadd.xlane.f32.xlu1 %v3781_v1  ;;  %5796 = vmatpush3.xpose.msk.msra.mxu1 %vm2015_vm0, %v4268_v59  ;;  %v2726_v42 = vmul.f32 1.442695, %v2499_v30 }
 0x43b   : > { %v2760_v54 = vmul.f32 1.442695, %v2516_v10  ;;  %3282 = vadd.xlane.f32.xlu0 %v3281_v63  ;;  %v11056_v45 = vpop.xlane.xlu1 %2308 }
 0x43c   : > { %v3184_v13 = vpop.xlane.xlu0 %3183 }
 0x43d   : > { %7016 = vpow2.f32 %v2760_v54  ;;  %v12229_v54 = vld [vmem:[#allocation157_spill] sm:$0xff] }
 0x43e   : > { %7018 = vrcp.f32 %v3184_v13  ;;  %3734 = vadd.xlane.f32.xlu1 %v3733_v49  ;;  %v7005_v10 = vpop.eup %7004  ;;  %v3778_v13 = vsel %vm2015_vm0, %v3414_v39, 0.0  ;;  %v3278_v49 = vsel %vm2015_vm0, %v2906_v40, 0.0 }
 0x43f   : > { %3234 = vadd.xlane.f32.xlu0 %v3233_v44  ;;  %v11071_v4 = vpop.xlane.xlu1 %3686  ;;  %7020 = vpow2.f32 %v2728_v51  ;;  %v4155_v1 = vsel %vm2014_vm1, %v7005_v10, %v7003_v58  ;;  %v7007_v63 = vpop.eup %7006  ;;  %v3398_v51 = vsel %vm2014_vm1, 0.0, %v11062_v34  ;;  %v2890_v58 = vsel %vm2014_vm1, %v10927_v53, 0.0 }
 0x440   : > { %v3136_v59 = vpop.xlane.xlu0 %3135  ;;  %7022 = vrcp.f32 %v10937_v17  ;;  %v4283_v14 = vmul.f32 %v12229_v54, %v4155_v1  ;;  %v11081_v20 = vpop.eup %7008  ;;  %v3730_v54 = vsel %vm2015_vm0, %v3398_v51, 0.0  ;;  %v3230_v30 = vsel %vm2015_vm0, %v2890_v58, 0.0 }
 0x441   : > { %7024 = vrcp.f32 %v3136_v59  ;;  %v12230_v59 = vld [vmem:[#allocation70_spill] sm:$0xff] }
 0x442   : > { %3779 = vadd.xlane.f32.xlu1 %v3778_v13  ;;  %v7011_v44 = vpop.eup %7010  ;;  %5797 = vmatprep.subr.msk.mxu1 %vm2015_vm0, %v4283_v14  ;;  %v3413_v14 = vsel %vm2014_vm1, 0.0, %v11081_v20  ;;  %7026 = vpow2.f32 %v2726_v42 }
 0x443   : > { %3279 = vadd.xlane.f32.xlu0 %v3278_v49  ;;  %v11088_v17 = vpop.xlane.xlu1 %3638  ;;  %v4139_v10 = vsel %vm2014_vm1, %v7011_v44, %v7007_v63  ;;  %v11102_v13 = vpop.eup %7012  ;;  %7028 = vrcp.f32 %v10969_v7  ;;  %v3775_v58 = vsel %vm2015_vm0, %v3413_v14, 0.0 }
 0x444   : > { %v2363_v39 = vpop.xlane.xlu0 %2362  ;;  %v4267_v1 = vmul.f32 %v12230_v59, %v4139_v10  ;;  %v7015_v44 = vpop.eup %7014  ;;  %v3397_v10 = vsel %vm2014_vm1, 0.0, %v11102_v13  ;;  %v12231_v59 = vld [vmem:[#allocation104_spill] sm:$0xff] }
 0x445   : > { %v2515_v40 = vsub.f32 %v12147_v24, %v2363_v39  ;;  %v2905_v24 = vsel %vm2014_vm1, %v10952_v36, 0.0 }
 0x446   : > { %3731 = vadd.xlane.f32.xlu1 %v3730_v54  ;;  %5798 = vmatpush3.xpose.msk.msra.mxu1 %vm2015_vm0, %v4267_v1  ;;  %v3275_v42 = vsel %vm2015_vm0, %v2905_v24, 0.0  ;;  %v2498_v1 = vsub.f32 %v12231_v59, %v11005_v43  ;;  %v2889_v54 = vsel %vm2014_vm1, %v10961_v12, 0.0  ;;  %v12232_v24 = vld [vmem:[#allocation68_spill] sm:$0xff] }
 0x447   : > { %v2758_v49 = vmul.f32 1.442695, %v2515_v40  ;;  %3231 = vadd.xlane.f32.xlu0 %v3230_v30  ;;  %v11105_v63 = vpop.xlane.xlu1 %2305 }
 0x448   : > { %v3181_v51 = vpop.xlane.xlu0 %3180  ;;  %v2724_v36 = vmul.f32 1.442695, %v2498_v1 }
 0x449   : > { %7030 = vpow2.f32 %v2758_v49 }
 0x44a   : > { %v11112_v39 = vpop.eup %7016  ;;  %7032 = vrcp.f32 %v3181_v51  ;;  %3776 = vadd.xlane.f32.xlu1 %v3775_v58  ;;  %v3727_v58 = vsel %vm2015_vm0, %v3397_v10, 0.0 }
 0x44b   : > { %v7019_v40 = vpop.eup %7018  ;;  %3276 = vadd.xlane.f32.xlu0 %v3275_v42  ;;  %v11120_v7 = vpop.xlane.xlu1 %3683  ;;  %7034 = vrcp.f32 %v10988_v11  ;;  %v3227_v42 = vsel %vm2015_vm0, %v2889_v54, 0.0  ;;  %v3412_v59 = vsel %vm2014_vm1, 0.0, %v11112_v39  ;;  %v2904_v11 = vsel %vm2014_vm1, %v10981_v60, 0.0 }
 0x44c   : > { %v3133_v30 = vpop.xlane.xlu0 %3132  ;;  %v4154_v14 = vsel %vm2014_vm1, %v7019_v40, %v7015_v44  ;;  %v11127_v49 = vpop.eup %7020  ;;  %v3272_v1 = vsel %vm2015_vm0, %v2904_v11, 0.0 }
 0x44d   : > { %v4282_v51 = vmul.f32 %v12232_v24, %v4154_v14  ;;  %v7023_v43 = vpop.eup %7022  ;;  %7036 = vrcp.f32 %v3133_v30  ;;  %v12233_v30 = vld [vmem:[#allocation69_spill] sm:$0xff]  ;;  %v3772_v24 = vsel %vm2015_vm0, %v3412_v59, 0.0 }
 0x44e   : > { %3728 = vadd.xlane.f32.xlu1 %v3727_v58  ;;  %v7025_v12 = vpop.eup %7024  ;;  %7038 = vpow2.f32 %v2724_v36 }
 0x44f   : > { %5799 = vmatprep.subr.msk.mxu1 %vm2015_vm0, %v4282_v51  ;;  %3228 = vadd.xlane.f32.xlu0 %v3227_v42  ;;  %v11137_v44 = vpop.xlane.xlu1 %3635  ;;  %v4138_v40 = vsel %vm2014_vm1, %v7025_v12, %v7023_v43  ;;  %v3396_v51 = vsel %vm2014_vm1, 0.0, %v11127_v49  ;;  %v11157_v12 = vpop.eup %7026  ;;  %7040 = vrcp.f32 %v11020_v62  ;;  %v2903_v62 = vsel %vm2014_vm1, %v11012_v2, 0.0 }
 0x450   : > { %v2360_v10 = vpop.xlane.xlu0 %2359  ;;  %v4266_v14 = vmul.f32 %v12233_v30, %v4138_v40  ;;  %v7029_v59 = vpop.eup %7028  ;;  %v3724_v11 = vsel %vm2015_vm0, %v3396_v51, 0.0 }
 0x451   : > { %v2514_v54 = vsub.f32 %v12159_v9, %v2360_v10  ;;  %v2888_v9 = vsel %vm2014_vm1, %v11002_v56, 0.0 }
 0x452   : > { %3773 = vadd.xlane.f32.xlu1 %v3772_v24  ;;  %5800 = vmatpush3.xpose.msk.msra.mxu1 %vm2015_vm0, %v4266_v14  ;;  %v3224_v10 = vsel %vm2015_vm0, %v2888_v9, 0.0 }
 0x453   : > { %v2756_v58 = vmul.f32 1.442695, %v2514_v54  ;;  %3273 = vadd.xlane.f32.xlu0 %v3272_v1  ;;  %v11152_v42 = vpop.xlane.xlu1 %3680  ;;  %v12234_v54 = vld [vmem:[#allocation96_spill] sm:$0xff] }
 0x454   : > { %v3178_v43 = vpop.xlane.xlu0 %3177  ;;  %v2497_v30 = vsub.f32 %v12234_v54, %v11056_v45 }
 0x455   : > { %7042 = vpow2.f32 %v2756_v58 }
 0x456   : > { %v11161_v36 = vpop.eup %7030  ;;  %7044 = vrcp.f32 %v3178_v43  ;;  %3725 = vadd.xlane.f32.xlu1 %v3724_v11  ;;  %v3269_v43 = vsel %vm2015_vm0, %v2903_v62, 0.0  ;;  %v3395_v11 = vsel %vm2014_vm1, 0.0, %v11157_v12  ;;  %v2722_v54 = vmul.f32 1.442695, %v2497_v30 }
 0x457   : > { %v7033_v40 = vpop.eup %7032  ;;  %3225 = vadd.xlane.f32.xlu0 %v3224_v10  ;;  %v11166_v14 = vpop.xlane.xlu1 %3632  ;;  %v3411_v24 = vsel %vm2014_vm1, 0.0, %v11161_v36  ;;  %7046 = vrcp.f32 %v11037_v57 }
 0x458   : > { %v3130_v1 = vpop.xlane.xlu0 %3129  ;;  %v4153_v51 = vsel %vm2014_vm1, %v7033_v40, %v7029_v59  ;;  %v3769_v58 = vsel %vm2015_vm0, %v3411_v24, 0.0  ;;  %v7035_v9 = vpop.eup %7034 }
 0x459   : > { %7048 = vrcp.f32 %v3130_v1  ;;  %v4281_v45 = vmul.f32 %v10244_v3, %v4153_v51  ;;  %v2887_v3 = vsel %vm2014_vm1, %v11028_v5, 0.0  ;;  %v3721_v1 = vsel %vm2015_vm0, %v3395_v11, 0.0 }
 0x45a   : > { %3770 = vadd.xlane.f32.xlu1 %v3769_v58  ;;  %v7037_v10 = vpop.eup %7036  ;;  %v3221_v30 = vsel %vm2015_vm0, %v2887_v3, 0.0  ;;  %7050 = vpow2.f32 %v2722_v54  ;;  %v2902_v58 = vsel %vm2014_vm1, %v11053_v27, 0.0  ;;  %v2496_v54 = vsub.f32 %v12154_v35, %v11105_v63 }
 0x45b   : > { %5801 = vmatprep.subr.msk.mxu1 %vm2015_vm0, %v4281_v45  ;;  %3270 = vadd.xlane.f32.xlu0 %v3269_v43  ;;  %v11184_v57 = vpop.xlane.xlu1 %3677  ;;  %v4137_v40 = vsel %vm2014_vm1, %v7037_v10, %v7035_v9  ;;  %v11201_v9 = vpop.eup %7038  ;;  %7052 = vrcp.f32 %v11071_v4  ;;  %v3266_v11 = vsel %vm2015_vm0, %v2902_v58, 0.0  ;;  %v2886_v4 = vsel %vm2014_vm1, %v11062_v34, 0.0 }
 0x45c   : > { %v2357_v59 = vpop.xlane.xlu0 %2356  ;;  %v4265_v24 = vmul.f32 %v10263_v0, %v4137_v40  ;;  %v2720_v58 = vmul.f32 1.442695, %v2496_v54 }
 0x45d   : > { %v2513_v62 = vsub.f32 %v12170_v48, %v2357_v59  ;;  %v7041_v48 = vpop.eup %7040 }
 0x45e   : > { %3722 = vadd.xlane.f32.xlu1 %v3721_v1  ;;  %5802 = vmatpush3.xpose.msk.msra.mxu1 %vm2015_vm0, %v4265_v24  ;;  %v3394_v1 = vsel %vm2014_vm1, 0.0, %v11201_v9 }
 0x45f   : > { %v2754_v51 = vmul.f32 1.442695, %v2513_v62  ;;  %3222 = vadd.xlane.f32.xlu0 %v3221_v30  ;;  %v11196_v45 = vpop.xlane.xlu1 %3629 }
 0x460   : > { %v3175_v0 = vpop.xlane.xlu0 %3174 }
 0x461   : > { %7054 = vpow2.f32 %v2754_v51  ;;  %v3218_v51 = vsel %vm2015_vm0, %v2886_v4, 0.0 }
 0x462   : > { %v11204_v43 = vpop.eup %7042  ;;  %7056 = vrcp.f32 %v3175_v0 }
 0x463   : > { %v7045_v10 = vpop.eup %7044  ;;  %3267 = vadd.xlane.f32.xlu0 %v3266_v11  ;;  %v11209_v3 = vpop.xlane.xlu1 %3674  ;;  %v3410_v59 = vsel %vm2014_vm1, 0.0, %v11204_v43  ;;  %7058 = vrcp.f32 %v11088_v17  ;;  %v3718_v11 = vsel %vm2015_vm0, %v3394_v1, 0.0 }
 0x464   : > { %v3127_v40 = vpop.xlane.xlu0 %3126  ;;  %v3766_v62 = vsel %vm2015_vm0, %v3410_v59, 0.0  ;;  %v4152_v24 = vsel %vm2014_vm1, %v7045_v10, %v7041_v48  ;;  %v7047_v35 = vpop.eup %7046 }
 0x465   : > { %7060 = vrcp.f32 %v3127_v40  ;;  %3767 = vadd.xlane.f32.xlu1 %v3766_v62  ;;  %v4280_v63 = vmul.f32 %v10300_v19, %v4152_v24  ;;  %v2901_v19 = vsel %vm2014_vm1, %v11081_v20, 0.0  ;;  %v2885_v62 = vsel %vm2014_vm1, %v11102_v13, 0.0 }
 0x466   : > { %v7049_v30 = vpop.eup %7048  ;;  %v3263_v54 = vsel %vm2015_vm0, %v2901_v19, 0.0  ;;  %7062 = vpow2.f32 %v2720_v58 }
 0x467   : > { %5803 = vmatprep.subr.msk.mxu1 %vm2015_vm0, %v4280_v63  ;;  %3219 = vadd.xlane.f32.xlu0 %v3218_v51  ;;  %v11227_v17 = vpop.xlane.xlu1 %3626  ;;  %v4136_v0 = vsel %vm2014_vm1, %v7049_v30, %v7047_v35  ;;  %v11244_v24 = vpop.eup %7050  ;;  %7064 = vrcp.f32 %v11120_v7  ;;  %v3215_v63 = vsel %vm2015_vm0, %v2885_v62, 0.0  ;;  %v2900_v7 = vsel %vm2014_vm1, %v11112_v39, 0.0 }
 0x468   : > { %v2354_v48 = vpop.xlane.xlu0 %2353  ;;  %v4264_v10 = vmul.f32 %v10322_v22, %v4136_v0  ;;  %v2884_v62 = vsel %vm2014_vm1, %v11127_v49, 0.0 }
 0x469   : > { %v2512_v59 = vsub.f32 %v12181_v50, %v2354_v48  ;;  %3719 = vadd.xlane.f32.xlu1 %v3718_v11  ;;  %v7053_v50 = vpop.eup %7052 }
 0x46a   : > { %5804 = vmatpush3.xpose.msk.msra.mxu1 %vm2015_vm0, %v4264_v10  ;;  %v3393_v10 = vsel %vm2014_vm1, 0.0, %v11244_v24 }
 0x46b   : > { %v2752_v4 = vmul.f32 1.442695, %v2512_v59  ;;  %3264 = vadd.xlane.f32.xlu0 %v3263_v54  ;;  %v11239_v40 = vpop.xlane.xlu1 %3671  ;;  %v3260_v54 = vsel %vm2015_vm0, %v2900_v7, 0.0 }
 0x46c   : > { %v3172_v22 = vpop.xlane.xlu0 %3171 }
 0x46d   : > { %7066 = vpow2.f32 %v2752_v4 }
 0x46e   : > { %v11247_v35 = vpop.eup %7054  ;;  %7068 = vrcp.f32 %v3172_v22  ;;  %v3715_v22 = vsel %vm2015_vm0, %v3393_v10, 0.0  ;;  %v2883_v10 = vsel %vm2014_vm1, %v11157_v12, 0.0 }
 0x46f   : > { %v7057_v1 = vpop.eup %7056  ;;  %3216 = vadd.xlane.f32.xlu0 %v3215_v63  ;;  %v11250_v30 = vpop.xlane.xlu1 %3623  ;;  %v3409_v51 = vsel %vm2014_vm1, 0.0, %v11247_v35  ;;  %7070 = vrcp.f32 %v11137_v44  ;;  %v3212_v63 = vsel %vm2015_vm0, %v2884_v62, 0.0 }
 0x470   : > { %v3124_v58 = vpop.xlane.xlu0 %3123  ;;  %v3763_v0 = vsel %vm2015_vm0, %v3409_v51, 0.0  ;;  %v4151_v19 = vsel %vm2014_vm1, %v7057_v1, %v7053_v50  ;;  %v7059_v48 = vpop.eup %7058  ;;  %v2899_v51 = vsel %vm2014_vm1, %v11161_v36, 0.0 }
 0x471   : > { %7072 = vrcp.f32 %v3124_v58  ;;  %3764 = vadd.xlane.f32.xlu1 %v3763_v0  ;;  %v4279_v11 = vmul.f32 %v10350_v38, %v4151_v19  ;;  %v3257_v0 = vsel %vm2015_vm0, %v2899_v51, 0.0  ;;  %v2898_v51 = vsel %vm2014_vm1, %v11204_v43, 0.0 }
 0x472   : > { %v7061_v59 = vpop.eup %7060  ;;  %7074 = vrcp.f32 %v11152_v42 }
 0x473   : > { %5805 = vmatprep.subr.msk.mxu1 %vm2015_vm0, %v4279_v11  ;;  %3261 = vadd.xlane.f32.xlu0 %v3260_v54  ;;  %v11268_v44 = vpop.xlane.xlu1 %3668  ;;  %v4135_v4 = vsel %vm2014_vm1, %v7061_v59, %v7059_v48  ;;  %v11285_v7 = vpop.eup %7062 }
 0x474   : > { %v3169_v38 = vpop.xlane.xlu0 %3168  ;;  %v4263_v50 = vmul.f32 %v10335_v37, %v4135_v4  ;;  %v7065_v58 = vpop.eup %7064 }
 0x475   : > { %7076 = vrcp.f32 %v3169_v38  ;;  %3716 = vadd.xlane.f32.xlu1 %v3715_v22  ;;  %v3392_v38 = vsel %vm2014_vm1, 0.0, %v11285_v7 }
 0x476   : > { %5806 = vmatpush3.xpose.msk.msra.mxu1 %vm2015_vm0, %v4263_v50  ;;  %7078 = vrcp.f32 %v11166_v14  ;;  %v3209_v50 = vsel %vm2015_vm0, %v2883_v10, 0.0 }
 0x477   : > { %3213 = vadd.xlane.f32.xlu0 %v3212_v63  ;;  %v11280_v1 = vpop.xlane.xlu1 %3620 }
 0x478   : > { %v3121_v42 = vpop.xlane.xlu0 %3120 }
 0x479   : > { %7080 = vrcp.f32 %v3121_v42  ;;  %v3712_v42 = vsel %vm2015_vm0, %v3392_v38, 0.0 }
 0x47a   : > { %v11288_v37 = vpop.eup %7066  ;;  %7082 = vrcp.f32 %v11184_v57 }
 0x47b   : > { %v7069_v19 = vpop.eup %7068  ;;  %3258 = vadd.xlane.f32.xlu0 %v3257_v0  ;;  %v11291_v48 = vpop.xlane.xlu1 %3665  ;;  %v3408_v11 = vsel %vm2014_vm1, 0.0, %v11288_v37 }
 0x47c   : > { %v3166_v14 = vpop.xlane.xlu0 %3165  ;;  %v3760_v59 = vsel %vm2015_vm0, %v3408_v11, 0.0  ;;  %v4150_v54 = vsel %vm2014_vm1, %v7069_v19, %v7065_v58  ;;  %v7071_v4 = vpop.eup %7070  ;;  %v3254_v11 = vsel %vm2015_vm0, %v2898_v51, 0.0 }
 0x47d   : > { %7084 = vrcp.f32 %v3166_v14  ;;  %3761 = vadd.xlane.f32.xlu1 %v3760_v59  ;;  %v4278_v62 = vmul.f32 %v10354_v31, %v4150_v54 }
 0x47e   : > { %v7073_v22 = vpop.eup %7072  ;;  %7086 = vrcp.f32 %v11196_v45  ;;  %v2882_v45 = vsel %vm2014_vm1, %v11201_v9, 0.0 }
 0x47f   : > { %5807 = vmatprep.subr.msk.mxu1 %vm2015_vm0, %v4278_v62  ;;  %3210 = vadd.xlane.f32.xlu0 %v3209_v50  ;;  %v11309_v57 = vpop.xlane.xlu1 %3617  ;;  %v4134_v63 = vsel %vm2014_vm1, %v7073_v22, %v7071_v4  ;;  %v7075_v0 = vpop.eup %7074  ;;  %v3206_v62 = vsel %vm2015_vm0, %v2882_v45, 0.0 }
 0x480   : > { %v3118_v31 = vpop.xlane.xlu0 %3117  ;;  %v4262_v58 = vmul.f32 %v10342_v32, %v4134_v63 }
 0x481   : > { %7088 = vrcp.f32 %v3118_v31  ;;  %3713 = vadd.xlane.f32.xlu1 %v3712_v42 }
 0x482   : > { %v7077_v19 = vpop.eup %7076  ;;  %5808 = vmatpush3.xpose.msk.msra.mxu1 %vm2015_vm0, %v4262_v58  ;;  %7090 = vrcp.f32 %v11209_v3  ;;  %v2897_v3 = vsel %vm2014_vm1, %v11247_v35, 0.0 }
 0x483   : > { %3255 = vadd.xlane.f32.xlu0 %v3254_v11  ;;  %v11321_v10 = vpop.xlane.xlu1 %3806  ;;  %v4149_v14 = vsel %vm2014_vm1, %v7077_v19, %v7075_v0  ;;  %v7079_v54 = vpop.eup %7078  ;;  %v3251_v31 = vsel %vm2015_vm0, %v2897_v3, 0.0 }
 0x484   : > { %v3163_v32 = vpop.xlane.xlu0 %3162  ;;  %v4277_v59 = vmul.f32 %v10477_v41, %v4149_v14 }
 0x485   : > { %7092 = vrcp.f32 %v3163_v32 }
 0x486   : > { %v7081_v4 = vpop.eup %7080  ;;  %5809 = vmatprep.subr.msk.mxu1 %vm2015_vm0, %v4277_v59  ;;  %7094 = vrcp.f32 %v11227_v17  ;;  %v2881_v17 = vsel %vm2014_vm1, %v11244_v24, 0.0 }
 0x487   : > { %3207 = vadd.xlane.f32.xlu0 %v3206_v62  ;;  %v11332_v38 = vpop.xlane.xlu1 %3758  ;;  %v4133_v22 = vsel %vm2014_vm1, %v7081_v4, %v7079_v54  ;;  %v7083_v63 = vpop.eup %7082  ;;  %v3203_v14 = vsel %vm2015_vm0, %v2881_v17, 0.0 }
 0x488   : > { %v3115_v41 = vpop.xlane.xlu0 %3114  ;;  %v4261_v50 = vmul.f32 %v10496_v15, %v4133_v22 }
 0x489   : > { %7096 = vrcp.f32 %v3115_v41 }
 0x48a   : > { %v7085_v51 = vpop.eup %7084  ;;  %5810 = vmatpush3.xpose.msk.msra.mxu1 %vm2015_vm0, %v4261_v50  ;;  %7098 = vrcp.f32 %v11239_v40  ;;  %v2896_v40 = vsel %vm2014_vm1, %v11288_v37, 0.0 }
 0x48b   : > { %3252 = vadd.xlane.f32.xlu0 %v3251_v31  ;;  %v11343_v42 = vpop.xlane.xlu1 %3803  ;;  %v4148_v58 = vsel %vm2014_vm1, %v7085_v51, %v7083_v63  ;;  %v7087_v19 = vpop.eup %7086  ;;  %v3248_v62 = vsel %vm2015_vm0, %v2896_v40, 0.0 }
 0x48c   : > { %v3160_v15 = vpop.xlane.xlu0 %3159  ;;  %v4276_v0 = vmul.f32 %v10520_v18, %v4148_v58 }
 0x48d   : > { %7100 = vrcp.f32 %v3160_v15 }
 0x48e   : > { %v7089_v11 = vpop.eup %7088  ;;  %5811 = vmatprep.subr.msk.mxu1 %vm2015_vm0, %v4276_v0  ;;  %7102 = vrcp.f32 %v11250_v30  ;;  %v2880_v30 = vsel %vm2014_vm1, %v11285_v7, 0.0 }
 0x48f   : > { %3204 = vadd.xlane.f32.xlu0 %v3203_v14  ;;  %v11354_v45 = vpop.xlane.xlu1 %3755  ;;  %v4132_v32 = vsel %vm2014_vm1, %v7089_v11, %v7087_v19  ;;  %v7091_v54 = vpop.eup %7090  ;;  %v3200_v51 = vsel %vm2015_vm0, %v2880_v30, 0.0 }
 0x490   : > { %v3112_v18 = vpop.xlane.xlu0 %3111  ;;  %v4260_v59 = vmul.f32 %v10546_v61, %v4132_v32 }
 0x491   : > { %7104 = vrcp.f32 %v3112_v18 }
 0x492   : > { %v7093_v4 = vpop.eup %7092  ;;  %5812 = vmatpush3.xpose.msk.msra.mxu1 %vm2015_vm0, %v4260_v59  ;;  %7106 = vrcp.f32 %v11268_v44 }
 0x493   : > { %3249 = vadd.xlane.f32.xlu0 %v3248_v62  ;;  %v11365_v22 = vpop.xlane.xlu1 %3800  ;;  %v4147_v3 = vsel %vm2014_vm1, %v7093_v4, %v7091_v54  ;;  %v7095_v50 = vpop.eup %7094 }
 0x494   : > { %v3157_v61 = vpop.xlane.xlu0 %3156  ;;  %v4275_v41 = vmul.f32 %v10558_v25, %v4147_v3 }
 0x495   : > { %7108 = vrcp.f32 %v3157_v61 }
 0x496   : > { %v7097_v63 = vpop.eup %7096  ;;  %5813 = vmatprep.subr.msk.mxu1 %vm2015_vm0, %v4275_v41  ;;  %7110 = vrcp.f32 %v11280_v1 }
 0x497   : > { %3201 = vadd.xlane.f32.xlu0 %v3200_v51  ;;  %v11376_v31 = vpop.xlane.xlu1 %3752  ;;  %v4131_v58 = vsel %vm2014_vm1, %v7097_v63, %v7095_v50  ;;  %v7099_v15 = vpop.eup %7098 }
 0x498   : > { %v3109_v17 = vpop.xlane.xlu0 %3108  ;;  %v4259_v44 = vmul.f32 %v10467_v55, %v4131_v58 }
 0x499   : > { %7112 = vrcp.f32 %v3109_v17 }
 0x49a   : > { %v7101_v25 = vpop.eup %7100  ;;  %5814 = vmatpush3.xpose.msk.msra.mxu1 %vm2015_vm0, %v4259_v44  ;;  %7114 = vrcp.f32 %v11291_v48 }
 0x49b   : > { %v11383_v0 = vpop.xlane.xlu1 %3797  ;;  %v4146_v19 = vsel %vm2014_vm1, %v7101_v25, %v7099_v15  ;;  %v7103_v32 = vpop.eup %7102 }
 0x49c   : > { %v3154_v11 = vpop.xlane.xlu0 %3153  ;;  %v4274_v14 = vmul.f32 %v10569_v21, %v4146_v19 }
 0x49d   : > { %7116 = vrcp.f32 %v3154_v11 }
 0x49e   : > { %v7105_v1 = vpop.eup %7104  ;;  %5815 = vmatprep.subr.msk.mxu1 %vm2015_vm0, %v4274_v14  ;;  %7118 = vrcp.f32 %v11309_v57 }
 0x49f   : > { %v11390_v55 = vpop.xlane.xlu1 %3749  ;;  %v4130_v40 = vsel %vm2014_vm1, %v7105_v1, %v7103_v32  ;;  %v7107_v54 = vpop.eup %7106 }
 0x4a0   : > { %v3106_v18 = vpop.xlane.xlu0 %3105  ;;  %v4258_v59 = vmul.f32 %v10488_v8, %v4130_v40 }
 0x4a1   : > { %7120 = vrcp.f32 %v3106_v18 }
 0x4a2   : > { %v7109_v48 = vpop.eup %7108  ;;  %5816 = vmatpush3.xpose.msk.msra.mxu1 %vm2015_vm0, %v4258_v59  ;;  %7122 = vrcp.f32 %v11321_v10  ;;  %v12235_v59 = vld [vmem:[#allocation63_spill] sm:$0xff] }
 0x4a3   : > { %v11397_v21 = vpop.xlane.xlu1 %3794  ;;  %v4145_v4 = vsel %vm2014_vm1, %v7109_v48, %v7107_v54  ;;  %v7111_v30 = vpop.eup %7110 }
 0x4a4   : > { %v3295_v62 = vpop.xlane.xlu0 %3294  ;;  %v4273_v3 = vmul.f32 %v10652_v46, %v4145_v4 }
 0x4a5   : > { %7124 = vrcp.f32 %v3295_v62 }
 0x4a6   : > { %v7113_v57 = vpop.eup %7112  ;;  %5817 = vmatprep.subr.msk.mxu1 %vm2015_vm0, %v4273_v3  ;;  %7126 = vrcp.f32 %v11332_v38 }
 0x4a7   : > { %v11404_v8 = vpop.xlane.xlu1 %3746  ;;  %v4129_v61 = vsel %vm2014_vm1, %v7113_v57, %v7111_v30  ;;  %v7115_v63 = vpop.eup %7114 }
 0x4a8   : > { %v3247_v41 = vpop.xlane.xlu0 %3246  ;;  %v4257_v50 = vmul.f32 %v10682_v23, %v4129_v61 }
 0x4a9   : > { %7128 = vrcp.f32 %v3247_v41 }
 0x4aa   : > { %v7117_v10 = vpop.eup %7116  ;;  %5818 = vmatpush3.xpose.msk.msra.mxu1 %vm2015_vm0, %v4257_v50  ;;  %7130 = vrcp.f32 %v11343_v42 }
 0x4ab   : > { %v11411_v46 = vpop.xlane.xlu1 %3791  ;;  %v4144_v51 = vsel %vm2014_vm1, %v7117_v10, %v7115_v63  ;;  %v7119_v44 = vpop.eup %7118  ;;  %v12236_v63 = vld [vmem:[#allocation73_spill] sm:$0xff] }
 0x4ac   : > { %v3292_v58 = vpop.xlane.xlu0 %3291  ;;  %v4272_v17 = vmul.f32 %v10690_v28, %v4144_v51 }
 0x4ad   : > { %7132 = vrcp.f32 %v3292_v58 }
 0x4ae   : > { %v7121_v38 = vpop.eup %7120  ;;  %5819 = vmatprep.subr.msk.mxu1 %vm2015_vm0, %v4272_v17  ;;  %7134 = vrcp.f32 %v11354_v45 }
 0x4af   : > { %v11418_v23 = vpop.xlane.xlu1 %3743  ;;  %v4128_v15 = vsel %vm2014_vm1, %v7121_v38, %v7119_v44  ;;  %v7123_v11 = vpop.eup %7122 }
 0x4b0   : > { %v3244_v25 = vpop.xlane.xlu0 %3243  ;;  %v4256_v19 = vmul.f32 %v10709_v47, %v4128_v15  ;;  %v11434_v47 = vld [vmem:[%s11669_s3] sm:$0x1] }
 0x4b1   : > { %7136 = vrcp.f32 %v3244_v25 }
 0x4b2   : > { %v7125_v42 = vpop.eup %7124  ;;  %5820 = vmatpush3.xpose.msk.msra.mxu1 %vm2015_vm0, %v4256_v19  ;;  %7138 = vrcp.f32 %v11365_v22  ;;  %v12237_v19 = vld [vmem:[#allocation35_spill] sm:$0xff] }
 0x4b3   : > { %v11425_v28 = vpop.xlane.xlu1 %3788  ;;  %v4191_v14 = vsel %vm2014_vm1, %v7125_v42, %v7123_v11  ;;  %v7127_v40 = vpop.eup %7126 }
 0x4b4   : > { %v3289_v32 = vpop.xlane.xlu0 %3288  ;;  %v4319_v1 = vmul.f32 %v10736_v16, %v4191_v14 }
 0x4b5   : > { %7140 = vrcp.f32 %v3289_v32  ;;  %5822 = vmatmul.mubr.msk.f32.vlgmr.msra.gmra.mxu1 %vm2015_vm0, %v11434_v47 }
 0x4b6   : > { %v7129_v45 = vpop.eup %7128  ;;  %5823 = vmatprep.subr.msk.mxu1 %vm2015_vm0, %v4319_v1  ;;  %5855 = vmatprep.mubr.msk.f32.mxu1 %vm2015_vm0, %v11434_v47  ;;  %7142 = vrcp.f32 %v11376_v31  ;;  %v12238_v1 = vld [vmem:[#allocation66_spill] sm:$0xff] }
 0x4b7   : > { %v11441_v22 = vpop.xlane.xlu1 %3740  ;;  %v4175_v16 = vsel %vm2014_vm1, %v7129_v45, %v7127_v40  ;;  %v7131_v48 = vpop.eup %7130 }
 0x4b8   : > { %v3241_v18 = vpop.xlane.xlu0 %3240  ;;  %v4303_v54 = vmul.f32 %v12235_v59, %v4175_v16 }
 0x4b9   : > { %7144 = vrcp.f32 %v3241_v18 }
 0x4ba   : > { %v7133_v4 = vpop.eup %7132  ;;  %5824 = vmatpush3.xpose.msk.msra.mxu1 %vm2015_vm0, %v4303_v54  ;;  %7146 = vrcp.f32 %v11383_v0  ;;  %v12239_v54 = vld [vmem:[#allocation15_spill] sm:$0xff] }
 0x4bb   : > { %v4190_v62 = vsel %vm2014_vm1, %v7133_v4, %v7131_v48  ;;  %v7135_v57 = vpop.eup %7134  ;;  %v11452_v61 = vpop.xlane.xlu1 %3785 }
 0x4bc   : > { %v3286_v3 = vpop.xlane.xlu0 %3285  ;;  %v4318_v30 = vmul.f32 %v10763_v26, %v4190_v62 }
 0x4bd   : > { %7148 = vrcp.f32 %v3286_v3 }
 0x4be   : > { %v7137_v31 = vpop.eup %7136  ;;  %5825 = vmatprep.subr.msk.mxu1 %vm2015_vm0, %v4318_v30  ;;  %7150 = vrcp.f32 %v11390_v55  ;;  %v12240_v30 = vld [vmem:[#allocation60_spill] sm:$0xff] }
 0x4bf   : > { %v4174_v41 = vsel %vm2014_vm1, %v7137_v31, %v7135_v57  ;;  %v7139_v51 = vpop.eup %7138  ;;  %v11460_v26 = vpop.xlane.xlu1 %3737 }
 0x4c0   : > { %v3238_v50 = vpop.xlane.xlu0 %3237  ;;  %v4302_v10 = vmul.f32 %v12236_v63, %v4174_v41 }
 0x4c1   : > { %7152 = vrcp.f32 %v3238_v50 }
 0x4c2   : > { %v7141_v0 = vpop.eup %7140  ;;  %5826 = vmatpush3.xpose.msk.msra.mxu1 %vm2015_vm0, %v4302_v10  ;;  %7154 = vrcp.f32 %v11397_v21 }
 0x4c3   : > { %v4189_v58 = vsel %vm2014_vm1, %v7141_v0, %v7139_v51  ;;  %v7143_v38 = vpop.eup %7142  ;;  %v3783_v14 = vpop.xlane.xlu1 %3782 }
 0x4c4   : > { %v3283_v17 = vpop.xlane.xlu0 %3282  ;;  %v4317_v44 = vmul.f32 %v10798_v52, %v4189_v58 }
 0x4c5   : > { %7156 = vrcp.f32 %v3283_v17 }
 0x4c6   : > { %v7145_v55 = vpop.eup %7144  ;;  %5827 = vmatprep.subr.msk.mxu1 %vm2015_vm0, %v4317_v44  ;;  %7158 = vrcp.f32 %v11404_v8 }
 0x4c7   : > { %v4173_v15 = vsel %vm2014_vm1, %v7145_v55, %v7143_v38  ;;  %v7147_v42 = vpop.eup %7146  ;;  %v3735_v16 = vpop.xlane.xlu1 %3734 }
 0x4c8   : > { %v3235_v25 = vpop.xlane.xlu0 %3234  ;;  %v4301_v11 = vmul.f32 %v12237_v19, %v4173_v15 }
 0x4c9   : > { %7160 = vrcp.f32 %v3235_v25 }
 0x4ca   : > { %v7149_v21 = vpop.eup %7148  ;;  %5828 = vmatpush3.xpose.msk.msra.mxu1 %vm2015_vm0, %v4301_v11  ;;  %7162 = vrcp.f32 %v11411_v46 }
 0x4cb   : > { %v4188_v52 = vsel %vm2014_vm1, %v7149_v21, %v7147_v42  ;;  %v7151_v45 = vpop.eup %7150  ;;  %v3780_v41 = vpop.xlane.xlu1 %3779  ;;  %v12241_v42 = vld [vmem:[#allocation91_spill] sm:$0xff] }
 0x4cc   : > { %v3280_v32 = vpop.xlane.xlu0 %3279  ;;  %v4316_v40 = vmul.f32 %v12238_v1, %v4188_v52 }
 0x4cd   : > { %7164 = vrcp.f32 %v3280_v32 }
 0x4ce   : > { %v7153_v8 = vpop.eup %7152  ;;  %5829 = vmatprep.subr.msk.mxu1 %vm2015_vm0, %v4316_v40  ;;  %7166 = vrcp.f32 %v11418_v23  ;;  %v12242_v40 = vld [vmem:[#allocation12_spill] sm:$0xff] }
 0x4cf   : > { %v4172_v18 = vsel %vm2014_vm1, %v7153_v8, %v7151_v45  ;;  %v7155_v4 = vpop.eup %7154  ;;  %v3732_v0 = vpop.xlane.xlu1 %3731 }
 0x4d0   : > { %v3232_v59 = vpop.xlane.xlu0 %3231  ;;  %v4300_v48 = vmul.f32 %v12239_v54, %v4172_v18 }
 0x4d1   : > { %7168 = vrcp.f32 %v3232_v59 }
 0x4d2   : > { %v7157_v46 = vpop.eup %7156  ;;  %5830 = vmatpush3.xpose.msk.msra.mxu1 %vm2015_vm0, %v4300_v48  ;;  %7170 = vrcp.f32 %v11425_v28 }
 0x4d3   : > { %v4187_v62 = vsel %vm2014_vm1, %v7157_v46, %v7155_v4  ;;  %v7159_v31 = vpop.eup %7158  ;;  %v3777_v19 = vpop.xlane.xlu1 %3776 }
 0x4d4   : > { %v3277_v3 = vpop.xlane.xlu0 %3276  ;;  %v4315_v57 = vmul.f32 %v12240_v30, %v4187_v62 }
 0x4d5   : > { %7172 = vrcp.f32 %v3277_v3 }
 0x4d6   : > { %v7161_v23 = vpop.eup %7160  ;;  %5831 = vmatprep.subr.msk.mxu1 %vm2015_vm0, %v4315_v57  ;;  %7174 = vrcp.f32 %v11441_v22 }
 0x4d7   : > { %v4171_v50 = vsel %vm2014_vm1, %v7161_v23, %v7159_v31  ;;  %v7163_v51 = vpop.eup %7162 }
 0x4d8   : > { %v3229_v63 = vpop.xlane.xlu0 %3228  ;;  %v4299_v10 = vmul.f32 %v10901_v29, %v4171_v50 }
 0x4d9   : > { %7176 = vrcp.f32 %v3229_v63 }
 0x4da   : > { %v7165_v28 = vpop.eup %7164  ;;  %5832 = vmatpush3.xpose.msk.msra.mxu1 %vm2015_vm0, %v4299_v10  ;;  %7178 = vrcp.f32 %v11452_v61 }
 0x4db   : > { %v4186_v58 = vsel %vm2014_vm1, %v7165_v28, %v7163_v51  ;;  %v7167_v38 = vpop.eup %7166 }
 0x4dc   : > { %v3274_v17 = vpop.xlane.xlu0 %3273  ;;  %v4314_v44 = vmul.f32 %v10911_v33, %v4186_v58 }
 0x4dd   : > { %7180 = vrcp.f32 %v3274_v17 }
 0x4de   : > { %v7169_v22 = vpop.eup %7168  ;;  %5833 = vmatprep.subr.msk.mxu1 %vm2015_vm0, %v4314_v44  ;;  %7182 = vrcp.f32 %v11460_v26  ;;  %v3729_v26 = vpop.xlane.xlu1 %3728 }
 0x4df   : > { %v4170_v29 = vsel %vm2014_vm1, %v7169_v22, %v7167_v38  ;;  %v7171_v25 = vpop.eup %7170 }
 0x4e0   : > { %v3226_v55 = vpop.xlane.xlu0 %3225  ;;  %v4298_v15 = vmul.f32 %v10927_v53, %v4170_v29 }
 0x4e1   : > { %7184 = vrcp.f32 %v3226_v55 }
 0x4e2   : > { %v7173_v61 = vpop.eup %7172  ;;  %5834 = vmatpush3.xpose.msk.msra.mxu1 %vm2015_vm0, %v4298_v15  ;;  %7186 = vrcp.f32 %v3783_v14  ;;  %v3774_v4 = vpop.xlane.xlu1 %3773 }
 0x4e3   : > { %v4185_v33 = vsel %vm2014_vm1, %v7173_v61, %v7171_v25  ;;  %v7175_v52 = vpop.eup %7174 }
 0x4e4   : > { %v3271_v11 = vpop.xlane.xlu0 %3270  ;;  %v4313_v21 = vmul.f32 %v12241_v42, %v4185_v33 }
 0x4e5   : > { %7188 = vrcp.f32 %v3271_v11 }
 0x4e6   : > { %v7177_v32 = vpop.eup %7176  ;;  %5835 = vmatprep.subr.msk.mxu1 %vm2015_vm0, %v4313_v21  ;;  %7190 = vrcp.f32 %v3735_v16  ;;  %v3726_v31 = vpop.xlane.xlu1 %3725 }
 0x4e7   : > { %v4169_v53 = vsel %vm2014_vm1, %v7177_v32, %v7175_v52  ;;  %v7179_v8 = vpop.eup %7178 }
 0x4e8   : > { %v3223_v1 = vpop.xlane.xlu0 %3222  ;;  %v4297_v45 = vmul.f32 %v12242_v40, %v4169_v53 }
 0x4e9   : > { %7192 = vrcp.f32 %v3223_v1 }
 0x4ea   : > { %v7181_v18 = vpop.eup %7180  ;;  %5836 = vmatpush3.xpose.msk.msra.mxu1 %vm2015_vm0, %v4297_v45  ;;  %7194 = vrcp.f32 %v3780_v41 }
 0x4eb   : > { %v4184_v14 = vsel %vm2014_vm1, %v7181_v18, %v7179_v8  ;;  %v7183_v48 = vpop.eup %7182 }
 0x4ec   : > { %v3268_v59 = vpop.xlane.xlu0 %3267  ;;  %v4312_v54 = vmul.f32 %v10981_v60, %v4184_v14 }
 0x4ed   : > { %7196 = vrcp.f32 %v3268_v59 }
 0x4ee   : > { %v7185_v46 = vpop.eup %7184  ;;  %5837 = vmatprep.subr.msk.mxu1 %vm2015_vm0, %v4312_v54  ;;  %7198 = vrcp.f32 %v3732_v0  ;;  %v3771_v0 = vpop.xlane.xlu1 %3770 }
 0x4ef   : > { %v4168_v16 = vsel %vm2014_vm1, %v7185_v46, %v7183_v48  ;;  %v7187_v30 = vpop.eup %7186 }
 0x4f0   : > { %v3220_v62 = vpop.xlane.xlu0 %3219  ;;  %v4296_v3 = vmul.f32 %v11002_v56, %v4168_v16 }
 0x4f1   : > { %7200 = vrcp.f32 %v3220_v62 }
 0x4f2   : > { %v7189_v57 = vpop.eup %7188  ;;  %5838 = vmatpush3.xpose.msk.msra.mxu1 %vm2015_vm0, %v4296_v3  ;;  %7202 = vrcp.f32 %v3777_v19  ;;  %v3723_v29 = vpop.xlane.xlu1 %3722 }
 0x4f3   : > { %v4183_v60 = vsel %vm2014_vm1, %v7189_v57, %v7187_v30  ;;  %v7191_v50 = vpop.eup %7190 }
 0x4f4   : > { %v3265_v41 = vpop.xlane.xlu0 %3264  ;;  %v4311_v23 = vmul.f32 %v11012_v2, %v4183_v60 }
 0x4f5   : > { %7204 = vrcp.f32 %v3265_v41 }
 0x4f6   : > { %v7193_v63 = vpop.eup %7192  ;;  %5839 = vmatprep.subr.msk.mxu1 %vm2015_vm0, %v4311_v23  ;;  %7206 = vrcp.f32 %v3729_v26  ;;  %v3768_v61 = vpop.xlane.xlu1 %3767 }
 0x4f7   : > { %v4167_v56 = vsel %vm2014_vm1, %v7193_v63, %v7191_v50  ;;  %v7195_v28 = vpop.eup %7194 }
 0x4f8   : > { %v3217_v10 = vpop.xlane.xlu0 %3216  ;;  %v4295_v51 = vmul.f32 %v11028_v5, %v4167_v56 }
 0x4f9   : > { %7208 = vrcp.f32 %v3217_v10 }
 0x4fa   : > { %v7197_v58 = vpop.eup %7196  ;;  %5840 = vmatpush3.xpose.msk.msra.mxu1 %vm2015_vm0, %v4295_v51  ;;  %7210 = vrcp.f32 %v3774_v4  ;;  %v3720_v53 = vpop.xlane.xlu1 %3719 }
 0x4fb   : > { %v4182_v2 = vsel %vm2014_vm1, %v7197_v58, %v7195_v28  ;;  %v7199_v38 = vpop.eup %7198 }
 0x4fc   : > { %v3262_v17 = vpop.xlane.xlu0 %3261  ;;  %v4310_v44 = vmul.f32 %v11053_v27, %v4182_v2 }
 0x4fd   : > { %7212 = vrcp.f32 %v3262_v17 }
 0x4fe   : > { %v7201_v22 = vpop.eup %7200  ;;  %5841 = vmatprep.subr.msk.mxu1 %vm2015_vm0, %v4310_v44  ;;  %7214 = vrcp.f32 %v3726_v31  ;;  %v3765_v18 = vpop.xlane.xlu1 %3764 }
 0x4ff   : > { %v4166_v5 = vsel %vm2014_vm1, %v7201_v22, %v7199_v38  ;;  %v7203_v25 = vpop.eup %7202 }
 0x500   : > { %v3214_v55 = vpop.xlane.xlu0 %3213  ;;  %v4294_v15 = vmul.f32 %v11062_v34, %v4166_v5 }
 0x501   : > { %7216 = vrcp.f32 %v3214_v55 }
 0x502   : > { %v7205_v19 = vpop.eup %7204  ;;  %5842 = vmatpush3.xpose.msk.msra.mxu1 %vm2015_vm0, %v4294_v15  ;;  %7218 = vrcp.f32 %v3771_v0  ;;  %v3717_v46 = vpop.xlane.xlu1 %3716 }
 0x503   : > { %v4181_v27 = vsel %vm2014_vm1, %v7205_v19, %v7203_v25  ;;  %v7207_v42 = vpop.eup %7206 }
 0x504   : > { %v3259_v33 = vpop.xlane.xlu0 %3258  ;;  %v4309_v11 = vmul.f32 %v11081_v20, %v4181_v27  ;;  %v7362_v27 = vld [vmem:[%s7762_s19 + $0x170] sm:$0xff] }
 0x505   : > { %7220 = vrcp.f32 %v3259_v33  ;;  %v7363_v33 = vld [vmem:[%s7762_s19 + $0x1e8] sm:$0xff] }
 0x506   : > { %v7209_v21 = vpop.eup %7208  ;;  %5843 = vmatprep.subr.msk.mxu1 %vm2015_vm0, %v4309_v11  ;;  %7222 = vrcp.f32 %v3723_v29  ;;  %v3762_v57 = vpop.xlane.xlu1 %3761  ;;  %v7365_v11 = vld [vmem:[%s7762_s19 + $0x1e0] sm:$0xff] }
 0x507   : > { %v4165_v34 = vsel %vm2014_vm1, %v7209_v21, %v7207_v42  ;;  %v7211_v26 = vpop.eup %7210  ;;  %v7366_v42 = vld [vmem:[%s7762_s19 + $0x160] sm:$0xff]  ;;  %v7367_v21 = vld [vmem:[%s7762_s19 + $0x1d8] sm:$0xff] }
 0x508   : > { %v3211_v52 = vpop.xlane.xlu0 %3210  ;;  %v4293_v32 = vmul.f32 %v11102_v13, %v4165_v34  ;;  %v7368_v34 = vld [vmem:[%s7762_s19 + $0x158] sm:$0xff] }
 0x509   : > { %7224 = vrcp.f32 %v3211_v52  ;;  %v7369_v52 = vld [vmem:[%s7762_s19 + $0x1d0] sm:$0xff] }
 0x50a   : > { %v7213_v1 = vpop.eup %7212  ;;  %5844 = vmatpush3.xpose.msk.msra.mxu1 %vm2015_vm0, %v4293_v32  ;;  %7226 = vrcp.f32 %v3768_v61  ;;  %v3714_v10 = vpop.xlane.xlu1 %3713  ;;  %v7358_v61 = vld [vmem:[%s7762_s19 + $0x1f8] sm:$0xff]  ;;  %v7370_v32 = vld [vmem:[%s7762_s19 + $0x150] sm:$0xff] }
 0x50b   : > { %v4180_v20 = vsel %vm2014_vm1, %v7213_v1, %v7211_v26  ;;  %v7215_v8 = vpop.eup %7214  ;;  %v7371_v26 = vld [vmem:[%s7762_s19 + $0x1c8] sm:$0xff]  ;;  %v7373_v1 = vld [vmem:[%s7762_s19 + $0x1c0] sm:$0xff] }
 0x50c   : > { %v3256_v40 = vpop.xlane.xlu0 %3255  ;;  %v4308_v45 = vmul.f32 %v11112_v39, %v4180_v20  ;;  %v7374_v20 = vld [vmem:[%s7762_s19 + $0x140] sm:$0xff] }
 0x50d   : > { %7228 = vrcp.f32 %v3256_v40  ;;  %v7375_v40 = vld [vmem:[%s7762_s19 + $0x1b8] sm:$0xff] }
 0x50e   : > { %v7217_v14 = vpop.eup %7216  ;;  %5845 = vmatprep.subr.msk.mxu1 %vm2015_vm0, %v4308_v45  ;;  %7230 = vrcp.f32 %v3720_v53  ;;  %v7372_v53 = vld [vmem:[%s7762_s19 + $0x148] sm:$0xff]  ;;  %v7376_v45 = vld [vmem:[%s7762_s19 + $0x138] sm:$0xff] }
 0x50f   : > { %v4164_v13 = vsel %vm2014_vm1, %v7217_v14, %v7215_v8  ;;  %v7219_v48 = vpop.eup %7218  ;;  %v7377_v8 = vld [vmem:[%s7762_s19 + $0x1b0] sm:$0xff]  ;;  %v7379_v14 = vld [vmem:[%s7762_s19 + $0x1a8] sm:$0xff] }
 0x510   : > { %v3208_v59 = vpop.xlane.xlu0 %3207  ;;  %v4292_v54 = vmul.f32 %v11127_v49, %v4164_v13  ;;  %v7380_v13 = vld [vmem:[%s7762_s19 + $0x128] sm:$0xff] }
 0x511   : > { %7232 = vrcp.f32 %v3208_v59  ;;  %v7381_v59 = vld [vmem:[%s7762_s19 + $0x1a0] sm:$0xff] }
 0x512   : > { %v7221_v4 = vpop.eup %7220  ;;  %5846 = vmatpush3.xpose.msk.msra.mxu1 %vm2015_vm0, %v4292_v54  ;;  %7234 = vrcp.f32 %v3765_v18  ;;  %v7378_v18 = vld [vmem:[%s7762_s19 + $0x130] sm:$0xff]  ;;  %v7382_v54 = vld [vmem:[%s7762_s19 + $0x120] sm:$0xff] }
 0x513   : > { %v4179_v39 = vsel %vm2014_vm1, %v7221_v4, %v7219_v48  ;;  %v7223_v3 = vpop.eup %7222  ;;  %v7383_v48 = vld [vmem:[%s7762_s19 + $0x198] sm:$0xff] }
 0x514   : > { %v3253_v16 = vpop.xlane.xlu0 %3252  ;;  %v4307_v62 = vmul.f32 %v11161_v36, %v4179_v39  ;;  %v7384_v4 = vld [vmem:[%s7762_s19 + $0x118] sm:$0xff]  ;;  %v7386_v39 = vld [vmem:[%s7762_s19 + $0x110] sm:$0xff] }
 0x515   : > { %7236 = vrcp.f32 %v3253_v16  ;;  %v7387_v16 = vld [vmem:[%s7762_s19 + $0x188] sm:$0xff] }
 0x516   : > { %v7225_v30 = vpop.eup %7224  ;;  %5847 = vmatprep.subr.msk.mxu1 %vm2015_vm0, %v4307_v62  ;;  %7238 = vrcp.f32 %v3717_v46  ;;  %v7385_v46 = vld [vmem:[%s7762_s19 + $0x190] sm:$0xff]  ;;  %v7388_v62 = vld [vmem:[%s7762_s19 + $0x108] sm:$0xff] }
 0x517   : > { %v4163_v49 = vsel %vm2014_vm1, %v7225_v30, %v7223_v3  ;;  %v7227_v41 = vpop.eup %7226  ;;  %v7389_v3 = vld [vmem:[%s7762_s19 + $0x180] sm:$0xff] }
 0x518   : > { %v3205_v31 = vpop.xlane.xlu0 %3204  ;;  %v4291_v60 = vmul.f32 %v11157_v12, %v4163_v49  ;;  %v7390_v30 = vld [vmem:[%s7762_s19 + $0x100] sm:$0xff]  ;;  %v7392_v49 = vld [vmem:[%s7762_s19 + $0x378] sm:$0xff] }
 0x519   : > { %7240 = vrcp.f32 %v3205_v31  ;;  %v7393_v31 = vld [vmem:[%s7762_s19 + $0x3f0] sm:$0xff] }
 0x51a   : > { %v7229_v23 = vpop.eup %7228  ;;  %5848 = vmatpush3.xpose.msk.msra.mxu1 %vm2015_vm0, %v4291_v60  ;;  %7242 = vrcp.f32 %v3762_v57  ;;  %v7391_v57 = vld [vmem:[%s7762_s19 + $0x3f8] sm:$0xff]  ;;  %v7394_v60 = vld [vmem:[%s7762_s19 + $0x370] sm:$0xff] }
 0x51b   : > { %v4178_v36 = vsel %vm2014_vm1, %v7229_v23, %v7227_v41  ;;  %v7231_v56 = vpop.eup %7230  ;;  %v7395_v41 = vld [vmem:[%s7762_s19 + $0x3e8] sm:$0xff] }
 0x51c   : > { %v3250_v50 = vpop.xlane.xlu0 %3249  ;;  %v4306_v63 = vmul.f32 %v11204_v43, %v4178_v36  ;;  %v7396_v23 = vld [vmem:[%s7762_s19 + $0x368] sm:$0xff]  ;;  %v7397_v36 = vld [vmem:[%s7762_s19 + $0x3e0] sm:$0xff] }
 0x51d   : > { %7244 = vrcp.f32 %v3250_v50  ;;  %v7398_v50 = vld [vmem:[%s7762_s19 + $0x360] sm:$0xff] }
 0x51e   : > { %v7233_v51 = vpop.eup %7232  ;;  %5849 = vmatprep.subr.msk.mxu1 %vm2015_vm0, %v4306_v63  ;;  %7246 = vrcp.f32 %v3714_v10  ;;  %v7399_v63 = vld [vmem:[%s7762_s19 + $0x3d8] sm:$0xff]  ;;  %v7401_v10 = vld [vmem:[%s7762_s19 + $0x3d0] sm:$0xff] }
 0x51f   : > { %v4162_v12 = vsel %vm2014_vm1, %v7233_v51, %v7231_v56  ;;  %v7235_v58 = vpop.eup %7234  ;;  %v7400_v56 = vld [vmem:[%s7762_s19 + $0x358] sm:$0xff]  ;;  %v7402_v51 = vld [vmem:[%s7762_s19 + $0x350] sm:$0xff] }
 0x520   : > { %v3202_v28 = vpop.xlane.xlu0 %3201  ;;  %v4290_v0 = vmul.f32 %v11201_v9, %v4162_v12  ;;  %v7403_v12 = vld [vmem:[%s7762_s19 + $0x3c8] sm:$0xff] }
 0x521   : > { %7248 = vrcp.f32 %v3202_v28  ;;  %v7404_v28 = vld [vmem:[%s7762_s19 + $0x348] sm:$0xff] }
 0x522   : > { %v7237_v2 = vpop.eup %7236  ;;  %5850 = vmatpush3.xpose.msk.msra.mxu1 %vm2015_vm0, %v4290_v0  ;;  %v7405_v0 = vld [vmem:[%s7762_s19 + $0x3c0] sm:$0xff] }
 0x523   : > { %v4177_v43 = vsel %vm2014_vm1, %v7237_v2, %v7235_v58  ;;  %v7239_v44 = vpop.eup %7238  ;;  %v7406_v58 = vld [vmem:[%s7762_s19 + $0x340] sm:$0xff]  ;;  %v7407_v2 = vld [vmem:[%s7762_s19 + $0x3b8] sm:$0xff] }
 0x524   : > { %v4305_v17 = vmul.f32 %v11247_v35, %v4177_v43  ;;  %v7408_v43 = vld [vmem:[%s7762_s19 + $0x338] sm:$0xff] }
 0x526   : > { %v7241_v38 = vpop.eup %7240  ;;  %5851 = vmatprep.subr.msk.mxu1 %vm2015_vm0, %v4305_v17  ;;  %v7409_v17 = vld [vmem:[%s7762_s19 + $0x3b0] sm:$0xff] }
 0x527   : > { %v4161_v22 = vsel %vm2014_vm1, %v7241_v38, %v7239_v44  ;;  %v7243_v29 = vpop.eup %7242  ;;  %v7410_v44 = vld [vmem:[%s7762_s19 + $0x330] sm:$0xff]  ;;  %v7411_v38 = vld [vmem:[%s7762_s19 + $0x3a8] sm:$0xff] }
 0x528   : > { %v4289_v9 = vmul.f32 %v11244_v24, %v4161_v22  ;;  %v7412_v22 = vld [vmem:[%s7762_s19 + $0x328] sm:$0xff] }
 0x52a   : > { %v7245_v5 = vpop.eup %7244  ;;  %5852 = vmatpush3.xpose.msk.msra.mxu1 %vm2015_vm0, %v4289_v9  ;;  %v7413_v9 = vld [vmem:[%s7762_s19 + $0x3a0] sm:$0xff] }
 0x52b   : > { %v4176_v55 = vsel %vm2014_vm1, %v7245_v5, %v7243_v29  ;;  %v7247_v15 = vpop.eup %7246  ;;  %v7414_v29 = vld [vmem:[%s7762_s19 + $0x320] sm:$0xff]  ;;  %v7415_v5 = vld [vmem:[%s7762_s19 + $0x398] sm:$0xff] }
 0x52c   : > { %v4304_v35 = vmul.f32 %v11288_v37, %v4176_v55  ;;  %v7359_v37 = vld [vmem:[%s7762_s19 + $0x178] sm:$0xff] }
 0x52d   : > { %v7416_v55 = vld [vmem:[%s7762_s19 + $0x318] sm:$0xff] }
 0x52e   : > { %v7249_v25 = vpop.eup %7248  ;;  %5853 = vmatprep.subr.msk.mxu1 %vm2015_vm0, %v4304_v35  ;;  %v7417_v35 = vld [vmem:[%s7762_s19 + $0x390] sm:$0xff] }
 0x52f   : > { %v4160_v19 = vsel %vm2014_vm1, %v7249_v25, %v7247_v15  ;;  %v7418_v15 = vld [vmem:[%s7762_s19 + $0x310] sm:$0xff]  ;;  %v7419_v25 = vld [vmem:[%s7762_s19 + $0x388] sm:$0xff] }
 0x530   : > { %v4288_v24 = vmul.f32 %v11285_v7, %v4160_v19  ;;  %v7361_v7 = vld [vmem:[%s7762_s19 + $0x1f0] sm:$0xff]  ;;  %v7420_v19 = vld [vmem:[%s7762_s19 + $0x308] sm:$0xff] }
 0x532   : > { %5854 = vmatpush3.xpose.msk.msra.mxu1 %vm2015_vm0, %v4288_v24  ;;  %v7421_v24 = vld [vmem:[%s7762_s19 + $0x380] sm:$0xff] }
 0x533   : > { %5891 = vmatprep.subr.mxu1 %v7358_v61  ;;  %v7422_v61 = vld [vmem:[%s7762_s19 + $0x300] sm:$0xff] }
 0x535   : > { %5856 = vmatmul.mubr.msk.f32.vlgmr.msra.gmra.mxu1 %vm2015_vm0, %v11434_v47  ;;  %v7364_v47 = vld [vmem:[%s7762_s19 + $0x168] sm:$0xff] }
 0x536   : > { %5892 = vmatpush3.xpose.msra.mxu1 %v7359_v37  ;;  %5923 = vmatprep.mubr.f32.mxu1 %v11589_v6  ;;  %v4775_v37 = vpop.f32.mrf.mxu1 }
 0x537   : > { %5893 = vmatprep.subr.mxu1 %v7361_v7 }
 0x538   : > { %v4777_v7 = vpop.f32.mrf.mxu1 }
 0x53a   : > { %5894 = vmatpush3.xpose.msra.mxu1 %v7362_v27  ;;  %v4846_v27 = vpop.f32.mrf.mxu1 }
 0x53b   : > { %5895 = vmatprep.subr.mxu1 %v7363_v33 }
 0x53c   : > { %v4848_v33 = vpop.f32.mrf.mxu1 }
 0x53e   : > { %5896 = vmatpush3.xpose.msra.mxu1 %v7364_v47 }
 0x53f   : > { %5897 = vmatprep.subr.mxu1 %v7365_v11 }
 0x542   : > { %5898 = vmatpush3.xpose.msra.mxu1 %v7366_v42 }
 0x543   : > { %5899 = vmatprep.subr.mxu1 %v7367_v21  ;;  %v5059_v21 = vpop.f32.mrf.mxu0 }
 0x546   : > { %5900 = vmatpush3.xpose.msra.mxu1 %v7368_v34 }
 0x547   : > { %5901 = vmatprep.subr.mxu1 %v7369_v52 }
 0x54a   : > { %5902 = vmatpush3.xpose.msra.mxu1 %v7370_v32  ;;  %v5061_v32 = vpop.f32.mrf.mxu0 }
 0x54b   : > { %5903 = vmatprep.subr.mxu1 %v7371_v26 }
 0x54c   : > { %v5201_v26 = vpop.f32.mrf.mxu0 }
 0x54e   : > { %5904 = vmatpush3.xpose.msra.mxu1 %v7372_v53 }
 0x54f   : > { %5905 = vmatprep.subr.mxu1 %v7373_v1 }
 0x552   : > { %5906 = vmatpush3.xpose.msra.mxu1 %v7374_v20  ;;  %v5203_v20 = vpop.f32.mrf.mxu0 }
 0x553   : > { %5907 = vmatprep.subr.mxu1 %v7375_v40  ;;  %v5060_v40 = vadd.f32 %v5059_v21, %v4775_v37 }
 0x556   : > { %5908 = vmatpush3.xpose.msra.mxu1 %v7376_v45  ;;  %v5062_v45 = vadd.f32 %v5061_v32, %v4777_v7 }
 0x557   : > { %5909 = vmatprep.subr.mxu1 %v7377_v8  ;;  %v7431_v8 = vmov 1966171168  }
 0x55a   : > { %5910 = vmatpush3.xpose.msra.mxu1 %v7378_v18 }
 0x55b   : > { %5911 = vmatprep.subr.mxu1 %v7379_v14  ;;  %v5278_v14 = vstv %s5277_s7 }
 0x55e   : > { %5912 = vmatpush3.xpose.msra.mxu1 %v7380_v13 }
 0x55f   : > { %5913 = vmatprep.subr.mxu1 %v7381_v59 }
 0x562   : > { %5914 = vmatpush3.xpose.msra.mxu1 %v7382_v54 }
 0x563   : > { %5915 = vmatprep.subr.mxu1 %v7383_v48  ;;  %v12243_v48 = vlaneseq }
 0x566   : > { %5916 = vmatpush3.xpose.msra.mxu1 %v7384_v4  ;;  %v5303_v4 = vshrl.u32 %v12243_v48, 7 }
 0x567   : > { %5917 = vmatprep.subr.mxu1 %v7385_v46  ;;  %v5279_v46 = vadd.f32 %v5278_v14, %v5060_v40 }
 0x56a   : > { %5918 = vmatpush3.xpose.msra.mxu1 %v7386_v39  ;;  %v5280_v39 = vadd.f32 %v5278_v14, %v5062_v45 }
 0x56b   : > { %5919 = vmatprep.subr.mxu1 %v7387_v16 }
 0x56e   : > { %5920 = vmatpush3.xpose.msra.mxu1 %v7388_v62 }
 0x56f   : > { %5921 = vmatprep.subr.mxu1 %v7389_v3 }
 0x572   : > { %5922 = vmatpush3.xpose.msra.mxu1 %v7390_v30 }
 0x573   : > { %5959 = vmatprep.subr.mxu1 %v7391_v57 }
 0x575   : > { %5924 = vmatmul.mubr.f32.vlgmr.msra.gmra.mxu1 %v11589_v6  ;;  %v4917_v47 = vpop.f32.mrf.mxu1 }
 0x576   : > { %5960 = vmatpush3.xpose.msra.mxu1 %v7392_v49  ;;  %5991 = vmatprep.mubr.f32.mxu1 %v11589_v6  ;;  %v5202_v13 = vadd.f32 %v5201_v26, %v4917_v47 }
 0x577   : > { %5961 = vmatprep.subr.mxu1 %v7393_v31  ;;  %v4919_v11 = vpop.f32.mrf.mxu1 }
 0x578   : > { %v5204_v59 = vadd.f32 %v5203_v20, %v4919_v11  ;;  %v5283_v30 = vadd.f32 %v5278_v14, %v5202_v13 }
 0x57a   : > { %5962 = vmatpush3.xpose.msra.mxu1 %v7394_v60  ;;  %v5284_v57 = vadd.f32 %v5278_v14, %v5204_v59 }
 0x57b   : > { %5963 = vmatprep.subr.mxu1 %v7395_v41  ;;  %v5295_v41 = vcombine.low %v5279_v46, %v5280_v39 }
 0x57e   : > { %5964 = vmatpush3.xpose.msra.mxu1 %v7396_v23 }
 0x57f   : > { %5965 = vmatprep.subr.mxu1 %v7397_v36 }
 0x582   : > { %5966 = vmatpush3.xpose.msra.mxu1 %v7398_v50  ;;  %v5297_v50 = vcombine.low %v5283_v30, %v5284_v57 }
 0x583   : > { %5967 = vmatprep.subr.mxu1 %v7399_v63 }
 0x586   : > { %5968 = vmatpush3.xpose.msra.mxu1 %v7400_v56 }
 0x587   : > { %5969 = vmatprep.subr.mxu1 %v7401_v10 }
 0x58a   : > { %5970 = vmatpush3.xpose.msra.mxu1 %v7402_v51 }
 0x58b   : > { %5971 = vmatprep.subr.mxu1 %v7403_v12 }
 0x58e   : > { %5972 = vmatpush3.xpose.msra.mxu1 %v7404_v28 }
 0x58f   : > { %5973 = vmatprep.subr.mxu1 %v7405_v0 }
 0x592   : > { %5974 = vmatpush3.xpose.msra.mxu1 %v7406_v58 }
 0x593   : > { %5975 = vmatprep.subr.mxu1 %v7407_v2 }
 0x596   : > { %5976 = vmatpush3.xpose.msra.mxu1 %v7408_v43 }
 0x597   : > { %5977 = vmatprep.subr.mxu1 %v7409_v17 }
 0x59a   : > { %5978 = vmatpush3.xpose.msra.mxu1 %v7410_v44 }
 0x59b   : > { %5979 = vmatprep.subr.mxu1 %v7411_v38 }
 0x59e   : > { %5980 = vmatpush3.xpose.msra.mxu1 %v7412_v22 }
 0x59f   : > { %5981 = vmatprep.subr.mxu1 %v7413_v9 }
 0x5a2   : > { %5982 = vmatpush3.xpose.msra.mxu1 %v7414_v29 }
 0x5a3   : > { %5983 = vmatprep.subr.mxu1 %v7415_v5 }
 0x5a6   : > { %5984 = vmatpush3.xpose.msra.mxu1 %v7416_v55 }
 0x5a7   : > { %5985 = vmatprep.subr.mxu1 %v7417_v35 }
 0x5aa   : > { %5986 = vmatpush3.xpose.msra.mxu1 %v7418_v15 }
 0x5ab   : > { %5987 = vmatprep.subr.mxu1 %v7419_v25 }
 0x5ae   : > { %5988 = vmatpush3.xpose.msra.mxu1 %v7420_v19 }
 0x5af   : > { %5989 = vmatprep.subr.mxu1 %v7421_v24 }
 0x5b2   : > { %5990 = vmatpush3.xpose.msra.mxu1 %v7422_v61 }
 0x5b5   : > { %5992 = vmatmul.mubr.f32.vlgmr.msra.gmra.mxu1 %v11589_v6  ;;  %v5300_v6 = vunpack.c.l.s4 %v7431_v8 }
 0x5b7   : > { %v5301_v16 = vunpack.c.0.s8 %v5300_v6 }
 0x5b9   : > { %v5304_v23 = vsub.s32 %v5301_v16, %v5303_v4 }
 0x5bb   : > { %v5305_v51 = vrot.slane %v5295_v41, %v5304_v23  ;;  %v5319_v28 = vrot.slane %v5297_v50, %v5304_v23 }
 0x5f5   : > { %v4988_v42 = vpop.f32.mrf.mxu1 }
 0x5f7   : > { %v4990_v34 = vpop.f32.mrf.mxu1 }
 0x635   : > { %v5130_v52 = vpop.f32.mrf.mxu1 }
 0x636   : > { %v5131_v18 = vadd.f32 %v5130_v52, %v4846_v27 }
 0x637   : > { %v5132_v53 = vpop.f32.mrf.mxu1 }
 0x638   : > { %v5133_v1 = vadd.f32 %v5132_v53, %v4848_v33  ;;  %v5281_v62 = vadd.f32 %v5278_v14, %v5131_v18 }
 0x63a   : > { %v5282_v54 = vadd.f32 %v5278_v14, %v5133_v1 }
 0x63c   : > { %v5296_v49 = vcombine.low %v5281_v62, %v5282_v54 }
 0x63e   : > { %v5312_v63 = vrot.slane %v5296_v49, %v5304_v23 }
 0x640   : > { %v5327_v0 = vcombine.low %v5305_v51, %v5312_v63 }
 0x642   : > { %v5335_v43 = vrot.slane %v5327_v0, %v5304_v23 }
 0x675   : > { %v5272_v3 = vpop.f32.mrf.mxu1 }
 0x676   : > { %v5273_v31 = vadd.f32 %v5272_v3, %v4988_v42 }
 0x677   : > { %v5274_v60 = vpop.f32.mrf.mxu1 }
 0x678   : > { %v5275_v36 = vadd.f32 %v5274_v60, %v4990_v34  ;;  %v5285_v56 = vadd.f32 %v5278_v14, %v5273_v31 }
 0x67a   : > { %v5286_v10 = vadd.f32 %v5278_v14, %v5275_v36 }
 0x67c   : > { %v5298_v12 = vcombine.low %v5285_v56, %v5286_v10 }
 0x67e   : > { %v5326_v58 = vrot.slane %v5298_v12, %v5304_v23 }
 0x680   : > { %v5328_v2 = vcombine.low %v5319_v28, %v5326_v58 }
 0x682   : > { %v5342_v17 = vrot.slane %v5328_v2, %v5304_v23 }
 0x684   : > { %v5343_v44 = vcombine.low %v5335_v43, %v5342_v17 }
 0x686   : > { %5345 = vst [vmem:[%s266_s11] sm:$0xff] %v5343_v44 }
 0x687 PF: > { %s18_s23 = sadd.s32 1, %s7429_s23  }
 0x688   : > { %p15_p5 = scmp.ge.s32.totalorder %s18_s23, 4  }
 0x68a   :  { %17 = sbr.rel (!%p15_p5) target bundleno = 2 (0x2), region = 82 }

</bundles_post_ra>
